<compile_context>
chip_gen: v6e
topology: v6e:2x2x1
jax: 0.10.0
libtpu: 0.0.40
codegen_flags: <defaults>
</compile_context>

<pallas_src>
import functools

import jax
import jax.numpy as jnp
from jax import lax
from jax.experimental import pallas as pl
from jax.experimental.pallas import tpu as pltpu

BN_EPS = 1e-5
LANE = 128


def _round_up(x, m):
    return -(-x // m) * m


# --------------------------------------------------------------------------- conv core
def _conv3x3(read_tap, w_ref, col_ref, *, WP, L2, C, fold):
    """3x3 conv on a padded, row-flattened image.

    read_tap(start) -> (L2, C) compute-dtype slice of the padded slab starting at
    flattened padded row `start`; tap (dy, dx) is the contiguous slice starting at
    dy*WP + dx (no strided slicing, no relayout copies).

    fold=True : im2col — fill 9 contiguous lane blocks of col_ref (L2, 9*C) and do
                a single (L2, 9C) @ (9C, Cout) MXU matmul (K = 9*C fills the array,
                removes the 8 f32 accumulator adds).
    fold=False: classic 9 dots + adds, w_ref is (9, C, Cout)  (for Cin already at
                or above the MXU contraction depth).
    """
    if fold:
        for k in range(9):
            dy, dx = k // 3, k % 3
            col_ref[:, k * C:(k + 1) * C] = read_tap(dy * WP + dx)
        return jnp.dot(col_ref[...], w_ref[...],
                       preferred_element_type=jnp.float32)
    cout = w_ref.shape[-1]
    acc = jnp.zeros((L2, cout), jnp.float32)
    for k in range(9):
        dy, dx = k // 3, k % 3
        acc = acc + jnp.dot(read_tap(dy * WP + dx), w_ref[k],
                            preferred_element_type=jnp.float32)
    return acc


# --------------------------------------------------------------------------- kernels
def conv1_stats_kernel(x_ref, w_ref, mask_ref, z_ref, stats_ref, *scratch,
                       WP, L2, C, fold):
    """Pass 1: conv1 on one image + per-image BN partial sums (f32)."""
    col_ref = scratch[0] if fold else None
    z = _conv3x3(lambda s: x_ref[0, s:s + L2, :], w_ref, col_ref,
                 WP=WP, L2=L2, C=C, fold=fold)
    z = z * mask_ref[...]                       # zero the interleaved halo-column rows
    stats_ref[0, 0:1, :] = jnp.sum(z, axis=0, keepdims=True)
    stats_ref[0, 1:2, :] = jnp.sum(z * z, axis=0, keepdims=True)
    z_ref[0] = z.astype(z_ref.dtype)            # inter-pass activation in compute dtype


def bn_relu_conv2_stats_kernel(z1_ref, a_ref, b_ref, w_ref, mask_ref,
                               z2_ref, stats_ref, hpad_ref, *scratch,
                               WP, L2, C, HEADP, R2P, fold):
    """Pass 2: h = relu(bn1(z1)); conv2(h) + per-image BN partial sums."""
    col_ref = scratch[0] if fold else None
    # bn1 as fused scale/shift (global stats from pass 1) + relu; mask keeps the
    # flattened halo-column rows at exactly zero for the conv below.
    h = jnp.maximum(z1_ref[0] * a_ref[...] + b_ref[...], 0.0) * mask_ref[...]

    # Padded conv2 input slab: zero only the halo rows (small), then one contiguous
    # interior-band store starting at an 8-aligned sublane offset (HEADP % 8 == 0).
    cdt = hpad_ref.dtype
    hpad_ref[0:HEADP, :] = jnp.zeros((HEADP, C), cdt)
    hpad_ref[HEADP + L2:R2P, :] = jnp.zeros((R2P - HEADP - L2, C), cdt)
    hpad_ref[HEADP:HEADP + L2, :] = h[:, :C].astype(cdt)

    base = HEADP - (WP + 1)
    z = _conv3x3(lambda s: hpad_ref[base + s:base + s + L2, :], w_ref, col_ref,
                 WP=WP, L2=L2, C=C, fold=fold)
    z = z * mask_ref[...]
    stats_ref[0, 0:1, :] = jnp.sum(z, axis=0, keepdims=True)
    stats_ref[0, 1:2, :] = jnp.sum(z * z, axis=0, keepdims=True)
    z2_ref[0] = z.astype(z2_ref.dtype)


def bn_residual_relu_kernel(z2_ref, a_ref, b_ref, id_ref, out_ref):
    """Pass 3: out = relu(bn2(z2) + identity) (pure bandwidth)."""
    out_ref[0] = jnp.maximum(
        z2_ref[0] * a_ref[...] + b_ref[...] + id_ref[0].astype(jnp.float32),
        0.0).astype(out_ref.dtype)


# --------------------------------------------------------------------------- wrapper
def _bn_scale_shift(partials, count, gamma, beta):
    """Fold global batch statistics into per-channel (scale, shift), f32."""
    s = jnp.sum(partials, axis=0)               # (2, Cpad): [sum, sum of squares]
    mean = s[0] / count
    var = s[1] / count - mean * mean            # biased variance (training-mode BN)
    scale = gamma * lax.rsqrt(var + BN_EPS)
    shift = beta - mean * scale
    return scale.reshape(1, -1), shift.reshape(1, -1)


def _vmem_block_bytes(shape, dtype):
    """VMEM footprint of one block, with (8,128) tile padding on the last two dims."""
    s = list(shape)
    s[-1] = _round_up(s[-1], 128)
    if len(s) >= 2:
        s[-2] = _round_up(s[-2], 8)
    n = 1
    for d in s:
        n *= d
    return n * jnp.dtype(dtype).itemsize


@functools.partial(jax.jit, static_argnames=("compute_dtype", "im2col_max_cin"))
def basic_block_pallas(x_nchw, w1_hwio, w2_hwio, gamma, beta,
                       compute_dtype=jnp.bfloat16, im2col_max_cin=256):
    x = jnp.transpose(x_nchw, (0, 2, 3, 1)).astype(jnp.float32)   # -> NHWC
    N, H, W, C = x.shape
    Cout = w1_hwio.shape[-1]
    assert C == Cout, "BasicBlock with downsample=None requires inplanes == planes"

    Cpad = _round_up(max(C, LANE), LANE)     # lane-dense output-channel dim
    HP, WP = H + 2, W + 2
    R2 = HP * WP + 2                         # padded rows, flattened, +2 tail for taps
    L2 = H * WP                              # conv-output rows kept per image
    HEADP = _round_up(WP + 1, 8)             # 8-aligned interior-band start in hpad
    R2P = HEADP + L2 + WP + 1                # rows needed in the conv2 padded scratch
    fold = C < im2col_max_cin                # im2col threshold (256 v6e/v7x, 128 v5e)
    cdt = compute_dtype

    # Conv1 input: padded, row-flattened, true-C channels, compute dtype.
    xpf = jnp.pad(x, ((0, 0), (1, 1), (1, 1), (0, 0))).reshape(N, HP * WP, C)
    xpf = jnp.pad(xpf, ((0, 0), (0, R2 - HP * WP), (0, 0))).astype(cdt)

    # Residual identity: interior rows only (L2), lane-padded to Cpad, compute dtype.
    ident = jnp.pad(x, ((0, 0), (0, 0), (0, 2), (0, Cpad - C))
                    ).reshape(N, L2, Cpad).astype(cdt)

    # Weights: im2col (9*C, Cpad) or per-tap (9, C, Cpad); Cout zero-padded to Cpad
    # (free MXU columns, lane-dense stores), contraction keeps the TRUE Cin.
    if fold:
        w1f = jnp.pad(w1_hwio.reshape(9 * C, Cout), ((0, 0), (0, Cpad - Cout)))
        w2f = jnp.pad(w2_hwio.reshape(9 * C, Cout), ((0, 0), (0, Cpad - Cout)))
        w_block, w_spec = (9 * C, Cpad), pl.BlockSpec((9 * C, Cpad), lambda i: (0, 0))
    else:
        w1f = jnp.pad(w1_hwio.reshape(9, C, Cout), ((0, 0), (0, 0), (0, Cpad - Cout)))
        w2f = jnp.pad(w2_hwio.reshape(9, C, Cout), ((0, 0), (0, 0), (0, Cpad - Cout)))
        w_block, w_spec = (9, C, Cpad), pl.BlockSpec((9, C, Cpad), lambda i: (0, 0, 0))
    w1f = w1f.astype(cdt)
    w2f = w2f.astype(cdt)

    gamma_p = jnp.pad(gamma.astype(jnp.float32), (0, Cpad - C))
    beta_p = jnp.pad(beta.astype(jnp.float32), (0, Cpad - C))

    # Lane-dense row-validity mask (zero on the interleaved halo-column rows of the
    # flattened layout); constant index_map keeps it resident across grid steps.
    col_x = (jnp.arange(L2, dtype=jnp.int32) + 1) % WP
    mask = jnp.broadcast_to(
        ((col_x >= 1) & (col_x <= W)).astype(jnp.float32)[:, None], (L2, Cpad))

    img_spec = pl.BlockSpec((1, R2, C), lambda i: (i, 0, 0))
    row_spec = pl.BlockSpec((1, L2, Cpad), lambda i: (i, 0, 0))
    mask_spec = pl.BlockSpec((L2, Cpad), lambda i: (0, 0))
    vec_spec = pl.BlockSpec((1, Cpad), lambda i: (0, 0))
    stat_spec = pl.BlockSpec((1, 2, Cpad), lambda i: (i, 0, 0))

    z_shape = jax.ShapeDtypeStruct((N, L2, Cpad), cdt)
    stat_shape = jax.ShapeDtypeStruct((N, 2, Cpad), jnp.float32)
    out_shape = jax.ShapeDtypeStruct((N, L2, Cpad), jnp.float32)

    col_scratch = [pltpu.VMEM((L2, 9 * C), cdt)] if fold else []

    # Honest VMEM budget: 2x (double-buffered) in/out blocks + scratch + headroom,
    # capped under v7x's 64 MiB physical VMEM.
    def pass_bytes(blocks, scratch):
        return (2 * sum(_vmem_block_bytes(s, d) for s, d in blocks)
                + sum(_vmem_block_bytes(s, d) for s, d in scratch))

    col_sc = [((L2, 9 * C), cdt)] if fold else []
    p1 = pass_bytes([((R2, C), cdt), (w_block, cdt), ((L2, Cpad), jnp.float32),
                     ((L2, Cpad), cdt), ((2, Cpad), jnp.float32)], col_sc)
    p2 = pass_bytes([((L2, Cpad), cdt), ((1, Cpad), jnp.float32),
                     ((1, Cpad), jnp.float32), (w_block, cdt),
                     ((L2, Cpad), jnp.float32), ((L2, Cpad), cdt),
                     ((2, Cpad), jnp.float32)], [((R2P, C), cdt)] + col_sc)
    p3 = pass_bytes([((L2, Cpad), cdt), ((1, Cpad), jnp.float32),
                     ((1, Cpad), jnp.float32), ((L2, Cpad), cdt),
                     ((L2, Cpad), jnp.float32)], [])
    vmem_limit = int(min(max(p1, p2, p3) + (16 << 20), 60 << 20))

    cparams = pltpu.CompilerParams(
        dimension_semantics=("parallel",),     # batch axis shards over v7x's 2 TCs
        vmem_limit_bytes=vmem_limit)

    # ---- pass 1: conv1 + BN partial sums -------------------------------------------
    z1, s1 = pl.pallas_call(
        functools.partial(conv1_stats_kernel, WP=WP, L2=L2, C=C, fold=fold),
        grid=(N,),
        in_specs=[img_spec, w_spec, mask_spec],
        out_specs=(row_spec, stat_spec),
        out_shape=(z_shape, stat_shape),
        scratch_shapes=col_scratch,
        compiler_params=cparams,
    )(xpf, w1f, mask)
    a1, b1 = _bn_scale_shift(s1, N * H * W, gamma_p, beta_p)

    # ---- pass 2: bn1 + relu -> conv2 + BN partial sums -------------------------------
    z2, s2 = pl.pallas_call(
        functools.partial(bn_relu_conv2_stats_kernel, WP=WP, L2=L2, C=C,
                          HEADP=HEADP, R2P=R2P, fold=fold),
        grid=(N,),
        in_specs=[row_spec, vec_spec, vec_spec, w_spec, mask_spec],
        out_specs=(row_spec, stat_spec),
        out_shape=(z_shape, stat_shape),
        scratch_shapes=[pltpu.VMEM((R2P, C), cdt)] + col_scratch,
        compiler_params=cparams,
    )(z1, a1, b1, w2f, mask)
    a2, b2 = _bn_scale_shift(s2, N * H * W, gamma_p, beta_p)

    # ---- pass 3: bn2 + residual + relu -----------------------------------------------
    out_pf = pl.pallas_call(
        bn_residual_relu_kernel,
        grid=(N,),
        in_specs=[row_spec, vec_spec, vec_spec, row_spec],
        out_specs=row_spec,
        out_shape=out_shape,
        compiler_params=cparams,
    )(z2, a2, b2, ident)

    # Drop the flattened halo columns / lane padding and return to PyTorch NCHW.
    out_nhwc = out_pf.reshape(N, H, WP, Cpad)[:, :, :W, :C]
    return jnp.transpose(out_nhwc, (0, 3, 1, 2))


# --------------------------------------------------------------------------- reference
def basic_block_reference(x_nchw, w1_hwio, w2_hwio, gamma, beta,
                          conv_dtype=jnp.float32):
    """Pure-JAX reference.  conv_dtype=bfloat16 mirrors the kernel's MXU precision."""
    x = jnp.transpose(x_nchw, (0, 2, 3, 1)).astype(jnp.float32)

    def conv(z, w):
        return lax.conv_general_dilated(
            z.astype(conv_dtype), w.astype(conv_dtype),
            window_strides=(1, 1), padding="SAME",
            dimension_numbers=("NHWC", "HWIO", "NHWC"),
            preferred_element_type=jnp.float32)

    def bn(z):
        mean = jnp.mean(z, axis=(0, 1, 2), keepdims=True)
        var = jnp.mean(z * z, axis=(0, 1, 2), keepdims=True) - mean * mean
        return (z - mean) * lax.rsqrt(var + BN_EPS) * gamma + beta

    h = jnp.maximum(bn(conv(x, w1_hwio)), 0.0)
    y = bn(conv(h, w2_hwio))
    out = jnp.maximum(y + x, 0.0)
    return jnp.transpose(out, (0, 3, 1, 2))


if __name__ == "__main__":
    # Small shapes consistent with BasicBlock(inplanes=16, planes=16, stride=1).
    N, C, H, W = 2, 16, 16, 16

    key = jax.random.PRNGKey(0)
    kx, kw1, kw2, kg, kb = jax.random.split(key, 5)

    x = jax.random.normal(kx, (N, C, H, W), jnp.float32)
    fan_in = 3 * 3 * C
    w1 = jax.random.normal(kw1, (3, 3, C, C), jnp.float32) * (2.0 / fan_in) ** 0.5
    w2 = jax.random.normal(kw2, (3, 3, C, C), jnp.float32) * (2.0 / fan_in) ** 0.5
    gamma = 1.0 + 0.5 * jax.random.normal(kg, (C,), jnp.float32)
    beta = 0.1 * jax.random.normal(kb, (C,), jnp.float32)

    # Exact path: f32 everywhere (intermediates stay f32) vs. the f32 reference.
    out_f32 = jax.block_until_ready(
        basic_block_pallas(x, w1, w2, gamma, beta, compute_dtype=jnp.float32))
    ref_f32 = jax.block_until_ready(basic_block_reference(x, w1, w2, gamma, beta))
    err_f32 = float(jnp.max(jnp.abs(out_f32 - ref_f32)))

    # Fast path: bf16 MXU inputs AND bf16 inter-pass intermediates (f32 accumulation /
    # f32 BN stats) vs. a bf16-conv reference; bf16 rounding of z1/z2/identity
    # propagates through conv2+bn2, so the bound is a few % of the O(1..8) activations.
    out_bf16 = jax.block_until_ready(
        basic_block_pallas(x, w1, w2, gamma, beta, compute_dtype=jnp.bfloat16))
    ref_bf16 = jax.block_until_ready(
        basic_block_reference(x, w1, w2, gamma, beta, conv_dtype=jnp.bfloat16))
    err_bf16 = float(jnp.max(jnp.abs(out_bf16 - ref_bf16)))

    if err_f32 < 1e-3 and err_bf16 < 2e-1:
        print("KERNEL_OK")
    else:
        print(f"MISMATCH err_f32={err_f32} err_bf16={err_bf16}")
</pallas_src>

<mosaic_0001>
module attributes {stable_mosaic.version = 11 : i64} {
  func.func @bn_relu_conv2_stats_kernel(%arg0: i32, %arg1: memref<1x288x128xf32, #tpu.memory_space<vmem>>, %arg2: memref<1x128xf32, #tpu.memory_space<vmem>>, %arg3: memref<1x128xf32, #tpu.memory_space<vmem>>, %arg4: memref<144x128xf32, #tpu.memory_space<vmem>>, %arg5: memref<288x128xf32, #tpu.memory_space<vmem>>, %arg6: memref<1x288x128xf32, #tpu.memory_space<vmem>>, %arg7: memref<1x2x128xf32, #tpu.memory_space<vmem>>, %arg8: memref<331x16xf32, #tpu.memory_space<vmem>>, %arg9: memref<288x144xf32, #tpu.memory_space<vmem>>) attributes {dimension_semantics = [#tpu.dimension_semantics<parallel>], iteration_bounds = array<i64: 2>, scalar_prefetch = 0 : i64, scratch_operands = 2 : i64, tpu.core_type = #tpu.core_type<tc>, window_params = [{transform_indices = @transform_0, window_bounds = array<i64: 1, 288, 128>}, {pipeline_mode = #tpu.pipeline_mode<synchronous>, transform_indices = @transform_1, window_bounds = array<i64: 1, 128>}, {pipeline_mode = #tpu.pipeline_mode<synchronous>, transform_indices = @transform_2, window_bounds = array<i64: 1, 128>}, {pipeline_mode = #tpu.pipeline_mode<synchronous>, transform_indices = @transform_3, window_bounds = array<i64: 144, 128>}, {pipeline_mode = #tpu.pipeline_mode<synchronous>, transform_indices = @transform_4, window_bounds = array<i64: 288, 128>}, {transform_indices = @transform_5, window_bounds = array<i64: 1, 288, 128>}, {transform_indices = @transform_6, window_bounds = array<i64: 1, 2, 128>}]} {
    %c0 = arith.constant 0 : index
    %c0_0 = arith.constant 0 : index
    %c0_1 = arith.constant 0 : index
    %0 = vector.load %arg1[%c0, %c0_0, %c0_1] : memref<1x288x128xf32, #tpu.memory_space<vmem>>, vector<1x288x128xf32>
    %1 = vector.shape_cast %0 : vector<1x288x128xf32> to vector<288x128xf32>
    %c0_2 = arith.constant 0 : index
    %c0_3 = arith.constant 0 : index
    %2 = vector.load %arg2[%c0_2, %c0_3] : memref<1x128xf32, #tpu.memory_space<vmem>>, vector<1x128xf32>
    %3 = vector.broadcast %2 : vector<1x128xf32> to vector<288x128xf32>
    %4 = arith.mulf %1, %3 : vector<288x128xf32>
    %c0_4 = arith.constant 0 : index
    %c0_5 = arith.constant 0 : index
    %5 = vector.load %arg3[%c0_4, %c0_5] : memref<1x128xf32, #tpu.memory_space<vmem>>, vector<1x128xf32>
    %6 = vector.broadcast %5 : vector<1x128xf32> to vector<288x128xf32>
    %7 = arith.addf %4, %6 : vector<288x128xf32>
    %cst = arith.constant 0.000000e+00 : f32
    %8 = vector.broadcast %cst : f32 to vector<288x128xf32>
    %9 = arith.maximumf %7, %8 : vector<288x128xf32>
    %c0_6 = arith.constant 0 : index
    %c0_7 = arith.constant 0 : index
    %10 = vector.load %arg5[%c0_6, %c0_7] : memref<288x128xf32, #tpu.memory_space<vmem>>, vector<288x128xf32>
    %11 = arith.mulf %9, %10 : vector<288x128xf32>
    %cst_8 = arith.constant 0.000000e+00 : f32
    %12 = vector.broadcast %cst_8 : f32 to vector<24x16xf32>
    %c0_9 = arith.constant 0 : index
    %c0_10 = arith.constant 0 : index
    %13 = vector.load %arg8[%c0_9, %c0_10] : memref<331x16xf32, #tpu.memory_space<vmem>>, vector<24x16xf32>
    tpu.vector_store %arg8[%c0_9, %c0_10], %12 {strides = array<i32>} : memref<331x16xf32, #tpu.memory_space<vmem>>, vector<24x16xf32>,
    %cst_11 = arith.constant 0.000000e+00 : f32
    %14 = vector.broadcast %cst_11 : f32 to vector<19x16xf32>
    %c312 = arith.constant 312 : index
    %c0_12 = arith.constant 0 : index
    %15 = vector.load %arg8[%c312, %c0_12] : memref<331x16xf32, #tpu.memory_space<vmem>>, vector<19x16xf32>
    tpu.vector_store %arg8[%c312, %c0_12], %14 {strides = array<i32>} : memref<331x16xf32, #tpu.memory_space<vmem>>, vector<19x16xf32>,
    %16 = vector.extract_strided_slice %11 {offsets = [0, 0], sizes = [288, 16], strides = [1, 1]} : vector<288x128xf32> to vector<288x16xf32>
    %c24 = arith.constant 24 : index
    %c0_13 = arith.constant 0 : index
    %17 = vector.load %arg8[%c24, %c0_13] : memref<331x16xf32, #tpu.memory_space<vmem>>, vector<288x16xf32>
    tpu.vector_store %arg8[%c24, %c0_13], %16 {strides = array<i32>} : memref<331x16xf32, #tpu.memory_space<vmem>>, vector<288x16xf32>,
    %c5 = arith.constant 5 : index
    %c0_14 = arith.constant 0 : index
    %18 = vector.load %arg8[%c5, %c0_14] : memref<331x16xf32, #tpu.memory_space<vmem>>, vector<288x16xf32>
    %c0_15 = arith.constant 0 : index
    %c0_16 = arith.constant 0 : index
    %19 = vector.load %arg9[%c0_15, %c0_16] : memref<288x144xf32, #tpu.memory_space<vmem>>, vector<288x16xf32>
    tpu.vector_store %arg9[%c0_15, %c0_16], %18 {strides = array<i32>} : memref<288x144xf32, #tpu.memory_space<vmem>>, vector<288x16xf32>,
    %c6 = arith.constant 6 : index
    %c0_17 = arith.constant 0 : index
    %20 = vector.load %arg8[%c6, %c0_17] : memref<331x16xf32, #tpu.memory_space<vmem>>, vector<288x16xf32>
    %c0_18 = arith.constant 0 : index
    %c16 = arith.constant 16 : index
    %21 = vector.load %arg9[%c0_18, %c16] : memref<288x144xf32, #tpu.memory_space<vmem>>, vector<288x16xf32>
    tpu.vector_store %arg9[%c0_18, %c16], %20 {strides = array<i32>} : memref<288x144xf32, #tpu.memory_space<vmem>>, vector<288x16xf32>,
    %c7 = arith.constant 7 : index
    %c0_19 = arith.constant 0 : index
    %22 = vector.load %arg8[%c7, %c0_19] : memref<331x16xf32, #tpu.memory_space<vmem>>, vector<288x16xf32>
    %c0_20 = arith.constant 0 : index
    %c32 = arith.constant 32 : index
    %23 = vector.load %arg9[%c0_20, %c32] : memref<288x144xf32, #tpu.memory_space<vmem>>, vector<288x16xf32>
    tpu.vector_store %arg9[%c0_20, %c32], %22 {strides = array<i32>} : memref<288x144xf32, #tpu.memory_space<vmem>>, vector<288x16xf32>,
    %c23 = arith.constant 23 : index
    %c0_21 = arith.constant 0 : index
    %24 = vector.load %arg8[%c23, %c0_21] : memref<331x16xf32, #tpu.memory_space<vmem>>, vector<288x16xf32>
    %c0_22 = arith.constant 0 : index
    %c48 = arith.constant 48 : index
    %25 = vector.load %arg9[%c0_22, %c48] : memref<288x144xf32, #tpu.memory_space<vmem>>, vector<288x16xf32>
    tpu.vector_store %arg9[%c0_22, %c48], %24 {strides = array<i32>} : memref<288x144xf32, #tpu.memory_space<vmem>>, vector<288x16xf32>,
    %c24_23 = arith.constant 24 : index
    %c0_24 = arith.constant 0 : index
    %26 = vector.load %arg8[%c24_23, %c0_24] : memref<331x16xf32, #tpu.memory_space<vmem>>, vector<288x16xf32>
    %c0_25 = arith.constant 0 : index
    %c64 = arith.constant 64 : index
    %27 = vector.load %arg9[%c0_25, %c64] : memref<288x144xf32, #tpu.memory_space<vmem>>, vector<288x16xf32>
    tpu.vector_store %arg9[%c0_25, %c64], %26 {strides = array<i32>} : memref<288x144xf32, #tpu.memory_space<vmem>>, vector<288x16xf32>,
    %c25 = arith.constant 25 : index
    %c0_26 = arith.constant 0 : index
    %28 = vector.load %arg8[%c25, %c0_26] : memref<331x16xf32, #tpu.memory_space<vmem>>, vector<288x16xf32>
    %c0_27 = arith.constant 0 : index
    %c80 = arith.constant 80 : index
    %29 = vector.load %arg9[%c0_27, %c80] : memref<288x144xf32, #tpu.memory_space<vmem>>, vector<288x16xf32>
    tpu.vector_store %arg9[%c0_27, %c80], %28 {strides = array<i32>} : memref<288x144xf32, #tpu.memory_space<vmem>>, vector<288x16xf32>,
    %c41 = arith.constant 41 : index
    %c0_28 = arith.constant 0 : index
    %30 = vector.load %arg8[%c41, %c0_28] : memref<331x16xf32, #tpu.memory_space<vmem>>, vector<288x16xf32>
    %c0_29 = arith.constant 0 : index
    %c96 = arith.constant 96 : index
    %31 = vector.load %arg9[%c0_29, %c96] : memref<288x144xf32, #tpu.memory_space<vmem>>, vector<288x16xf32>
    tpu.vector_store %arg9[%c0_29, %c96], %30 {strides = array<i32>} : memref<288x144xf32, #tpu.memory_space<vmem>>, vector<288x16xf32>,
    %c42 = arith.constant 42 : index
    %c0_30 = arith.constant 0 : index
    %32 = vector.load %arg8[%c42, %c0_30] : memref<331x16xf32, #tpu.memory_space<vmem>>, vector<288x16xf32>
    %c0_31 = arith.constant 0 : index
    %c112 = arith.constant 112 : index
    %33 = vector.load %arg9[%c0_31, %c112] : memref<288x144xf32, #tpu.memory_space<vmem>>, vector<288x16xf32>
    tpu.vector_store %arg9[%c0_31, %c112], %32 {strides = array<i32>} : memref<288x144xf32, #tpu.memory_space<vmem>>, vector<288x16xf32>,
    %c43 = arith.constant 43 : index
    %c0_32 = arith.constant 0 : index
    %34 = vector.load %arg8[%c43, %c0_32] : memref<331x16xf32, #tpu.memory_space<vmem>>, vector<288x16xf32>
    %c0_33 = arith.constant 0 : index
    %c128 = arith.constant 128 : index
    %35 = vector.load %arg9[%c0_33, %c128] : memref<288x144xf32, #tpu.memory_space<vmem>>, vector<288x16xf32>
    tpu.vector_store %arg9[%c0_33, %c128], %34 {strides = array<i32>} : memref<288x144xf32, #tpu.memory_space<vmem>>, vector<288x16xf32>,
    %c0_34 = arith.constant 0 : index
    %c0_35 = arith.constant 0 : index
    %36 = vector.load %arg9[%c0_34, %c0_35] : memref<288x144xf32, #tpu.memory_space<vmem>>, vector<288x144xf32>
    %c0_36 = arith.constant 0 : index
    %c0_37 = arith.constant 0 : index
    %37 = vector.load %arg4[%c0_36, %c0_37] : memref<144x128xf32, #tpu.memory_space<vmem>>, vector<144x128xf32>
    %cst_38 = arith.constant dense<0.000000e+00> : vector<288x128xf32>
    %38 = tpu.matmul %36, %37, %cst_38 {dimension_numbers = #tpu.dot_dimension_numbers<[1], [0], [0], [1], [0, 0, 1, 1], [], []>} : vector<288x144xf32>, vector<144x128xf32>, vector<288x128xf32> -> vector<288x128xf32>
    %c0_39 = arith.constant 0 : index
    %c0_40 = arith.constant 0 : index
    %39 = vector.load %arg5[%c0_39, %c0_40] : memref<288x128xf32, #tpu.memory_space<vmem>>, vector<288x128xf32>
    %40 = arith.mulf %38, %39 : vector<288x128xf32>
    %cst_41 = arith.constant dense<0.000000e+00> : vector<128xf32>
    %41 = vector.multi_reduction <add>, %40, %cst_41 [0] : vector<288x128xf32> to vector<128xf32>
    %42 = vector.shape_cast %41 : vector<128xf32> to vector<1x128xf32>
    %c0_42 = arith.constant 0 : index
    %c0_43 = arith.constant 0 : index
    %c0_44 = arith.constant 0 : index
    %43 = vector.load %arg7[%c0_42, %c0_43, %c0_44] : memref<1x2x128xf32, #tpu.memory_space<vmem>>, vector<1x1x128xf32>
    %44 = vector.shape_cast %43 : vector<1x1x128xf32> to vector<1x128xf32>
    %45 = vector.shape_cast %42 : vector<1x128xf32> to vector<1x1x128xf32>
    tpu.vector_store %arg7[%c0_42, %c0_43, %c0_44], %45 {strides = array<i32>} : memref<1x2x128xf32, #tpu.memory_space<vmem>>, vector<1x1x128xf32>,
    %46 = arith.mulf %40, %40 : vector<288x128xf32>
    %cst_45 = arith.constant dense<0.000000e+00> : vector<128xf32>
    %47 = vector.multi_reduction <add>, %46, %cst_45 [0] : vector<288x128xf32> to vector<128xf32>
    %48 = vector.shape_cast %47 : vector<128xf32> to vector<1x128xf32>
    %c0_46 = arith.constant 0 : index
    %c1 = arith.constant 1 : index
    %c0_47 = arith.constant 0 : index
    %49 = vector.load %arg7[%c0_46, %c1, %c0_47] : memref<1x2x128xf32, #tpu.memory_space<vmem>>, vector<1x1x128xf32>
    %50 = vector.shape_cast %49 : vector<1x1x128xf32> to vector<1x128xf32>
    %51 = vector.shape_cast %48 : vector<1x128xf32> to vector<1x1x128xf32>
    tpu.vector_store %arg7[%c0_46, %c1, %c0_47], %51 {strides = array<i32>} : memref<1x2x128xf32, #tpu.memory_space<vmem>>, vector<1x1x128xf32>,
    %c0_48 = arith.constant 0 : index
    %c0_49 = arith.constant 0 : index
    %c0_50 = arith.constant 0 : index
    %52 = vector.load %arg6[%c0_48, %c0_49, %c0_50] : memref<1x288x128xf32, #tpu.memory_space<vmem>>, vector<1x288x128xf32>
    %53 = vector.shape_cast %52 : vector<1x288x128xf32> to vector<288x128xf32>
    %54 = vector.shape_cast %40 : vector<288x128xf32> to vector<1x288x128xf32>
    tpu.vector_store %arg6[%c0_48, %c0_49, %c0_50], %54 {strides = array<i32>} : memref<1x288x128xf32, #tpu.memory_space<vmem>>, vector<1x288x128xf32>,
    return
  }
  func.func @transform_0(%arg0: i32) -> (i32, i32, i32) {
    %c0_i32 = arith.constant 0 : i32
    %c0_i32_0 = arith.constant 0 : i32
    %c0_i32_1 = arith.constant 0 : i32
    return %arg0, %c0_i32, %c0_i32_0 : i32, i32, i32
  }
  func.func @transform_1(%arg0: i32) -> (i32, i32) {
    %c0_i32 = arith.constant 0 : i32
    %c0_i32_0 = arith.constant 0 : i32
    %c0_i32_1 = arith.constant 0 : i32
    return %c0_i32, %c0_i32_0 : i32, i32
  }
  func.func @transform_2(%arg0: i32) -> (i32, i32) {
    %c0_i32 = arith.constant 0 : i32
    %c0_i32_0 = arith.constant 0 : i32
    %c0_i32_1 = arith.constant 0 : i32
    return %c0_i32, %c0_i32_0 : i32, i32
  }
  func.func @transform_3(%arg0: i32) -> (i32, i32) {
    %c0_i32 = arith.constant 0 : i32
    %c0_i32_0 = arith.constant 0 : i32
    %c0_i32_1 = arith.constant 0 : i32
    return %c0_i32, %c0_i32_0 : i32, i32
  }
  func.func @transform_4(%arg0: i32) -> (i32, i32) {
    %c0_i32 = arith.constant 0 : i32
    %c0_i32_0 = arith.constant 0 : i32
    %c0_i32_1 = arith.constant 0 : i32
    return %c0_i32, %c0_i32_0 : i32, i32
  }
  func.func @transform_5(%arg0: i32) -> (i32, i32, i32) {
    %c0_i32 = arith.constant 0 : i32
    %c0_i32_0 = arith.constant 0 : i32
    %c0_i32_1 = arith.constant 0 : i32
    return %arg0, %c0_i32, %c0_i32_0 : i32, i32, i32
  }
  func.func @transform_6(%arg0: i32) -> (i32, i32, i32) {
    %c0_i32 = arith.constant 0 : i32
    %c0_i32_0 = arith.constant 0 : i32
    %c0_i32_1 = arith.constant 0 : i32
    return %arg0, %c0_i32, %c0_i32_0 : i32, i32, i32
  }
}

module attributes {stable_mosaic.version = 11 : i64} {
  func.func @conv1_stats_kernel(%arg0: i32, %arg1: memref<1x326x16xf32, #tpu.memory_space<vmem>>, %arg2: memref<144x128xf32, #tpu.memory_space<vmem>>, %arg3: memref<288x128xf32, #tpu.memory_space<vmem>>, %arg4: memref<1x288x128xf32, #tpu.memory_space<vmem>>, %arg5: memref<1x2x128xf32, #tpu.memory_space<vmem>>, %arg6: memref<288x144xf32, #tpu.memory_space<vmem>>) attributes {dimension_semantics = [#tpu.dimension_semantics<parallel>], iteration_bounds = array<i64: 2>, scalar_prefetch = 0 : i64, scratch_operands = 1 : i64, tpu.core_type = #tpu.core_type<tc>, window_params = [{transform_indices = @transform_0, window_bounds = array<i64: 1, 326, 16>}, {pipeline_mode = #tpu.pipeline_mode<synchronous>, transform_indices = @transform_1, window_bounds = array<i64: 144, 128>}, {pipeline_mode = #tpu.pipeline_mode<synchronous>, transform_indices = @transform_2, window_bounds = array<i64: 288, 128>}, {transform_indices = @transform_3, window_bounds = array<i64: 1, 288, 128>}, {transform_indices = @transform_4, window_bounds = array<i64: 1, 2, 128>}]} {
    %c0 = arith.constant 0 : index
    %c0_0 = arith.constant 0 : index
    %c0_1 = arith.constant 0 : index
    %0 = vector.load %arg1[%c0, %c0_0, %c0_1] : memref<1x326x16xf32, #tpu.memory_space<vmem>>, vector<1x288x16xf32>
    %1 = vector.shape_cast %0 : vector<1x288x16xf32> to vector<288x16xf32>
    %c0_2 = arith.constant 0 : index
    %c0_3 = arith.constant 0 : index
    %2 = vector.load %arg6[%c0_2, %c0_3] : memref<288x144xf32, #tpu.memory_space<vmem>>, vector<288x16xf32>
    tpu.vector_store %arg6[%c0_2, %c0_3], %1 {strides = array<i32>} : memref<288x144xf32, #tpu.memory_space<vmem>>, vector<288x16xf32>,
    %c0_4 = arith.constant 0 : index
    %c1 = arith.constant 1 : index
    %c0_5 = arith.constant 0 : index
    %3 = vector.load %arg1[%c0_4, %c1, %c0_5] : memref<1x326x16xf32, #tpu.memory_space<vmem>>, vector<1x288x16xf32>
    %4 = vector.shape_cast %3 : vector<1x288x16xf32> to vector<288x16xf32>
    %c0_6 = arith.constant 0 : index
    %c16 = arith.constant 16 : index
    %5 = vector.load %arg6[%c0_6, %c16] : memref<288x144xf32, #tpu.memory_space<vmem>>, vector<288x16xf32>
    tpu.vector_store %arg6[%c0_6, %c16], %4 {strides = array<i32>} : memref<288x144xf32, #tpu.memory_space<vmem>>, vector<288x16xf32>,
    %c0_7 = arith.constant 0 : index
    %c2 = arith.constant 2 : index
    %c0_8 = arith.constant 0 : index
    %6 = vector.load %arg1[%c0_7, %c2, %c0_8] : memref<1x326x16xf32, #tpu.memory_space<vmem>>, vector<1x288x16xf32>
    %7 = vector.shape_cast %6 : vector<1x288x16xf32> to vector<288x16xf32>
    %c0_9 = arith.constant 0 : index
    %c32 = arith.constant 32 : index
    %8 = vector.load %arg6[%c0_9, %c32] : memref<288x144xf32, #tpu.memory_space<vmem>>, vector<288x16xf32>
    tpu.vector_store %arg6[%c0_9, %c32], %7 {strides = array<i32>} : memref<288x144xf32, #tpu.memory_space<vmem>>, vector<288x16xf32>,
    %c0_10 = arith.constant 0 : index
    %c18 = arith.constant 18 : index
    %c0_11 = arith.constant 0 : index
    %9 = vector.load %arg1[%c0_10, %c18, %c0_11] : memref<1x326x16xf32, #tpu.memory_space<vmem>>, vector<1x288x16xf32>
    %10 = vector.shape_cast %9 : vector<1x288x16xf32> to vector<288x16xf32>
    %c0_12 = arith.constant 0 : index
    %c48 = arith.constant 48 : index
    %11 = vector.load %arg6[%c0_12, %c48] : memref<288x144xf32, #tpu.memory_space<vmem>>, vector<288x16xf32>
    tpu.vector_store %arg6[%c0_12, %c48], %10 {strides = array<i32>} : memref<288x144xf32, #tpu.memory_space<vmem>>, vector<288x16xf32>,
    %c0_13 = arith.constant 0 : index
    %c19 = arith.constant 19 : index
    %c0_14 = arith.constant 0 : index
    %12 = vector.load %arg1[%c0_13, %c19, %c0_14] : memref<1x326x16xf32, #tpu.memory_space<vmem>>, vector<1x288x16xf32>
    %13 = vector.shape_cast %12 : vector<1x288x16xf32> to vector<288x16xf32>
    %c0_15 = arith.constant 0 : index
    %c64 = arith.constant 64 : index
    %14 = vector.load %arg6[%c0_15, %c64] : memref<288x144xf32, #tpu.memory_space<vmem>>, vector<288x16xf32>
    tpu.vector_store %arg6[%c0_15, %c64], %13 {strides = array<i32>} : memref<288x144xf32, #tpu.memory_space<vmem>>, vector<288x16xf32>,
    %c0_16 = arith.constant 0 : index
    %c20 = arith.constant 20 : index
    %c0_17 = arith.constant 0 : index
    %15 = vector.load %arg1[%c0_16, %c20, %c0_17] : memref<1x326x16xf32, #tpu.memory_space<vmem>>, vector<1x288x16xf32>
    %16 = vector.shape_cast %15 : vector<1x288x16xf32> to vector<288x16xf32>
    %c0_18 = arith.constant 0 : index
    %c80 = arith.constant 80 : index
    %17 = vector.load %arg6[%c0_18, %c80] : memref<288x144xf32, #tpu.memory_space<vmem>>, vector<288x16xf32>
    tpu.vector_store %arg6[%c0_18, %c80], %16 {strides = array<i32>} : memref<288x144xf32, #tpu.memory_space<vmem>>, vector<288x16xf32>,
    %c0_19 = arith.constant 0 : index
    %c36 = arith.constant 36 : index
    %c0_20 = arith.constant 0 : index
    %18 = vector.load %arg1[%c0_19, %c36, %c0_20] : memref<1x326x16xf32, #tpu.memory_space<vmem>>, vector<1x288x16xf32>
    %19 = vector.shape_cast %18 : vector<1x288x16xf32> to vector<288x16xf32>
    %c0_21 = arith.constant 0 : index
    %c96 = arith.constant 96 : index
    %20 = vector.load %arg6[%c0_21, %c96] : memref<288x144xf32, #tpu.memory_space<vmem>>, vector<288x16xf32>
    tpu.vector_store %arg6[%c0_21, %c96], %19 {strides = array<i32>} : memref<288x144xf32, #tpu.memory_space<vmem>>, vector<288x16xf32>,
    %c0_22 = arith.constant 0 : index
    %c37 = arith.constant 37 : index
    %c0_23 = arith.constant 0 : index
    %21 = vector.load %arg1[%c0_22, %c37, %c0_23] : memref<1x326x16xf32, #tpu.memory_space<vmem>>, vector<1x288x16xf32>
    %22 = vector.shape_cast %21 : vector<1x288x16xf32> to vector<288x16xf32>
    %c0_24 = arith.constant 0 : index
    %c112 = arith.constant 112 : index
    %23 = vector.load %arg6[%c0_24, %c112] : memref<288x144xf32, #tpu.memory_space<vmem>>, vector<288x16xf32>
    tpu.vector_store %arg6[%c0_24, %c112], %22 {strides = array<i32>} : memref<288x144xf32, #tpu.memory_space<vmem>>, vector<288x16xf32>,
    %c0_25 = arith.constant 0 : index
    %c38 = arith.constant 38 : index
    %c0_26 = arith.constant 0 : index
    %24 = vector.load %arg1[%c0_25, %c38, %c0_26] : memref<1x326x16xf32, #tpu.memory_space<vmem>>, vector<1x288x16xf32>
    %25 = vector.shape_cast %24 : vector<1x288x16xf32> to vector<288x16xf32>
    %c0_27 = arith.constant 0 : index
    %c128 = arith.constant 128 : index
    %26 = vector.load %arg6[%c0_27, %c128] : memref<288x144xf32, #tpu.memory_space<vmem>>, vector<288x16xf32>
    tpu.vector_store %arg6[%c0_27, %c128], %25 {strides = array<i32>} : memref<288x144xf32, #tpu.memory_space<vmem>>, vector<288x16xf32>,
    %c0_28 = arith.constant 0 : index
    %c0_29 = arith.constant 0 : index
    %27 = vector.load %arg6[%c0_28, %c0_29] : memref<288x144xf32, #tpu.memory_space<vmem>>, vector<288x144xf32>
    %c0_30 = arith.constant 0 : index
    %c0_31 = arith.constant 0 : index
    %28 = vector.load %arg2[%c0_30, %c0_31] : memref<144x128xf32, #tpu.memory_space<vmem>>, vector<144x128xf32>
    %cst = arith.constant dense<0.000000e+00> : vector<288x128xf32>
    %29 = tpu.matmul %27, %28, %cst {dimension_numbers = #tpu.dot_dimension_numbers<[1], [0], [0], [1], [0, 0, 1, 1], [], []>} : vector<288x144xf32>, vector<144x128xf32>, vector<288x128xf32> -> vector<288x128xf32>
    %c0_32 = arith.constant 0 : index
    %c0_33 = arith.constant 0 : index
    %30 = vector.load %arg3[%c0_32, %c0_33] : memref<288x128xf32, #tpu.memory_space<vmem>>, vector<288x128xf32>
    %31 = arith.mulf %29, %30 : vector<288x128xf32>
    %cst_34 = arith.constant dense<0.000000e+00> : vector<128xf32>
    %32 = vector.multi_reduction <add>, %31, %cst_34 [0] : vector<288x128xf32> to vector<128xf32>
    %33 = vector.shape_cast %32 : vector<128xf32> to vector<1x128xf32>
    %c0_35 = arith.constant 0 : index
    %c0_36 = arith.constant 0 : index
    %c0_37 = arith.constant 0 : index
    %34 = vector.load %arg5[%c0_35, %c0_36, %c0_37] : memref<1x2x128xf32, #tpu.memory_space<vmem>>, vector<1x1x128xf32>
    %35 = vector.shape_cast %34 : vector<1x1x128xf32> to vector<1x128xf32>
    %36 = vector.shape_cast %33 : vector<1x128xf32> to vector<1x1x128xf32>
    tpu.vector_store %arg5[%c0_35, %c0_36, %c0_37], %36 {strides = array<i32>} : memref<1x2x128xf32, #tpu.memory_space<vmem>>, vector<1x1x128xf32>,
    %37 = arith.mulf %31, %31 : vector<288x128xf32>
    %cst_38 = arith.constant dense<0.000000e+00> : vector<128xf32>
    %38 = vector.multi_reduction <add>, %37, %cst_38 [0] : vector<288x128xf32> to vector<128xf32>
    %39 = vector.shape_cast %38 : vector<128xf32> to vector<1x128xf32>
    %c0_39 = arith.constant 0 : index
    %c1_40 = arith.constant 1 : index
    %c0_41 = arith.constant 0 : index
    %40 = vector.load %arg5[%c0_39, %c1_40, %c0_41] : memref<1x2x128xf32, #tpu.memory_space<vmem>>, vector<1x1x128xf32>
    %41 = vector.shape_cast %40 : vector<1x1x128xf32> to vector<1x128xf32>
    %42 = vector.shape_cast %39 : vector<1x128xf32> to vector<1x1x128xf32>
    tpu.vector_store %arg5[%c0_39, %c1_40, %c0_41], %42 {strides = array<i32>} : memref<1x2x128xf32, #tpu.memory_space<vmem>>, vector<1x1x128xf32>,
    %c0_42 = arith.constant 0 : index
    %c0_43 = arith.constant 0 : index
    %c0_44 = arith.constant 0 : index
    %43 = vector.load %arg4[%c0_42, %c0_43, %c0_44] : memref<1x288x128xf32, #tpu.memory_space<vmem>>, vector<1x288x128xf32>
    %44 = vector.shape_cast %43 : vector<1x288x128xf32> to vector<288x128xf32>
    %45 = vector.shape_cast %31 : vector<288x128xf32> to vector<1x288x128xf32>
    tpu.vector_store %arg4[%c0_42, %c0_43, %c0_44], %45 {strides = array<i32>} : memref<1x288x128xf32, #tpu.memory_space<vmem>>, vector<1x288x128xf32>,
    return
  }
  func.func @transform_0(%arg0: i32) -> (i32, i32, i32) {
    %c0_i32 = arith.constant 0 : i32
    %c0_i32_0 = arith.constant 0 : i32
    %c0_i32_1 = arith.constant 0 : i32
    return %arg0, %c0_i32, %c0_i32_0 : i32, i32, i32
  }
  func.func @transform_1(%arg0: i32) -> (i32, i32) {
    %c0_i32 = arith.constant 0 : i32
    %c0_i32_0 = arith.constant 0 : i32
    %c0_i32_1 = arith.constant 0 : i32
    return %c0_i32, %c0_i32_0 : i32, i32
  }
  func.func @transform_2(%arg0: i32) -> (i32, i32) {
    %c0_i32 = arith.constant 0 : i32
    %c0_i32_0 = arith.constant 0 : i32
    %c0_i32_1 = arith.constant 0 : i32
    return %c0_i32, %c0_i32_0 : i32, i32
  }
  func.func @transform_3(%arg0: i32) -> (i32, i32, i32) {
    %c0_i32 = arith.constant 0 : i32
    %c0_i32_0 = arith.constant 0 : i32
    %c0_i32_1 = arith.constant 0 : i32
    return %arg0, %c0_i32, %c0_i32_0 : i32, i32, i32
  }
  func.func @transform_4(%arg0: i32) -> (i32, i32, i32) {
    %c0_i32 = arith.constant 0 : i32
    %c0_i32_0 = arith.constant 0 : i32
    %c0_i32_1 = arith.constant 0 : i32
    return %arg0, %c0_i32, %c0_i32_0 : i32, i32, i32
  }
}

module attributes {stable_mosaic.version = 11 : i64} {
  func.func @bn_residual_relu_kernel(%arg0: i32, %arg1: memref<1x288x128xf32, #tpu.memory_space<vmem>>, %arg2: memref<1x128xf32, #tpu.memory_space<vmem>>, %arg3: memref<1x128xf32, #tpu.memory_space<vmem>>, %arg4: memref<1x288x128xf32, #tpu.memory_space<vmem>>, %arg5: memref<1x288x128xf32, #tpu.memory_space<vmem>>) attributes {dimension_semantics = [#tpu.dimension_semantics<parallel>], iteration_bounds = array<i64: 2>, scalar_prefetch = 0 : i64, scratch_operands = 0 : i64, tpu.core_type = #tpu.core_type<tc>, window_params = [{transform_indices = @transform_0, window_bounds = array<i64: 1, 288, 128>}, {pipeline_mode = #tpu.pipeline_mode<synchronous>, transform_indices = @transform_1, window_bounds = array<i64: 1, 128>}, {pipeline_mode = #tpu.pipeline_mode<synchronous>, transform_indices = @transform_2, window_bounds = array<i64: 1, 128>}, {transform_indices = @transform_3, window_bounds = array<i64: 1, 288, 128>}, {transform_indices = @transform_4, window_bounds = array<i64: 1, 288, 128>}]} {
    %c0 = arith.constant 0 : index
    %c0_0 = arith.constant 0 : index
    %c0_1 = arith.constant 0 : index
    %0 = vector.load %arg1[%c0, %c0_0, %c0_1] : memref<1x288x128xf32, #tpu.memory_space<vmem>>, vector<1x288x128xf32>
    %1 = vector.shape_cast %0 : vector<1x288x128xf32> to vector<288x128xf32>
    %c0_2 = arith.constant 0 : index
    %c0_3 = arith.constant 0 : index
    %2 = vector.load %arg2[%c0_2, %c0_3] : memref<1x128xf32, #tpu.memory_space<vmem>>, vector<1x128xf32>
    %3 = vector.broadcast %2 : vector<1x128xf32> to vector<288x128xf32>
    %4 = arith.mulf %1, %3 : vector<288x128xf32>
    %c0_4 = arith.constant 0 : index
    %c0_5 = arith.constant 0 : index
    %5 = vector.load %arg3[%c0_4, %c0_5] : memref<1x128xf32, #tpu.memory_space<vmem>>, vector<1x128xf32>
    %6 = vector.broadcast %5 : vector<1x128xf32> to vector<288x128xf32>
    %7 = arith.addf %4, %6 : vector<288x128xf32>
    %c0_6 = arith.constant 0 : index
    %c0_7 = arith.constant 0 : index
    %c0_8 = arith.constant 0 : index
    %8 = vector.load %arg4[%c0_6, %c0_7, %c0_8] : memref<1x288x128xf32, #tpu.memory_space<vmem>>, vector<1x288x128xf32>
    %9 = vector.shape_cast %8 : vector<1x288x128xf32> to vector<288x128xf32>
    %10 = arith.addf %7, %9 : vector<288x128xf32>
    %cst = arith.constant 0.000000e+00 : f32
    %11 = vector.broadcast %cst : f32 to vector<288x128xf32>
    %12 = arith.maximumf %10, %11 : vector<288x128xf32>
    %c0_9 = arith.constant 0 : index
    %c0_10 = arith.constant 0 : index
    %c0_11 = arith.constant 0 : index
    %13 = vector.load %arg5[%c0_9, %c0_10, %c0_11] : memref<1x288x128xf32, #tpu.memory_space<vmem>>, vector<1x288x128xf32>
    %14 = vector.shape_cast %13 : vector<1x288x128xf32> to vector<288x128xf32>
    %15 = vector.shape_cast %12 : vector<288x128xf32> to vector<1x288x128xf32>
    tpu.vector_store %arg5[%c0_9, %c0_10, %c0_11], %15 {strides = array<i32>} : memref<1x288x128xf32, #tpu.memory_space<vmem>>, vector<1x288x128xf32>,
    return
  }
  func.func @transform_0(%arg0: i32) -> (i32, i32, i32) {
    %c0_i32 = arith.constant 0 : i32
    %c0_i32_0 = arith.constant 0 : i32
    %c0_i32_1 = arith.constant 0 : i32
    return %arg0, %c0_i32, %c0_i32_0 : i32, i32, i32
  }
  func.func @transform_1(%arg0: i32) -> (i32, i32) {
    %c0_i32 = arith.constant 0 : i32
    %c0_i32_0 = arith.constant 0 : i32
    %c0_i32_1 = arith.constant 0 : i32
    return %c0_i32, %c0_i32_0 : i32, i32
  }
  func.func @transform_2(%arg0: i32) -> (i32, i32) {
    %c0_i32 = arith.constant 0 : i32
    %c0_i32_0 = arith.constant 0 : i32
    %c0_i32_1 = arith.constant 0 : i32
    return %c0_i32, %c0_i32_0 : i32, i32
  }
  func.func @transform_3(%arg0: i32) -> (i32, i32, i32) {
    %c0_i32 = arith.constant 0 : i32
    %c0_i32_0 = arith.constant 0 : i32
    %c0_i32_1 = arith.constant 0 : i32
    return %arg0, %c0_i32, %c0_i32_0 : i32, i32, i32
  }
  func.func @transform_4(%arg0: i32) -> (i32, i32, i32) {
    %c0_i32 = arith.constant 0 : i32
    %c0_i32_0 = arith.constant 0 : i32
    %c0_i32_1 = arith.constant 0 : i32
    return %arg0, %c0_i32, %c0_i32_0 : i32, i32, i32
  }
}

</mosaic_0001>

<bundles_post_ra>
// kernel: basic_block_pallas.5
= control target key start
LH: loop header
LB: loop body
LE: loop exit
PB: predicated region body
PF: predicated region fallthrough
CT: control target
= control target key end

     0   :  { %s605_s15 = smov 0   ;;  %s826_s0 = inlined_call_operand.vmem [shape: f32[2,288,128], index: 0, kind: input, shape index: {}]   ;;  %s827_s1 = inlined_call_operand.vmem [shape: f32[1,128], index: 1, kind: input, shape index: {}]   ;;  %s828_s2 = inlined_call_operand.vmem [shape: f32[1,128], index: 2, kind: input, shape index: {}]   ;;  %s829_s3 = inlined_call_operand.vmem [shape: f32[2,288,128], index: 3, kind: input, shape index: {}]   ;;  %s830_s4 = inlined_call_operand.vmem [shape: f32[2,288,128], index: 4, kind: output, shape index: {}]  }
   0x1 LB: > { %s551_s16 = sadd.s32 4294967295, %s578_s15   ;;  %p555_p0 = scmp.ge.s32.totalorder %s578_s15, 1  ;;  %s578_s15 = sphi %s605_s15, %s14_s15  }
   0x2   : > { %p172_p1 = scmp.lt.s32.totalorder %s578_s15, 3 }
   0x4   : > { %p173_p2 = pnand %p555_p0, %p172_p1 }
   0x5   : > { %p203_p3 = scmp.lt.s32.totalorder (!%p173_p2), %s551_s16, 1 }
   0x6   : > { %176 = sbr.rel (%p173_p2) target bundleno = 58 (0x3a), region = 36 }
   0xb   : > { %s832_s16 = smov (!%p203_p3, %s551_s16), 1  ;;  %v618_v0 = vld [vmem:[%s827_s1] ss:$0 sm:$0xff] }
   0xc   : > { %s613_s17 = smul.u32 288, %s832_s16  ;;  %v636_v2 = vld [vmem:[%s828_s2] ss:$0 sm:$0xff] }
   0xe   : > { %s624_s22 = scalar_lea.vmem %s826_s0, %s613_s17  ;;  %s630_s25 = scalar_lea.vmem %s829_s3, %s613_s17 }
   0xf   : > { %v218_v1 = vld [vmem:[%s624_s22] sm:$0xff]  ;;  %v219_v3 = vld [vmem:[%s624_s22 + $0x8] sm:$0xff]  ;;  %v220_v7 = vld [vmem:[%s624_s22 + $0x10] sm:$0xff]  ;;  %s666_s30 = scalar_lea.vmem %s830_s4, %s613_s17 }
  0x10   : > { %v261_v4 = vmul.f32 %v618_v0, %v218_v1  ;;  %v340_v5 = vld [vmem:[%s630_s25] sm:$0xff]  ;;  %v262_v6 = vmul.f32 %v618_v0, %v219_v3  ;;  %v341_v8 = vld [vmem:[%s630_s25 + $0x8] sm:$0xff]  ;;  %v263_v9 = vmul.f32 %v618_v0, %v220_v7  ;;  %v221_v10 = vld [vmem:[%s624_s22 + $0x18] sm:$0xff] }
  0x11   : > { %v222_v11 = vld [vmem:[%s624_s22 + $0x20] sm:$0xff]  ;;  %v342_v14 = vld [vmem:[%s630_s25 + $0x10] sm:$0xff]  ;;  %v264_v15 = vmul.f32 %v618_v0, %v221_v10  ;;  %v343_v16 = vld [vmem:[%s630_s25 + $0x18] sm:$0xff] }
  0x12   : > { %v304_v12 = vadd.f32 %v636_v2, %v261_v4  ;;  %v305_v13 = vadd.f32 %v636_v2, %v262_v6  ;;  %v265_v17 = vmul.f32 %v618_v0, %v222_v11  ;;  %v223_v18 = vld [vmem:[%s624_s22 + $0x28] sm:$0xff]  ;;  %v306_v19 = vadd.f32 %v636_v2, %v263_v9  ;;  %v344_v20 = vld [vmem:[%s630_s25 + $0x20] sm:$0xff]  ;;  %v224_v22 = vld [vmem:[%s624_s22 + $0x30] sm:$0xff] }
  0x13   : > { %v266_v21 = vmul.f32 %v618_v0, %v223_v18  ;;  %v225_v23 = vld [vmem:[%s624_s22 + $0x38] sm:$0xff]  ;;  %v307_v26 = vadd.f32 %v636_v2, %v264_v15  ;;  %v345_v28 = vld [vmem:[%s630_s25 + $0x28] sm:$0xff]  ;;  %v267_v31 = vmul.f32 %v618_v0, %v224_v22  ;;  %v226_v33 = vld [vmem:[%s624_s22 + $0x40] sm:$0xff] }
  0x14   : > { %v376_v24 = vadd.f32 %v340_v5, %v304_v12  ;;  %v377_v25 = vadd.f32 %v341_v8, %v305_v13  ;;  %v308_v27 = vadd.f32 %v636_v2, %v265_v17  ;;  %v378_v29 = vadd.f32 %v342_v14, %v306_v19  ;;  %v227_v34 = vld [vmem:[%s624_s22 + $0x48] sm:$0xff]  ;;  %v346_v39 = vld [vmem:[%s630_s25 + $0x30] sm:$0xff]  ;;  %v347_v40 = vld [vmem:[%s630_s25 + $0x38] sm:$0xff] }
  0x15   : > { %v309_v30 = vadd.f32 %v636_v2, %v266_v21  ;;  %v268_v32 = vmul.f32 %v618_v0, %v225_v23  ;;  %v379_v37 = vadd.f32 %v343_v16, %v307_v26  ;;  %v228_v41 = vld [vmem:[%s624_s22 + $0x50] sm:$0xff]  ;;  %v310_v44 = vadd.f32 %v636_v2, %v267_v31  ;;  %v229_v46 = vld [vmem:[%s624_s22 + $0x58] sm:$0xff]  ;;  %v230_v47 = vld [vmem:[%s624_s22 + $0x60] sm:$0xff] }
  0x16   : > { %v412_v35 = vmax.f32 %v376_v24, 0.0  ;;  %v413_v36 = vmax.f32 %v377_v25, 0.0  ;;  %v380_v38 = vadd.f32 %v344_v20, %v308_v27  ;;  %v414_v42 = vmax.f32 %v378_v29, 0.0  ;;  %v231_v52 = vld [vmem:[%s624_s22 + $0x68] sm:$0xff]  ;;  %v348_v56 = vld [vmem:[%s630_s25 + $0x40] sm:$0xff]  ;;  %v350_v61 = vld [vmem:[%s630_s25 + $0x50] sm:$0xff] }
  0x17   : > { %v381_v43 = vadd.f32 %v345_v28, %v309_v30  ;;  %v311_v45 = vadd.f32 %v636_v2, %v268_v32  ;;  %v415_v48 = vmax.f32 %v379_v37, 0.0  ;;  %v269_v50 = vmul.f32 %v618_v0, %v226_v33  ;;  %v349_v57 = vld [vmem:[%s630_s25 + $0x48] sm:$0xff]  ;;  %v232_v1 = vld [vmem:[%s624_s22 + $0x70] sm:$0xff]  ;;  %v233_v3 = vld [vmem:[%s624_s22 + $0x78] sm:$0xff] }
  0x18   : > { %448 = vst [vmem:[%s666_s30] sm:$0xff] %v412_v35  ;;  %449 = vst [vmem:[%s666_s30 + $0x8] sm:$0xff] %v413_v36  ;;  %v416_v49 = vmax.f32 %v380_v38, 0.0  ;;  %v270_v51 = vmul.f32 %v618_v0, %v227_v34  ;;  %v382_v54 = vadd.f32 %v346_v39, %v310_v44  ;;  %v271_v58 = vmul.f32 %v618_v0, %v228_v41  ;;  %v351_v7 = vld [vmem:[%s630_s25 + $0x58] sm:$0xff]  ;;  %v352_v8 = vld [vmem:[%s630_s25 + $0x60] sm:$0xff] }
  0x19   : > { %450 = vst [vmem:[%s666_s30 + $0x10] sm:$0xff] %v414_v42  ;;  %v417_v53 = vmax.f32 %v381_v43, 0.0  ;;  %v383_v55 = vadd.f32 %v347_v40, %v311_v45  ;;  %451 = vst [vmem:[%s666_s30 + $0x18] sm:$0xff] %v415_v48  ;;  %v312_v59 = vadd.f32 %v636_v2, %v269_v50  ;;  %v272_v62 = vmul.f32 %v618_v0, %v229_v46  ;;  %v353_v14 = vld [vmem:[%s630_s25 + $0x68] sm:$0xff]  ;;  %v234_v19 = vld [vmem:[%s624_s22 + $0x80] sm:$0xff] }
  0x1a   : > { %452 = vst [vmem:[%s666_s30 + $0x20] sm:$0xff] %v416_v49  ;;  %v313_v60 = vadd.f32 %v636_v2, %v270_v51  ;;  %v273_v63 = vmul.f32 %v618_v0, %v230_v47  ;;  %v418_v4 = vmax.f32 %v382_v54, 0.0  ;;  %v314_v6 = vadd.f32 %v636_v2, %v271_v58  ;;  %v235_v20 = vld [vmem:[%s624_s22 + $0x88] sm:$0xff]  ;;  %v354_v25 = vld [vmem:[%s630_s25 + $0x70] sm:$0xff]  ;;  %v355_v26 = vld [vmem:[%s630_s25 + $0x78] sm:$0xff] }
  0x1b   : > { %453 = vst [vmem:[%s666_s30 + $0x28] sm:$0xff] %v417_v53  ;;  %v419_v5 = vmax.f32 %v383_v55, 0.0  ;;  %v274_v9 = vmul.f32 %v618_v0, %v231_v52  ;;  %v384_v10 = vadd.f32 %v348_v56, %v312_v59  ;;  %v315_v12 = vadd.f32 %v636_v2, %v272_v62  ;;  %v236_v27 = vld [vmem:[%s624_s22 + $0x90] sm:$0xff]  ;;  %v237_v32 = vld [vmem:[%s624_s22 + $0x98] sm:$0xff]  ;;  %v238_v33 = vld [vmem:[%s624_s22 + $0xa0] sm:$0xff] }
  0x1c   : > { %v385_v11 = vadd.f32 %v349_v57, %v313_v60  ;;  %v316_v13 = vadd.f32 %v636_v2, %v273_v63  ;;  %454 = vst [vmem:[%s666_s30 + $0x30] sm:$0xff] %v418_v4  ;;  %v386_v15 = vadd.f32 %v350_v61, %v314_v6  ;;  %v275_v17 = vmul.f32 %v618_v0, %v232_v1  ;;  %v239_v38 = vld [vmem:[%s624_s22 + $0xa8] sm:$0xff]  ;;  %v356_v42 = vld [vmem:[%s630_s25 + $0x80] sm:$0xff]  ;;  %v358_v47 = vld [vmem:[%s630_s25 + $0x90] sm:$0xff] }
  0x1d   : > { %455 = vst [vmem:[%s666_s30 + $0x38] sm:$0xff] %v419_v5  ;;  %v317_v16 = vadd.f32 %v636_v2, %v274_v9  ;;  %v276_v18 = vmul.f32 %v618_v0, %v233_v3  ;;  %v420_v21 = vmax.f32 %v384_v10, 0.0  ;;  %v387_v23 = vadd.f32 %v351_v7, %v315_v12  ;;  %v357_v43 = vld [vmem:[%s630_s25 + $0x88] sm:$0xff]  ;;  %v240_v50 = vld [vmem:[%s624_s22 + $0xb0] sm:$0xff]  ;;  %v241_v51 = vld [vmem:[%s624_s22 + $0xb8] sm:$0xff] }
  0x1e   : > { %v421_v22 = vmax.f32 %v385_v11, 0.0  ;;  %v388_v24 = vadd.f32 %v352_v8, %v316_v13  ;;  %v422_v28 = vmax.f32 %v386_v15, 0.0  ;;  %v318_v30 = vadd.f32 %v636_v2, %v275_v17  ;;  %v359_v55 = vld [vmem:[%s630_s25 + $0x98] sm:$0xff]  ;;  %v360_v56 = vld [vmem:[%s630_s25 + $0xa0] sm:$0xff]  ;;  %v361_v62 = vld [vmem:[%s630_s25 + $0xa8] sm:$0xff] }
  0x1f   : > { %v389_v29 = vadd.f32 %v353_v14, %v317_v16  ;;  %v319_v31 = vadd.f32 %v636_v2, %v276_v18  ;;  %456 = vst [vmem:[%s666_s30 + $0x40] sm:$0xff] %v420_v21  ;;  %v423_v34 = vmax.f32 %v387_v23, 0.0  ;;  %v277_v36 = vmul.f32 %v618_v0, %v234_v19  ;;  %v242_v5 = vld [vmem:[%s624_s22 + $0xc0] sm:$0xff]  ;;  %v243_v6 = vld [vmem:[%s624_s22 + $0xc8] sm:$0xff]  ;;  %v362_v11 = vld [vmem:[%s630_s25 + $0xb0] sm:$0xff] }
  0x20   : > { %457 = vst [vmem:[%s666_s30 + $0x48] sm:$0xff] %v421_v22  ;;  %v424_v35 = vmax.f32 %v388_v24, 0.0  ;;  %v278_v37 = vmul.f32 %v618_v0, %v235_v20  ;;  %458 = vst [vmem:[%s666_s30 + $0x50] sm:$0xff] %v422_v28  ;;  %v390_v40 = vadd.f32 %v354_v25, %v318_v30  ;;  %v279_v44 = vmul.f32 %v618_v0, %v236_v27  ;;  %v363_v12 = vld [vmem:[%s630_s25 + $0xb8] sm:$0xff]  ;;  %v244_v13 = vld [vmem:[%s624_s22 + $0xd0] sm:$0xff] }
  0x21   : > { %v425_v39 = vmax.f32 %v389_v29, 0.0  ;;  %v391_v41 = vadd.f32 %v355_v26, %v319_v31  ;;  %459 = vst [vmem:[%s666_s30 + $0x58] sm:$0xff] %v423_v34  ;;  %v320_v45 = vadd.f32 %v636_v2, %v277_v36  ;;  %v280_v48 = vmul.f32 %v618_v0, %v237_v32  ;;  %v245_v18 = vld [vmem:[%s624_s22 + $0xd8] sm:$0xff]  ;;  %v246_v19 = vld [vmem:[%s624_s22 + $0xe0] sm:$0xff]  ;;  %v247_v24 = vld [vmem:[%s624_s22 + $0xe8] sm:$0xff] }
  0x22   : > { %460 = vst [vmem:[%s666_s30 + $0x60] sm:$0xff] %v424_v35  ;;  %v321_v46 = vadd.f32 %v636_v2, %v278_v37  ;;  %v281_v49 = vmul.f32 %v618_v0, %v238_v33  ;;  %v426_v52 = vmax.f32 %v390_v40, 0.0  ;;  %v322_v54 = vadd.f32 %v636_v2, %v279_v44  ;;  %v364_v28 = vld [vmem:[%s630_s25 + $0xc0] sm:$0xff]  ;;  %v365_v29 = vld [vmem:[%s630_s25 + $0xc8] sm:$0xff]  ;;  %v366_v33 = vld [vmem:[%s630_s25 + $0xd0] sm:$0xff] }
  0x23   : > { %461 = vst [vmem:[%s666_s30 + $0x68] sm:$0xff] %v425_v39  ;;  %v427_v53 = vmax.f32 %v391_v41, 0.0  ;;  %v282_v57 = vmul.f32 %v618_v0, %v239_v38  ;;  %v392_v58 = vadd.f32 %v356_v42, %v320_v45  ;;  %v323_v60 = vadd.f32 %v636_v2, %v280_v48  ;;  %v248_v36 = vld [vmem:[%s624_s22 + $0xf0] sm:$0xff]  ;;  %v249_v37 = vld [vmem:[%s624_s22 + $0xf8] sm:$0xff]  ;;  %v368_v42 = vld [vmem:[%s630_s25 + $0xe0] sm:$0xff] }
  0x24   : > { %v393_v59 = vadd.f32 %v357_v43, %v321_v46  ;;  %v324_v61 = vadd.f32 %v636_v2, %v281_v49  ;;  %462 = vst [vmem:[%s666_s30 + $0x70] sm:$0xff] %v426_v52  ;;  %v394_v63 = vadd.f32 %v358_v47, %v322_v54  ;;  %v283_v3 = vmul.f32 %v618_v0, %v240_v50  ;;  %v367_v41 = vld [vmem:[%s630_s25 + $0xd8] sm:$0xff]  ;;  %v369_v48 = vld [vmem:[%s630_s25 + $0xe8] sm:$0xff] }
  0x25   : > { %463 = vst [vmem:[%s666_s30 + $0x78] sm:$0xff] %v427_v53  ;;  %v325_v1 = vadd.f32 %v636_v2, %v282_v57  ;;  %v284_v4 = vmul.f32 %v618_v0, %v241_v51  ;;  %v428_v7 = vmax.f32 %v392_v58, 0.0  ;;  %v395_v9 = vadd.f32 %v359_v55, %v323_v60  ;;  %v250_v53 = vld [vmem:[%s624_s22 + $0x100] sm:$0xff]  ;;  %v251_v54 = vld [vmem:[%s624_s22 + $0x108] sm:$0xff]  ;;  %v371_v60 = vld [vmem:[%s630_s25 + $0xf8] sm:$0xff] }
  0x26   : > { %v429_v8 = vmax.f32 %v393_v59, 0.0  ;;  %v396_v10 = vadd.f32 %v360_v56, %v324_v61  ;;  %v430_v14 = vmax.f32 %v394_v63, 0.0  ;;  %v326_v16 = vadd.f32 %v636_v2, %v283_v3  ;;  %v370_v59 = vld [vmem:[%s630_s25 + $0xf0] sm:$0xff] }
  0x27   : > { %v397_v15 = vadd.f32 %v361_v62, %v325_v1  ;;  %v327_v17 = vadd.f32 %v636_v2, %v284_v4  ;;  %464 = vst [vmem:[%s666_s30 + $0x80] sm:$0xff] %v428_v7  ;;  %v431_v20 = vmax.f32 %v395_v9, 0.0  ;;  %v285_v22 = vmul.f32 %v618_v0, %v242_v5  ;;  %v252_v61 = vld [vmem:[%s624_s22 + $0x110] sm:$0xff]  ;;  %v253_v4 = vld [vmem:[%s624_s22 + $0x118] sm:$0xff] }
  0x28   : > { %465 = vst [vmem:[%s666_s30 + $0x88] sm:$0xff] %v429_v8  ;;  %v432_v21 = vmax.f32 %v396_v10, 0.0  ;;  %v286_v23 = vmul.f32 %v618_v0, %v243_v6  ;;  %466 = vst [vmem:[%s666_s30 + $0x90] sm:$0xff] %v430_v14  ;;  %v398_v26 = vadd.f32 %v362_v11, %v326_v16  ;;  %v287_v30 = vmul.f32 %v618_v0, %v244_v13  ;;  %v373_v13 = vld [vmem:[%s630_s25 + $0x108] sm:$0xff] }
  0x29   : > { %v433_v25 = vmax.f32 %v397_v15, 0.0  ;;  %v399_v27 = vadd.f32 %v363_v12, %v327_v17  ;;  %467 = vst [vmem:[%s666_s30 + $0x98] sm:$0xff] %v431_v20  ;;  %v328_v31 = vadd.f32 %v636_v2, %v285_v22  ;;  %v288_v34 = vmul.f32 %v618_v0, %v245_v18  ;;  %v372_v12 = vld [vmem:[%s630_s25 + $0x100] sm:$0xff]  ;;  %v374_v17 = vld [vmem:[%s630_s25 + $0x110] sm:$0xff]  ;;  %v375_v22 = vld [vmem:[%s630_s25 + $0x118] sm:$0xff] }
  0x2a   : > { %468 = vst [vmem:[%s666_s30 + $0xa0] sm:$0xff] %v432_v21  ;;  %v329_v32 = vadd.f32 %v636_v2, %v286_v23  ;;  %v289_v35 = vmul.f32 %v618_v0, %v246_v19  ;;  %v434_v38 = vmax.f32 %v398_v26, 0.0  ;;  %v330_v40 = vadd.f32 %v636_v2, %v287_v30 }
  0x2b   : > { %469 = vst [vmem:[%s666_s30 + $0xa8] sm:$0xff] %v433_v25  ;;  %v435_v39 = vmax.f32 %v399_v27, 0.0  ;;  %v290_v43 = vmul.f32 %v618_v0, %v247_v24  ;;  %v400_v44 = vadd.f32 %v364_v28, %v328_v31  ;;  %v331_v46 = vadd.f32 %v636_v2, %v288_v34 }
  0x2c   : > { %v401_v45 = vadd.f32 %v365_v29, %v329_v32  ;;  %v332_v47 = vadd.f32 %v636_v2, %v289_v35  ;;  %470 = vst [vmem:[%s666_s30 + $0xb0] sm:$0xff] %v434_v38  ;;  %v402_v49 = vadd.f32 %v366_v33, %v330_v40  ;;  %v291_v51 = vmul.f32 %v618_v0, %v248_v36 }
  0x2d   : > { %471 = vst [vmem:[%s666_s30 + $0xb8] sm:$0xff] %v435_v39  ;;  %v333_v50 = vadd.f32 %v636_v2, %v290_v43  ;;  %v292_v52 = vmul.f32 %v618_v0, %v249_v37  ;;  %v436_v55 = vmax.f32 %v400_v44, 0.0  ;;  %v403_v57 = vadd.f32 %v367_v41, %v331_v46 }
  0x2e   : > { %v437_v56 = vmax.f32 %v401_v45, 0.0  ;;  %v404_v58 = vadd.f32 %v368_v42, %v332_v47  ;;  %v438_v62 = vmax.f32 %v402_v49, 0.0  ;;  %v334_v1 = vadd.f32 %v636_v2, %v291_v51 }
  0x2f   : > { %v405_v63 = vadd.f32 %v369_v48, %v333_v50  ;;  %v335_v3 = vadd.f32 %v636_v2, %v292_v52  ;;  %472 = vst [vmem:[%s666_s30 + $0xc0] sm:$0xff] %v436_v55  ;;  %v439_v5 = vmax.f32 %v403_v57, 0.0  ;;  %v293_v7 = vmul.f32 %v618_v0, %v250_v53 }
  0x30   : > { %473 = vst [vmem:[%s666_s30 + $0xc8] sm:$0xff] %v437_v56  ;;  %v440_v6 = vmax.f32 %v404_v58, 0.0  ;;  %v294_v8 = vmul.f32 %v618_v0, %v251_v54  ;;  %474 = vst [vmem:[%s666_s30 + $0xd0] sm:$0xff] %v438_v62  ;;  %v406_v10 = vadd.f32 %v370_v59, %v334_v1  ;;  %v295_v14 = vmul.f32 %v618_v0, %v252_v61 }
  0x31   : > { %v441_v9 = vmax.f32 %v405_v63, 0.0  ;;  %v407_v11 = vadd.f32 %v371_v60, %v335_v3  ;;  %475 = vst [vmem:[%s666_s30 + $0xd8] sm:$0xff] %v439_v5  ;;  %v336_v15 = vadd.f32 %v636_v2, %v293_v7  ;;  %v296_v18 = vmul.f32 %v618_v0, %v253_v4 }
  0x32   : > { %476 = vst [vmem:[%s666_s30 + $0xe0] sm:$0xff] %v440_v6  ;;  %v337_v16 = vadd.f32 %v636_v2, %v294_v8  ;;  %v442_v19 = vmax.f32 %v406_v10, 0.0  ;;  %v338_v21 = vadd.f32 %v636_v2, %v295_v14 }
  0x33   : > { %477 = vst [vmem:[%s666_s30 + $0xe8] sm:$0xff] %v441_v9  ;;  %v443_v20 = vmax.f32 %v407_v11, 0.0  ;;  %v408_v23 = vadd.f32 %v372_v12, %v336_v15  ;;  %v339_v25 = vadd.f32 %v636_v2, %v296_v18 }
  0x34   : > { %v409_v24 = vadd.f32 %v373_v13, %v337_v16  ;;  %478 = vst [vmem:[%s666_s30 + $0xf0] sm:$0xff] %v442_v19  ;;  %v410_v26 = vadd.f32 %v374_v17, %v338_v21 }
  0x35   : > { %479 = vst [vmem:[%s666_s30 + $0xf8] sm:$0xff] %v443_v20  ;;  %v444_v27 = vmax.f32 %v408_v23, 0.0  ;;  %v411_v0 = vadd.f32 %v375_v22, %v339_v25 }
  0x36   : > { %v445_v28 = vmax.f32 %v409_v24, 0.0  ;;  %v446_v29 = vmax.f32 %v410_v26, 0.0 }
  0x37   : > { %480 = vst [vmem:[%s666_s30 + $0x100] sm:$0xff] %v444_v27  ;;  %v447_v30 = vmax.f32 %v411_v0, 0.0 }
  0x38   : > { %481 = vst [vmem:[%s666_s30 + $0x108] sm:$0xff] %v445_v28  ;;  %482 = vst [vmem:[%s666_s30 + $0x110] sm:$0xff] %v446_v29 }
  0x39   : > { %483 = vst [vmem:[%s666_s30 + $0x118] sm:$0xff] %v447_v30 }
  0x3a PF: > { %s14_s15 = sadd.s32 1, %s578_s15  }
  0x3b   : > { %p11_p4 = scmp.ge.s32.totalorder %s14_s15, 4  }
  0x3d   :  { %13 = sbr.rel (!%p11_p4) target bundleno = 1 (0x1), region = 69 }

// kernel: basic_block_pallas.3
= control target key start
LH: loop header
LB: loop body
LE: loop exit
PB: predicated region body
PF: predicated region fallthrough
CT: control target
= control target key end

     0   :  { %s2771_s15 = smov 0   ;;  %s4139_s0 = inlined_call_operand.vmem [shape: f32[2,326,16], index: 0, kind: input, shape index: {}]   ;;  %s4140_s1 = inlined_call_operand.vmem [shape: f32[144,128], index: 1, kind: input, shape index: {}]   ;;  %s4141_s2 = inlined_call_operand.vmem [shape: f32[288,128], index: 2, kind: input, shape index: {}]   ;;  %s4142_s3 = inlined_call_operand.vmem [shape: f32[2,288,128], index: 3, kind: output, shape index: {0}]   ;;  %s4143_s4 = inlined_call_operand.vmem [shape: f32[2,2,128], index: 4, kind: output, shape index: {1}]  }
   0x1 LB: > { %s2630_s16 = sadd.s32 4294967295, %s2736_s15   ;;  %p2634_p0 = scmp.ge.s32.totalorder %s2736_s15, 1  ;;  %s2736_s15 = sphi %s2771_s15, %s15_s15  }
   0x2   : > { %p165_p1 = scmp.lt.s32.totalorder %s2736_s15, 3 }
   0x4   : > { %p166_p2 = pnand %p2634_p0, %p165_p1 }
   0x5   : > { %p195_p3 = scmp.lt.s32.totalorder (!%p166_p2), %s2630_s16, 1  ;;  %s2738_s21 = smov (!%p166_p2), 16  }
   0x6   : > { %169 = sbr.rel (%p166_p2) target bundleno = 853 (0x355), region = 32  ;;  %s2739_s22 = smov (!%p166_p2), 32  }
   0x7   : > { %s2741_s27 = smov (!%p166_p2), 64   ;;  %s2742_s28 = smov (!%p166_p2), 48  }
   0x8   : > { %s2743_s7 = smov (!%p166_p2), 96   ;;  %s2744_s8 = smov (!%p166_p2), 80  }
   0x9   : > { %s2745_s11 = smov (!%p166_p2), 112  }
   0xb   : > { %s4145_s16 = smov (!%p195_p3, %s2630_s16), 1  ;;  %vm245_vm0 = vcmask 130048   ;;  %vm462_vm1 = vcmask 261248   ;;  %vm679_vm2 = vcmask 392448   ;;  %vm896_vm3 = vcmask 523648  }
   0xc   : > { %s2712_s17 = smul.u32 328, %s4145_s16  ;;  %vm1113_vm4 = vcmask 654848   ;;  %vm1330_vm5 = vcmask 786048   ;;  %vm1547_vm6 = vcmask 917248   ;;  %vm1764_vm7 = vcmask 1048448   ;;  %s2637_s29 = sshll.u32 %s4145_s16, 1 }
   0xd   : > { %s2713_s18 = smul.u32 288, %s4145_s16  ;;  %s208_s6 = scalar_lea.vmem %s4143_s4, %s2637_s29 }
   0xe   : > { %s2785_s20 = scalar_lea.vmem %s4139_s0, %s2712_s17 }
   0xf   : > { %v284_v0 = vld [vmem:[%s2785_s20 + $0x11] sm:$0xff]  ;;  %v282_v1 = vld [vmem:[%s2785_s20 + $0x1] sm:$0xff]  ;;  %v285_v2 = vld [vmem:[%s2785_s20 + $0x19] sm:$0xff]  ;;  %s3772_s25 = scalar_lea.vmem %s4142_s3, %s2713_s18 }
  0x10   : > { %358 = vrot.lane.b32.xlu1 %v284_v0, %s2738_s21  ;;  %354 = vrot.lane.b32.xlu0 %v282_v1, %s2738_s21  ;;  %v283_v3 = vld [vmem:[%s2785_s20 + $0x9] sm:$0xff]  ;;  %v286_v5 = vld [vmem:[%s2785_s20 + $0x21] sm:$0xff] }
  0x11   : > { %v287_v4 = vld [vmem:[%s2785_s20 + $0x29] sm:$0xff]  ;;  %v289_v6 = vld [vmem:[%s2785_s20 + $0x39] sm:$0xff]  ;;  %v288_v7 = vld [vmem:[%s2785_s20 + $0x31] sm:$0xff] }
  0x12   : > { %v291_v8 = vld [vmem:[%s2785_s20 + $0x49] sm:$0xff]  ;;  %v290_v9 = vld [vmem:[%s2785_s20 + $0x41] sm:$0xff]  ;;  %v293_v10 = vld [vmem:[%s2785_s20 + $0x59] sm:$0xff] }
  0x13   : > { %v292_v11 = vld [vmem:[%s2785_s20 + $0x51] sm:$0xff]  ;;  %v209_v13 = vld [vmem:[%s2785_s20] sm:$0xff]  ;;  %v295_v14 = vld [vmem:[%s2785_s20 + $0x69] sm:$0xff] }
  0x14   : > { %360 = vrot.lane.b32.xlu1 %v285_v2, %s2738_s21  ;;  %356 = vrot.lane.b32.xlu0 %v283_v3, %s2738_s21  ;;  %v211_v12 = vld [vmem:[%s2785_s20 + $0x10] sm:$0xff]  ;;  %v294_v15 = vld [vmem:[%s2785_s20 + $0x61] sm:$0xff]  ;;  %246 = vst.msk [vmem:[#allocation2] sm:$0xff] %vm245_vm0, %v209_v13 }
  0x15   : > { %248 = vst.msk [vmem:[#allocation2 + $0x20] sm:$0xff] %vm245_vm0, %v211_v12  ;;  %v212_v16 = vld [vmem:[%s2785_s20 + $0x18] sm:$0xff]  ;;  %v210_v17 = vld [vmem:[%s2785_s20 + $0x8] sm:$0xff]  ;;  %v213_v20 = vld [vmem:[%s2785_s20 + $0x20] sm:$0xff] }
  0x16   : > { %249 = vst.msk [vmem:[#allocation2 + $0x30] sm:$0xff] %vm245_vm0, %v212_v16  ;;  %v214_v18 = vld [vmem:[%s2785_s20 + $0x28] sm:$0xff]  ;;  %v297_v19 = vld [vmem:[%s2785_s20 + $0x79] sm:$0xff]  ;;  %247 = vst.msk [vmem:[#allocation2 + $0x10] sm:$0xff] %vm245_vm0, %v210_v17 }
  0x17   : > { %251 = vst.msk [vmem:[#allocation2 + $0x50] sm:$0xff] %vm245_vm0, %v214_v18  ;;  %250 = vst.msk [vmem:[#allocation2 + $0x40] sm:$0xff] %vm245_vm0, %v213_v20  ;;  %v216_v21 = vld [vmem:[%s2785_s20 + $0x38] sm:$0xff]  ;;  %v215_v22 = vld [vmem:[%s2785_s20 + $0x30] sm:$0xff]  ;;  %v2740_v18 = vmov 0.0  }
  0x18   : > { %364 = vrot.lane.b32.xlu1 %v287_v4, %s2738_s21  ;;  %362 = vrot.lane.b32.xlu0 %v286_v5, %s2738_s21  ;;  %v296_v23 = vld [vmem:[%s2785_s20 + $0x71] sm:$0xff]  ;;  %253 = vst.msk [vmem:[#allocation2 + $0x70] sm:$0xff] %vm245_vm0, %v216_v21  ;;  %252 = vst.msk [vmem:[#allocation2 + $0x60] sm:$0xff] %vm245_vm0, %v215_v22  ;;  %v218_v24 = vld [vmem:[%s2785_s20 + $0x48] sm:$0xff] }
  0x19   : > { %v217_v25 = vld [vmem:[%s2785_s20 + $0x40] sm:$0xff]  ;;  %255 = vst.msk [vmem:[#allocation2 + $0x90] sm:$0xff] %vm245_vm0, %v218_v24  ;;  %v220_v26 = vld [vmem:[%s2785_s20 + $0x58] sm:$0xff]  ;;  %v219_v27 = vld [vmem:[%s2785_s20 + $0x50] sm:$0xff]  ;;  %2071 = vmatprep.subr.mxu0 %v2740_v18  ;;  %2676 = vmatprep.subr.mxu1 %v2740_v18 }
  0x1a   : > { %254 = vst.msk [vmem:[#allocation2 + $0x80] sm:$0xff] %vm245_vm0, %v217_v25  ;;  %257 = vst.msk [vmem:[#allocation2 + $0xb0] sm:$0xff] %vm245_vm0, %v220_v26  ;;  %v222_v28 = vld [vmem:[%s2785_s20 + $0x68] sm:$0xff]  ;;  %v221_v30 = vld [vmem:[%s2785_s20 + $0x60] sm:$0xff] }
  0x1b   : > { %v299_v29 = vld [vmem:[%s2785_s20 + $0x89] sm:$0xff]  ;;  %256 = vst.msk [vmem:[#allocation2 + $0xa0] sm:$0xff] %vm245_vm0, %v219_v27  ;;  %259 = vst.msk [vmem:[#allocation2 + $0xd0] sm:$0xff] %vm245_vm0, %v222_v28  ;;  %v298_v31 = vld [vmem:[%s2785_s20 + $0x81] sm:$0xff] }
  0x1c   : > { %368 = vrot.lane.b32.xlu1 %v289_v6, %s2738_s21  ;;  %366 = vrot.lane.b32.xlu0 %v288_v7, %s2738_s21  ;;  %258 = vst.msk [vmem:[#allocation2 + $0xc0] sm:$0xff] %vm245_vm0, %v221_v30  ;;  %v224_v32 = vld [vmem:[%s2785_s20 + $0x78] sm:$0xff]  ;;  %v223_v33 = vld [vmem:[%s2785_s20 + $0x70] sm:$0xff] }
  0x1d   : > { %261 = vst.msk [vmem:[#allocation2 + $0xf0] sm:$0xff] %vm245_vm0, %v224_v32  ;;  %260 = vst.msk [vmem:[#allocation2 + $0xe0] sm:$0xff] %vm245_vm0, %v223_v33  ;;  %v226_v34 = vld [vmem:[%s2785_s20 + $0x88] sm:$0xff]  ;;  %v225_v35 = vld [vmem:[%s2785_s20 + $0x80] sm:$0xff] }
  0x1e   : > { %263 = vst.msk [vmem:[#allocation2 + $0x110] sm:$0xff] %vm245_vm0, %v226_v34  ;;  %262 = vst.msk [vmem:[#allocation2 + $0x100] sm:$0xff] %vm245_vm0, %v225_v35  ;;  %v228_v36 = vld [vmem:[%s2785_s20 + $0x98] sm:$0xff]  ;;  %v227_v37 = vld [vmem:[%s2785_s20 + $0x90] sm:$0xff] }
  0x1f   : > { %v301_v38 = vld [vmem:[%s2785_s20 + $0x99] sm:$0xff]  ;;  %265 = vst.msk [vmem:[#allocation2 + $0x130] sm:$0xff] %vm245_vm0, %v228_v36  ;;  %264 = vst.msk [vmem:[#allocation2 + $0x120] sm:$0xff] %vm245_vm0, %v227_v37  ;;  %v230_v39 = vld [vmem:[%s2785_s20 + $0xa8] sm:$0xff] }
  0x20   : > { %372 = vrot.lane.b32.xlu1 %v291_v8, %s2738_s21  ;;  %370 = vrot.lane.b32.xlu0 %v290_v9, %s2738_s21  ;;  %v300_v40 = vld [vmem:[%s2785_s20 + $0x91] sm:$0xff]  ;;  %267 = vst.msk [vmem:[#allocation2 + $0x150] sm:$0xff] %vm245_vm0, %v230_v39  ;;  %v229_v41 = vld [vmem:[%s2785_s20 + $0xa0] sm:$0xff] }
  0x21   : > { %v232_v42 = vld [vmem:[%s2785_s20 + $0xb8] sm:$0xff]  ;;  %266 = vst.msk [vmem:[#allocation2 + $0x140] sm:$0xff] %vm245_vm0, %v229_v41  ;;  %v231_v43 = vld [vmem:[%s2785_s20 + $0xb0] sm:$0xff]  ;;  %v234_v44 = vld [vmem:[%s2785_s20 + $0xc8] sm:$0xff] }
  0x22   : > { %269 = vst.msk [vmem:[#allocation2 + $0x170] sm:$0xff] %vm245_vm0, %v232_v42  ;;  %268 = vst.msk [vmem:[#allocation2 + $0x160] sm:$0xff] %vm245_vm0, %v231_v43  ;;  %v233_v45 = vld [vmem:[%s2785_s20 + $0xc0] sm:$0xff]  ;;  %v303_v46 = vld [vmem:[%s2785_s20 + $0xa9] sm:$0xff] }
  0x23   : > { %271 = vst.msk [vmem:[#allocation2 + $0x190] sm:$0xff] %vm245_vm0, %v234_v44  ;;  %270 = vst.msk [vmem:[#allocation2 + $0x180] sm:$0xff] %vm245_vm0, %v233_v45  ;;  %v302_v47 = vld [vmem:[%s2785_s20 + $0xa1] sm:$0xff]  ;;  %v235_v48 = vld [vmem:[%s2785_s20 + $0xd0] sm:$0xff] }
  0x24   : > { %376 = vrot.lane.b32.xlu1 %v293_v10, %s2738_s21  ;;  %374 = vrot.lane.b32.xlu0 %v292_v11, %s2738_s21  ;;  %v236_v49 = vld [vmem:[%s2785_s20 + $0xd8] sm:$0xff]  ;;  %272 = vst.msk [vmem:[#allocation2 + $0x1a0] sm:$0xff] %vm245_vm0, %v235_v48  ;;  %v237_v52 = vld [vmem:[%s2785_s20 + $0xe0] sm:$0xff] }
  0x25   : > { %273 = vst.msk [vmem:[#allocation2 + $0x1b0] sm:$0xff] %vm245_vm0, %v236_v49  ;;  %v305_v50 = vld [vmem:[%s2785_s20 + $0xb9] sm:$0xff]  ;;  %v304_v51 = vld [vmem:[%s2785_s20 + $0xb1] sm:$0xff]  ;;  %v238_v53 = vld [vmem:[%s2785_s20 + $0xe8] sm:$0xff] }
  0x26   : > { %274 = vst.msk [vmem:[#allocation2 + $0x1c0] sm:$0xff] %vm245_vm0, %v237_v52  ;;  %275 = vst.msk [vmem:[#allocation2 + $0x1d0] sm:$0xff] %vm245_vm0, %v238_v53  ;;  %v307_v54 = vld [vmem:[%s2785_s20 + $0xc9] sm:$0xff]  ;;  %v306_v55 = vld [vmem:[%s2785_s20 + $0xc1] sm:$0xff] }
  0x27   : > { %v239_v56 = vld [vmem:[%s2785_s20 + $0xf0] sm:$0xff]  ;;  %v240_v57 = vld [vmem:[%s2785_s20 + $0xf8] sm:$0xff]  ;;  %v241_v60 = vld [vmem:[%s2785_s20 + $0x100] sm:$0xff] }
  0x28   : > { %380 = vrot.lane.b32.xlu1 %v295_v14, %s2738_s21  ;;  %378 = vrot.lane.b32.xlu0 %v294_v15, %s2738_s21  ;;  %276 = vst.msk [vmem:[#allocation2 + $0x1e0] sm:$0xff] %vm245_vm0, %v239_v56  ;;  %277 = vst.msk [vmem:[#allocation2 + $0x1f0] sm:$0xff] %vm245_vm0, %v240_v57  ;;  %v309_v58 = vld [vmem:[%s2785_s20 + $0xd9] sm:$0xff]  ;;  %v308_v59 = vld [vmem:[%s2785_s20 + $0xd1] sm:$0xff] }
  0x29   : > { %v242_v61 = vld [vmem:[%s2785_s20 + $0x108] sm:$0xff]  ;;  %278 = vst.msk [vmem:[#allocation2 + $0x200] sm:$0xff] %vm245_vm0, %v241_v60  ;;  %v243_v0 = vld [vmem:[%s2785_s20 + $0x110] sm:$0xff]  ;;  %v244_v1 = vld [vmem:[%s2785_s20 + $0x118] sm:$0xff] }
  0x2a   : > { %279 = vst.msk [vmem:[#allocation2 + $0x210] sm:$0xff] %vm245_vm0, %v242_v61  ;;  %v311_v62 = vld [vmem:[%s2785_s20 + $0xe9] sm:$0xff]  ;;  %v310_v63 = vld [vmem:[%s2785_s20 + $0xe1] sm:$0xff]  ;;  %280 = vst.msk [vmem:[#allocation2 + $0x220] sm:$0xff] %vm245_vm0, %v243_v0 }
  0x2b   : > { %281 = vst.msk [vmem:[#allocation2 + $0x230] sm:$0xff] %vm245_vm0, %v244_v1  ;;  %v313_v2 = vld [vmem:[%s2785_s20 + $0xf9] sm:$0xff]  ;;  %v312_v3 = vld [vmem:[%s2785_s20 + $0xf1] sm:$0xff]  ;;  %v315_v4 = vld [vmem:[%s2785_s20 + $0x109] sm:$0xff] }
  0x2c   : > { %384 = vrot.lane.b32.xlu1 %v297_v19, %s2738_s21  ;;  %382 = vrot.lane.b32.xlu0 %v296_v23, %s2738_s21  ;;  %v314_v5 = vld [vmem:[%s2785_s20 + $0x101] sm:$0xff]  ;;  %v317_v6 = vld [vmem:[%s2785_s20 + $0x119] sm:$0xff] }
  0x2d   : > { %v316_v7 = vld [vmem:[%s2785_s20 + $0x111] sm:$0xff]  ;;  %v499_v9 = vld [vmem:[%s2785_s20 + $0x2] sm:$0xff]  ;;  %v2936_v10 = vld [vmem:[%s2785_s20 + $0x1a] sm:$0xff] }
  0x2e   : > { %v500_v8 = vld [vmem:[%s2785_s20 + $0xa] sm:$0xff]  ;;  %v2939_v11 = vld [vmem:[%s2785_s20 + $0x12] sm:$0xff]  ;;  %v2949_v13 = vld [vmem:[%s2785_s20 + $0x22] sm:$0xff] }
  0x2f   : > { %v2946_v12 = vld [vmem:[%s2785_s20 + $0x2a] sm:$0xff]  ;;  %v2956_v14 = vld [vmem:[%s2785_s20 + $0x3a] sm:$0xff]  ;;  %v2959_v15 = vld [vmem:[%s2785_s20 + $0x32] sm:$0xff] }
  0x30   : > { %388 = vrot.lane.b32.xlu1 %v299_v29, %s2738_s21  ;;  %386 = vrot.lane.b32.xlu0 %v298_v31, %s2738_s21  ;;  %v2966_v16 = vld [vmem:[%s2785_s20 + $0x4a] sm:$0xff]  ;;  %v2969_v17 = vld [vmem:[%s2785_s20 + $0x42] sm:$0xff] }
  0x31   : > { %v1960_v19 = vld [vmem:[%s4140_s1 + $0x78] sm:$0xff]  ;;  %v1959_v20 = vld [vmem:[%s4140_s1 + $0x70] sm:$0xff]  ;;  %v1958_v23 = vld [vmem:[%s4140_s1 + $0x68] sm:$0xff] }
  0x32   : > { %v2984_v21 = vld [vmem:[%s2785_s20 + $0x5a] sm:$0xff]  ;;  %v2987_v22 = vld [vmem:[%s2785_s20 + $0x52] sm:$0xff]  ;;  %2072 = vmatpush1.msra.mxu0 %v1960_v19  ;;  %2694 = vmatpush1.msra.mxu1 %v1960_v19  ;;  %v2999_v24 = vld [vmem:[%s2785_s20 + $0x6a] sm:$0xff] }
  0x33   : > { %2073 = vmatprep.subr.mxu0 %v2740_v18  ;;  %2677 = vmatprep.subr.mxu1 %v2740_v18  ;;  %v3002_v25 = vld [vmem:[%s2785_s20 + $0x62] sm:$0xff]  ;;  %v1956_v27 = vld [vmem:[%s4140_s1 + $0x58] sm:$0xff]  ;;  %v1955_v30 = vld [vmem:[%s4140_s1 + $0x50] sm:$0xff] }
  0x34   : > { %392 = vrot.lane.b32.xlu1 %v301_v38, %s2738_s21  ;;  %390 = vrot.lane.b32.xlu0 %v300_v40, %s2738_s21  ;;  %v1957_v26 = vld [vmem:[%s4140_s1 + $0x60] sm:$0xff]  ;;  %v3020_v29 = vld [vmem:[%s2785_s20 + $0x72] sm:$0xff] }
  0x35   : > { %2074 = vmatpush1.msra.mxu0 %v1959_v20  ;;  %2695 = vmatpush1.msra.mxu1 %v1959_v20  ;;  %v514_v28 = vld [vmem:[%s2785_s20 + $0x7a] sm:$0xff]  ;;  %v516_v31 = vld [vmem:[%s2785_s20 + $0x8a] sm:$0xff]  ;;  %v515_v32 = vld [vmem:[%s2785_s20 + $0x82] sm:$0xff] }
  0x36   : > { %2075 = vmatprep.subr.mxu0 %v2740_v18  ;;  %2678 = vmatprep.subr.mxu1 %v2740_v18  ;;  %v1954_v33 = vld [vmem:[%s4140_s1 + $0x48] sm:$0xff]  ;;  %v1953_v34 = vld [vmem:[%s4140_s1 + $0x40] sm:$0xff]  ;;  %v517_v36 = vld [vmem:[%s2785_s20 + $0x92] sm:$0xff] }
  0x37   : > { %2076 = vmatpush1.msra.mxu0 %v1958_v23  ;;  %2696 = vmatpush1.msra.mxu1 %v1958_v23  ;;  %v518_v35 = vld [vmem:[%s2785_s20 + $0x9a] sm:$0xff]  ;;  %v3054_v38 = vld [vmem:[%s2785_s20 + $0xaa] sm:$0xff]  ;;  %v3057_v39 = vld [vmem:[%s2785_s20 + $0xa2] sm:$0xff] }
  0x38   : > { %396 = vrot.lane.b32.xlu1 %v303_v46, %s2738_s21  ;;  %394 = vrot.lane.b32.xlu0 %v302_v47, %s2738_s21  ;;  %v1952_v37 = vld [vmem:[%s4140_s1 + $0x38] sm:$0xff]  ;;  %v1951_v40 = vld [vmem:[%s4140_s1 + $0x30] sm:$0xff] }
  0x39   : > { %2077 = vmatprep.subr.mxu0 %v2740_v18  ;;  %2679 = vmatprep.subr.mxu1 %v2740_v18  ;;  %v1950_v41 = vld [vmem:[%s4140_s1 + $0x28] sm:$0xff]  ;;  %v3074_v42 = vld [vmem:[%s2785_s20 + $0xba] sm:$0xff]  ;;  %v3077_v43 = vld [vmem:[%s2785_s20 + $0xb2] sm:$0xff] }
  0x3a   : > { %2078 = vmatpush1.msra.mxu0 %v1957_v26  ;;  %2697 = vmatpush1.msra.mxu1 %v1957_v26  ;;  %v1801_v44 = vld [vmem:[%s2785_s20 + $0x26] sm:$0xff]  ;;  %v933_v48 = vld [vmem:[%s2785_s20 + $0x13] sm:$0xff]  ;;  %v1151_v1 = vld [vmem:[%s2785_s20 + $0x1c] sm:$0xff] }
  0x3b   : > { %2079 = vmatprep.subr.mxu0 %v2740_v18  ;;  %2680 = vmatprep.subr.mxu1 %v2740_v18  ;;  %1837 = vst.msk [vmem:[#allocation2 + $0x8] sm:$0xff] %vm245_vm0, %v1801_v44  ;;  %v1949_v47 = vld [vmem:[%s4140_s1 + $0x20] sm:$0xff]  ;;  %v1947_v52 = vld [vmem:[%s4140_s1 + $0x10] sm:$0xff]  ;;  %v1962_v0 = vld [vmem:[%s4140_s1 + $0x88] sm:$0xff] }
  0x3c   : > { %400 = vrot.lane.b32.xlu1 %v305_v50, %s2738_s21  ;;  %398 = vrot.lane.b32.xlu0 %v304_v51, %s2738_s21  ;;  %v1948_v51 = vld [vmem:[%s4140_s1 + $0x18] sm:$0xff]  ;;  %v3109_v53 = vld [vmem:[%s2785_s20 + $0x24] sm:$0xff] }
  0x3d   : > { %2080 = vmatpush1.msra.mxu0 %v1956_v27  ;;  %2698 = vmatpush1.msra.mxu1 %v1956_v27  ;;  %v1802_v60 = vld [vmem:[%s2785_s20 + $0x2e] sm:$0xff]  ;;  %v1804_v27 = vld [vmem:[%s2785_s20 + $0x3e] sm:$0xff] }
  0x3e   : > { %2081 = vmatprep.subr.mxu0 %v2740_v18  ;;  %2681 = vmatprep.subr.mxu1 %v2740_v18  ;;  %1838 = vst.msk [vmem:[#allocation2 + $0x18] sm:$0xff] %vm245_vm0, %v1802_v60  ;;  %v1586_v26 = vld [vmem:[%s2785_s20 + $0x35] sm:$0xff]  ;;  %1840 = vst.msk [vmem:[#allocation2 + $0x38] sm:$0xff] %vm245_vm0, %v1804_v27  ;;  %v1592_v27 = vld [vmem:[%s2785_s20 + $0x65] sm:$0xff] }
  0x3f   : > { %2082 = vmatpush1.msra.mxu0 %v1955_v30  ;;  %2699 = vmatpush1.msra.mxu1 %v1955_v30 }
  0x40   : > { %404 = vrot.lane.b32.xlu1 %v307_v54, %s2738_s21  ;;  %402 = vrot.lane.b32.xlu0 %v306_v55, %s2738_s21  ;;  %v1150_v54 = vld [vmem:[%s2785_s20 + $0x14] sm:$0xff] }
  0x41   : > { %2083 = vmatprep.subr.mxu0 %v2740_v18  ;;  %2682 = vmatprep.subr.mxu1 %v2740_v18 }
  0x42   : > { %2084 = vmatpush1.msra.mxu0 %v1954_v33  ;;  %2700 = vmatpush1.msra.mxu1 %v1954_v33  ;;  %v1874_v55 = vld [vmem:[#allocation2 + $0x8] sm:$0xff] }
  0x43   : > { %2085 = vmatprep.subr.mxu0 %v2740_v18  ;;  %2683 = vmatprep.subr.mxu1 %v2740_v18 }
  0x44   : > { %408 = vrot.lane.b32.xlu1 %v309_v58, %s2738_s21  ;;  %406 = vrot.lane.b32.xlu0 %v308_v59, %s2738_s21  ;;  %v1946_v58 = vld [vmem:[%s4140_s1 + $0x8] sm:$0xff] }
  0x45   : > { %2086 = vmatpush1.msra.mxu0 %v1953_v34  ;;  %2701 = vmatpush1.msra.mxu1 %v1953_v34  ;;  %v1584_v59 = vld [vmem:[%s2785_s20 + $0x25] sm:$0xff]  ;;  %v1370_v34 = vld [vmem:[%s2785_s20 + $0x3c] sm:$0xff] }
  0x46   : > { %2087 = vmatprep.subr.mxu0 %v2740_v18  ;;  %2684 = vmatprep.subr.mxu1 %v2740_v18 }
  0x47   : > { %2088 = vmatpush1.msra.mxu0 %v1952_v37  ;;  %2702 = vmatpush1.msra.mxu1 %v1952_v37 }
  0x48   : > { %412 = vrot.lane.b32.xlu1 %v311_v62, %s2738_s21  ;;  %410 = vrot.lane.b32.xlu0 %v310_v63, %s2738_s21  ;;  %v1945_v63 = vld [vmem:[%s4140_s1] sm:$0xff] }
  0x49   : > { %2089 = vmatprep.subr.mxu0 %v2740_v18  ;;  %2685 = vmatprep.subr.mxu1 %v2740_v18 }
  0x4a   : > { %2090 = vmatpush1.msra.mxu0 %v1951_v40  ;;  %2703 = vmatpush1.msra.mxu1 %v1951_v40  ;;  %v1587_v40 = vld [vmem:[%s2785_s20 + $0x3d] sm:$0xff] }
  0x4b   : > { %2091 = vmatprep.subr.mxu0 %v2740_v18  ;;  %2686 = vmatprep.subr.mxu1 %v2740_v18 }
  0x4c   : > { %416 = vrot.lane.b32.xlu1 %v313_v2, %s2738_s21  ;;  %414 = vrot.lane.b32.xlu0 %v312_v3, %s2738_s21  ;;  %v934_v2 = vld [vmem:[%s2785_s20 + $0x1b] sm:$0xff] }
  0x4d   : > { %2092 = vmatpush1.msra.mxu0 %v1950_v41  ;;  %2704 = vmatpush1.msra.mxu1 %v1950_v41 }
  0x4e   : > { %2093 = vmatprep.subr.mxu0 %v2740_v18  ;;  %2687 = vmatprep.subr.mxu1 %v2740_v18 }
  0x4f   : > { %2094 = vmatpush1.msra.mxu0 %v1949_v47  ;;  %2705 = vmatpush1.msra.mxu1 %v1949_v47  ;;  %v1588_v47 = vld [vmem:[%s2785_s20 + $0x45] sm:$0xff] }
  0x50   : > { %420 = vrot.lane.b32.xlu1 %v315_v4, %s2738_s21  ;;  %418 = vrot.lane.b32.xlu0 %v314_v5, %s2738_s21  ;;  %v1961_v5 = vld [vmem:[%s4140_s1 + $0x80] sm:$0xff] }
  0x51   : > { %2095 = vmatprep.subr.mxu0 %v2740_v18  ;;  %2688 = vmatprep.subr.mxu1 %v2740_v18 }
  0x52   : > { %2096 = vmatpush1.msra.mxu0 %v1948_v51  ;;  %2706 = vmatpush1.msra.mxu1 %v1948_v51  ;;  %v938_v51 = vld [vmem:[%s2785_s20 + $0x3b] sm:$0xff] }
  0x53   : > { %2097 = vmatprep.subr.mxu0 %v2740_v18  ;;  %2638 = vmatprep.mubr.msk.f32.mxu0 %vm245_vm0, %v1874_v55  ;;  %v1807_v55 = vld [vmem:[%s2785_s20 + $0x56] sm:$0xff] }
  0x54   : > { %424 = vrot.lane.b32.xlu1 %v317_v6, %s2738_s21  ;;  %422 = vrot.lane.b32.xlu0 %v316_v7, %s2738_s21  ;;  %v1368_v6 = vld [vmem:[%s2785_s20 + $0x2c] sm:$0xff]  ;;  %v1803_v7 = vld [vmem:[%s2785_s20 + $0x36] sm:$0xff]  ;;  %1843 = vst.msk [vmem:[#allocation2 + $0x68] sm:$0xff] %vm245_vm0, %v1807_v55 }
  0x55   : > { %2098 = vmatpush1.msra.mxu0 %v1947_v52  ;;  %2689 = vmatprep.subr.mxu1 %v2740_v18  ;;  %1839 = vst.msk [vmem:[#allocation2 + $0x28] sm:$0xff] %vm245_vm0, %v1803_v7  ;;  %v1820_v55 = vld [vmem:[%s2785_s20 + $0xbe] sm:$0xff] }
  0x56   : > { %2099 = vmatprep.subr.mxu0 %v2740_v18  ;;  %2707 = vmatpush1.msra.mxu1 %v1947_v52  ;;  %1856 = vst.msk [vmem:[#allocation2 + $0x138] sm:$0xff] %vm245_vm0, %v1820_v55  ;;  %v1814_v55 = vld [vmem:[%s2785_s20 + $0x8e] sm:$0xff] }
  0x57   : > { %2100 = vmatpush1.msra.mxu0 %v1946_v58  ;;  %2690 = vmatprep.subr.mxu1 %v2740_v18  ;;  %1850 = vst.msk [vmem:[#allocation2 + $0xd8] sm:$0xff] %vm245_vm0, %v1814_v55  ;;  %v3585_v55 = vld [vmem:[%s2785_s20 + $0xda] sm:$0xff] }
  0x58   : > { %573 = vrot.lane.b32.xlu1 %v500_v8, %s2739_s22  ;;  %571 = vrot.lane.b32.xlu0 %v499_v9, %s2739_s22 }
  0x59   : > { %2101 = vmatprep.subr.mxu0 %v2740_v18  ;;  %2708 = vmatpush1.msra.mxu1 %v1946_v58  ;;  %v1589_v58 = vld [vmem:[%s2785_s20 + $0x4d] sm:$0xff] }
  0x5a   : > { %2102 = vmatpush1.msra.mxu0 %v1945_v63  ;;  %2691 = vmatprep.subr.mxu1 %v2740_v18 }
  0x5b   : > { %2131 = vmatprep.subr.mxu0 %v2740_v18  ;;  %2709 = vmatpush1.msra.mxu1 %v1945_v63  ;;  %v1590_v63 = vld [vmem:[%s2785_s20 + $0x55] sm:$0xff] }
  0x5c   : > { %577 = vrot.lane.b32.xlu1 %v2936_v10, %s2739_s22  ;;  %575 = vrot.lane.b32.xlu0 %v2939_v11, %s2739_s22 }
  0x5d   : > { %2132 = vmatpush2.msra.mxu0 %v1962_v0  ;;  %2692 = vmatprep.subr.mxu1 %v2740_v18 }
  0x5e   : > { %2133 = vmatprep.subr.mxu0 %v2740_v18  ;;  %2710 = vmatpush2.msra.mxu1 %v1962_v0  ;;  %v1808_v0 = vld [vmem:[%s2785_s20 + $0x5e] sm:$0xff] }
  0x5f   : > { %2134 = vmatpush2.msra.mxu0 %v1961_v5  ;;  %2693 = vmatprep.subr.mxu1 %v2740_v18  ;;  %v1369_v18 = vld [vmem:[%s2785_s20 + $0x34] sm:$0xff]  ;;  %1844 = vst.msk [vmem:[#allocation2 + $0x78] sm:$0xff] %vm245_vm0, %v1808_v0 }
  0x60   : > { %581 = vrot.lane.b32.xlu1 %v2946_v12, %s2739_s22  ;;  %579 = vrot.lane.b32.xlu0 %v2949_v13, %s2739_s22 }
  0x61   : > { %2711 = vmatpush2.msra.mxu1 %v1961_v5 }
  0x64   : > { %585 = vrot.lane.b32.xlu1 %v2956_v14, %s2739_s22  ;;  %583 = vrot.lane.b32.xlu0 %v2959_v15, %s2739_s22 }
  0x68   : > { %589 = vrot.lane.b32.xlu1 %v2966_v16, %s2739_s22  ;;  %587 = vrot.lane.b32.xlu0 %v2969_v17, %s2739_s22 }
  0x6c   : > { %593 = vrot.lane.b32.xlu1 %v2984_v21, %s2739_s22  ;;  %591 = vrot.lane.b32.xlu0 %v2987_v22, %s2739_s22 }
  0x70   : > { %597 = vrot.lane.b32.xlu1 %v2999_v24, %s2739_s22  ;;  %595 = vrot.lane.b32.xlu0 %v3002_v25, %s2739_s22 }
  0x74   : > { %601 = vrot.lane.b32.xlu1 %v514_v28, %s2739_s22  ;;  %599 = vrot.lane.b32.xlu0 %v3020_v29, %s2739_s22 }
  0x78   : > { %605 = vrot.lane.b32.xlu1 %v516_v31, %s2739_s22  ;;  %603 = vrot.lane.b32.xlu0 %v515_v32, %s2739_s22  ;;  %v936_v31 = vld [vmem:[%s2785_s20 + $0x2b] sm:$0xff] }
  0x7c   : > { %609 = vrot.lane.b32.xlu1 %v518_v35, %s2739_s22  ;;  %607 = vrot.lane.b32.xlu0 %v517_v36, %s2739_s22  ;;  %v1805_v35 = vld [vmem:[%s2785_s20 + $0x46] sm:$0xff] }
  0x7d   : > { %1841 = vst.msk [vmem:[#allocation2 + $0x48] sm:$0xff] %vm245_vm0, %v1805_v35  ;;  %v1819_v35 = vld [vmem:[%s2785_s20 + $0xb6] sm:$0xff] }
  0x7e   : > { %1855 = vst.msk [vmem:[#allocation2 + $0x128] sm:$0xff] %vm245_vm0, %v1819_v35 }
  0x80   : > { %613 = vrot.lane.b32.xlu1 %v3054_v38, %s2739_s22  ;;  %611 = vrot.lane.b32.xlu0 %v3057_v39, %s2739_s22 }
  0x82   : > { %v359_v45 = vpop.permute.xlu1 %358  ;;  %v355_v46 = vpop.permute.xlu0 %354 }
  0x83   : > { %465 = vst.msk [vmem:[#allocation2 + $0x20] sm:$0xff] %vm462_vm1, %v359_v45  ;;  %463 = vst.msk [vmem:[#allocation2] sm:$0xff] %vm462_vm1, %v355_v46  ;;  %v1371_v45 = vld [vmem:[%s2785_s20 + $0x44] sm:$0xff] }
  0x84   : > { %617 = vrot.lane.b32.xlu1 %v3074_v42, %s2739_s22  ;;  %615 = vrot.lane.b32.xlu0 %v3077_v43, %s2739_s22 }
  0x86   : > { %v361_v49 = vpop.permute.xlu1 %360  ;;  %v357_v50 = vpop.permute.xlu0 %356 }
  0x87   : > { %466 = vst.msk [vmem:[#allocation2 + $0x30] sm:$0xff] %vm462_vm1, %v361_v49  ;;  %464 = vst.msk [vmem:[#allocation2 + $0x10] sm:$0xff] %vm462_vm1, %v357_v50 }
  0x88   : > { %1005 = vrot.lane.b32.xlu1 %v933_v48, %s2741_s27  ;;  %788 = vrot.lane.b32.xlu0 %v2939_v11, %s2742_s28  ;;  %v1585_v11 = vld [vmem:[%s2785_s20 + $0x2d] sm:$0xff] }
  0x89   : > { %v1806_v48 = vld [vmem:[%s2785_s20 + $0x4e] sm:$0xff] }
  0x8a   : > { %v365_v56 = vpop.permute.xlu1 %364  ;;  %v363_v57 = vpop.permute.xlu0 %362  ;;  %1842 = vst.msk [vmem:[#allocation2 + $0x58] sm:$0xff] %vm245_vm0, %v1806_v48 }
  0x8b   : > { %468 = vst.msk [vmem:[#allocation2 + $0x50] sm:$0xff] %vm462_vm1, %v365_v56  ;;  %467 = vst.msk [vmem:[#allocation2 + $0x40] sm:$0xff] %vm462_vm1, %v363_v57 }
  0x8c   : > { %1439 = vrot.lane.b32.xlu1 %v3109_v53, %s2743_s7  ;;  %1222 = vrot.lane.b32.xlu0 %v1150_v54, %s2744_s8  ;;  %v1372_v54 = vld [vmem:[%s2785_s20 + $0x4c] sm:$0xff] }
  0x8e   : > { %v369_v61 = vpop.permute.xlu1 %368  ;;  %v367_v62 = vpop.permute.xlu0 %366 }
  0x8f   : > { %470 = vst.msk [vmem:[#allocation2 + $0x70] sm:$0xff] %vm462_vm1, %v369_v61  ;;  %469 = vst.msk [vmem:[#allocation2 + $0x60] sm:$0xff] %vm462_vm1, %v367_v62  ;;  %v1373_v61 = vld [vmem:[%s2785_s20 + $0x54] sm:$0xff] }
  0x90   : > { %1656 = vrot.lane.b32.xlu1 %v1584_v59, %s2745_s11  ;;  %790 = vrot.lane.b32.xlu0 %v2936_v10, %s2742_s28  ;;  %v935_v10 = vld [vmem:[%s2785_s20 + $0x23] sm:$0xff] }
  0x92   : > { %v373_v3 = vpop.permute.xlu1 %372  ;;  %v371_v4 = vpop.permute.xlu0 %370 }
  0x93   : > { %472 = vst.msk [vmem:[#allocation2 + $0x90] sm:$0xff] %vm462_vm1, %v373_v3  ;;  %471 = vst.msk [vmem:[#allocation2 + $0x80] sm:$0xff] %vm462_vm1, %v371_v4  ;;  %v940_v3 = vld [vmem:[%s2785_s20 + $0x4b] sm:$0xff] }
  0x94   : > { %1224 = vrot.lane.b32.xlu1 %v1151_v1, %s2744_s8  ;;  %1007 = vrot.lane.b32.xlu0 %v934_v2, %s2741_s27 }
  0x96   : > { %v377_v8 = vpop.permute.xlu1 %376  ;;  %v375_v9 = vpop.permute.xlu0 %374 }
  0x97   : > { %474 = vst.msk [vmem:[#allocation2 + $0xb0] sm:$0xff] %vm462_vm1, %v377_v8  ;;  %473 = vst.msk [vmem:[#allocation2 + $0xa0] sm:$0xff] %vm462_vm1, %v375_v9  ;;  %v1591_v9 = vld [vmem:[%s2785_s20 + $0x5d] sm:$0xff] }
  0x98   : > { %792 = vrot.lane.b32.xlu1 %v2949_v13, %s2742_s28  ;;  %1441 = vrot.lane.b32.xlu0 %v1368_v6, %s2743_s7 }
  0x9a   : > { %v381_v19 = vpop.permute.xlu1 %380  ;;  %v379_v20 = vpop.permute.xlu0 %378 }
  0x9b   : > { %476 = vst.msk [vmem:[#allocation2 + $0xd0] sm:$0xff] %vm462_vm1, %v381_v19  ;;  %475 = vst.msk [vmem:[#allocation2 + $0xc0] sm:$0xff] %vm462_vm1, %v379_v20 }
  0x9c   : > { %1009 = vrot.lane.b32.xlu1 %v935_v10, %s2741_s27  ;;  %1658 = vrot.lane.b32.xlu0 %v1585_v11, %s2745_s11  ;;  %v1809_v10 = vld [vmem:[%s2785_s20 + $0x66] sm:$0xff] }
  0x9d   : > { %1845 = vst.msk [vmem:[#allocation2 + $0x88] sm:$0xff] %vm245_vm0, %v1809_v10 }
  0x9e   : > { %v385_v23 = vpop.permute.xlu1 %384  ;;  %v383_v13 = vpop.permute.xlu0 %382 }
  0x9f   : > { %478 = vst.msk [vmem:[#allocation2 + $0xf0] sm:$0xff] %vm462_vm1, %v385_v23  ;;  %477 = vst.msk [vmem:[#allocation2 + $0xe0] sm:$0xff] %vm462_vm1, %v383_v13 }
  0xa0   : > { %1443 = vrot.lane.b32.xlu1 %v1369_v18, %s2743_s7  ;;  %1226 = vrot.lane.b32.xlu0 %v3109_v53, %s2744_s8 }
  0xa2   : > { %v389_v28 = vpop.permute.xlu1 %388  ;;  %v387_v30 = vpop.permute.xlu0 %386 }
  0xa3   : > { %480 = vst.msk [vmem:[#allocation2 + $0x110] sm:$0xff] %vm462_vm1, %v389_v28  ;;  %479 = vst.msk [vmem:[#allocation2 + $0x100] sm:$0xff] %vm462_vm1, %v387_v30 }
  0xa4   : > { %1660 = vrot.lane.b32.xlu1 %v1586_v26, %s2745_s11  ;;  %794 = vrot.lane.b32.xlu0 %v2946_v12, %s2742_s28  ;;  %v937_v12 = vld [vmem:[%s2785_s20 + $0x33] sm:$0xff]  ;;  %v942_v26 = vld [vmem:[%s2785_s20 + $0x5b] sm:$0xff] }
  0xa6   : > { %v393_v32 = vpop.permute.xlu1 %392  ;;  %v391_v33 = vpop.permute.xlu0 %390 }
  0xa7   : > { %482 = vst.msk [vmem:[#allocation2 + $0x130] sm:$0xff] %vm462_vm1, %v393_v32  ;;  %481 = vst.msk [vmem:[#allocation2 + $0x120] sm:$0xff] %vm462_vm1, %v391_v33 }
  0xa8   : > { %1228 = vrot.lane.b32.xlu1 %v1368_v6, %s2744_s8  ;;  %1011 = vrot.lane.b32.xlu0 %v936_v31, %s2741_s27  ;;  %v1374_v6 = vld [vmem:[%s2785_s20 + $0x5c] sm:$0xff] }
  0xa9   : > { %v951_v31 = vld [vmem:[%s2785_s20 + $0xa3] sm:$0xff] }
  0xaa   : > { %v397_v36 = vpop.permute.xlu1 %396  ;;  %v395_v37 = vpop.permute.xlu0 %394 }
  0xab   : > { %484 = vst.msk [vmem:[#allocation2 + $0x150] sm:$0xff] %vm462_vm1, %v397_v36  ;;  %483 = vst.msk [vmem:[#allocation2 + $0x140] sm:$0xff] %vm462_vm1, %v395_v37 }
  0xac   : > { %796 = vrot.lane.b32.xlu1 %v2959_v15, %s2742_s28  ;;  %1445 = vrot.lane.b32.xlu0 %v1370_v34, %s2743_s7 }
  0xae   : > { %v401_v41 = vpop.permute.xlu1 %400  ;;  %v399_v44 = vpop.permute.xlu0 %398 }
  0xaf   : > { %486 = vst.msk [vmem:[#allocation2 + $0x170] sm:$0xff] %vm462_vm1, %v401_v41  ;;  %485 = vst.msk [vmem:[#allocation2 + $0x160] sm:$0xff] %vm462_vm1, %v399_v44  ;;  %v1593_v44 = vld [vmem:[%s2785_s20 + $0x6d] sm:$0xff] }
  0xb0   : > { %1013 = vrot.lane.b32.xlu1 %v937_v12, %s2741_s27  ;;  %1662 = vrot.lane.b32.xlu0 %v1587_v40, %s2745_s11  ;;  %v3307_v12 = vld [vmem:[%s2785_s20 + $0xb4] sm:$0xff] }
  0xb2   : > { %v405_v46 = vpop.permute.xlu1 %404  ;;  %v403_v15 = vpop.permute.xlu0 %402 }
  0xb3   : > { %488 = vst.msk [vmem:[#allocation2 + $0x190] sm:$0xff] %vm462_vm1, %v405_v46  ;;  %487 = vst.msk [vmem:[#allocation2 + $0x180] sm:$0xff] %vm462_vm1, %v403_v15 }
  0xb4   : > { %1447 = vrot.lane.b32.xlu1 %v1371_v45, %s2743_s7  ;;  %1230 = vrot.lane.b32.xlu0 %v1369_v18, %s2744_s8 }
  0xb6   : > { %v409_v49 = vpop.permute.xlu1 %408  ;;  %v407_v50 = vpop.permute.xlu0 %406 }
  0xb7   : > { %490 = vst.msk [vmem:[#allocation2 + $0x1b0] sm:$0xff] %vm462_vm1, %v409_v49  ;;  %489 = vst.msk [vmem:[#allocation2 + $0x1a0] sm:$0xff] %vm462_vm1, %v407_v50  ;;  %v952_v50 = vld [vmem:[%s2785_s20 + $0xab] sm:$0xff] }
  0xb8   : > { %1664 = vrot.lane.b32.xlu1 %v1588_v47, %s2745_s11  ;;  %798 = vrot.lane.b32.xlu0 %v2956_v14, %s2742_s28  ;;  %v939_v14 = vld [vmem:[%s2785_s20 + $0x43] sm:$0xff]  ;;  %v1602_v47 = vld [vmem:[%s2785_s20 + $0xb5] sm:$0xff] }
  0xba   : > { %v413_v52 = vpop.permute.xlu1 %412  ;;  %v411_v53 = vpop.permute.xlu0 %410 }
  0xbb   : > { %492 = vst.msk [vmem:[#allocation2 + $0x1d0] sm:$0xff] %vm462_vm1, %v413_v52  ;;  %491 = vst.msk [vmem:[#allocation2 + $0x1c0] sm:$0xff] %vm462_vm1, %v411_v53  ;;  %v3337_v53 = vld [vmem:[%s2785_s20 + $0x74] sm:$0xff] }
  0xbc   : > { %1232 = vrot.lane.b32.xlu1 %v1370_v34, %s2744_s8  ;;  %1015 = vrot.lane.b32.xlu0 %v938_v51, %s2741_s27  ;;  %v3296_v34 = vld [vmem:[%s2785_s20 + $0xa4] sm:$0xff]  ;;  %v1811_v51 = vld [vmem:[%s2785_s20 + $0x76] sm:$0xff] }
  0xbd   : > { %1847 = vst.msk [vmem:[#allocation2 + $0xa8] sm:$0xff] %vm245_vm0, %v1811_v51 }
  0xbe   : > { %v417_v56 = vpop.permute.xlu1 %416  ;;  %v415_v57 = vpop.permute.xlu0 %414 }
  0xbf   : > { %494 = vst.msk [vmem:[#allocation2 + $0x1f0] sm:$0xff] %vm462_vm1, %v417_v56  ;;  %493 = vst.msk [vmem:[#allocation2 + $0x1e0] sm:$0xff] %vm462_vm1, %v415_v57 }
  0xc0   : > { %800 = vrot.lane.b32.xlu1 %v2969_v17, %s2742_s28  ;;  %1449 = vrot.lane.b32.xlu0 %v1372_v54, %s2743_s7 }
  0xc2   : > { %v421_v59 = vpop.permute.xlu1 %420  ;;  %v419_v60 = vpop.permute.xlu0 %418 }
  0xc3   : > { %496 = vst.msk [vmem:[#allocation2 + $0x210] sm:$0xff] %vm462_vm1, %v421_v59  ;;  %495 = vst.msk [vmem:[#allocation2 + $0x200] sm:$0xff] %vm462_vm1, %v419_v60  ;;  %v1594_v60 = vld [vmem:[%s2785_s20 + $0x75] sm:$0xff] }
  0xc4   : > { %1017 = vrot.lane.b32.xlu1 %v939_v14, %s2741_s27  ;;  %1666 = vrot.lane.b32.xlu0 %v1589_v58, %s2745_s11  ;;  %v3351_v14 = vld [vmem:[%s2785_s20 + $0xbc] sm:$0xff] }
  0xc6   : > { %v425_v62 = vpop.permute.xlu1 %424  ;;  %v423_v17 = vpop.permute.xlu0 %422 }
  0xc7   : > { %498 = vst.msk [vmem:[#allocation2 + $0x230] sm:$0xff] %vm462_vm1, %v425_v62  ;;  %497 = vst.msk [vmem:[#allocation2 + $0x220] sm:$0xff] %vm462_vm1, %v423_v17  ;;  %v944_v17 = vld [vmem:[%s2785_s20 + $0x6b] sm:$0xff] }
  0xc8   : > { %1451 = vrot.lane.b32.xlu1 %v1373_v61, %s2743_s7  ;;  %1234 = vrot.lane.b32.xlu0 %v1371_v45, %s2744_s8  ;;  %v1910_v45 = vld [vmem:[#allocation2 + $0x128] sm:$0xff] }
  0xc9   : > { %2656 = vmatprep.mubr.msk.f32.mxu1 %vm245_vm0, %v1910_v45  ;;  %v1882_v45 = vld [vmem:[#allocation2 + $0x48] sm:$0xff] }
  0xca   : > { %v574_v1 = vpop.permute.xlu1 %573  ;;  %v572_v2 = vpop.permute.xlu0 %571 }
  0xcb   : > { %681 = vst.msk [vmem:[#allocation2 + $0x10] sm:$0xff] %vm679_vm2, %v574_v1  ;;  %680 = vst.msk [vmem:[#allocation2] sm:$0xff] %vm679_vm2, %v572_v2  ;;  %v1876_v2 = vld [vmem:[#allocation2 + $0x18] sm:$0xff] }
  0xcc   : > { %1668 = vrot.lane.b32.xlu1 %v1590_v63, %s2745_s11  ;;  %802 = vrot.lane.b32.xlu0 %v2966_v16, %s2742_s28  ;;  %v941_v16 = vld [vmem:[%s2785_s20 + $0x53] sm:$0xff]  ;;  %v1603_v63 = vld [vmem:[%s2785_s20 + $0xbd] sm:$0xff] }
  0xce   : > { %v578_v4 = vpop.permute.xlu1 %577  ;;  %v576_v5 = vpop.permute.xlu0 %575 }
  0xcf   : > { %683 = vst.msk [vmem:[#allocation2 + $0x30] sm:$0xff] %vm679_vm2, %v578_v4  ;;  %682 = vst.msk [vmem:[#allocation2 + $0x20] sm:$0xff] %vm679_vm2, %v576_v5 }
  0xd0   : > { %1236 = vrot.lane.b32.xlu1 %v1372_v54, %s2744_s8  ;;  %1019 = vrot.lane.b32.xlu0 %v940_v3, %s2741_s27  ;;  %v3340_v54 = vld [vmem:[%s2785_s20 + $0xac] sm:$0xff] }
  0xd1   : > { %v953_v3 = vld [vmem:[%s2785_s20 + $0xb3] sm:$0xff] }
  0xd2   : > { %v582_v7 = vpop.permute.xlu1 %581  ;;  %v580_v8 = vpop.permute.xlu0 %579 }
  0xd3   : > { %685 = vst.msk [vmem:[#allocation2 + $0x50] sm:$0xff] %vm679_vm2, %v582_v7  ;;  %684 = vst.msk [vmem:[#allocation2 + $0x40] sm:$0xff] %vm679_vm2, %v580_v8  ;;  %v1821_v7 = vld [vmem:[%s2785_s20 + $0xc6] sm:$0xff] }
  0xd4   : > { %804 = vrot.lane.b32.xlu1 %v2987_v22, %s2742_s28  ;;  %1453 = vrot.lane.b32.xlu0 %v1374_v6, %s2743_s7  ;;  %v3266_v22 = vld [vmem:[%s2785_s20 + $0x64] sm:$0xff]  ;;  %1857 = vst.msk [vmem:[#allocation2 + $0x148] sm:$0xff] %vm245_vm0, %v1821_v7 }
  0xd6   : > { %v586_v11 = vpop.permute.xlu1 %585  ;;  %v584_v19 = vpop.permute.xlu0 %583 }
  0xd7   : > { %687 = vst.msk [vmem:[#allocation2 + $0x70] sm:$0xff] %vm679_vm2, %v586_v11  ;;  %686 = vst.msk [vmem:[#allocation2 + $0x60] sm:$0xff] %vm679_vm2, %v584_v19 }
  0xd8   : > { %1021 = vrot.lane.b32.xlu1 %v941_v16, %s2741_s27  ;;  %1670 = vrot.lane.b32.xlu0 %v1591_v9, %s2745_s11  ;;  %v3392_v9 = vld [vmem:[%s2785_s20 + $0xc4] sm:$0xff] }
  0xda   : > { %v590_v20 = vpop.permute.xlu1 %589  ;;  %v588_v18 = vpop.permute.xlu0 %587 }
  0xdb   : > { %689 = vst.msk [vmem:[#allocation2 + $0x90] sm:$0xff] %vm679_vm2, %v590_v20  ;;  %688 = vst.msk [vmem:[#allocation2 + $0x80] sm:$0xff] %vm679_vm2, %v588_v18  ;;  %v1595_v20 = vld [vmem:[%s2785_s20 + $0x7d] sm:$0xff] }
  0xdc   : > { %1455 = vrot.lane.b32.xlu1 %v3266_v22, %s2743_s7  ;;  %1238 = vrot.lane.b32.xlu0 %v1373_v61, %s2744_s8 }
  0xde   : > { %v594_v23 = vpop.permute.xlu1 %593  ;;  %v592_v13 = vpop.permute.xlu0 %591 }
  0xdf   : > { %691 = vst.msk [vmem:[#allocation2 + $0xb0] sm:$0xff] %vm679_vm2, %v594_v23  ;;  %690 = vst.msk [vmem:[#allocation2 + $0xa0] sm:$0xff] %vm679_vm2, %v592_v13  ;;  %v1604_v13 = vld [vmem:[%s2785_s20 + $0xc5] sm:$0xff] }
  0xe0   : > { %824 = vrot.lane.b32.xlu1 %v3057_v39, %s2742_s28  ;;  %806 = vrot.lane.b32.xlu0 %v2984_v21, %s2742_s28  ;;  %v1810_v39 = vld [vmem:[%s2785_s20 + $0x6e] sm:$0xff] }
  0xe1   : > { %1846 = vst.msk [vmem:[#allocation2 + $0x98] sm:$0xff] %vm245_vm0, %v1810_v39  ;;  %v3293_v21 = vld [vmem:[%s2785_s20 + $0x6c] sm:$0xff] }
  0xe2   : > { %v598_v28 = vpop.permute.xlu1 %597  ;;  %v596_v30 = vpop.permute.xlu0 %595 }
  0xe3   : > { %693 = vst.msk [vmem:[#allocation2 + $0xd0] sm:$0xff] %vm679_vm2, %v598_v28  ;;  %692 = vst.msk [vmem:[#allocation2 + $0xc0] sm:$0xff] %vm679_vm2, %v596_v30  ;;  %v1880_v30 = vld [vmem:[#allocation2 + $0x38] sm:$0xff] }
  0xe4   : > { %1023 = vrot.lane.b32.xlu1 %v942_v26, %s2741_s27  ;;  %1672 = vrot.lane.b32.xlu0 %v1592_v27, %s2745_s11 }
  0xe6   : > { %v602_v32 = vpop.permute.xlu1 %601  ;;  %v600_v33 = vpop.permute.xlu0 %599 }
  0xe7   : > { %695 = vst.msk [vmem:[#allocation2 + $0xf0] sm:$0xff] %vm679_vm2, %v602_v32  ;;  %694 = vst.msk [vmem:[#allocation2 + $0xe0] sm:$0xff] %vm679_vm2, %v600_v33  ;;  %v3423_v33 = vld [vmem:[%s2785_s20 + $0x84] sm:$0xff] }
  0xe8   : > { %1240 = vrot.lane.b32.xlu1 %v1374_v6, %s2744_s8  ;;  %1041 = vrot.lane.b32.xlu0 %v951_v31, %s2741_s27  ;;  %v3381_v6 = vld [vmem:[%s2785_s20 + $0x7c] sm:$0xff] }
  0xe9   : > { %v954_v31 = vld [vmem:[%s2785_s20 + $0xbb] sm:$0xff] }
  0xea   : > { %v606_v36 = vpop.permute.xlu1 %605  ;;  %v604_v37 = vpop.permute.xlu0 %603 }
  0xeb   : > { %697 = vst.msk [vmem:[#allocation2 + $0x110] sm:$0xff] %vm679_vm2, %v606_v36  ;;  %696 = vst.msk [vmem:[#allocation2 + $0x100] sm:$0xff] %vm679_vm2, %v604_v37  ;;  %v729_v37 = vld [vmem:[%s2785_s20 + $0x7a] sm:$0xff] }
  0xec   : > { %1457 = vrot.lane.b32.xlu1 %v3293_v21, %s2743_s7  ;;  %1258 = vrot.lane.b32.xlu0 %v3296_v34, %s2744_s8 }
  0xee   : > { %v610_v40 = vpop.permute.xlu1 %609  ;;  %v608_v41 = vpop.permute.xlu0 %607 }
  0xef   : > { %699 = vst.msk [vmem:[#allocation2 + $0x130] sm:$0xff] %vm679_vm2, %v610_v40  ;;  %698 = vst.msk [vmem:[#allocation2 + $0x120] sm:$0xff] %vm679_vm2, %v608_v41 }
  0xf0   : > { %808 = vrot.lane.b32.xlu1 %v3002_v25, %s2742_s28  ;;  %1475 = vrot.lane.b32.xlu0 %v3307_v12, %s2743_s7  ;;  %v943_v25 = vld [vmem:[%s2785_s20 + $0x63] sm:$0xff] }
  0xf2   : > { %v614_v46 = vpop.permute.xlu1 %613  ;;  %v612_v15 = vpop.permute.xlu0 %611 }
  0xf3   : > { %701 = vst.msk [vmem:[#allocation2 + $0x150] sm:$0xff] %vm679_vm2, %v614_v46  ;;  %700 = vst.msk [vmem:[#allocation2 + $0x140] sm:$0xff] %vm679_vm2, %v612_v15  ;;  %v1596_v46 = vld [vmem:[%s2785_s20 + $0x85] sm:$0xff] }
  0xf4   : > { %1674 = vrot.lane.b32.xlu1 %v1593_v44, %s2745_s11  ;;  %826 = vrot.lane.b32.xlu0 %v3054_v38, %s2742_s28  ;;  %v3444_v15 = vld [vmem:[%s2785_s20 + $0xc2] sm:$0xff] }
  0xf6   : > { %v618_v48 = vpop.permute.xlu1 %617  ;;  %v616_v49 = vpop.permute.xlu0 %615 }
  0xf7   : > { %703 = vst.msk [vmem:[#allocation2 + $0x170] sm:$0xff] %vm679_vm2, %v618_v48  ;;  %702 = vst.msk [vmem:[#allocation2 + $0x160] sm:$0xff] %vm679_vm2, %v616_v49  ;;  %v946_v48 = vld [vmem:[%s2785_s20 + $0x7b] sm:$0xff]  ;;  %v1605_v49 = vld [vmem:[%s2785_s20 + $0xcd] sm:$0xff] }
  0xf8   : > { %1025 = vrot.lane.b32.xlu1 %v943_v25, %s2741_s27  ;;  %1692 = vrot.lane.b32.xlu0 %v1602_v47, %s2745_s11 }
  0xfa   : > { %v1006_v38 = vpop.permute.xlu1 %1005  ;;  %v789_v52 = vpop.permute.xlu0 %788 }
  0xfb   : > { %897 = vst.msk [vmem:[#allocation2] sm:$0xff] %vm896_vm3, %v789_v52  ;;  %v1884_v52 = vld [vmem:[#allocation2 + $0x58] sm:$0xff] }
  0xfc   : > { %1242 = vrot.lane.b32.xlu1 %v3266_v22, %s2744_s8  ;;  %1043 = vrot.lane.b32.xlu0 %v952_v50, %s2741_s27  ;;  %1114 = vst.msk [vmem:[#allocation2] sm:$0xff] %vm1113_vm4, %v1006_v38  ;;  %v1878_v22 = vld [vmem:[#allocation2 + $0x28] sm:$0xff] }
  0xfe   : > { %v1440_v56 = vpop.permute.xlu1 %1439  ;;  %v1223_v57 = vpop.permute.xlu0 %1222 }
  0xff   : > { %1331 = vst.msk [vmem:[#allocation2] sm:$0xff] %vm1330_vm5, %v1223_v57 }
 0x100   : > { %1459 = vrot.lane.b32.xlu1 %v3337_v53, %s2743_s7  ;;  %1260 = vrot.lane.b32.xlu0 %v3340_v54, %s2744_s8  ;;  %1548 = vst.msk [vmem:[#allocation2] sm:$0xff] %vm1547_vm6, %v1440_v56 }
 0x102   : > { %v1657_v58 = vpop.permute.xlu1 %1656  ;;  %v791_v59 = vpop.permute.xlu0 %790 }
 0x103   : > { %1765 = vst.msk [vmem:[#allocation2] sm:$0xff] %vm1764_vm7, %v1657_v58  ;;  %v1823_v58 = vld [vmem:[%s2785_s20 + $0xd6] sm:$0xff] }
 0x104   : > { %898 = vst.msk [vmem:[#allocation2 + $0x10] sm:$0xff] %vm896_vm3, %v791_v59  ;;  %810 = vrot.lane.b32.xlu1 %v2999_v24, %s2742_s28  ;;  %1477 = vrot.lane.b32.xlu0 %v3351_v14, %s2743_s7 }
 0x105   : > { %1859 = vst.msk [vmem:[#allocation2 + $0x168] sm:$0xff] %vm245_vm0, %v1823_v58  ;;  %v1894_v58 = vld [vmem:[#allocation2 + $0xa8] sm:$0xff] }
 0x106   : > { %v1225_v61 = vpop.permute.xlu1 %1224  ;;  %v1008_v62 = vpop.permute.xlu0 %1007 }
 0x107   : > { %1115 = vst.msk [vmem:[#allocation2 + $0x10] sm:$0xff] %vm1113_vm4, %v1008_v62  ;;  %v3480_v62 = vld [vmem:[%s2785_s20 + $0xd4] sm:$0xff] }
 0x108   : > { %1332 = vst.msk [vmem:[#allocation2 + $0x10] sm:$0xff] %vm1330_vm5, %v1225_v61  ;;  %1676 = vrot.lane.b32.xlu1 %v1594_v60, %s2745_s11  ;;  %828 = vrot.lane.b32.xlu0 %v3077_v43, %s2742_s28  ;;  %v1812_v43 = vld [vmem:[%s2785_s20 + $0x7e] sm:$0xff] }
 0x109   : > { %1848 = vst.msk [vmem:[#allocation2 + $0xb8] sm:$0xff] %vm245_vm0, %v1812_v43  ;;  %v730_v61 = vld [vmem:[%s2785_s20 + $0x82] sm:$0xff] }
 0x10a   : > { %v793_v24 = vpop.permute.xlu1 %792  ;;  %v1442_v0 = vpop.permute.xlu0 %1441  ;;  %v1873_v1 = vld [vmem:[#allocation2] sm:$0xff] }
 0x10b   : > { %899 = vst.msk [vmem:[#allocation2 + $0x20] sm:$0xff] %vm896_vm3, %v793_v24  ;;  %2136 = vmatmul.mubr.f32.vlgmr.msra.gmra.mxu0 %v1873_v1  ;;  %v1597_v1 = vld [vmem:[%s2785_s20 + $0x8d] sm:$0xff] }
 0x10c   : > { %1549 = vst.msk [vmem:[#allocation2 + $0x10] sm:$0xff] %vm1547_vm6, %v1442_v0  ;;  %1027 = vrot.lane.b32.xlu1 %v944_v17, %s2741_s27  ;;  %1694 = vrot.lane.b32.xlu0 %v1603_v63, %s2745_s11  ;;  %v1886_v0 = vld [vmem:[#allocation2 + $0x68] sm:$0xff] }
 0x10d   : > { %2639 = vmatprep.mubr.msk.f32.mxu0 %vm245_vm0, %v1876_v2  ;;  %v3489_v2 = vld [vmem:[%s2785_s20 + $0xca] sm:$0xff] }
 0x10e   : > { %v1010_v4 = vpop.permute.xlu1 %1009  ;;  %v1659_v5 = vpop.permute.xlu0 %1658 }
 0x10f   : > { %1116 = vst.msk [vmem:[#allocation2 + $0x20] sm:$0xff] %vm1113_vm4, %v1010_v4  ;;  %v947_v4 = vld [vmem:[%s2785_s20 + $0x83] sm:$0xff] }
 0x110   : > { %1766 = vst.msk [vmem:[#allocation2 + $0x10] sm:$0xff] %vm1764_vm7, %v1659_v5  ;;  %1244 = vrot.lane.b32.xlu1 %v3293_v21, %s2744_s8  ;;  %1045 = vrot.lane.b32.xlu0 %v953_v3, %s2741_s27  ;;  %v1822_v21 = vld [vmem:[%s2785_s20 + $0xce] sm:$0xff] }
 0x111   : > { %1858 = vst.msk [vmem:[#allocation2 + $0x158] sm:$0xff] %vm245_vm0, %v1822_v21  ;;  %v1606_v5 = vld [vmem:[%s2785_s20 + $0xd5] sm:$0xff] }
 0x112   : > { %v1444_v8 = vpop.permute.xlu1 %1443  ;;  %v1227_v16 = vpop.permute.xlu0 %1226 }
 0x113   : > { %1333 = vst.msk [vmem:[#allocation2 + $0x20] sm:$0xff] %vm1330_vm5, %v1227_v16  ;;  %v1888_v16 = vld [vmem:[#allocation2 + $0x78] sm:$0xff] }
 0x114   : > { %1550 = vst.msk [vmem:[#allocation2 + $0x20] sm:$0xff] %vm1547_vm6, %v1444_v8  ;;  %1461 = vrot.lane.b32.xlu1 %v3381_v6, %s2743_s7  ;;  %1262 = vrot.lane.b32.xlu0 %v3307_v12, %s2744_s8  ;;  %v3435_v12 = vld [vmem:[%s2785_s20 + $0xcc] sm:$0xff] }
 0x116   : > { %v1661_v10 = vpop.permute.xlu1 %1660  ;;  %v795_v11 = vpop.permute.xlu0 %794 }
 0x117   : > { %v1875_v19 = vld [vmem:[#allocation2 + $0x10] sm:$0xff]  ;;  %1767 = vst.msk [vmem:[#allocation2 + $0x20] sm:$0xff] %vm1764_vm7, %v1661_v10 }
 0x118   : > { %900 = vst.msk [vmem:[#allocation2 + $0x30] sm:$0xff] %vm896_vm3, %v795_v11  ;;  %2141 = vmatmul.mubr.f32.gmra.mxu0 %v1875_v19  ;;  %812 = vrot.lane.b32.xlu1 %v3020_v29, %s2742_s28  ;;  %v945_v29 = vld [vmem:[%s2785_s20 + $0x73] sm:$0xff] }
 0x119   : > { %1479 = vrot.lane.b32.xlu0 %v3392_v9, %s2743_s7  ;;  %2640 = vmatprep.mubr.msk.f32.mxu0 %vm245_vm0, %v1878_v22  ;;  %v1815_v19 = vld [vmem:[%s2785_s20 + $0x96] sm:$0xff]  ;;  %v1824_v22 = vld [vmem:[%s2785_s20 + $0xde] sm:$0xff] }
 0x11a   : > { %v1229_v18 = vpop.permute.xlu1 %1228  ;;  %v1012_v23 = vpop.permute.xlu0 %1011  ;;  %1851 = vst.msk [vmem:[#allocation2 + $0xe8] sm:$0xff] %vm245_vm0, %v1815_v19  ;;  %1860 = vst.msk [vmem:[#allocation2 + $0x178] sm:$0xff] %vm245_vm0, %v1824_v22  ;;  %v1896_v19 = vld [vmem:[#allocation2 + $0xb8] sm:$0xff]  ;;  %v1600_v22 = vld [vmem:[%s2785_s20 + $0xa5] sm:$0xff] }
 0x11b   : > { %1117 = vst.msk [vmem:[#allocation2 + $0x30] sm:$0xff] %vm1113_vm4, %v1012_v23  ;;  %v3521_v23 = vld [vmem:[%s2785_s20 + $0xdc] sm:$0xff] }
 0x11c   : > { %1334 = vst.msk [vmem:[#allocation2 + $0x30] sm:$0xff] %vm1330_vm5, %v1229_v18  ;;  %1678 = vrot.lane.b32.xlu1 %v1595_v20, %s2745_s11 }
 0x11d   : > { %830 = vrot.lane.b32.xlu0 %v3074_v42, %s2742_s28  ;;  %v1813_v42 = vld [vmem:[%s2785_s20 + $0x86] sm:$0xff] }
 0x11e   : > { %v797_v26 = vpop.permute.xlu1 %796  ;;  %v1446_v27 = vpop.permute.xlu0 %1445  ;;  %v1877_v28 = vld [vmem:[#allocation2 + $0x20] sm:$0xff]  ;;  %1849 = vst.msk [vmem:[#allocation2 + $0xc8] sm:$0xff] %vm245_vm0, %v1813_v42 }
 0x11f   : > { %901 = vst.msk [vmem:[#allocation2 + $0x40] sm:$0xff] %vm896_vm3, %v797_v26  ;;  %2146 = vmatmul.mubr.f32.gmra.mxu0 %v1877_v28  ;;  %v1890_v28 = vld [vmem:[#allocation2 + $0x88] sm:$0xff] }
 0x120   : > { %1551 = vst.msk [vmem:[#allocation2 + $0x30] sm:$0xff] %vm1547_vm6, %v1446_v27  ;;  %1029 = vrot.lane.b32.xlu1 %v945_v29, %s2741_s27  ;;  %2641 = vmatprep.mubr.msk.f32.mxu0 %vm245_vm0, %v1880_v30  ;;  %v3524_v29 = vld [vmem:[%s2785_s20 + $0x94] sm:$0xff] }
 0x121   : > { %1696 = vrot.lane.b32.xlu0 %v1604_v13, %s2745_s11  ;;  %v3533_v30 = vld [vmem:[%s2785_s20 + $0xd2] sm:$0xff] }
 0x122   : > { %v1014_v39 = vpop.permute.xlu1 %1013  ;;  %v1663_v32 = vpop.permute.xlu0 %1662 }
 0x123   : > { %1118 = vst.msk [vmem:[#allocation2 + $0x40] sm:$0xff] %vm1113_vm4, %v1014_v39 }
 0x124   : > { %1768 = vst.msk [vmem:[#allocation2 + $0x30] sm:$0xff] %vm1764_vm7, %v1663_v32  ;;  %1246 = vrot.lane.b32.xlu1 %v3337_v53, %s2744_s8  ;;  %v955_v53 = vld [vmem:[%s2785_s20 + $0xc3] sm:$0xff] }
 0x125   : > { %1047 = vrot.lane.b32.xlu0 %v954_v31, %s2741_s27  ;;  %v731_v31 = vld [vmem:[%s2785_s20 + $0x8a] sm:$0xff]  ;;  %v1607_v32 = vld [vmem:[%s2785_s20 + $0xdd] sm:$0xff] }
 0x126   : > { %v1448_v35 = vpop.permute.xlu1 %1447  ;;  %v1231_v36 = vpop.permute.xlu0 %1230 }
 0x127   : > { %1335 = vst.msk [vmem:[#allocation2 + $0x40] sm:$0xff] %vm1330_vm5, %v1231_v36  ;;  %v957_v36 = vld [vmem:[%s2785_s20 + $0xd3] sm:$0xff] }
 0x128   : > { %1552 = vst.msk [vmem:[#allocation2 + $0x40] sm:$0xff] %vm1547_vm6, %v1448_v35  ;;  %1463 = vrot.lane.b32.xlu1 %v3423_v33, %s2743_s7 }
 0x129   : > { %1264 = vrot.lane.b32.xlu0 %v3351_v14, %s2744_s8  ;;  %v3468_v14 = vld [vmem:[%s2785_s20 + $0x8c] sm:$0xff] }
 0x12a   : > { %v1665_v40 = vpop.permute.xlu1 %1664  ;;  %v799_v41 = vpop.permute.xlu0 %798 }
 0x12b   : > { %v1879_v44 = vld [vmem:[#allocation2 + $0x30] sm:$0xff]  ;;  %1769 = vst.msk [vmem:[#allocation2 + $0x40] sm:$0xff] %vm1764_vm7, %v1665_v40 }
 0x12c   : > { %902 = vst.msk [vmem:[#allocation2 + $0x50] sm:$0xff] %vm896_vm3, %v799_v41  ;;  %2151 = vmatmul.mubr.f32.gmra.mxu0 %v1879_v44  ;;  %814 = vrot.lane.b32.xlu1 %v729_v37, %s2742_s28  ;;  %v948_v37 = vld [vmem:[%s2785_s20 + $0x8b] sm:$0xff]  ;;  %v1892_v44 = vld [vmem:[#allocation2 + $0x98] sm:$0xff] }
 0x12d   : > { %1481 = vrot.lane.b32.xlu0 %v3435_v12, %s2743_s7  ;;  %2642 = vmatprep.mubr.msk.f32.mxu0 %vm245_vm0, %v1882_v45  ;;  %v1816_v45 = vld [vmem:[%s2785_s20 + $0x9e] sm:$0xff] }
 0x12e   : > { %v1233_v25 = vpop.permute.xlu1 %1232  ;;  %v1016_v47 = vpop.permute.xlu0 %1015  ;;  %1852 = vst.msk [vmem:[#allocation2 + $0xf8] sm:$0xff] %vm245_vm0, %v1816_v45 }
 0x12f   : > { %1119 = vst.msk [vmem:[#allocation2 + $0x50] sm:$0xff] %vm1113_vm4, %v1016_v47  ;;  %v1825_v47 = vld [vmem:[%s2785_s20 + $0xe6] sm:$0xff] }
 0x130   : > { %1336 = vst.msk [vmem:[#allocation2 + $0x50] sm:$0xff] %vm1330_vm5, %v1233_v25  ;;  %1680 = vrot.lane.b32.xlu1 %v1596_v46, %s2745_s11  ;;  %v3564_v25 = vld [vmem:[%s2785_s20 + $0x9c] sm:$0xff] }
 0x131   : > { %832 = vrot.lane.b32.xlu0 %v3444_v15, %s2742_s28  ;;  %1861 = vst.msk [vmem:[#allocation2 + $0x188] sm:$0xff] %vm245_vm0, %v1825_v47  ;;  %v960_v47 = vld [vmem:[%s2785_s20 + $0xeb] sm:$0xff] }
 0x132   : > { %v801_v50 = vpop.permute.xlu1 %800  ;;  %v1450_v51 = vpop.permute.xlu0 %1449  ;;  %v1881_v38 = vld [vmem:[#allocation2 + $0x40] sm:$0xff] }
 0x133   : > { %903 = vst.msk [vmem:[#allocation2 + $0x60] sm:$0xff] %vm896_vm3, %v801_v50  ;;  %2156 = vmatmul.mubr.f32.gmra.mxu0 %v1881_v38  ;;  %v732_v50 = vld [vmem:[%s2785_s20 + $0x92] sm:$0xff] }
 0x134   : > { %1553 = vst.msk [vmem:[#allocation2 + $0x50] sm:$0xff] %vm1547_vm6, %v1450_v51  ;;  %1031 = vrot.lane.b32.xlu1 %v946_v48, %s2741_s27  ;;  %2643 = vmatprep.mubr.msk.f32.mxu0 %vm245_vm0, %v1884_v52  ;;  %v3576_v51 = vld [vmem:[%s2785_s20 + $0xe4] sm:$0xff] }
 0x135   : > { %1698 = vrot.lane.b32.xlu0 %v1605_v49, %s2745_s11 }
 0x136   : > { %v1018_v56 = vpop.permute.xlu1 %1017  ;;  %v1667_v57 = vpop.permute.xlu0 %1666 }
 0x137   : > { %1120 = vst.msk [vmem:[#allocation2 + $0x60] sm:$0xff] %vm1113_vm4, %v1018_v56 }
 0x138   : > { %1770 = vst.msk [vmem:[#allocation2 + $0x50] sm:$0xff] %vm1764_vm7, %v1667_v57  ;;  %1248 = vrot.lane.b32.xlu1 %v3381_v6, %s2744_s8 }
 0x139   : > { %1049 = vrot.lane.b32.xlu0 %v955_v53, %s2741_s27  ;;  %v1599_v53 = vld [vmem:[%s2785_s20 + $0x9d] sm:$0xff] }
 0x13a   : > { %v1452_v59 = vpop.permute.xlu1 %1451  ;;  %v1235_v60 = vpop.permute.xlu0 %1234 }
 0x13b   : > { %1337 = vst.msk [vmem:[#allocation2 + $0x60] sm:$0xff] %vm1330_vm5, %v1235_v60  ;;  %v1608_v60 = vld [vmem:[%s2785_s20 + $0xe5] sm:$0xff] }
 0x13c   : > { %1554 = vst.msk [vmem:[#allocation2 + $0x60] sm:$0xff] %vm1547_vm6, %v1452_v59  ;;  %1465 = vrot.lane.b32.xlu1 %v3468_v14, %s2743_s7  ;;  %v949_v59 = vld [vmem:[%s2785_s20 + $0x93] sm:$0xff] }
 0x13d   : > { %1266 = vrot.lane.b32.xlu0 %v3392_v9, %s2744_s8  ;;  %v956_v9 = vld [vmem:[%s2785_s20 + $0xcb] sm:$0xff] }
 0x13e   : > { %v1669_v17 = vpop.permute.xlu1 %1668  ;;  %v803_v63 = vpop.permute.xlu0 %802 }
 0x13f   : > { %v1883_v24 = vld [vmem:[#allocation2 + $0x50] sm:$0xff]  ;;  %1771 = vst.msk [vmem:[#allocation2 + $0x60] sm:$0xff] %vm1764_vm7, %v1669_v17 }
 0x140   : > { %904 = vst.msk [vmem:[#allocation2 + $0x70] sm:$0xff] %vm896_vm3, %v803_v63  ;;  %2161 = vmatmul.mubr.f32.gmra.mxu0 %v1883_v24  ;;  %816 = vrot.lane.b32.xlu1 %v730_v61, %s2742_s28  ;;  %v1912_v63 = vld [vmem:[#allocation2 + $0x138] sm:$0xff] }
 0x141   : > { %1483 = vrot.lane.b32.xlu0 %v3480_v62, %s2743_s7  ;;  %2644 = vmatprep.mubr.msk.f32.mxu0 %vm245_vm0, %v1886_v0  ;;  %v958_v24 = vld [vmem:[%s2785_s20 + $0xdb] sm:$0xff] }
 0x142   : > { %v1237_v3 = vpop.permute.xlu1 %1236  ;;  %v1020_v43 = vpop.permute.xlu0 %1019 }
 0x143   : > { %1121 = vst.msk [vmem:[#allocation2 + $0x70] sm:$0xff] %vm1113_vm4, %v1020_v43 }
 0x144   : > { %1338 = vst.msk [vmem:[#allocation2 + $0x70] sm:$0xff] %vm1330_vm5, %v1237_v3  ;;  %1682 = vrot.lane.b32.xlu1 %v1597_v1, %s2745_s11  ;;  %v1826_v3 = vld [vmem:[%s2785_s20 + $0xee] sm:$0xff] }
 0x145   : > { %834 = vrot.lane.b32.xlu0 %v3489_v2, %s2742_s28  ;;  %1862 = vst.msk [vmem:[#allocation2 + $0x198] sm:$0xff] %vm245_vm0, %v1826_v3  ;;  %v1830_v3 = vld [vmem:[%s2785_s20 + $0x10e] sm:$0xff] }
 0x146   : > { %v805_v6 = vpop.permute.xlu1 %804  ;;  %v1454_v7 = vpop.permute.xlu0 %1453  ;;  %v1885_v8 = vld [vmem:[#allocation2 + $0x60] sm:$0xff]  ;;  %1866 = vst.msk [vmem:[#allocation2 + $0x1d8] sm:$0xff] %vm245_vm0, %v1830_v3 }
 0x147   : > { %905 = vst.msk [vmem:[#allocation2 + $0x80] sm:$0xff] %vm896_vm3, %v805_v6  ;;  %2166 = vmatmul.mubr.f32.gmra.mxu0 %v1885_v8  ;;  %v3626_v8 = vld [vmem:[%s2785_s20 + $0xe2] sm:$0xff] }
 0x148   : > { %1555 = vst.msk [vmem:[#allocation2 + $0x70] sm:$0xff] %vm1547_vm6, %v1454_v7  ;;  %1033 = vrot.lane.b32.xlu1 %v947_v4, %s2741_s27  ;;  %2645 = vmatprep.mubr.msk.f32.mxu0 %vm245_vm0, %v1888_v16  ;;  %v733_v16 = vld [vmem:[%s2785_s20 + $0x9a] sm:$0xff] }
 0x149   : > { %1700 = vrot.lane.b32.xlu0 %v1606_v5, %s2745_s11  ;;  %v3617_v5 = vld [vmem:[%s2785_s20 + $0xec] sm:$0xff] }
 0x14a   : > { %v1022_v10 = vpop.permute.xlu1 %1021  ;;  %v1671_v11 = vpop.permute.xlu0 %1670 }
 0x14b   : > { %1122 = vst.msk [vmem:[#allocation2 + $0x80] sm:$0xff] %vm1113_vm4, %v1022_v10 }
 0x14c   : > { %1772 = vst.msk [vmem:[#allocation2 + $0x70] sm:$0xff] %vm1764_vm7, %v1671_v11  ;;  %1250 = vrot.lane.b32.xlu1 %v3423_v33, %s2744_s8  ;;  %v1598_v33 = vld [vmem:[%s2785_s20 + $0x95] sm:$0xff] }
 0x14d   : > { %1051 = vrot.lane.b32.xlu0 %v956_v9, %s2741_s27 }
 0x14e   : > { %v1456_v20 = vpop.permute.xlu1 %1455  ;;  %v1239_v18 = vpop.permute.xlu0 %1238 }
 0x14f   : > { %1339 = vst.msk [vmem:[#allocation2 + $0x80] sm:$0xff] %vm1330_vm5, %v1239_v18 }
 0x150   : > { %1556 = vst.msk [vmem:[#allocation2 + $0x80] sm:$0xff] %vm1547_vm6, %v1456_v20  ;;  %619 = vrot.lane.b32.xlu1 %v3444_v15, %s2739_s22 }
 0x151   : > { %1268 = vrot.lane.b32.xlu0 %v3435_v12, %s2744_s8 }
 0x152   : > { %v825_v13 = vpop.permute.xlu1 %824  ;;  %v807_v26 = vpop.permute.xlu0 %806 }
 0x153   : > { %v1887_v27 = vld [vmem:[#allocation2 + $0x70] sm:$0xff]  ;;  %915 = vst.msk [vmem:[#allocation2 + $0x120] sm:$0xff] %vm896_vm3, %v825_v13  ;;  %906 = vst.msk [vmem:[#allocation2 + $0x90] sm:$0xff] %vm896_vm3, %v807_v26  ;;  %v959_v13 = vld [vmem:[%s2785_s20 + $0xe3] sm:$0xff] }
 0x154   : > { %2171 = vmatmul.mubr.f32.gmra.mxu0 %v1887_v27  ;;  %1485 = vrot.lane.b32.xlu1 %v3521_v23, %s2743_s7  ;;  %v950_v26 = vld [vmem:[%s2785_s20 + $0x9b] sm:$0xff] }
 0x155   : > { %1467 = vrot.lane.b32.xlu0 %v3524_v29, %s2743_s7  ;;  %2646 = vmatprep.mubr.msk.f32.mxu0 %vm245_vm0, %v1890_v28 }
 0x156   : > { %v1024_v42 = vpop.permute.xlu1 %1023  ;;  %v1673_v39 = vpop.permute.xlu0 %1672 }
 0x157   : > { %1123 = vst.msk [vmem:[#allocation2 + $0x90] sm:$0xff] %vm1113_vm4, %v1024_v42 }
 0x158   : > { %1773 = vst.msk [vmem:[#allocation2 + $0x80] sm:$0xff] %vm1764_vm7, %v1673_v39  ;;  %836 = vrot.lane.b32.xlu1 %v3533_v30, %s2742_s28 }
 0x159   : > { %818 = vrot.lane.b32.xlu0 %v731_v31, %s2742_s28  ;;  %v1827_v31 = vld [vmem:[%s2785_s20 + $0xf6] sm:$0xff] }
 0x15a   : > { %v1241_v21 = vpop.permute.xlu1 %1240  ;;  %v1042_v35 = vpop.permute.xlu0 %1041  ;;  %1863 = vst.msk [vmem:[#allocation2 + $0x1a8] sm:$0xff] %vm245_vm0, %v1827_v31 }
 0x15b   : > { %1340 = vst.msk [vmem:[#allocation2 + $0x90] sm:$0xff] %vm1330_vm5, %v1241_v21  ;;  %v3665_v21 = vld [vmem:[%s2785_s20 + $0xea] sm:$0xff] }
 0x15c   : > { %1132 = vst.msk [vmem:[#allocation2 + $0x120] sm:$0xff] %vm1113_vm4, %v1042_v35  ;;  %1702 = vrot.lane.b32.xlu1 %v1607_v32, %s2745_s11  ;;  %v1393_v35 = vld [vmem:[%s2785_s20 + $0xf4] sm:$0xff] }
 0x15d   : > { %1684 = vrot.lane.b32.xlu0 %v1598_v33, %s2745_s11 }
 0x15e   : > { %v1458_v12 = vpop.permute.xlu1 %1457  ;;  %v1259_v40 = vpop.permute.xlu0 %1258 }
 0x15f   : > { %v1889_v41 = vld [vmem:[#allocation2 + $0x80] sm:$0xff]  ;;  %1557 = vst.msk [vmem:[#allocation2 + $0x90] sm:$0xff] %vm1547_vm6, %v1458_v12 }
 0x160   : > { %1349 = vst.msk [vmem:[#allocation2 + $0x120] sm:$0xff] %vm1330_vm5, %v1259_v40  ;;  %2176 = vmatmul.mubr.f32.gmra.mxu0 %v1889_v41  ;;  %1053 = vrot.lane.b32.xlu1 %v957_v36, %s2741_s27  ;;  %v1898_v40 = vld [vmem:[#allocation2 + $0xc8] sm:$0xff] }
 0x161   : > { %1035 = vrot.lane.b32.xlu0 %v948_v37, %s2741_s27  ;;  %2647 = vmatprep.mubr.msk.f32.mxu0 %vm245_vm0, %v1892_v44  ;;  %v1601_v41 = vld [vmem:[%s2785_s20 + $0xad] sm:$0xff]  ;;  %v1828_v44 = vld [vmem:[%s2785_s20 + $0xfe] sm:$0xff] }
 0x162   : > { %v809_v46 = vpop.permute.xlu1 %808  ;;  %v1476_v15 = vpop.permute.xlu0 %1475  ;;  %1864 = vst.msk [vmem:[#allocation2 + $0x1b8] sm:$0xff] %vm245_vm0, %v1828_v44  ;;  %v3784_v44 = vld [vmem:[%s2785_s20 + $0x11c] sm:$0xff] }
 0x163   : > { %907 = vst.msk [vmem:[#allocation2 + $0xa0] sm:$0xff] %vm896_vm3, %v809_v46 }
 0x164   : > { %1566 = vst.msk [vmem:[#allocation2 + $0x120] sm:$0xff] %vm1547_vm6, %v1476_v15  ;;  %1270 = vrot.lane.b32.xlu1 %v3480_v62, %s2744_s8 }
 0x165   : > { %1252 = vrot.lane.b32.xlu0 %v3468_v14, %s2744_s8 }
 0x166   : > { %v1675_v48 = vpop.permute.xlu1 %1674  ;;  %v827_v49 = vpop.permute.xlu0 %826 }
 0x167   : > { %1774 = vst.msk [vmem:[#allocation2 + $0x90] sm:$0xff] %vm1764_vm7, %v1675_v48 }
 0x168   : > { %916 = vst.msk [vmem:[#allocation2 + $0x130] sm:$0xff] %vm896_vm3, %v827_v49  ;;  %1469 = vrot.lane.b32.xlu1 %v3564_v25, %s2743_s7 }
 0x169   : > { %621 = vrot.lane.b32.xlu0 %v3489_v2, %s2739_s22  ;;  %v1817_v2 = vld [vmem:[%s2785_s20 + $0xa6] sm:$0xff] }
 0x16a   : > { %v1026_v38 = vpop.permute.xlu1 %1025  ;;  %v1693_v52 = vpop.permute.xlu0 %1692  ;;  %1853 = vst.msk [vmem:[#allocation2 + $0x108] sm:$0xff] %vm245_vm0, %v1817_v2  ;;  %v745_v2 = vld [vmem:[%s2785_s20 + $0xfa] sm:$0xff] }
 0x16b   : > { %1124 = vst.msk [vmem:[#allocation2 + $0xa0] sm:$0xff] %vm1113_vm4, %v1026_v38 }
 0x16c   : > { %1783 = vst.msk [vmem:[#allocation2 + $0x120] sm:$0xff] %vm1764_vm7, %v1693_v52  ;;  %820 = vrot.lane.b32.xlu1 %v732_v50, %s2742_s28  ;;  %v1394_v50 = vld [vmem:[%s2785_s20 + $0xfc] sm:$0xff] }
 0x16d   : > { %1487 = vrot.lane.b32.xlu0 %v3576_v51, %s2743_s7  ;;  %v1611_v52 = vld [vmem:[%s2785_s20 + $0xfd] sm:$0xff] }
 0x16e   : > { %v1243_v56 = vpop.permute.xlu1 %1242  ;;  %v1044_v57 = vpop.permute.xlu0 %1043  ;;  %v1891_v14 = vld [vmem:[#allocation2 + $0x90] sm:$0xff] }
 0x16f   : > { %1341 = vst.msk [vmem:[#allocation2 + $0xa0] sm:$0xff] %vm1330_vm5, %v1243_v56  ;;  %2181 = vmatmul.mubr.f32.gmra.mxu0 %v1891_v14  ;;  %v961_v14 = vld [vmem:[%s2785_s20 + $0xf3] sm:$0xff] }
 0x170   : > { %1133 = vst.msk [vmem:[#allocation2 + $0x130] sm:$0xff] %vm1113_vm4, %v1044_v57  ;;  %1686 = vrot.lane.b32.xlu1 %v1599_v53, %s2745_s11  ;;  %2648 = vmatprep.mubr.msk.f32.mxu0 %vm245_vm0, %v1894_v58  ;;  %v744_v53 = vld [vmem:[%s2785_s20 + $0xf2] sm:$0xff] }
 0x171   : > { %838 = vrot.lane.b32.xlu0 %v3585_v55, %s2742_s28 }
 0x172   : > { %v1460_v61 = vpop.permute.xlu1 %1459  ;;  %v1261_v62 = vpop.permute.xlu0 %1260 }
 0x173   : > { %v1909_v17 = vld [vmem:[#allocation2 + $0x120] sm:$0xff]  ;;  %1558 = vst.msk [vmem:[#allocation2 + $0xa0] sm:$0xff] %vm1547_vm6, %v1460_v61  ;;  %v1900_v61 = vld [vmem:[#allocation2 + $0xd8] sm:$0xff] }
 0x174   : > { %1350 = vst.msk [vmem:[#allocation2 + $0x130] sm:$0xff] %vm1330_vm5, %v1261_v62  ;;  %2226 = vmatmul.mubr.f32.vlgmr.msra.gmra.mxu1 %v1909_v17  ;;  %1037 = vrot.lane.b32.xlu1 %v949_v59, %s2741_s27  ;;  %v1395_v62 = vld [vmem:[%s2785_s20 + $0x104] sm:$0xff] }
 0x175   : > { %1704 = vrot.lane.b32.xlu0 %v1608_v60, %s2745_s11  ;;  %2657 = vmatprep.mubr.msk.f32.mxu1 %vm245_vm0, %v1912_v63 }
 0x176   : > { %v811_v0 = vpop.permute.xlu1 %810  ;;  %v1478_v1 = vpop.permute.xlu0 %1477 }
 0x177   : > { %908 = vst.msk [vmem:[#allocation2 + $0xb0] sm:$0xff] %vm896_vm3, %v811_v0  ;;  %v1918_v0 = vld [vmem:[#allocation2 + $0x168] sm:$0xff] }
 0x178   : > { %1567 = vst.msk [vmem:[#allocation2 + $0x130] sm:$0xff] %vm1547_vm6, %v1478_v1  ;;  %1254 = vrot.lane.b32.xlu1 %v3524_v29, %s2744_s8  ;;  %v1914_v29 = vld [vmem:[#allocation2 + $0x148] sm:$0xff] }
 0x179   : > { %1055 = vrot.lane.b32.xlu0 %v958_v24, %s2741_s27  ;;  %v1612_v1 = vld [vmem:[%s2785_s20 + $0x105] sm:$0xff] }
 0x17a   : > { %v1677_v43 = vpop.permute.xlu1 %1676  ;;  %v829_v4 = vpop.permute.xlu0 %828 }
 0x17b   : > { %1775 = vst.msk [vmem:[#allocation2 + $0xa0] sm:$0xff] %vm1764_vm7, %v1677_v43 }
 0x17c   : > { %917 = vst.msk [vmem:[#allocation2 + $0x140] sm:$0xff] %vm896_vm3, %v829_v4  ;;  %623 = vrot.lane.b32.xlu1 %v3533_v30, %s2739_s22  ;;  %v1818_v30 = vld [vmem:[%s2785_s20 + $0xae] sm:$0xff] }
 0x17d   : > { %1272 = vrot.lane.b32.xlu0 %v3521_v23, %s2744_s8  ;;  %1854 = vst.msk [vmem:[#allocation2 + $0x118] sm:$0xff] %vm245_vm0, %v1818_v30 }
 0x17e   : > { %v1028_v6 = vpop.permute.xlu1 %1027  ;;  %v1695_v7 = vpop.permute.xlu0 %1694 }
 0x17f   : > { %1125 = vst.msk [vmem:[#allocation2 + $0xb0] sm:$0xff] %vm1113_vm4, %v1028_v6 }
 0x180   : > { %1784 = vst.msk [vmem:[#allocation2 + $0x130] sm:$0xff] %vm1764_vm7, %v1695_v7  ;;  %1489 = vrot.lane.b32.xlu1 %v3617_v5, %s2743_s7 }
 0x181   : > { %1471 = vrot.lane.b32.xlu0 %v3296_v34, %s2743_s7  ;;  %v1609_v34 = vld [vmem:[%s2785_s20 + $0xed] sm:$0xff] }
 0x182   : > { %v1245_v9 = vpop.permute.xlu1 %1244  ;;  %v1046_v10 = vpop.permute.xlu0 %1045  ;;  %v1893_v11 = vld [vmem:[#allocation2 + $0xa0] sm:$0xff] }
 0x183   : > { %1342 = vst.msk [vmem:[#allocation2 + $0xb0] sm:$0xff] %vm1330_vm5, %v1245_v9  ;;  %2186 = vmatmul.mubr.f32.gmra.mxu0 %v1893_v11  ;;  %v746_v11 = vld [vmem:[%s2785_s20 + $0x102] sm:$0xff] }
 0x184   : > { %1134 = vst.msk [vmem:[#allocation2 + $0x140] sm:$0xff] %vm1113_vm4, %v1046_v10  ;;  %840 = vrot.lane.b32.xlu1 %v3626_v8, %s2742_s28  ;;  %2649 = vmatprep.mubr.msk.f32.mxu0 %vm245_vm0, %v1896_v19  ;;  %v1613_v10 = vld [vmem:[%s2785_s20 + $0x10d] sm:$0xff]  ;;  %v1831_v19 = vld [vmem:[%s2785_s20 + $0x116] sm:$0xff] }
 0x185   : > { %822 = vrot.lane.b32.xlu0 %v733_v16, %s2742_s28  ;;  %1867 = vst.msk [vmem:[#allocation2 + $0x1e8] sm:$0xff] %vm245_vm0, %v1831_v19 }
 0x186   : > { %v1462_v20 = vpop.permute.xlu1 %1461  ;;  %v1263_v18 = vpop.permute.xlu0 %1262 }
 0x187   : > { %v1911_v23 = vld [vmem:[#allocation2 + $0x130] sm:$0xff]  ;;  %1559 = vst.msk [vmem:[#allocation2 + $0xb0] sm:$0xff] %vm1547_vm6, %v1462_v20 }
 0x188   : > { %1351 = vst.msk [vmem:[#allocation2 + $0x140] sm:$0xff] %vm1330_vm5, %v1263_v18  ;;  %2231 = vmatmul.mubr.f32.gmra.mxu1 %v1911_v23  ;;  %1706 = vrot.lane.b32.xlu1 %v1609_v34, %s2745_s11  ;;  %v1902_v18 = vld [vmem:[#allocation2 + $0xe8] sm:$0xff] }
 0x189   : > { %1688 = vrot.lane.b32.xlu0 %v1600_v22, %s2745_s11  ;;  %2658 = vmatprep.mubr.msk.f32.mxu1 %vm245_vm0, %v1914_v29  ;;  %v963_v23 = vld [vmem:[%s2785_s20 + $0x103] sm:$0xff] }
 0x18a   : > { %v813_v27 = vpop.permute.xlu1 %812 }
 0x18b   : > { %v1480_v28 = vpop.permute.xlu0 %1479  ;;  %909 = vst.msk [vmem:[#allocation2 + $0xc0] sm:$0xff] %vm896_vm3, %v813_v27  ;;  %v1920_v27 = vld [vmem:[#allocation2 + $0x178] sm:$0xff] }
 0x18c   : > { %1568 = vst.msk [vmem:[#allocation2 + $0x140] sm:$0xff] %vm1547_vm6, %v1480_v28  ;;  %1057 = vrot.lane.b32.xlu1 %v959_v13, %s2741_s27  ;;  %v3749_v28 = vld [vmem:[%s2785_s20 + $0x114] sm:$0xff] }
 0x18d   : > { %1039 = vrot.lane.b32.xlu0 %v950_v26, %s2741_s27 }
 0x18e   : > { %v1679_v42 = vpop.permute.xlu1 %1678 }
 0x18f   : > { %v831_v39 = vpop.permute.xlu0 %830  ;;  %1776 = vst.msk [vmem:[#allocation2 + $0xb0] sm:$0xff] %vm1764_vm7, %v1679_v42  ;;  %v2316_v42 = vld [vmem:[%s4141_s2] sm:$0xff] }
 0x190   : > { %918 = vst.msk [vmem:[#allocation2 + $0x150] sm:$0xff] %vm896_vm3, %v831_v39  ;;  %1274 = vrot.lane.b32.xlu1 %v3576_v51, %s2744_s8  ;;  %v1614_v39 = vld [vmem:[%s2785_s20 + $0x115] sm:$0xff] }
 0x191   : > { %1256 = vrot.lane.b32.xlu0 %v3564_v25, %s2744_s8  ;;  %v1916_v25 = vld [vmem:[#allocation2 + $0x158] sm:$0xff] }
 0x192   : > { %v1030_v32 = vpop.permute.xlu1 %1029 }
 0x193   : > { %v1697_v33 = vpop.permute.xlu0 %1696  ;;  %1126 = vst.msk [vmem:[#allocation2 + $0xc0] sm:$0xff] %vm1113_vm4, %v1030_v32  ;;  %v3763_v32 = vld [vmem:[%s2785_s20 + $0x10a] sm:$0xff] }
 0x194   : > { %1785 = vst.msk [vmem:[#allocation2 + $0x140] sm:$0xff] %vm1764_vm7, %v1697_v33  ;;  %1473 = vrot.lane.b32.xlu1 %v3340_v54, %s2743_s7  ;;  %v1610_v54 = vld [vmem:[%s2785_s20 + $0xf5] sm:$0xff]  ;;  %v1832_v33 = vld [vmem:[%s2785_s20 + $0x11e] sm:$0xff] }
 0x195   : > { %625 = vrot.lane.b32.xlu0 %v3585_v55, %s2739_s22  ;;  %v1829_v55 = vld [vmem:[%s2785_s20 + $0x106] sm:$0xff]  ;;  %1868 = vst.msk [vmem:[#allocation2 + $0x1f8] sm:$0xff] %vm245_vm0, %v1832_v33 }
 0x196   : > { %v1247_v36 = vpop.permute.xlu1 %1246  ;;  %v1895_v12 = vld [vmem:[#allocation2 + $0xb0] sm:$0xff]  ;;  %1865 = vst.msk [vmem:[#allocation2 + $0x1c8] sm:$0xff] %vm245_vm0, %v1829_v55 }
 0x197   : > { %v1048_v37 = vpop.permute.xlu0 %1047  ;;  %1343 = vst.msk [vmem:[#allocation2 + $0xc0] sm:$0xff] %vm1330_vm5, %v1247_v36  ;;  %2191 = vmatmul.mubr.f32.gmra.mxu0 %v1895_v12 }
 0x198   : > { %1135 = vst.msk [vmem:[#allocation2 + $0x150] sm:$0xff] %vm1113_vm4, %v1048_v37  ;;  %842 = vrot.lane.b32.xlu1 %v3665_v21, %s2742_s28  ;;  %2650 = vmatprep.mubr.msk.f32.mxu0 %vm245_vm0, %v1898_v40  ;;  %v964_v40 = vld [vmem:[%s2785_s20 + $0x10b] sm:$0xff] }
 0x199   : > { %1491 = vrot.lane.b32.xlu0 %v1393_v35, %s2743_s7 }
 0x19a   : > { %v1464_v45 = vpop.permute.xlu1 %1463 }
 0x19b   : > { %v1265_v46 = vpop.permute.xlu0 %1264  ;;  %v1913_v15 = vld [vmem:[#allocation2 + $0x140] sm:$0xff]  ;;  %1560 = vst.msk [vmem:[#allocation2 + $0xc0] sm:$0xff] %vm1547_vm6, %v1464_v45 }
 0x19c   : > { %1352 = vst.msk [vmem:[#allocation2 + $0x150] sm:$0xff] %vm1330_vm5, %v1265_v46  ;;  %2236 = vmatmul.mubr.f32.gmra.mxu1 %v1913_v15  ;;  %1708 = vrot.lane.b32.xlu1 %v1610_v54, %s2745_s11  ;;  %v2317_v15 = vld [vmem:[%s4141_s2 + $0x8] sm:$0xff] }
 0x19d   : > { %1690 = vrot.lane.b32.xlu0 %v1601_v41, %s2745_s11  ;;  %2659 = vmatprep.mubr.msk.f32.mxu1 %vm245_vm0, %v1916_v25  ;;  %v1615_v25 = vld [vmem:[%s2785_s20 + $0x11d] sm:$0xff] }
 0x19e   : > { %v815_v48 = vpop.permute.xlu1 %814 }
 0x19f   : > { %v1482_v49 = vpop.permute.xlu0 %1481  ;;  %910 = vst.msk [vmem:[#allocation2 + $0xd0] sm:$0xff] %vm896_vm3, %v815_v48  ;;  %v1904_v48 = vld [vmem:[#allocation2 + $0xf8] sm:$0xff] }
 0x1a0   : > { %1569 = vst.msk [vmem:[#allocation2 + $0x150] sm:$0xff] %vm1547_vm6, %v1482_v49  ;;  %1276 = vrot.lane.b32.xlu1 %v3617_v5, %s2744_s8  ;;  %v962_v5 = vld [vmem:[%s2785_s20 + $0xfb] sm:$0xff]  ;;  %v1833_v49 = vld [vmem:[%s2785_s20 + $0x126] sm:$0xff] }
 0x1a1   : > { %1059 = vrot.lane.b32.xlu0 %v960_v47, %s2741_s27  ;;  %v3796_v47 = vld [vmem:[%s2785_s20 + $0x112] sm:$0xff]  ;;  %1869 = vst.msk [vmem:[#allocation2 + $0x208] sm:$0xff] %vm245_vm0, %v1833_v49 }
 0x1a2   : > { %v1681_v51 = vpop.permute.xlu1 %1680 }
 0x1a3   : > { %v833_v38 = vpop.permute.xlu0 %832  ;;  %1777 = vst.msk [vmem:[#allocation2 + $0xc0] sm:$0xff] %vm1764_vm7, %v1681_v51 }
 0x1a4   : > { %919 = vst.msk [vmem:[#allocation2 + $0x160] sm:$0xff] %vm896_vm3, %v833_v38  ;;  %1493 = vrot.lane.b32.xlu1 %v1394_v50, %s2743_s7 }
 0x1a5   : > { %627 = vrot.lane.b32.xlu0 %v3626_v8, %s2739_s22  ;;  %v1396_v8 = vld [vmem:[%s2785_s20 + $0x10c] sm:$0xff] }
 0x1a6   : > { %v1032_v56 = vpop.permute.xlu1 %1031 }
 0x1a7   : > { %v1699_v57 = vpop.permute.xlu0 %1698  ;;  %1127 = vst.msk [vmem:[#allocation2 + $0xd0] sm:$0xff] %vm1113_vm4, %v1032_v56 }
 0x1a8   : > { %1786 = vst.msk [vmem:[#allocation2 + $0x150] sm:$0xff] %vm1764_vm7, %v1699_v57  ;;  %1710 = vrot.lane.b32.xlu1 %v1611_v52, %s2745_s11 }
 0x1a9   : > { %844 = vrot.lane.b32.xlu0 %v744_v53, %s2742_s28 }
 0x1aa   : > { %v1249_v58 = vpop.permute.xlu1 %1248  ;;  %v1897_v60 = vld [vmem:[#allocation2 + $0xc0] sm:$0xff] }
 0x1ab   : > { %v1050_v59 = vpop.permute.xlu0 %1049  ;;  %1344 = vst.msk [vmem:[#allocation2 + $0xd0] sm:$0xff] %vm1330_vm5, %v1249_v58  ;;  %2196 = vmatmul.mubr.f32.gmra.mxu0 %v1897_v60 }
 0x1ac   : > { %1136 = vst.msk [vmem:[#allocation2 + $0x160] sm:$0xff] %vm1113_vm4, %v1050_v59  ;;  %1278 = vrot.lane.b32.xlu1 %v1393_v35, %s2744_s8  ;;  %2651 = vmatprep.mubr.msk.f32.mxu0 %vm245_vm0, %v1900_v61 }
 0x1ad   : > { %1061 = vrot.lane.b32.xlu0 %v961_v14, %s2741_s27  ;;  %v965_v14 = vld [vmem:[%s2785_s20 + $0x113] sm:$0xff] }
 0x1ae   : > { %v1466_v17 = vpop.permute.xlu1 %1465 }
 0x1af   : > { %v1267_v63 = vpop.permute.xlu0 %1266  ;;  %v1915_v24 = vld [vmem:[#allocation2 + $0x150] sm:$0xff]  ;;  %1561 = vst.msk [vmem:[#allocation2 + $0xd0] sm:$0xff] %vm1547_vm6, %v1466_v17 }
 0x1b0   : > { %1353 = vst.msk [vmem:[#allocation2 + $0x160] sm:$0xff] %vm1330_vm5, %v1267_v63  ;;  %2241 = vmatmul.mubr.f32.gmra.mxu1 %v1915_v24  ;;  %1495 = vrot.lane.b32.xlu1 %v1395_v62, %s2743_s7  ;;  %v2318_v63 = vld [vmem:[%s4141_s2 + $0x10] sm:$0xff]  ;;  %v3818_v24 = vld [vmem:[%s2785_s20 + $0x124] sm:$0xff] }
 0x1b1   : > { %629 = vrot.lane.b32.xlu0 %v3665_v21, %s2739_s22  ;;  %2660 = vmatprep.mubr.msk.f32.mxu1 %vm245_vm0, %v1918_v0 }
 0x1b2   : > { %v817_v43 = vpop.permute.xlu1 %816 }
 0x1b3   : > { %v1484_v4 = vpop.permute.xlu0 %1483  ;;  %911 = vst.msk [vmem:[#allocation2 + $0xe0] sm:$0xff] %vm896_vm3, %v817_v43 }
 0x1b4   : > { %1570 = vst.msk [vmem:[#allocation2 + $0x160] sm:$0xff] %vm1547_vm6, %v1484_v4  ;;  %1712 = vrot.lane.b32.xlu1 %v1612_v1, %s2745_s11  ;;  %v1616_v4 = vld [vmem:[%s2785_s20 + $0x125] sm:$0xff] }
 0x1b5   : > { %846 = vrot.lane.b32.xlu0 %v745_v2, %s2742_s28 }
 0x1b6   : > { %v1683_v6 = vpop.permute.xlu1 %1682 }
 0x1b7   : > { %v835_v7 = vpop.permute.xlu0 %834  ;;  %1778 = vst.msk [vmem:[#allocation2 + $0xd0] sm:$0xff] %vm1764_vm7, %v1683_v6  ;;  %v1834_v6 = vld [vmem:[%s2785_s20 + $0x12e] sm:$0xff] }
 0x1b8   : > { %920 = vst.msk [vmem:[#allocation2 + $0x170] sm:$0xff] %vm896_vm3, %v835_v7  ;;  %1280 = vrot.lane.b32.xlu1 %v1394_v50, %s2744_s8 }
 0x1b9   : > { %1063 = vrot.lane.b32.xlu0 %v962_v5, %s2741_s27  ;;  %v3828_v5 = vld [vmem:[%s2785_s20 + $0x11a] sm:$0xff]  ;;  %1870 = vst.msk [vmem:[#allocation2 + $0x218] sm:$0xff] %vm245_vm0, %v1834_v6  ;;  %v2322_v6 = vld [vmem:[%s4141_s2 + $0x30] sm:$0xff] }
 0x1ba   : > { %v1034_v16 = vpop.permute.xlu1 %1033 }
 0x1bb   : > { %v1701_v9 = vpop.permute.xlu0 %1700  ;;  %1128 = vst.msk [vmem:[#allocation2 + $0xe0] sm:$0xff] %vm1113_vm4, %v1034_v16 }
 0x1bc   : > { %1787 = vst.msk [vmem:[#allocation2 + $0x160] sm:$0xff] %vm1764_vm7, %v1701_v9  ;;  %1497 = vrot.lane.b32.xlu1 %v1396_v8, %s2743_s7 }
 0x1bd   : > { %631 = vrot.lane.b32.xlu0 %v744_v53, %s2739_s22  ;;  %v1922_v53 = vld [vmem:[#allocation2 + $0x188] sm:$0xff] }
 0x1be   : > { %v1251_v34 = vpop.permute.xlu1 %1250  ;;  %v1899_v20 = vld [vmem:[#allocation2 + $0xd0] sm:$0xff] }
 0x1bf   : > { %v1052_v22 = vpop.permute.xlu0 %1051  ;;  %1345 = vst.msk [vmem:[#allocation2 + $0xe0] sm:$0xff] %vm1330_vm5, %v1251_v34  ;;  %2201 = vmatmul.mubr.f32.gmra.mxu0 %v1899_v20  ;;  %v3848_v20 = vld [vmem:[%s2785_s20 + $0x12c] sm:$0xff] }
 0x1c0   : > { %1137 = vst.msk [vmem:[#allocation2 + $0x170] sm:$0xff] %vm1113_vm4, %v1052_v22  ;;  %1714 = vrot.lane.b32.xlu1 %v1613_v10, %s2745_s11  ;;  %2652 = vmatprep.mubr.msk.f32.mxu0 %vm245_vm0, %v1902_v18  ;;  %v2319_v22 = vld [vmem:[%s4141_s2 + $0x18] sm:$0xff] }
 0x1c1   : > { %848 = vrot.lane.b32.xlu0 %v746_v11, %s2742_s28 }
 0x1c2   : > { %v620_v29 = vpop.permute.xlu1 %619 }
 0x1c3   : > { %v1269_v13 = vpop.permute.xlu0 %1268  ;;  %v1917_v26 = vld [vmem:[#allocation2 + $0x160] sm:$0xff]  ;;  %704 = vst.msk [vmem:[#allocation2 + $0x180] sm:$0xff] %vm679_vm2, %v620_v29 }
 0x1c4   : > { %1354 = vst.msk [vmem:[#allocation2 + $0x170] sm:$0xff] %vm1330_vm5, %v1269_v13  ;;  %2246 = vmatmul.mubr.f32.gmra.mxu1 %v1917_v26  ;;  %1282 = vrot.lane.b32.xlu1 %v1395_v62, %s2744_s8  ;;  %v1906_v13 = vld [vmem:[#allocation2 + $0x108] sm:$0xff] }
 0x1c5   : > { %1065 = vrot.lane.b32.xlu0 %v963_v23, %s2741_s27  ;;  %2661 = vmatprep.mubr.msk.f32.mxu1 %vm245_vm0, %v1920_v27 }
 0x1c6   : > { %v1486_v30 = vpop.permute.xlu1 %1485 }
 0x1c7   : > { %v1468_v31 = vpop.permute.xlu0 %1467  ;;  %1571 = vst.msk [vmem:[#allocation2 + $0x170] sm:$0xff] %vm1547_vm6, %v1486_v30  ;;  %v1617_v30 = vld [vmem:[%s2785_s20 + $0x12d] sm:$0xff] }
 0x1c8   : > { %1562 = vst.msk [vmem:[#allocation2 + $0xe0] sm:$0xff] %vm1547_vm6, %v1468_v31  ;;  %1499 = vrot.lane.b32.xlu1 %v3749_v28, %s2743_s7  ;;  %v750_v31 = vld [vmem:[%s2785_s20 + $0x122] sm:$0xff] }
 0x1c9   : > { %633 = vrot.lane.b32.xlu0 %v745_v2, %s2739_s22 }
 0x1ca   : > { %v837_v21 = vpop.permute.xlu1 %836 }
 0x1cb   : > { %v819_v35 = vpop.permute.xlu0 %818  ;;  %921 = vst.msk [vmem:[#allocation2 + $0x180] sm:$0xff] %vm896_vm3, %v837_v21  ;;  %v2137_v36 = vpop.f32.mrf.mxu0 }
 0x1cc   : > { %912 = vst.msk [vmem:[#allocation2 + $0xf0] sm:$0xff] %vm896_vm3, %v819_v35  ;;  %v2352_v37 = vmul.f32 %v2316_v42, %v2137_v36  ;;  %1716 = vrot.lane.b32.xlu1 %v1614_v39, %s2745_s11  ;;  %v1835_v42 = vld [vmem:[%s2785_s20 + $0x136] sm:$0xff] }
 0x1cd   : > { %850 = vrot.lane.b32.xlu0 %v3763_v32, %s2742_s28  ;;  %v2139_v12 = vpop.f32.mrf.mxu0  ;;  %v1924_v36 = vld [vmem:[#allocation2 + $0x198] sm:$0xff]  ;;  %1871 = vst.msk [vmem:[#allocation2 + $0x228] sm:$0xff] %vm245_vm0, %v1835_v42 }
 0x1ce   : > { %2508 = vst [vmem:[%s3772_s25] sm:$0xff] %v2352_v37  ;;  %v1703_v54 = vpop.permute.xlu1 %1702  ;;  %v2430_v58 = vmul.f32 %v2352_v37, %v2352_v37  ;;  %v2320_v12 = vld [vmem:[%s4141_s2 + $0x20] sm:$0xff] }
 0x1cf   : > { %v1685_v41 = vpop.permute.xlu0 %1684  ;;  %1788 = vst.msk [vmem:[#allocation2 + $0x170] sm:$0xff] %vm1764_vm7, %v1703_v54 }
 0x1d0   : > { %1779 = vst.msk [vmem:[#allocation2 + $0xe0] sm:$0xff] %vm1764_vm7, %v1685_v41  ;;  %1284 = vrot.lane.b32.xlu1 %v1396_v8, %s2744_s8 }
 0x1d1   : > { %1067 = vrot.lane.b32.xlu0 %v964_v40, %s2741_s27  ;;  %v967_v40 = vld [vmem:[%s2785_s20 + $0x123] sm:$0xff] }
 0x1d2   : > { %v1054_v45 = vpop.permute.xlu1 %1053 }
 0x1d3   : > { %v1036_v46 = vpop.permute.xlu0 %1035  ;;  %1138 = vst.msk [vmem:[#allocation2 + $0x180] sm:$0xff] %vm1113_vm4, %v1054_v45 }
 0x1d4   : > { %1129 = vst.msk [vmem:[#allocation2 + $0xf0] sm:$0xff] %vm1113_vm4, %v1036_v46  ;;  %1501 = vrot.lane.b32.xlu1 %v3784_v44, %s2743_s7 }
 0x1d5   : > { %635 = vrot.lane.b32.xlu0 %v746_v11, %s2739_s22  ;;  %v966_v11 = vld [vmem:[%s2785_s20 + $0x11b] sm:$0xff] }
 0x1d6   : > { %v1271_v50 = vpop.permute.xlu1 %1270  ;;  %v1919_v52 = vld [vmem:[#allocation2 + $0x170] sm:$0xff] }
 0x1d7   : > { %v1253_v51 = vpop.permute.xlu0 %1252  ;;  %v1901_v38 = vld [vmem:[#allocation2 + $0xe0] sm:$0xff]  ;;  %1355 = vst.msk [vmem:[#allocation2 + $0x180] sm:$0xff] %vm1330_vm5, %v1271_v50  ;;  %2251 = vmatmul.mubr.f32.gmra.mxu1 %v1919_v52  ;;  %v751_v52 = vld [vmem:[%s2785_s20 + $0x12a] sm:$0xff] }
 0x1d8   : > { %1346 = vst.msk [vmem:[#allocation2 + $0xf0] sm:$0xff] %vm1330_vm5, %v1253_v51  ;;  %v2142_v55 = vpop.f32.mrf.mxu0  ;;  %2206 = vmatmul.mubr.f32.gmra.mxu0 %v1901_v38  ;;  %1718 = vrot.lane.b32.xlu1 %v1615_v25, %s2745_s11  ;;  %v1836_v50 = vld [vmem:[%s2785_s20 + $0x13e] sm:$0xff]  ;;  %v1618_v38 = vld [vmem:[%s2785_s20 + $0x135] sm:$0xff] }
 0x1d9   : > { %v2353_v56 = vmul.f32 %v2317_v15, %v2142_v55  ;;  %852 = vrot.lane.b32.xlu0 %v3796_v47, %s2742_s28  ;;  %2653 = vmatprep.mubr.msk.f32.mxu0 %vm245_vm0, %v1904_v48  ;;  %v1401_v15 = vld [vmem:[%s2785_s20 + $0x134] sm:$0xff]  ;;  %1872 = vst.msk [vmem:[#allocation2 + $0x238] sm:$0xff] %vm245_vm0, %v1836_v50 }
 0x1da   : > { %v2144_v57 = vpop.f32.mrf.mxu0  ;;  %2662 = vmatprep.mubr.msk.f32.mxu1 %vm245_vm0, %v1922_v53  ;;  %v1470_v61 = vpop.permute.xlu1 %1469 }
 0x1db   : > { %v2388_v59 = vadd.f32 %v2353_v56, %v2352_v37  ;;  %v2431_v60 = vmul.f32 %v2353_v56, %v2353_v56  ;;  %2509 = vst [vmem:[%s3772_s25 + $0x8] sm:$0xff] %v2353_v56  ;;  %v622_v62 = vpop.permute.xlu0 %621  ;;  %1563 = vst.msk [vmem:[#allocation2 + $0xf0] sm:$0xff] %vm1547_vm6, %v1470_v61  ;;  %v2321_v56 = vld [vmem:[%s4141_s2 + $0x28] sm:$0xff] }
 0x1dc   : > { %705 = vst.msk [vmem:[#allocation2 + $0x190] sm:$0xff] %vm679_vm2, %v622_v62  ;;  %1286 = vrot.lane.b32.xlu1 %v3749_v28, %s2744_s8  ;;  %v968_v57 = vld [vmem:[%s2785_s20 + $0x12b] sm:$0xff]  ;;  %v1402_v62 = vld [vmem:[%s2785_s20 + $0x13c] sm:$0xff] }
 0x1dd   : > { %v2466_v17 = vadd.f32 %v2431_v60, %v2430_v58  ;;  %1069 = vrot.lane.b32.xlu0 %v965_v14, %s2741_s27 }
 0x1de   : > { %v821_v0 = vpop.permute.xlu1 %820 }
 0x1df   : > { %v1488_v1 = vpop.permute.xlu0 %1487  ;;  %913 = vst.msk [vmem:[#allocation2 + $0x100] sm:$0xff] %vm896_vm3, %v821_v0  ;;  %v2147_v2 = vpop.f32.mrf.mxu0 }
 0x1e0   : > { %1572 = vst.msk [vmem:[#allocation2 + $0x180] sm:$0xff] %vm1547_vm6, %v1488_v1  ;;  %v2354_v3 = vmul.f32 %v2318_v63, %v2147_v2  ;;  %1503 = vrot.lane.b32.xlu1 %v3818_v24, %s2743_s7  ;;  %v1908_v63 = vld [vmem:[#allocation2 + $0x118] sm:$0xff] }
 0x1e1   : > { %637 = vrot.lane.b32.xlu0 %v3763_v32, %s2739_s22  ;;  %v2149_v43 = vpop.f32.mrf.mxu0 }
 0x1e2   : > { %v2389_v7 = vadd.f32 %v2388_v59, %v2354_v3  ;;  %v2432_v8 = vmul.f32 %v2354_v3, %v2354_v3  ;;  %2510 = vst [vmem:[%s3772_s25 + $0x10] sm:$0xff] %v2354_v3  ;;  %v1687_v16 = vpop.permute.xlu1 %1686 }
 0x1e3   : > { %v839_v9 = vpop.permute.xlu0 %838  ;;  %1780 = vst.msk [vmem:[#allocation2 + $0xf0] sm:$0xff] %vm1764_vm7, %v1687_v16 }
 0x1e4   : > { %922 = vst.msk [vmem:[#allocation2 + $0x190] sm:$0xff] %vm896_vm3, %v839_v9  ;;  %v2467_v10 = vadd.f32 %v2466_v17, %v2432_v8  ;;  %1720 = vrot.lane.b32.xlu1 %v1616_v4, %s2745_s11  ;;  %v1619_v17 = vld [vmem:[%s2785_s20 + $0x13d] sm:$0xff]  ;;  %v1926_v4 = vld [vmem:[#allocation2 + $0x1a8] sm:$0xff] }
 0x1e5   : > { %854 = vrot.lane.b32.xlu0 %v3828_v5, %s2742_s28 }
 0x1e6   : > { %v1038_v19 = vpop.permute.xlu1 %1037 }
 0x1e7   : > { %v1705_v34 = vpop.permute.xlu0 %1704  ;;  %1130 = vst.msk [vmem:[#allocation2 + $0x100] sm:$0xff] %vm1113_vm4, %v1038_v19 }
 0x1e8   : > { %1789 = vst.msk [vmem:[#allocation2 + $0x180] sm:$0xff] %vm1764_vm7, %v1705_v34  ;;  %1288 = vrot.lane.b32.xlu1 %v3784_v44, %s2744_s8 }
 0x1e9   : > { %1071 = vrot.lane.b32.xlu0 %v966_v11, %s2741_s27 }
 0x1ea   : > { %v1255_v18 = vpop.permute.xlu1 %1254  ;;  %v1903_v29 = vld [vmem:[#allocation2 + $0xf0] sm:$0xff] }
 0x1eb   : > { %v1056_v23 = vpop.permute.xlu0 %1055  ;;  %1347 = vst.msk [vmem:[#allocation2 + $0x100] sm:$0xff] %vm1330_vm5, %v1255_v18  ;;  %2211 = vmatmul.mubr.f32.gmra.mxu0 %v1903_v29  ;;  %v2323_v29 = vld [vmem:[%s4141_s2 + $0x38] sm:$0xff] }
 0x1ec   : > { %1139 = vst.msk [vmem:[#allocation2 + $0x190] sm:$0xff] %vm1113_vm4, %v1056_v23  ;;  %v2152_v26 = vpop.f32.mrf.mxu0  ;;  %1505 = vrot.lane.b32.xlu1 %v3848_v20, %s2743_s7  ;;  %2654 = vmatprep.mubr.msk.f32.mxu0 %vm245_vm0, %v1906_v13 }
 0x1ed   : > { %v2355_v27 = vmul.f32 %v2319_v22, %v2152_v26  ;;  %639 = vrot.lane.b32.xlu0 %v3796_v47, %s2739_s22 }
 0x1ee   : > { %v2154_v28 = vpop.f32.mrf.mxu0  ;;  %v624_v33 = vpop.permute.xlu1 %623 }
 0x1ef   : > { %v2390_v39 = vadd.f32 %v2389_v7, %v2355_v27  ;;  %v2433_v32 = vmul.f32 %v2355_v27, %v2355_v27  ;;  %2511 = vst [vmem:[%s3772_s25 + $0x18] sm:$0xff] %v2355_v27  ;;  %v1273_v21 = vpop.permute.xlu0 %1272  ;;  %v1921_v35 = vld [vmem:[#allocation2 + $0x180] sm:$0xff]  ;;  %706 = vst.msk [vmem:[#allocation2 + $0x1a0] sm:$0xff] %vm679_vm2, %v624_v33 }
 0x1f0   : > { %1356 = vst.msk [vmem:[#allocation2 + $0x190] sm:$0xff] %vm1330_vm5, %v1273_v21  ;;  %2256 = vmatmul.mubr.f32.gmra.mxu1 %v1921_v35  ;;  %1722 = vrot.lane.b32.xlu1 %v1617_v30, %s2745_s11 }
 0x1f1   : > { %v2468_v37 = vadd.f32 %v2467_v10, %v2433_v32  ;;  %856 = vrot.lane.b32.xlu0 %v750_v31, %s2742_s28  ;;  %2663 = vmatprep.mubr.msk.f32.mxu1 %vm245_vm0, %v1924_v36  ;;  %v1928_v31 = vld [vmem:[#allocation2 + $0x1b8] sm:$0xff] }
 0x1f2   : > { %v1490_v54 = vpop.permute.xlu1 %1489 }
 0x1f3   : > { %v1472_v41 = vpop.permute.xlu0 %1471  ;;  %1573 = vst.msk [vmem:[#allocation2 + $0x190] sm:$0xff] %vm1547_vm6, %v1490_v54  ;;  %v2157_v44 = vpop.f32.mrf.mxu0 }
 0x1f4   : > { %1564 = vst.msk [vmem:[#allocation2 + $0x100] sm:$0xff] %vm1547_vm6, %v1472_v41  ;;  %v2356_v45 = vmul.f32 %v2320_v12, %v2157_v44  ;;  %1290 = vrot.lane.b32.xlu1 %v3818_v24, %s2744_s8 }
 0x1f5   : > { %1073 = vrot.lane.b32.xlu0 %v967_v40, %s2741_s27  ;;  %v2159_v46 = vpop.f32.mrf.mxu0  ;;  %v2324_v40 = vld [vmem:[%s4141_s2 + $0x40] sm:$0xff] }
 0x1f6   : > { %v2391_v25 = vadd.f32 %v2390_v39, %v2356_v45  ;;  %v2434_v47 = vmul.f32 %v2356_v45, %v2356_v45  ;;  %2512 = vst [vmem:[%s3772_s25 + $0x20] sm:$0xff] %v2356_v45  ;;  %v841_v48 = vpop.permute.xlu1 %840 }
 0x1f7   : > { %v823_v49 = vpop.permute.xlu0 %822  ;;  %923 = vst.msk [vmem:[#allocation2 + $0x1a0] sm:$0xff] %vm896_vm3, %v841_v48 }
 0x1f8   : > { %914 = vst.msk [vmem:[#allocation2 + $0x110] sm:$0xff] %vm896_vm3, %v823_v49  ;;  %v2469_v51 = vadd.f32 %v2468_v37, %v2434_v47  ;;  %1507 = vrot.lane.b32.xlu1 %v1401_v15, %s2743_s7  ;;  %v1930_v15 = vld [vmem:[#allocation2 + $0x1c8] sm:$0xff] }
 0x1f9   : > { %641 = vrot.lane.b32.xlu0 %v3828_v5, %s2739_s22 }
 0x1fa   : > { %v1707_v53 = vpop.permute.xlu1 %1706 }
 0x1fb   : > { %v1689_v55 = vpop.permute.xlu0 %1688  ;;  %1790 = vst.msk [vmem:[#allocation2 + $0x190] sm:$0xff] %vm1764_vm7, %v1707_v53 }
 0x1fc   : > { %1781 = vst.msk [vmem:[#allocation2 + $0x100] sm:$0xff] %vm1764_vm7, %v1689_v55  ;;  %1724 = vrot.lane.b32.xlu1 %v1618_v38, %s2745_s11 }
 0x1fd   : > { %858 = vrot.lane.b32.xlu0 %v751_v52, %s2742_s28 }
 0x1fe   : > { %v1058_v14 = vpop.permute.xlu1 %1057 }
 0x1ff   : > { %v1040_v58 = vpop.permute.xlu0 %1039  ;;  %1140 = vst.msk [vmem:[#allocation2 + $0x1a0] sm:$0xff] %vm1113_vm4, %v1058_v14 }
 0x200   : > { %1131 = vst.msk [vmem:[#allocation2 + $0x110] sm:$0xff] %vm1113_vm4, %v1040_v58  ;;  %v2162_v59 = vpop.f32.mrf.mxu0  ;;  %1292 = vrot.lane.b32.xlu1 %v3848_v20, %s2744_s8 }
 0x201   : > { %v2357_v60 = vmul.f32 %v2321_v56, %v2162_v59  ;;  %1075 = vrot.lane.b32.xlu0 %v968_v57, %s2741_s27  ;;  %v2325_v56 = vld [vmem:[%s4141_s2 + $0x48] sm:$0xff]  ;;  %v1932_v57 = vld [vmem:[#allocation2 + $0x1d8] sm:$0xff] }
 0x202   : > { %v2164_v61 = vpop.f32.mrf.mxu0  ;;  %v1275_v1 = vpop.permute.xlu1 %1274  ;;  %v1923_v43 = vld [vmem:[#allocation2 + $0x190] sm:$0xff] }
 0x203   : > { %v2392_v24 = vadd.f32 %v2391_v25, %v2357_v60  ;;  %v2435_v0 = vmul.f32 %v2357_v60, %v2357_v60  ;;  %2513 = vst [vmem:[%s3772_s25 + $0x28] sm:$0xff] %v2357_v60  ;;  %v1257_v2 = vpop.permute.xlu0 %1256  ;;  %v1905_v3 = vld [vmem:[#allocation2 + $0x100] sm:$0xff]  ;;  %1357 = vst.msk [vmem:[#allocation2 + $0x1a0] sm:$0xff] %vm1330_vm5, %v1275_v1  ;;  %2261 = vmatmul.mubr.f32.gmra.mxu1 %v1923_v43 }
 0x204   : > { %1348 = vst.msk [vmem:[#allocation2 + $0x110] sm:$0xff] %vm1330_vm5, %v1257_v2  ;;  %2216 = vmatmul.mubr.f32.gmra.mxu0 %v1905_v3  ;;  %1726 = vrot.lane.b32.xlu1 %v1619_v17, %s2745_s11  ;;  %v2334_v17 = vld [vmem:[%s4141_s2 + $0x90] sm:$0xff] }
 0x205   : > { %v2470_v5 = vadd.f32 %v2469_v51, %v2435_v0  ;;  %1509 = vrot.lane.b32.xlu0 %v1402_v62, %s2743_s7  ;;  %2655 = vmatprep.mubr.msk.f32.mxu0 %vm245_vm0, %v1908_v63 }
 0x206   : > { %2664 = vmatprep.mubr.msk.f32.mxu1 %vm245_vm0, %v1926_v4  ;;  %v1474_v7 = vpop.permute.xlu1 %1473 }
 0x207   : > { %v626_v8 = vpop.permute.xlu0 %625  ;;  %1565 = vst.msk [vmem:[#allocation2 + $0x110] sm:$0xff] %vm1547_vm6, %v1474_v7  ;;  %v2167_v16 = vpop.f32.mrf.mxu0  ;;  %v1934_v7 = vld [vmem:[#allocation2 + $0x1e8] sm:$0xff] }
 0x208   : > { %707 = vst.msk [vmem:[#allocation2 + $0x1b0] sm:$0xff] %vm679_vm2, %v626_v8  ;;  %v2358_v9 = vmul.f32 %v2322_v6, %v2167_v16 }
 0x209   : > { %v2169_v10 = vpop.f32.mrf.mxu0 }
 0x20a   : > { %v2393_v11 = vadd.f32 %v2392_v24, %v2358_v9  ;;  %v2436_v19 = vmul.f32 %v2358_v9, %v2358_v9  ;;  %2514 = vst [vmem:[%s3772_s25 + $0x30] sm:$0xff] %v2358_v9  ;;  %v843_v34 = vpop.permute.xlu1 %842 }
 0x20b   : > { %v1492_v22 = vpop.permute.xlu0 %1491  ;;  %924 = vst.msk [vmem:[#allocation2 + $0x1b0] sm:$0xff] %vm896_vm3, %v843_v34 }
 0x20c   : > { %1574 = vst.msk [vmem:[#allocation2 + $0x1a0] sm:$0xff] %vm1547_vm6, %v1492_v22  ;;  %v2471_v20 = vadd.f32 %v2470_v5, %v2436_v19  ;;  %v2326_v19 = vld [vmem:[%s4141_s2 + $0x50] sm:$0xff] }
 0x20e   : > { %v1709_v18 = vpop.permute.xlu1 %1708 }
 0x20f   : > { %v1691_v23 = vpop.permute.xlu0 %1690  ;;  %1791 = vst.msk [vmem:[#allocation2 + $0x1a0] sm:$0xff] %vm1764_vm7, %v1709_v18 }
 0x210   : > { %1782 = vst.msk [vmem:[#allocation2 + $0x110] sm:$0xff] %vm1764_vm7, %v1691_v23 }
 0x212   : > { %v1277_v13 = vpop.permute.xlu1 %1276 }
 0x213   : > { %v1060_v26 = vpop.permute.xlu0 %1059 }
 0x214   : > { %1141 = vst.msk [vmem:[#allocation2 + $0x1b0] sm:$0xff] %vm1113_vm4, %v1060_v26  ;;  %v2172_v27 = vpop.f32.mrf.mxu0 }
 0x215   : > { %1358 = vst.msk [vmem:[#allocation2 + $0x1b0] sm:$0xff] %vm1330_vm5, %v1277_v13  ;;  %v2359_v28 = vmul.f32 %v2323_v29, %v2172_v27  ;;  %v2335_v29 = vld [vmem:[%s4141_s2 + $0x98] sm:$0xff] }
 0x216   : > { %v2174_v30 = vpop.f32.mrf.mxu0  ;;  %v1494_v32 = vpop.permute.xlu1 %1493  ;;  %v1925_v35 = vld [vmem:[#allocation2 + $0x1a0] sm:$0xff]  ;;  %v1936_v13 = vld [vmem:[#allocation2 + $0x1f8] sm:$0xff] }
 0x217   : > { %v2394_v42 = vadd.f32 %v2393_v11, %v2359_v28  ;;  %v2437_v39 = vmul.f32 %v2359_v28, %v2359_v28  ;;  %2515 = vst [vmem:[%s3772_s25 + $0x38] sm:$0xff] %v2359_v28  ;;  %v628_v33 = vpop.permute.xlu0 %627  ;;  %v1907_v21 = vld [vmem:[#allocation2 + $0x110] sm:$0xff]  ;;  %1575 = vst.msk [vmem:[#allocation2 + $0x1b0] sm:$0xff] %vm1547_vm6, %v1494_v32  ;;  %2266 = vmatmul.mubr.f32.gmra.mxu1 %v1925_v35 }
 0x218   : > { %708 = vst.msk [vmem:[#allocation2 + $0x1c0] sm:$0xff] %vm679_vm2, %v628_v33  ;;  %2221 = vmatmul.mubr.f32.gmra.mxu0 %v1907_v21  ;;  %2665 = vmatprep.mubr.msk.f32.mxu1 %vm245_vm0, %v1928_v31 }
 0x219   : > { %v2472_v36 = vadd.f32 %v2471_v20, %v2437_v39 }
 0x21a   : > { %v1711_v37 = vpop.permute.xlu1 %1710 }
 0x21b   : > { %v845_v12 = vpop.permute.xlu0 %844  ;;  %1792 = vst.msk [vmem:[#allocation2 + $0x1b0] sm:$0xff] %vm1764_vm7, %v1711_v37 }
 0x21c   : > { %925 = vst.msk [vmem:[#allocation2 + $0x1c0] sm:$0xff] %vm896_vm3, %v845_v12  ;;  %v1938_v12 = vld [vmem:[#allocation2 + $0x208] sm:$0xff] }
 0x21e   : > { %v1279_v54 = vpop.permute.xlu1 %1278 }
 0x21f   : > { %v1062_v41 = vpop.permute.xlu0 %1061 }
 0x220   : > { %1142 = vst.msk [vmem:[#allocation2 + $0x1c0] sm:$0xff] %vm1113_vm4, %v1062_v41  ;;  %v2177_v44 = vpop.f32.mrf.mxu0 }
 0x221   : > { %1359 = vst.msk [vmem:[#allocation2 + $0x1c0] sm:$0xff] %vm1330_vm5, %v1279_v54  ;;  %v2360_v45 = vmul.f32 %v2324_v40, %v2177_v44  ;;  %v2327_v44 = vld [vmem:[%s4141_s2 + $0x58] sm:$0xff] }
 0x222   : > { %v2179_v46 = vpop.f32.mrf.mxu0  ;;  %v1496_v48 = vpop.permute.xlu1 %1495  ;;  %v1927_v50 = vld [vmem:[#allocation2 + $0x1b0] sm:$0xff] }
 0x223   : > { %v2395_v25 = vadd.f32 %v2394_v42, %v2360_v45  ;;  %v2438_v47 = vmul.f32 %v2360_v45, %v2360_v45  ;;  %2516 = vst [vmem:[%s3772_s25 + $0x40] sm:$0xff] %v2360_v45  ;;  %v630_v49 = vpop.permute.xlu0 %629  ;;  %1576 = vst.msk [vmem:[#allocation2 + $0x1c0] sm:$0xff] %vm1547_vm6, %v1496_v48  ;;  %2271 = vmatmul.mubr.f32.gmra.mxu1 %v1927_v50  ;;  %v2336_v48 = vld [vmem:[%s4141_s2 + $0xa0] sm:$0xff] }
 0x224   : > { %709 = vst.msk [vmem:[#allocation2 + $0x1d0] sm:$0xff] %vm679_vm2, %v630_v49  ;;  %2666 = vmatprep.mubr.msk.f32.mxu1 %vm245_vm0, %v1930_v15 }
 0x225   : > { %v2473_v51 = vadd.f32 %v2472_v36, %v2438_v47 }
 0x226   : > { %v1713_v38 = vpop.permute.xlu1 %1712 }
 0x227   : > { %v847_v52 = vpop.permute.xlu0 %846  ;;  %1793 = vst.msk [vmem:[#allocation2 + $0x1c0] sm:$0xff] %vm1764_vm7, %v1713_v38 }
 0x228   : > { %926 = vst.msk [vmem:[#allocation2 + $0x1d0] sm:$0xff] %vm896_vm3, %v847_v52 }
 0x22a   : > { %v1281_v53 = vpop.permute.xlu1 %1280 }
 0x22b   : > { %v1064_v55 = vpop.permute.xlu0 %1063 }
 0x22c   : > { %1143 = vst.msk [vmem:[#allocation2 + $0x1d0] sm:$0xff] %vm1113_vm4, %v1064_v55 }
 0x22d   : > { %1360 = vst.msk [vmem:[#allocation2 + $0x1d0] sm:$0xff] %vm1330_vm5, %v1281_v53 }
 0x22e   : > { %v1498_v14 = vpop.permute.xlu1 %1497  ;;  %v1929_v59 = vld [vmem:[#allocation2 + $0x1c0] sm:$0xff] }
 0x22f   : > { %v632_v58 = vpop.permute.xlu0 %631  ;;  %1577 = vst.msk [vmem:[#allocation2 + $0x1d0] sm:$0xff] %vm1547_vm6, %v1498_v14  ;;  %v2182_v60 = vpop.f32.mrf.mxu0  ;;  %2276 = vmatmul.mubr.f32.gmra.mxu1 %v1929_v59 }
 0x230   : > { %710 = vst.msk [vmem:[#allocation2 + $0x1e0] sm:$0xff] %vm679_vm2, %v632_v58  ;;  %v2361_v61 = vmul.f32 %v2325_v56, %v2182_v60  ;;  %2667 = vmatprep.mubr.msk.f32.mxu1 %vm245_vm0, %v1932_v57  ;;  %v1940_v57 = vld [vmem:[#allocation2 + $0x218] sm:$0xff] }
 0x231   : > { %v2184_v62 = vpop.f32.mrf.mxu0 }
 0x232   : > { %v2396_v63 = vadd.f32 %v2395_v25, %v2361_v61  ;;  %v2439_v24 = vmul.f32 %v2361_v61, %v2361_v61  ;;  %2517 = vst [vmem:[%s3772_s25 + $0x48] sm:$0xff] %v2361_v61  ;;  %v1715_v0 = vpop.permute.xlu1 %1714 }
 0x233   : > { %v849_v1 = vpop.permute.xlu0 %848  ;;  %1794 = vst.msk [vmem:[#allocation2 + $0x1d0] sm:$0xff] %vm1764_vm7, %v1715_v0 }
 0x234   : > { %927 = vst.msk [vmem:[#allocation2 + $0x1e0] sm:$0xff] %vm896_vm3, %v849_v1  ;;  %v2227_v2 = vpop.f32.mrf.mxu1  ;;  %v2474_v3 = vadd.f32 %v2473_v51, %v2439_v24  ;;  %v1942_v24 = vld [vmem:[#allocation2 + $0x228] sm:$0xff] }
 0x235   : > { %v3955_v43 = vmul.f32 %v2334_v17, %v2227_v2 }
 0x236   : > { %v2229_v4 = vpop.f32.mrf.mxu1  ;;  %v1283_v5 = vpop.permute.xlu1 %1282 }
 0x237   : > { %2526 = vst [vmem:[%s3772_s25 + $0x90] sm:$0xff] %v3955_v43  ;;  %v1066_v6 = vpop.permute.xlu0 %1065 }
 0x238   : > { %1144 = vst.msk [vmem:[#allocation2 + $0x1e0] sm:$0xff] %vm1113_vm4, %v1066_v6  ;;  %v2337_v6 = vld [vmem:[%s4141_s2 + $0xa8] sm:$0xff] }
 0x239   : > { %1361 = vst.msk [vmem:[#allocation2 + $0x1e0] sm:$0xff] %vm1330_vm5, %v1283_v5 }
 0x23a   : > { %v1500_v8 = vpop.permute.xlu1 %1499  ;;  %v1931_v9 = vld [vmem:[#allocation2 + $0x1d0] sm:$0xff] }
 0x23b   : > { %v634_v16 = vpop.permute.xlu0 %633  ;;  %1578 = vst.msk [vmem:[#allocation2 + $0x1e0] sm:$0xff] %vm1547_vm6, %v1500_v8  ;;  %2281 = vmatmul.mubr.f32.gmra.mxu1 %v1931_v9 }
 0x23c   : > { %711 = vst.msk [vmem:[#allocation2 + $0x1f0] sm:$0xff] %vm679_vm2, %v634_v16  ;;  %2668 = vmatprep.mubr.msk.f32.mxu1 %vm245_vm0, %v1934_v7 }
 0x23e   : > { %v1717_v10 = vpop.permute.xlu1 %1716 }
 0x23f   : > { %v851_v11 = vpop.permute.xlu0 %850  ;;  %1795 = vst.msk [vmem:[#allocation2 + $0x1e0] sm:$0xff] %vm1764_vm7, %v1717_v10 }
 0x240   : > { %928 = vst.msk [vmem:[#allocation2 + $0x1f0] sm:$0xff] %vm896_vm3, %v851_v11 }
 0x242   : > { %v1285_v34 = vpop.permute.xlu1 %1284 }
 0x243   : > { %v1068_v22 = vpop.permute.xlu0 %1067  ;;  %v2187_v20 = vpop.f32.mrf.mxu0 }
 0x244   : > { %1145 = vst.msk [vmem:[#allocation2 + $0x1f0] sm:$0xff] %vm1113_vm4, %v1068_v22  ;;  %v2362_v18 = vmul.f32 %v2326_v19, %v2187_v20 }
 0x245   : > { %1362 = vst.msk [vmem:[#allocation2 + $0x1f0] sm:$0xff] %vm1330_vm5, %v1285_v34  ;;  %v2189_v23 = vpop.f32.mrf.mxu0 }
 0x246   : > { %v2397_v26 = vadd.f32 %v2396_v63, %v2362_v18  ;;  %v2440_v27 = vmul.f32 %v2362_v18, %v2362_v18  ;;  %2518 = vst [vmem:[%s3772_s25 + $0x50] sm:$0xff] %v2362_v18  ;;  %v1502_v28 = vpop.permute.xlu1 %1501  ;;  %v1933_v31 = vld [vmem:[#allocation2 + $0x1e0] sm:$0xff]  ;;  %v1944_v18 = vld [vmem:[#allocation2 + $0x238] sm:$0xff] }
 0x247   : > { %v636_v30 = vpop.permute.xlu0 %635  ;;  %1579 = vst.msk [vmem:[#allocation2 + $0x1f0] sm:$0xff] %vm1547_vm6, %v1502_v28  ;;  %2286 = vmatmul.mubr.f32.gmra.mxu1 %v1933_v31  ;;  %v2328_v63 = vld [vmem:[%s4141_s2 + $0x60] sm:$0xff] }
 0x248   : > { %712 = vst.msk [vmem:[#allocation2 + $0x200] sm:$0xff] %vm679_vm2, %v636_v30  ;;  %v2232_v42 = vpop.f32.mrf.mxu1  ;;  %v2475_v39 = vadd.f32 %v2474_v3, %v2440_v27  ;;  %2669 = vmatprep.mubr.msk.f32.mxu1 %vm245_vm0, %v1936_v13 }
 0x249   : > { %v3977_v32 = vmul.f32 %v2335_v29, %v2232_v42  ;;  %v2338_v42 = vld [vmem:[%s4141_s2 + $0xb0] sm:$0xff] }
 0x24a   : > { %v2234_v33 = vpop.f32.mrf.mxu1  ;;  %v1719_v21 = vpop.permute.xlu1 %1718 }
 0x24b   : > { %2527 = vst [vmem:[%s3772_s25 + $0x98] sm:$0xff] %v3977_v32  ;;  %v853_v35 = vpop.permute.xlu0 %852  ;;  %1796 = vst.msk [vmem:[#allocation2 + $0x1f0] sm:$0xff] %vm1764_vm7, %v1719_v21 }
 0x24c   : > { %929 = vst.msk [vmem:[#allocation2 + $0x200] sm:$0xff] %vm896_vm3, %v853_v35 }
 0x24e   : > { %v1287_v36 = vpop.permute.xlu1 %1286 }
 0x24f   : > { %v1070_v37 = vpop.permute.xlu0 %1069 }
 0x250   : > { %1146 = vst.msk [vmem:[#allocation2 + $0x200] sm:$0xff] %vm1113_vm4, %v1070_v37 }
 0x251   : > { %1363 = vst.msk [vmem:[#allocation2 + $0x200] sm:$0xff] %vm1330_vm5, %v1287_v36 }
 0x252   : > { %v1504_v40 = vpop.permute.xlu1 %1503  ;;  %v1935_v41 = vld [vmem:[#allocation2 + $0x1f0] sm:$0xff] }
 0x253   : > { %v638_v54 = vpop.permute.xlu0 %637  ;;  %1580 = vst.msk [vmem:[#allocation2 + $0x200] sm:$0xff] %vm1547_vm6, %v1504_v40  ;;  %2291 = vmatmul.mubr.f32.gmra.mxu1 %v1935_v41  ;;  %v2339_v40 = vld [vmem:[%s4141_s2 + $0xb8] sm:$0xff] }
 0x254   : > { %713 = vst.msk [vmem:[#allocation2 + $0x210] sm:$0xff] %vm679_vm2, %v638_v54  ;;  %2670 = vmatprep.mubr.msk.f32.mxu1 %vm245_vm0, %v1938_v12  ;;  %v2330_v12 = vld [vmem:[%s4141_s2 + $0x70] sm:$0xff] }
 0x256   : > { %v1721_v45 = vpop.permute.xlu1 %1720 }
 0x257   : > { %v855_v46 = vpop.permute.xlu0 %854  ;;  %1797 = vst.msk [vmem:[#allocation2 + $0x200] sm:$0xff] %vm1764_vm7, %v1721_v45  ;;  %v2192_v15 = vpop.f32.mrf.mxu0 }
 0x258   : > { %930 = vst.msk [vmem:[#allocation2 + $0x210] sm:$0xff] %vm896_vm3, %v855_v46  ;;  %v2363_v25 = vmul.f32 %v2327_v44, %v2192_v15 }
 0x259   : > { %v2194_v47 = vpop.f32.mrf.mxu0 }
 0x25a   : > { %v2398_v49 = vadd.f32 %v2397_v26, %v2363_v25  ;;  %v2441_v50 = vmul.f32 %v2363_v25, %v2363_v25  ;;  %2519 = vst [vmem:[%s3772_s25 + $0x58] sm:$0xff] %v2363_v25  ;;  %v1289_v51 = vpop.permute.xlu1 %1288  ;;  %v2329_v26 = vld [vmem:[%s4141_s2 + $0x68] sm:$0xff] }
 0x25b   : > { %v1072_v38 = vpop.permute.xlu0 %1071 }
 0x25c   : > { %1147 = vst.msk [vmem:[#allocation2 + $0x210] sm:$0xff] %vm1113_vm4, %v1072_v38  ;;  %v2237_v52 = vpop.f32.mrf.mxu1  ;;  %v2476_v53 = vadd.f32 %v2475_v39, %v2441_v50 }
 0x25d   : > { %1364 = vst.msk [vmem:[#allocation2 + $0x210] sm:$0xff] %vm1330_vm5, %v1289_v51  ;;  %v4000_v55 = vmul.f32 %v2336_v48, %v2237_v52  ;;  %v2340_v52 = vld [vmem:[%s4141_s2 + $0xc0] sm:$0xff] }
 0x25e   : > { %v2239_v56 = vpop.f32.mrf.mxu1  ;;  %v1506_v14 = vpop.permute.xlu1 %1505  ;;  %v1937_v59 = vld [vmem:[#allocation2 + $0x200] sm:$0xff] }
 0x25f   : > { %2528 = vst [vmem:[%s3772_s25 + $0xa0] sm:$0xff] %v4000_v55  ;;  %v640_v58 = vpop.permute.xlu0 %639  ;;  %1581 = vst.msk [vmem:[#allocation2 + $0x210] sm:$0xff] %vm1547_vm6, %v1506_v14  ;;  %2296 = vmatmul.mubr.f32.gmra.mxu1 %v1937_v59 }
 0x260   : > { %714 = vst.msk [vmem:[#allocation2 + $0x220] sm:$0xff] %vm679_vm2, %v640_v58  ;;  %2671 = vmatprep.mubr.msk.f32.mxu1 %vm245_vm0, %v1940_v57 }
 0x262   : > { %v1723_v60 = vpop.permute.xlu1 %1722 }
 0x263   : > { %v857_v61 = vpop.permute.xlu0 %856  ;;  %1798 = vst.msk [vmem:[#allocation2 + $0x210] sm:$0xff] %vm1764_vm7, %v1723_v60  ;;  %v2332_v60 = vld [vmem:[%s4141_s2 + $0x80] sm:$0xff] }
 0x264   : > { %931 = vst.msk [vmem:[#allocation2 + $0x220] sm:$0xff] %vm896_vm3, %v857_v61  ;;  %v2341_v61 = vld [vmem:[%s4141_s2 + $0xc8] sm:$0xff] }
 0x266   : > { %v1291_v62 = vpop.permute.xlu1 %1290 }
 0x267   : > { %v1074_v17 = vpop.permute.xlu0 %1073 }
 0x268   : > { %1148 = vst.msk [vmem:[#allocation2 + $0x220] sm:$0xff] %vm1113_vm4, %v1074_v17 }
 0x269   : > { %1365 = vst.msk [vmem:[#allocation2 + $0x220] sm:$0xff] %vm1330_vm5, %v1291_v62 }
 0x26a   : > { %v1508_v0 = vpop.permute.xlu1 %1507  ;;  %v1939_v2 = vld [vmem:[#allocation2 + $0x210] sm:$0xff] }
 0x26b   : > { %v642_v1 = vpop.permute.xlu0 %641  ;;  %1582 = vst.msk [vmem:[#allocation2 + $0x220] sm:$0xff] %vm1547_vm6, %v1508_v0  ;;  %v2197_v3 = vpop.f32.mrf.mxu0  ;;  %2301 = vmatmul.mubr.f32.gmra.mxu1 %v1939_v2 }
 0x26c   : > { %715 = vst.msk [vmem:[#allocation2 + $0x230] sm:$0xff] %vm679_vm2, %v642_v1  ;;  %v2364_v4 = vmul.f32 %v2328_v63, %v2197_v3  ;;  %2672 = vmatprep.mubr.msk.f32.mxu1 %vm245_vm0, %v1942_v24 }
 0x26d   : > { %v2199_v5 = vpop.f32.mrf.mxu0 }
 0x26e   : > { %v2399_v7 = vadd.f32 %v2398_v49, %v2364_v4  ;;  %v2442_v8 = vmul.f32 %v2364_v4, %v2364_v4  ;;  %2520 = vst [vmem:[%s3772_s25 + $0x60] sm:$0xff] %v2364_v4  ;;  %v1725_v16 = vpop.permute.xlu1 %1724  ;;  %v2331_v49 = vld [vmem:[%s4141_s2 + $0x78] sm:$0xff]  ;;  %v2333_v5 = vld [vmem:[%s4141_s2 + $0x88] sm:$0xff] }
 0x26f   : > { %v859_v9 = vpop.permute.xlu0 %858  ;;  %1799 = vst.msk [vmem:[#allocation2 + $0x220] sm:$0xff] %vm1764_vm7, %v1725_v16 }
 0x270   : > { %932 = vst.msk [vmem:[#allocation2 + $0x230] sm:$0xff] %vm896_vm3, %v859_v9  ;;  %v2242_v10 = vpop.f32.mrf.mxu1  ;;  %v2477_v11 = vadd.f32 %v2476_v53, %v2442_v8 }
 0x271   : > { %v4023_v19 = vmul.f32 %v2337_v6, %v2242_v10  ;;  %v2342_v6 = vld [vmem:[%s4141_s2 + $0xd0] sm:$0xff] }
 0x272   : > { %v2244_v34 = vpop.f32.mrf.mxu1  ;;  %v1293_v20 = vpop.permute.xlu1 %1292 }
 0x273   : > { %2529 = vst [vmem:[%s3772_s25 + $0xa8] sm:$0xff] %v4023_v19  ;;  %v1076_v22 = vpop.permute.xlu0 %1075 }
 0x274   : > { %1149 = vst.msk [vmem:[#allocation2 + $0x230] sm:$0xff] %vm1113_vm4, %v1076_v22 }
 0x275   : > { %1366 = vst.msk [vmem:[#allocation2 + $0x230] sm:$0xff] %vm1330_vm5, %v1293_v20  ;;  %v2448_v20 = vmul.f32 %v3955_v43, %v3955_v43 }
 0x276   : > { %v1727_v29 = vpop.permute.xlu1 %1726  ;;  %v1941_v13 = vld [vmem:[#allocation2 + $0x220] sm:$0xff] }
 0x277   : > { %v1510_v23 = vpop.permute.xlu0 %1509  ;;  %2306 = vmatmul.mubr.f32.gmra.mxu1 %v1941_v13 }
 0x278   : > { %1583 = vst.msk [vmem:[#allocation2 + $0x230] sm:$0xff] %vm1547_vm6, %v1510_v23  ;;  %2673 = vmatprep.mubr.msk.f32.mxu1 %vm245_vm0, %v1944_v18 }
 0x279   : > { %1800 = vst.msk [vmem:[#allocation2 + $0x230] sm:$0xff] %vm1764_vm7, %v1727_v29  ;;  %v2449_v29 = vmul.f32 %v3977_v32, %v3977_v32 }
 0x27f   : > { %v2202_v27 = vpop.f32.mrf.mxu0 }
 0x280   : > { %v1943_v28 = vld [vmem:[#allocation2 + $0x230] sm:$0xff]  ;;  %v2365_v30 = vmul.f32 %v2329_v26, %v2202_v27  ;;  %v2450_v27 = vmul.f32 %v4000_v55, %v4000_v55 }
 0x281   : > { %2311 = vmatmul.mubr.f32.gmra.mxu1 %v1943_v28  ;;  %v2204_v31 = vpop.f32.mrf.mxu0 }
 0x282   : > { %v2400_v39 = vadd.f32 %v2399_v7, %v2365_v30  ;;  %v2443_v33 = vmul.f32 %v2365_v30, %v2365_v30  ;;  %2521 = vst [vmem:[%s3772_s25 + $0x68] sm:$0xff] %v2365_v30  ;;  %v2343_v31 = vld [vmem:[%s4141_s2 + $0xd8] sm:$0xff] }
 0x284   : > { %v2247_v21 = vpop.f32.mrf.mxu1  ;;  %v2478_v35 = vadd.f32 %v2477_v11, %v2443_v33 }
 0x285   : > { %v4039_v36 = vmul.f32 %v2338_v42, %v2247_v21 }
 0x286   : > { %v2249_v37 = vpop.f32.mrf.mxu1 }
 0x287   : > { %2530 = vst [vmem:[%s3772_s25 + $0xb0] sm:$0xff] %v4039_v36 }
 0x297   : > { %v2252_v41 = vpop.f32.mrf.mxu1 }
 0x298   : > { %v2207_v54 = vpop.f32.mrf.mxu0  ;;  %v4049_v45 = vmul.f32 %v2339_v40, %v2252_v41 }
 0x299   : > { %v2366_v44 = vmul.f32 %v2330_v12, %v2207_v54  ;;  %v2254_v15 = vpop.f32.mrf.mxu1 }
 0x29a   : > { %v2209_v46 = vpop.f32.mrf.mxu0  ;;  %2531 = vst [vmem:[%s3772_s25 + $0xb8] sm:$0xff] %v4049_v45  ;;  %v2453_v12 = vmul.f32 %v4049_v45, %v4049_v45 }
 0x29b   : > { %v2401_v25 = vadd.f32 %v2400_v39, %v2366_v44  ;;  %v2444_v47 = vmul.f32 %v2366_v44, %v2366_v44  ;;  %2522 = vst [vmem:[%s3772_s25 + $0x70] sm:$0xff] %v2366_v44 }
 0x29d   : > { %v2479_v48 = vadd.f32 %v2478_v35, %v2444_v47 }
 0x2ab   : > { %v2212_v50 = vpop.f32.mrf.mxu0 }
 0x2ac   : > { %v2367_v51 = vmul.f32 %v2331_v49, %v2212_v50 }
 0x2ad   : > { %v2214_v38 = vpop.f32.mrf.mxu0 }
 0x2ae   : > { %v2402_v53 = vadd.f32 %v2401_v25, %v2367_v51  ;;  %v2445_v56 = vmul.f32 %v2367_v51, %v2367_v51  ;;  %2523 = vst [vmem:[%s3772_s25 + $0x78] sm:$0xff] %v2367_v51 }
 0x2b0   : > { %v2257_v57 = vpop.f32.mrf.mxu1  ;;  %v2480_v14 = vadd.f32 %v2479_v48, %v2445_v56 }
 0x2b1   : > { %v2376_v58 = vmul.f32 %v2340_v52, %v2257_v57 }
 0x2b2   : > { %v2259_v59 = vpop.f32.mrf.mxu1 }
 0x2b3   : > { %2532 = vst [vmem:[%s3772_s25 + $0xc0] sm:$0xff] %v2376_v58  ;;  %v2454_v41 = vmul.f32 %v2376_v58, %v2376_v58  ;;  %v2345_v59 = vld [vmem:[%s4141_s2 + $0xe8] sm:$0xff] }
 0x2c3   : > { %v2262_v17 = vpop.f32.mrf.mxu1 }
 0x2c4   : > { %v2217_v62 = vpop.f32.mrf.mxu0  ;;  %v2377_v24 = vmul.f32 %v2341_v61, %v2262_v17  ;;  %v2346_v17 = vld [vmem:[%s4141_s2 + $0xf0] sm:$0xff] }
 0x2c5   : > { %v2368_v63 = vmul.f32 %v2332_v60, %v2217_v62  ;;  %v2264_v1 = vpop.f32.mrf.mxu1 }
 0x2c6   : > { %v2219_v0 = vpop.f32.mrf.mxu0  ;;  %2533 = vst [vmem:[%s3772_s25 + $0xc8] sm:$0xff] %v2377_v24  ;;  %v2455_v46 = vmul.f32 %v2377_v24, %v2377_v24  ;;  %v2347_v1 = vld [vmem:[%s4141_s2 + $0xf8] sm:$0xff] }
 0x2c7   : > { %v2403_v2 = vadd.f32 %v2402_v53, %v2368_v63  ;;  %v2446_v3 = vmul.f32 %v2368_v63, %v2368_v63  ;;  %2524 = vst [vmem:[%s3772_s25 + $0x80] sm:$0xff] %v2368_v63 }
 0x2c9   : > { %v2481_v4 = vadd.f32 %v2480_v14, %v2446_v3 }
 0x2d7   : > { %v2267_v8 = vpop.f32.mrf.mxu1 }
 0x2d8   : > { %v2222_v7 = vpop.f32.mrf.mxu0  ;;  %v2378_v9 = vmul.f32 %v2342_v6, %v2267_v8 }
 0x2d9   : > { %v2369_v16 = vmul.f32 %v2333_v5, %v2222_v7  ;;  %v2269_v11 = vpop.f32.mrf.mxu1  ;;  %v2348_v5 = vld [vmem:[%s4141_s2 + $0x100] sm:$0xff] }
 0x2da   : > { %v2224_v10 = vpop.f32.mrf.mxu0  ;;  %2534 = vst [vmem:[%s3772_s25 + $0xd0] sm:$0xff] %v2378_v9  ;;  %v2456_v48 = vmul.f32 %v2378_v9, %v2378_v9 }
 0x2db   : > { %v2404_v34 = vadd.f32 %v2403_v2, %v2369_v16  ;;  %v2447_v22 = vmul.f32 %v2369_v16, %v2369_v16  ;;  %2525 = vst [vmem:[%s3772_s25 + $0x88] sm:$0xff] %v2369_v16  ;;  %v2349_v16 = vld [vmem:[%s4141_s2 + $0x108] sm:$0xff] }
 0x2dd   : > { %v2405_v18 = vadd.f32 %v2404_v34, %v3955_v43  ;;  %v2482_v23 = vadd.f32 %v2481_v4, %v2447_v22  ;;  %v2451_v43 = vmul.f32 %v4023_v19, %v4023_v19  ;;  %v2350_v22 = vld [vmem:[%s4141_s2 + $0x110] sm:$0xff] }
 0x2df   : > { %v2406_v13 = vadd.f32 %v2405_v18, %v3977_v32  ;;  %v2483_v26 = vadd.f32 %v2482_v23, %v2448_v20  ;;  %v2452_v32 = vmul.f32 %v4039_v36, %v4039_v36 }
 0x2e1   : > { %v2407_v28 = vadd.f32 %v2406_v13, %v4000_v55  ;;  %v2484_v30 = vadd.f32 %v2483_v26, %v2449_v29 }
 0x2e3   : > { %v2408_v42 = vadd.f32 %v2407_v28, %v4023_v19  ;;  %v2485_v39 = vadd.f32 %v2484_v30, %v2450_v27  ;;  %v2272_v33 = vpop.f32.mrf.mxu1 }
 0x2e4   : > { %v2379_v37 = vmul.f32 %v2343_v31, %v2272_v33 }
 0x2e5   : > { %v2486_v21 = vadd.f32 %v2485_v39, %v2451_v43  ;;  %v2409_v35 = vadd.f32 %v2408_v42, %v4039_v36  ;;  %v2274_v55 = vpop.f32.mrf.mxu1  ;;  %v2344_v36 = vld [vmem:[%s4141_s2 + $0xe0] sm:$0xff] }
 0x2e6   : > { %2535 = vst [vmem:[%s3772_s25 + $0xd8] sm:$0xff] %v2379_v37 }
 0x2e7   : > { %v2410_v40 = vadd.f32 %v2409_v35, %v4049_v45  ;;  %v2487_v54 = vadd.f32 %v2486_v21, %v2452_v32  ;;  %v2457_v45 = vmul.f32 %v2379_v37, %v2379_v37  ;;  %v2351_v32 = vld [vmem:[%s4141_s2 + $0x118] sm:$0xff] }
 0x2e9   : > { %v2411_v44 = vadd.f32 %v2410_v40, %v2376_v58  ;;  %v2488_v19 = vadd.f32 %v2487_v54, %v2453_v12 }
 0x2eb   : > { %v2412_v15 = vadd.f32 %v2411_v44, %v2377_v24  ;;  %v2489_v25 = vadd.f32 %v2488_v19, %v2454_v41 }
 0x2ed   : > { %v2413_v47 = vadd.f32 %v2412_v15, %v2378_v9  ;;  %v2490_v49 = vadd.f32 %v2489_v25, %v2455_v46 }
 0x2ef   : > { %v2491_v50 = vadd.f32 %v2490_v49, %v2456_v48  ;;  %v2414_v51 = vadd.f32 %v2413_v47, %v2379_v37  ;;  %v2277_v38 = vpop.f32.mrf.mxu1 }
 0x2f0   : > { %v2380_v53 = vmul.f32 %v2344_v36, %v2277_v38 }
 0x2f1   : > { %v2492_v52 = vadd.f32 %v2491_v50, %v2457_v45  ;;  %v2279_v56 = vpop.f32.mrf.mxu1 }
 0x2f2   : > { %v2415_v57 = vadd.f32 %v2414_v51, %v2380_v53  ;;  %v2458_v14 = vmul.f32 %v2380_v53, %v2380_v53  ;;  %2536 = vst [vmem:[%s3772_s25 + $0xe0] sm:$0xff] %v2380_v53 }
 0x2f4   : > { %v2493_v58 = vadd.f32 %v2492_v52, %v2458_v14 }
 0x2fb   : > { %v2282_v60 = vpop.f32.mrf.mxu1 }
 0x2fc   : > { %v2381_v61 = vmul.f32 %v2345_v59, %v2282_v60 }
 0x2fd   : > { %v2284_v62 = vpop.f32.mrf.mxu1 }
 0x2fe   : > { %2537 = vst [vmem:[%s3772_s25 + $0xe8] sm:$0xff] %v2381_v61  ;;  %v2459_v34 = vmul.f32 %v2381_v61, %v2381_v61  ;;  %v2416_v20 = vadd.f32 %v2415_v57, %v2381_v61 }
 0x300   : > { %v2494_v13 = vadd.f32 %v2493_v58, %v2459_v34 }
 0x307   : > { %v2287_v63 = vpop.f32.mrf.mxu1 }
 0x308   : > { %v2382_v24 = vmul.f32 %v2346_v17, %v2287_v63 }
 0x309   : > { %v2289_v0 = vpop.f32.mrf.mxu1 }
 0x30a   : > { %2538 = vst [vmem:[%s3772_s25 + $0xf0] sm:$0xff] %v2382_v24  ;;  %v2460_v18 = vmul.f32 %v2382_v24, %v2382_v24  ;;  %v2417_v26 = vadd.f32 %v2416_v20, %v2382_v24 }
 0x30c   : > { %v2495_v30 = vadd.f32 %v2494_v13, %v2460_v18 }
 0x313   : > { %v2292_v2 = vpop.f32.mrf.mxu1 }
 0x314   : > { %v2383_v3 = vmul.f32 %v2347_v1, %v2292_v2 }
 0x315   : > { %v2294_v4 = vpop.f32.mrf.mxu1 }
 0x316   : > { %2539 = vst [vmem:[%s3772_s25 + $0xf8] sm:$0xff] %v2383_v3  ;;  %v2461_v27 = vmul.f32 %v2383_v3, %v2383_v3  ;;  %v2418_v31 = vadd.f32 %v2417_v26, %v2383_v3 }
 0x318   : > { %v2496_v42 = vadd.f32 %v2495_v30, %v2461_v27 }
 0x31f   : > { %v2297_v6 = vpop.f32.mrf.mxu1 }
 0x320   : > { %v2384_v7 = vmul.f32 %v2348_v5, %v2297_v6 }
 0x321   : > { %v2299_v8 = vpop.f32.mrf.mxu1 }
 0x322   : > { %2540 = vst [vmem:[%s3772_s25 + $0x100] sm:$0xff] %v2384_v7  ;;  %v2462_v43 = vmul.f32 %v2384_v7, %v2384_v7  ;;  %v2419_v39 = vadd.f32 %v2418_v31, %v2384_v7 }
 0x324   : > { %v2497_v21 = vadd.f32 %v2496_v42, %v2462_v43 }
 0x32b   : > { %v2302_v9 = vpop.f32.mrf.mxu1 }
 0x32c   : > { %v2385_v10 = vmul.f32 %v2349_v16, %v2302_v9 }
 0x32d   : > { %v2304_v11 = vpop.f32.mrf.mxu1 }
 0x32e   : > { %2541 = vst [vmem:[%s3772_s25 + $0x108] sm:$0xff] %v2385_v10  ;;  %v2463_v33 = vmul.f32 %v2385_v10, %v2385_v10  ;;  %v2420_v35 = vadd.f32 %v2419_v39, %v2385_v10 }
 0x330   : > { %v2498_v12 = vadd.f32 %v2497_v21, %v2463_v33 }
 0x337   : > { %v2307_v23 = vpop.f32.mrf.mxu1 }
 0x338   : > { %v2386_v29 = vmul.f32 %v2350_v22, %v2307_v23 }
 0x339   : > { %v2309_v28 = vpop.f32.mrf.mxu1 }
 0x33a   : > { %2542 = vst [vmem:[%s3772_s25 + $0x110] sm:$0xff] %v2386_v29  ;;  %v2464_v37 = vmul.f32 %v2386_v29, %v2386_v29  ;;  %v2421_v40 = vadd.f32 %v2420_v35, %v2386_v29 }
 0x33c   : > { %v2499_v44 = vadd.f32 %v2498_v12, %v2464_v37 }
 0x341   : > { %v2312_v55 = vpop.f32.mrf.mxu1 }
 0x342   : > { %v2387_v54 = vmul.f32 %v2351_v32, %v2312_v55 }
 0x343   : > { %v2314_v41 = vpop.f32.mrf.mxu1 }
 0x344   : > { %v2422_v19 = vadd.f32 %v2421_v40, %v2387_v54  ;;  %v2465_v46 = vmul.f32 %v2387_v54, %v2387_v54  ;;  %2543 = vst [vmem:[%s3772_s25 + $0x118] sm:$0xff] %v2387_v54 }
 0x346   : > { %v2423_v15 = vrot.slane %v2422_v19, 4  ;;  %v2500_v25 = vadd.f32 %v2499_v44, %v2465_v46 }
 0x348   : > { %v2424_v47 = vadd.f32 %v2423_v15, %v2422_v19  ;;  %v2501_v48 = vrot.slane %v2500_v25, 4 }
 0x34a   : > { %v2425_v49 = vrot.slane %v2424_v47, 2  ;;  %v2502_v36 = vadd.f32 %v2501_v48, %v2500_v25 }
 0x34c   : > { %v2426_v50 = vadd.f32 %v2425_v49, %v2424_v47  ;;  %v2503_v51 = vrot.slane %v2502_v36, 2 }
 0x34e   : > { %v2427_v45 = vrot.slane %v2426_v50, 1  ;;  %v2504_v38 = vadd.f32 %v2503_v51, %v2502_v36 }
 0x350   : > { %v2428_v52 = vadd.f32 %v2427_v45, %v2426_v50  ;;  %v2505_v53 = vrot.slane %v2504_v38, 1 }
 0x352   : > { %2429 = vst [vmem:[%s208_s6] sm:$0x1] %v2428_v52  ;;  %v2506_v56 = vadd.f32 %v2505_v53, %v2504_v38 }
 0x354   : > { %2507 = vst [vmem:[%s208_s6 + $0x1] sm:$0x1] %v2506_v56 }
 0x355 PF: > { %s15_s15 = sadd.s32 1, %s2736_s15  }
 0x356   : > { %p12_p4 = scmp.ge.s32.totalorder %s15_s15, 4  }
 0x358   :  { %14 = sbr.rel (!%p12_p4) target bundleno = 1 (0x1), region = 74 }

// kernel: basic_block_pallas.4
= control target key start
LH: loop header
LB: loop body
LE: loop exit
PB: predicated region body
PF: predicated region fallthrough
CT: control target
= control target key end

     0   :  { %s3111_s21 = smov 0   ;;  %s4494_s0 = inlined_call_operand.vmem [shape: f32[2,288,128], index: 0, kind: input, shape index: {}]   ;;  %s4495_s1 = inlined_call_operand.vmem [shape: f32[1,128], index: 1, kind: input, shape index: {}]   ;;  %s4496_s2 = inlined_call_operand.vmem [shape: f32[1,128], index: 2, kind: input, shape index: {}]   ;;  %s4497_s3 = inlined_call_operand.vmem [shape: f32[144,128], index: 3, kind: input, shape index: {}]   ;;  %s4498_s4 = inlined_call_operand.vmem [shape: f32[288,128], index: 4, kind: input, shape index: {}]   ;;  %s4499_s5 = inlined_call_operand.vmem [shape: f32[2,288,128], index: 5, kind: output, shape index: {0}]   ;;  %s4500_s6 = inlined_call_operand.vmem [shape: f32[2,2,128], index: 6, kind: output, shape index: {1}]  }
   0x1 LB: > { %s2957_s22 = sadd.s32 4294967295, %s3066_s21   ;;  %p2961_p0 = scmp.ge.s32.totalorder %s3066_s21, 1  ;;  %s3066_s21 = sphi %s3111_s21, %s17_s21  }
   0x2   : > { %p215_p1 = scmp.lt.s32.totalorder %s3066_s21, 3 }
   0x4   : > { %p216_p2 = pnand %p2961_p0, %p215_p1 }
   0x5   : > { %p249_p3 = scmp.lt.s32.totalorder (!%p216_p2), %s2957_s22, 1  ;;  %s3069_s7 = smov (!%p216_p2), 16  }
   0x6   : > { %219 = sbr.rel (%p216_p2) target bundleno = 868 (0x364), region = 40  ;;  %s3070_s19 = smov (!%p216_p2), 32  }
   0x7   : > { %s3071_s20 = smov (!%p216_p2), 48   ;;  %s3072_s29 = smov (!%p216_p2), 80  }
   0x8   : > { %s3073_s9 = smov (!%p216_p2), 64   ;;  %s3074_s14 = smov (!%p216_p2), 96  }
   0x9   : > { %s3075_s17 = smov (!%p216_p2), 112  }
   0xb   : > { %vm493_vm0 = vcmask 130048   ;;  %v3068_v0 = vmov 0.0   ;;  %s4502_s22 = smov (!%p249_p3, %s2957_s22), 1  ;;  %v3137_v1 = vld [vmem:[%s4495_s1] ss:$0 sm:$0xff]  ;;  %v422_v22 = vld [vmem:[%s4498_s4 + $0x8] sm:$0xff] }
   0xc   : > { %494 = vst.msk [vmem:[#allocation2] sm:$0xff] %vm493_vm0, %v3068_v0  ;;  %495 = vst.msk [vmem:[#allocation2 + $0x8] sm:$0xff] %vm493_vm0, %v3068_v0  ;;  %2398 = vmatprep.subr.mxu0 %v3068_v0  ;;  %3005 = vmatprep.subr.mxu1 %v3068_v0  ;;  %s3041_s23 = smul.u32 288, %s4502_s22  ;;  %v3149_v2 = vld [vmem:[%s4496_s2] ss:$0 sm:$0xff]  ;;  %v423_v23 = vld [vmem:[%s4498_s4 + $0x10] sm:$0xff] }
   0xd   : > { %496 = vst.msk [vmem:[#allocation2 + $0x10] sm:$0xff] %vm493_vm0, %v3068_v0  ;;  %497 = vst.msk [vmem:[#allocation2 + $0x138] sm:$0xff] %vm493_vm0, %v3068_v0  ;;  %v421_v24 = vld [vmem:[%s4498_s4] sm:$0xff]  ;;  %v424_v33 = vld [vmem:[%s4498_s4 + $0x18] sm:$0xff]  ;;  %vm789_vm1 = vcmask 261248   ;;  %vm1006_vm2 = vcmask 392448  }
   0xe   : > { %498 = vst.msk [vmem:[#allocation2 + $0x140] sm:$0xff] %vm493_vm0, %v3068_v0  ;;  %s3144_s28 = scalar_lea.vmem %s4494_s0, %s3041_s23  ;;  %v425_v35 = vld [vmem:[%s4498_s4 + $0x20] sm:$0xff]  ;;  %v426_v45 = vld [vmem:[%s4498_s4 + $0x28] sm:$0xff]  ;;  %v427_v46 = vld [vmem:[%s4498_s4 + $0x30] sm:$0xff]  ;;  %vm1223_vm3 = vcmask 523648   ;;  %vm1440_vm4 = vcmask 654848  }
   0xf   : > { %v264_v3 = vld [vmem:[%s3144_s28 + $0x8] sm:$0xff]  ;;  %v265_v4 = vld [vmem:[%s3144_s28 + $0x10] sm:$0xff]  ;;  %v263_v5 = vld [vmem:[%s3144_s28] sm:$0xff]  ;;  %vm1657_vm5 = vcmask 786048   ;;  %vm1874_vm6 = vcmask 917248   ;;  %vm2091_vm7 = vcmask 1048448  }
  0x10   : > { %v307_v7 = vmul.f32 %v3137_v1, %v264_v3  ;;  %v308_v8 = vmul.f32 %v3137_v1, %v265_v4  ;;  %v306_v9 = vmul.f32 %v3137_v1, %v263_v5  ;;  %v266_v10 = vld [vmem:[%s3144_s28 + $0x18] sm:$0xff]  ;;  %v267_v11 = vld [vmem:[%s3144_s28 + $0x20] sm:$0xff]  ;;  %v268_v13 = vld [vmem:[%s3144_s28 + $0x28] sm:$0xff]  ;;  %vm499_vm8 = vcmask 124928   ;;  %s2964_s10 = sshll.u32 %s4502_s22, 1 }
  0x11   : > { %v309_v12 = vmul.f32 %v3137_v1, %v266_v10  ;;  %v269_v14 = vld [vmem:[%s3144_s28 + $0x30] sm:$0xff]  ;;  %v310_v19 = vmul.f32 %v3137_v1, %v267_v11  ;;  %v270_v20 = vld [vmem:[%s3144_s28 + $0x38] sm:$0xff]  ;;  %v271_v21 = vld [vmem:[%s3144_s28 + $0x40] sm:$0xff]  ;;  %v311_v26 = vmul.f32 %v3137_v1, %v268_v13  ;;  %500 = vst.msk [vmem:[#allocation2 + $0x148] sm:$0x7] %vm499_vm8, %v3068_v0 }
  0x12   : > { %v350_v16 = vadd.f32 %v3149_v2, %v307_v7  ;;  %v351_v17 = vadd.f32 %v3149_v2, %v308_v8  ;;  %v349_v18 = vadd.f32 %v3149_v2, %v306_v9  ;;  %v312_v27 = vmul.f32 %v3137_v1, %v269_v14  ;;  %v272_v39 = vld [vmem:[%s3144_s28 + $0x48] sm:$0xff]  ;;  %v273_v40 = vld [vmem:[%s3144_s28 + $0x50] sm:$0xff]  ;;  %v274_v47 = vld [vmem:[%s3144_s28 + $0x58] sm:$0xff] }
  0x13   : > { %v609_v6 = vld [vmem:[#allocation2 + $0x6] sm:$0xff]  ;;  %v352_v25 = vadd.f32 %v3149_v2, %v309_v12  ;;  %v313_v28 = vmul.f32 %v3137_v1, %v270_v20  ;;  %v353_v32 = vadd.f32 %v3149_v2, %v310_v19  ;;  %v354_v36 = vadd.f32 %v3149_v2, %v311_v26  ;;  %v428_v55 = vld [vmem:[%s4498_s4 + $0x38] sm:$0xff]  ;;  %v277_v59 = vld [vmem:[%s3144_s28 + $0x70] sm:$0xff] }
  0x14   : > { %681 = vrot.lane.b32.xlu0 %v609_v6, %s3069_s7  ;;  %v610_v15 = vld [vmem:[#allocation2 + $0xe] sm:$0xff]  ;;  %v386_v29 = vmax.f32 %v350_v16, 0.0  ;;  %v387_v30 = vmax.f32 %v351_v17, 0.0  ;;  %v385_v31 = vmax.f32 %v349_v18, 0.0  ;;  %v355_v37 = vadd.f32 %v3149_v2, %v312_v27  ;;  %v275_v52 = vld [vmem:[%s3144_s28 + $0x60] sm:$0xff]  ;;  %v278_v8 = vld [vmem:[%s3144_s28 + $0x78] sm:$0xff] }
  0x15   : > { %v388_v34 = vmax.f32 %v352_v25, 0.0  ;;  %v314_v38 = vmul.f32 %v3137_v1, %v271_v21  ;;  %v389_v44 = vmax.f32 %v353_v32, 0.0  ;;  %v390_v49 = vmax.f32 %v354_v36, 0.0  ;;  %v276_v58 = vld [vmem:[%s3144_s28 + $0x68] sm:$0xff]  ;;  %v429_v63 = vld [vmem:[%s4498_s4 + $0x40] sm:$0xff]  ;;  %v431_v11 = vld [vmem:[%s4498_s4 + $0x50] sm:$0xff] }
  0x16   : > { %v458_v41 = vmul.f32 %v422_v22, %v386_v29  ;;  %v459_v42 = vmul.f32 %v423_v23, %v387_v30  ;;  %v457_v43 = vmul.f32 %v421_v24, %v385_v31  ;;  %v391_v50 = vmax.f32 %v355_v37, 0.0  ;;  %v430_v10 = vld [vmem:[%s4498_s4 + $0x48] sm:$0xff]  ;;  %v432_v20 = vld [vmem:[%s4498_s4 + $0x58] sm:$0xff]  ;;  %v433_v21 = vld [vmem:[%s4498_s4 + $0x60] sm:$0xff] }
  0x17   : > { %v460_v48 = vmul.f32 %v424_v33, %v388_v34  ;;  %v356_v51 = vadd.f32 %v3149_v2, %v313_v28  ;;  %v461_v53 = vmul.f32 %v425_v35, %v389_v44  ;;  %v357_v54 = vadd.f32 %v3149_v2, %v314_v38  ;;  %v434_v25 = vld [vmem:[%s4498_s4 + $0x68] sm:$0xff]  ;;  %v435_v26 = vld [vmem:[%s4498_s4 + $0x70] sm:$0xff]  ;;  %v436_v33 = vld [vmem:[%s4498_s4 + $0x78] sm:$0xff] }
  0x18   : > { %683 = vrot.lane.b32.xlu0 %v610_v15, %s3069_s7  ;;  %502 = vst.msk [vmem:[#allocation2 + $0x20] sm:$0xff] %vm493_vm0, %v458_v41  ;;  %503 = vst.msk [vmem:[#allocation2 + $0x28] sm:$0xff] %vm493_vm0, %v459_v42  ;;  %v315_v56 = vmul.f32 %v3137_v1, %v272_v39  ;;  %v316_v57 = vmul.f32 %v3137_v1, %v273_v40  ;;  %v462_v60 = vmul.f32 %v426_v45, %v390_v49  ;;  %v279_v15 = vld [vmem:[%s3144_s28 + $0x80] sm:$0xff]  ;;  %v280_v28 = vld [vmem:[%s3144_s28 + $0x88] sm:$0xff] }
  0x19   : > { %501 = vst.msk [vmem:[#allocation2 + $0x18] sm:$0xff] %vm493_vm0, %v457_v43  ;;  %504 = vst.msk [vmem:[#allocation2 + $0x30] sm:$0xff] %vm493_vm0, %v460_v48  ;;  %v463_v61 = vmul.f32 %v427_v46, %v391_v50  ;;  %v392_v62 = vmax.f32 %v356_v51, 0.0  ;;  %v317_v3 = vmul.f32 %v3137_v1, %v274_v47  ;;  %v393_v4 = vmax.f32 %v357_v54, 0.0  ;;  %v281_v34 = vld [vmem:[%s3144_s28 + $0x90] sm:$0xff]  ;;  %v282_v35 = vld [vmem:[%s3144_s28 + $0x98] sm:$0xff] }
  0x1a   : > { %505 = vst.msk [vmem:[#allocation2 + $0x38] sm:$0xff] %vm493_vm0, %v461_v53  ;;  %v358_v5 = vadd.f32 %v3149_v2, %v315_v56  ;;  %v359_v6 = vadd.f32 %v3149_v2, %v316_v57  ;;  %v318_v7 = vmul.f32 %v3137_v1, %v275_v52  ;;  %506 = vst.msk [vmem:[#allocation2 + $0x40] sm:$0xff] %vm493_vm0, %v462_v60  ;;  %v283_v42 = vld [vmem:[%s3144_s28 + $0xa0] sm:$0xff]  ;;  %v284_v46 = vld [vmem:[%s3144_s28 + $0xa8] sm:$0xff] }
  0x1b   : > { %507 = vst.msk [vmem:[#allocation2 + $0x48] sm:$0xff] %vm493_vm0, %v463_v61  ;;  %v464_v9 = vmul.f32 %v428_v55, %v392_v62  ;;  %v360_v12 = vadd.f32 %v3149_v2, %v317_v3  ;;  %v319_v13 = vmul.f32 %v3137_v1, %v276_v58  ;;  %v320_v14 = vmul.f32 %v3137_v1, %v277_v59  ;;  %v285_v47 = vld [vmem:[%s3144_s28 + $0xb0] sm:$0xff]  ;;  %v437_v53 = vld [vmem:[%s4498_s4 + $0x80] sm:$0xff]  ;;  %v286_v59 = vld [vmem:[%s3144_s28 + $0xb8] sm:$0xff] }
  0x1c   : > { %v465_v16 = vmul.f32 %v429_v63, %v393_v4  ;;  %v394_v17 = vmax.f32 %v358_v5, 0.0  ;;  %v395_v18 = vmax.f32 %v359_v6, 0.0  ;;  %v361_v19 = vadd.f32 %v3149_v2, %v318_v7  ;;  %v438_v62 = vld [vmem:[%s4498_s4 + $0x88] sm:$0xff]  ;;  %v439_v63 = vld [vmem:[%s4498_s4 + $0x90] sm:$0xff]  ;;  %v287_v5 = vld [vmem:[%s3144_s28 + $0xc0] sm:$0xff] }
  0x1d   : > { %508 = vst.msk [vmem:[#allocation2 + $0x50] sm:$0xff] %vm493_vm0, %v464_v9  ;;  %v396_v22 = vmax.f32 %v360_v12, 0.0  ;;  %v362_v23 = vadd.f32 %v3149_v2, %v319_v13  ;;  %v363_v24 = vadd.f32 %v3149_v2, %v320_v14  ;;  %v321_v27 = vmul.f32 %v3137_v1, %v278_v8 }
  0x1e   : > { %509 = vst.msk [vmem:[#allocation2 + $0x58] sm:$0xff] %vm493_vm0, %v465_v16  ;;  %v466_v29 = vmul.f32 %v430_v10, %v394_v17  ;;  %v467_v30 = vmul.f32 %v431_v11, %v395_v18  ;;  %v397_v31 = vmax.f32 %v361_v19, 0.0  ;;  %v322_v32 = vmul.f32 %v3137_v1, %v279_v15  ;;  %v440_v10 = vld [vmem:[%s4498_s4 + $0x98] sm:$0xff]  ;;  %v441_v11 = vld [vmem:[%s4498_s4 + $0xa0] sm:$0xff]  ;;  %v442_v17 = vld [vmem:[%s4498_s4 + $0xa8] sm:$0xff] }
  0x1f   : > { %v613_v36 = vld [vmem:[#allocation2 + $0x26] sm:$0xff]  ;;  %v468_v38 = vmul.f32 %v432_v20, %v396_v22  ;;  %v398_v39 = vmax.f32 %v362_v23, 0.0  ;;  %v399_v40 = vmax.f32 %v363_v24, 0.0  ;;  %v364_v41 = vadd.f32 %v3149_v2, %v321_v27  ;;  %v443_v22 = vld [vmem:[%s4498_s4 + $0xb0] sm:$0xff]  ;;  %v444_v24 = vld [vmem:[%s4498_s4 + $0xb8] sm:$0xff] }
  0x20   : > { %v611_v37 = vld [vmem:[#allocation2 + $0x16] sm:$0xff]  ;;  %689 = vrot.lane.b32.xlu0 %v613_v36, %s3069_s7  ;;  %510 = vst.msk [vmem:[#allocation2 + $0x60] sm:$0xff] %vm493_vm0, %v466_v29  ;;  %511 = vst.msk [vmem:[#allocation2 + $0x68] sm:$0xff] %vm493_vm0, %v467_v30  ;;  %v469_v43 = vmul.f32 %v433_v21, %v397_v31  ;;  %v365_v44 = vadd.f32 %v3149_v2, %v322_v32  ;;  %v323_v45 = vmul.f32 %v3137_v1, %v280_v28  ;;  %v612_v49 = vld [vmem:[#allocation2 + $0x1e] sm:$0xff] }
  0x21   : > { %685 = vrot.lane.b32.xlu1 %v611_v37, %s3069_s7  ;;  %v615_v48 = vld [vmem:[#allocation2 + $0x36] sm:$0xff]  ;;  %512 = vst.msk [vmem:[#allocation2 + $0x70] sm:$0xff] %vm493_vm0, %v468_v38  ;;  %v470_v50 = vmul.f32 %v434_v25, %v398_v39  ;;  %v471_v51 = vmul.f32 %v435_v26, %v399_v40  ;;  %v400_v52 = vmax.f32 %v364_v41, 0.0  ;;  %v324_v54 = vmul.f32 %v3137_v1, %v281_v34  ;;  %v614_v13 = vld [vmem:[#allocation2 + $0x2e] sm:$0xff]  ;;  %v291_v32 = vld [vmem:[%s3144_s28 + $0xe0] sm:$0xff] }
  0x22   : > { %513 = vst.msk [vmem:[#allocation2 + $0x78] sm:$0xff] %vm493_vm0, %v469_v43  ;;  %v401_v55 = vmax.f32 %v365_v44, 0.0  ;;  %v366_v56 = vadd.f32 %v3149_v2, %v323_v45  ;;  %v325_v57 = vmul.f32 %v3137_v1, %v282_v35  ;;  %v326_v58 = vmul.f32 %v3137_v1, %v283_v42  ;;  %v617_v12 = vld [vmem:[#allocation2 + $0x46] sm:$0xff]  ;;  %v289_v30 = vld [vmem:[%s3144_s28 + $0xd0] sm:$0xff]  ;;  %v290_v31 = vld [vmem:[%s3144_s28 + $0xd8] sm:$0xff] }
  0x23   : > { %514 = vst.msk [vmem:[#allocation2 + $0x80] sm:$0xff] %vm493_vm0, %v470_v50  ;;  %515 = vst.msk [vmem:[#allocation2 + $0x88] sm:$0xff] %vm493_vm0, %v471_v51  ;;  %v472_v60 = vmul.f32 %v436_v33, %v400_v52  ;;  %v367_v61 = vadd.f32 %v3149_v2, %v324_v54  ;;  %v327_v3 = vmul.f32 %v3137_v1, %v284_v46  ;;  %v288_v25 = vld [vmem:[%s3144_s28 + $0xc8] sm:$0xff]  ;;  %v293_v37 = vld [vmem:[%s3144_s28 + $0xf0] sm:$0xff] }
  0x24   : > { %v328_v4 = vmul.f32 %v3137_v1, %v285_v47  ;;  %693 = vrot.lane.b32.xlu0 %v615_v48, %s3069_s7  ;;  %v473_v6 = vmul.f32 %v437_v53, %v401_v55  ;;  %v402_v7 = vmax.f32 %v366_v56, 0.0  ;;  %v368_v8 = vadd.f32 %v3149_v2, %v325_v57  ;;  %v292_v36 = vld [vmem:[%s3144_s28 + $0xe8] sm:$0xff]  ;;  %v616_v39 = vld [vmem:[#allocation2 + $0x3e] sm:$0xff]  ;;  %v447_v53 = vld [vmem:[%s4498_s4 + $0xd0] sm:$0xff] }
  0x25   : > { %687 = vrot.lane.b32.xlu1 %v612_v49, %s3069_s7  ;;  %v369_v9 = vadd.f32 %v3149_v2, %v326_v58  ;;  %516 = vst.msk [vmem:[#allocation2 + $0x90] sm:$0xff] %vm493_vm0, %v472_v60  ;;  %v403_v14 = vmax.f32 %v367_v61, 0.0  ;;  %v370_v15 = vadd.f32 %v3149_v2, %v327_v3  ;;  %v329_v18 = vmul.f32 %v3137_v1, %v286_v59  ;;  %v619_v38 = vld [vmem:[#allocation2 + $0x56] sm:$0xff]  ;;  %v445_v43 = vld [vmem:[%s4498_s4 + $0xc0] sm:$0xff]  ;;  %v446_v47 = vld [vmem:[%s4498_s4 + $0xc8] sm:$0xff] }
  0x26   : > { %v371_v16 = vadd.f32 %v3149_v2, %v328_v4  ;;  %517 = vst.msk [vmem:[#allocation2 + $0x98] sm:$0xff] %vm493_vm0, %v473_v6  ;;  %v474_v19 = vmul.f32 %v438_v62, %v402_v7  ;;  %v404_v20 = vmax.f32 %v368_v8, 0.0  ;;  %v330_v23 = vmul.f32 %v3137_v1, %v287_v5  ;;  %v294_v50 = vld [vmem:[%s3144_s28 + $0xf8] sm:$0xff]  ;;  %v295_v57 = vld [vmem:[%s3144_s28 + $0x100] sm:$0xff]  ;;  %v538_v59 = vld [vmem:[#allocation2 + $0xd] sm:$0xff] }
  0x27   : > { %v405_v21 = vmax.f32 %v369_v9, 0.0  ;;  %v475_v26 = vmul.f32 %v439_v63, %v403_v14  ;;  %v406_v27 = vmax.f32 %v370_v15, 0.0  ;;  %v372_v29 = vadd.f32 %v3149_v2, %v329_v18  ;;  %v448_v54 = vld [vmem:[%s4498_s4 + $0xd8] sm:$0xff]  ;;  %v537_v58 = vld [vmem:[#allocation2 + $0x5] sm:$0xff]  ;;  %574 = vst.msk [vmem:[#allocation3 + $0x10] sm:$0xff] %vm493_vm0, %v538_v59  ;;  %v618_v6 = vld [vmem:[#allocation2 + $0x4e] sm:$0xff] }
  0x28   : > { %v407_v28 = vmax.f32 %v371_v16, 0.0  ;;  %697 = vrot.lane.b32.xlu0 %v617_v12, %s3069_s7  ;;  %518 = vst.msk [vmem:[#allocation2 + $0xa0] sm:$0xff] %vm493_vm0, %v474_v19  ;;  %v476_v33 = vmul.f32 %v440_v10, %v404_v20  ;;  %v373_v35 = vadd.f32 %v3149_v2, %v330_v23  ;;  %v331_v44 = vmul.f32 %v3137_v1, %v288_v25  ;;  %v449_v63 = vld [vmem:[%s4498_s4 + $0xe0] sm:$0xff]  ;;  %v450_v3 = vld [vmem:[%s4498_s4 + $0xe8] sm:$0xff]  ;;  %v451_v14 = vld [vmem:[%s4498_s4 + $0xf0] sm:$0xff] }
  0x29   : > { %691 = vrot.lane.b32.xlu1 %v614_v13, %s3069_s7  ;;  %v477_v34 = vmul.f32 %v441_v11, %v405_v21  ;;  %519 = vst.msk [vmem:[#allocation2 + $0xa8] sm:$0xff] %vm493_vm0, %v475_v26  ;;  %v478_v40 = vmul.f32 %v442_v17, %v406_v27  ;;  %v408_v42 = vmax.f32 %v372_v29, 0.0  ;;  %v332_v46 = vmul.f32 %v3137_v1, %v289_v30  ;;  %v541_v4 = vld [vmem:[#allocation2 + $0x25] sm:$0xff]  ;;  %v539_v11 = vld [vmem:[#allocation2 + $0x15] sm:$0xff]  ;;  %v540_v18 = vld [vmem:[#allocation2 + $0x1d] sm:$0xff] }
  0x2a   : > { %v479_v41 = vmul.f32 %v443_v22, %v407_v28  ;;  %520 = vst.msk [vmem:[#allocation2 + $0xb0] sm:$0xff] %vm493_vm0, %v476_v33  ;;  %v409_v45 = vmax.f32 %v373_v35, 0.0  ;;  %v333_v48 = vmul.f32 %v3137_v1, %v290_v31  ;;  %v334_v49 = vmul.f32 %v3137_v1, %v291_v32  ;;  %573 = vst.msk [vmem:[#allocation3] sm:$0xff] %vm493_vm0, %v537_v58  ;;  %v621_v5 = vld [vmem:[#allocation2 + $0x66] sm:$0xff]  ;;  %v543_v17 = vld [vmem:[#allocation2 + $0x35] sm:$0xff] }
  0x2b   : > { %521 = vst.msk [vmem:[#allocation2 + $0xb8] sm:$0xff] %vm493_vm0, %v477_v34  ;;  %522 = vst.msk [vmem:[#allocation2 + $0xc0] sm:$0xff] %vm493_vm0, %v478_v40  ;;  %v480_v51 = vmul.f32 %v444_v24, %v408_v42  ;;  %v374_v52 = vadd.f32 %v3149_v2, %v331_v44  ;;  %v335_v55 = vmul.f32 %v3137_v1, %v292_v36  ;;  %v296_v23 = vld [vmem:[%s3144_s28 + $0x108] sm:$0xff]  ;;  %v623_v28 = vld [vmem:[#allocation2 + $0x76] sm:$0xff] }
  0x2c   : > { %523 = vst.msk [vmem:[#allocation2 + $0xc8] sm:$0xff] %vm493_vm0, %v479_v41  ;;  %v336_v56 = vmul.f32 %v3137_v1, %v293_v37  ;;  %701 = vrot.lane.b32.xlu0 %v619_v38, %s3069_s7  ;;  %v481_v60 = vmul.f32 %v445_v43, %v409_v45  ;;  %v375_v61 = vadd.f32 %v3149_v2, %v332_v46  ;;  %577 = vst.msk [vmem:[#allocation3 + $0x40] sm:$0xff] %vm493_vm0, %v541_v4  ;;  %v545_v27 = vld [vmem:[#allocation2 + $0x45] sm:$0xff]  ;;  %v452_v34 = vld [vmem:[%s4498_s4 + $0xf8] sm:$0xff] }
  0x2d   : > { %695 = vrot.lane.b32.xlu1 %v616_v39, %s3069_s7  ;;  %v376_v62 = vadd.f32 %v3149_v2, %v333_v48  ;;  %524 = vst.msk [vmem:[#allocation2 + $0xd0] sm:$0xff] %vm493_vm0, %v480_v51  ;;  %v410_v7 = vmax.f32 %v374_v52, 0.0  ;;  %v377_v8 = vadd.f32 %v3149_v2, %v334_v49  ;;  %v378_v9 = vadd.f32 %v3149_v2, %v335_v55  ;;  %v620_v29 = vld [vmem:[#allocation2 + $0x5e] sm:$0xff]  ;;  %v542_v39 = vld [vmem:[#allocation2 + $0x2d] sm:$0xff]  ;;  %v551_v49 = vld [vmem:[#allocation2 + $0x75] sm:$0xff] }
  0x2e   : > { %v379_v10 = vadd.f32 %v3149_v2, %v336_v56  ;;  %525 = vst.msk [vmem:[#allocation2 + $0xd8] sm:$0xff] %vm493_vm0, %v481_v60  ;;  %v411_v12 = vmax.f32 %v375_v61, 0.0  ;;  %v337_v15 = vmul.f32 %v3137_v1, %v294_v50  ;;  %v338_v16 = vmul.f32 %v3137_v1, %v295_v57  ;;  %575 = vst.msk [vmem:[#allocation3 + $0x20] sm:$0xff] %vm493_vm0, %v539_v11  ;;  %v453_v36 = vld [vmem:[%s4498_s4 + $0x100] sm:$0xff]  ;;  %v454_v42 = vld [vmem:[%s4498_s4 + $0x108] sm:$0xff] }
  0x2f   : > { %v412_v13 = vmax.f32 %v376_v62, 0.0  ;;  %v482_v19 = vmul.f32 %v446_v47, %v410_v7  ;;  %v413_v20 = vmax.f32 %v377_v8, 0.0  ;;  %v414_v21 = vmax.f32 %v378_v9, 0.0  ;;  %579 = vst.msk [vmem:[#allocation3 + $0x60] sm:$0xff] %vm493_vm0, %v543_v17  ;;  %576 = vst.msk [vmem:[#allocation3 + $0x30] sm:$0xff] %vm493_vm0, %v540_v18  ;;  %v625_v43 = vld [vmem:[#allocation2 + $0x86] sm:$0xff] }
  0x30   : > { %v415_v22 = vmax.f32 %v379_v10, 0.0  ;;  %705 = vrot.lane.b32.xlu0 %v621_v5, %s3069_s7  ;;  %v483_v24 = vmul.f32 %v447_v53, %v411_v12  ;;  %v380_v26 = vadd.f32 %v3149_v2, %v337_v15  ;;  %v381_v33 = vadd.f32 %v3149_v2, %v338_v16  ;;  %581 = vst.msk [vmem:[#allocation3 + $0x80] sm:$0xff] %vm493_vm0, %v545_v27  ;;  %v622_v44 = vld [vmem:[#allocation2 + $0x6e] sm:$0xff]  ;;  %v544_v46 = vld [vmem:[#allocation2 + $0x3d] sm:$0xff]  ;;  %v549_v48 = vld [vmem:[#allocation2 + $0x65] sm:$0xff] }
  0x31   : > { %699 = vrot.lane.b32.xlu1 %v618_v6, %s3069_s7  ;;  %v484_v25 = vmul.f32 %v448_v54, %v412_v13  ;;  %526 = vst.msk [vmem:[#allocation2 + $0xe0] sm:$0xff] %vm493_vm0, %v482_v19  ;;  %v485_v30 = vmul.f32 %v449_v63, %v413_v20  ;;  %v486_v31 = vmul.f32 %v450_v3, %v414_v21  ;;  %578 = vst.msk [vmem:[#allocation3 + $0x50] sm:$0xff] %vm493_vm0, %v542_v39  ;;  %v548_v51 = vld [vmem:[#allocation2 + $0x5d] sm:$0xff]  ;;  %v553_v52 = vld [vmem:[#allocation2 + $0x85] sm:$0xff] }
  0x32   : > { %v487_v32 = vmul.f32 %v451_v14, %v415_v22  ;;  %527 = vst.msk [vmem:[#allocation2 + $0xe8] sm:$0xff] %vm493_vm0, %v483_v24  ;;  %v416_v35 = vmax.f32 %v380_v26, 0.0  ;;  %v339_v37 = vmul.f32 %v3137_v1, %v296_v23  ;;  %v417_v38 = vmax.f32 %v381_v33, 0.0  ;;  %v547_v1 = vld [vmem:[#allocation2 + $0x55] sm:$0xff]  ;;  %580 = vst.msk [vmem:[#allocation3 + $0x70] sm:$0xff] %vm493_vm0, %v544_v46  ;;  %v624_v54 = vld [vmem:[#allocation2 + $0x7e] sm:$0xff] }
  0x33   : > { %528 = vst.msk [vmem:[#allocation2 + $0xf0] sm:$0xff] %vm493_vm0, %v484_v25  ;;  %529 = vst.msk [vmem:[#allocation2 + $0xf8] sm:$0xff] %vm493_vm0, %v485_v30  ;;  %v627_v53 = vld [vmem:[#allocation2 + $0x96] sm:$0xff]  ;;  %v550_v55 = vld [vmem:[#allocation2 + $0x6d] sm:$0xff] }
  0x34   : > { %530 = vst.msk [vmem:[#allocation2 + $0x100] sm:$0xff] %vm493_vm0, %v486_v31  ;;  %531 = vst.msk [vmem:[#allocation2 + $0x108] sm:$0xff] %vm493_vm0, %v487_v32  ;;  %709 = vrot.lane.b32.xlu0 %v623_v28, %s3069_s7  ;;  %v488_v40 = vmul.f32 %v452_v34, %v416_v35  ;;  %v382_v41 = vadd.f32 %v3149_v2, %v339_v37  ;;  %v489_v45 = vmul.f32 %v453_v36, %v417_v38  ;;  %v546_v2 = vld [vmem:[#allocation2 + $0x4d] sm:$0xff]  ;;  %v555_v56 = vld [vmem:[#allocation2 + $0x95] sm:$0xff] }
  0x35   : > { %703 = vrot.lane.b32.xlu1 %v620_v29, %s3069_s7  ;;  %583 = vst.msk [vmem:[#allocation3 + $0xa0] sm:$0xff] %vm493_vm0, %v547_v1  ;;  %585 = vst.msk [vmem:[#allocation3 + $0xc0] sm:$0xff] %vm493_vm0, %v549_v48  ;;  %v552_v57 = vld [vmem:[#allocation2 + $0x7d] sm:$0xff]  ;;  %v557_v58 = vld [vmem:[#allocation2 + $0xa5] sm:$0xff] }
  0x36   : > { %532 = vst.msk [vmem:[#allocation2 + $0x110] sm:$0xff] %vm493_vm0, %v488_v40  ;;  %v418_v47 = vmax.f32 %v382_v41, 0.0  ;;  %533 = vst.msk [vmem:[#allocation2 + $0x118] sm:$0xff] %vm493_vm0, %v489_v45  ;;  %v629_v59 = vld [vmem:[#allocation2 + $0xa6] sm:$0xff]  ;;  %v626_v60 = vld [vmem:[#allocation2 + $0x8e] sm:$0xff] }
  0x37   : > { %582 = vst.msk [vmem:[#allocation3 + $0x90] sm:$0xff] %vm493_vm0, %v546_v2  ;;  %587 = vst.msk [vmem:[#allocation3 + $0xe0] sm:$0xff] %vm493_vm0, %v551_v49  ;;  %v554_v61 = vld [vmem:[#allocation2 + $0x8d] sm:$0xff]  ;;  %v559_v62 = vld [vmem:[#allocation2 + $0xb5] sm:$0xff] }
  0x38   : > { %713 = vrot.lane.b32.xlu0 %v625_v43, %s3069_s7  ;;  %v490_v50 = vmul.f32 %v454_v42, %v418_v47  ;;  %584 = vst.msk [vmem:[#allocation3 + $0xb0] sm:$0xff] %vm493_vm0, %v548_v51  ;;  %589 = vst.msk [vmem:[#allocation3 + $0x100] sm:$0xff] %vm493_vm0, %v553_v52  ;;  %v556_v63 = vld [vmem:[#allocation2 + $0x9d] sm:$0xff]  ;;  %v561_v3 = vld [vmem:[#allocation2 + $0xc5] sm:$0xff] }
  0x39   : > { %707 = vrot.lane.b32.xlu1 %v622_v44, %s3069_s7  ;;  %586 = vst.msk [vmem:[#allocation3 + $0xd0] sm:$0xff] %vm493_vm0, %v550_v55  ;;  %591 = vst.msk [vmem:[#allocation3 + $0x120] sm:$0xff] %vm493_vm0, %v555_v56  ;;  %v558_v4 = vld [vmem:[#allocation2 + $0xad] sm:$0xff]  ;;  %v563_v5 = vld [vmem:[#allocation2 + $0xd5] sm:$0xff] }
  0x3a   : > { %534 = vst.msk [vmem:[#allocation2 + $0x120] sm:$0xff] %vm493_vm0, %v490_v50  ;;  %588 = vst.msk [vmem:[#allocation3 + $0xf0] sm:$0xff] %vm493_vm0, %v552_v57  ;;  %v560_v6 = vld [vmem:[#allocation2 + $0xbd] sm:$0xff]  ;;  %v565_v9 = vld [vmem:[#allocation2 + $0xe5] sm:$0xff] }
  0x3b   : > { %593 = vst.msk [vmem:[#allocation3 + $0x140] sm:$0xff] %vm493_vm0, %v557_v58  ;;  %590 = vst.msk [vmem:[#allocation3 + $0x110] sm:$0xff] %vm493_vm0, %v554_v61  ;;  %v631_v7 = vld [vmem:[#allocation2 + $0xb6] sm:$0xff]  ;;  %v628_v8 = vld [vmem:[#allocation2 + $0x9e] sm:$0xff] }
  0x3c   : > { %717 = vrot.lane.b32.xlu0 %v627_v53, %s3069_s7  ;;  %595 = vst.msk [vmem:[#allocation3 + $0x160] sm:$0xff] %vm493_vm0, %v559_v62  ;;  %592 = vst.msk [vmem:[#allocation3 + $0x130] sm:$0xff] %vm493_vm0, %v556_v63  ;;  %v562_v10 = vld [vmem:[#allocation2 + $0xcd] sm:$0xff]  ;;  %v567_v11 = vld [vmem:[#allocation2 + $0xf5] sm:$0xff] }
  0x3d   : > { %711 = vrot.lane.b32.xlu1 %v624_v54, %s3069_s7  ;;  %597 = vst.msk [vmem:[#allocation3 + $0x180] sm:$0xff] %vm493_vm0, %v561_v3  ;;  %594 = vst.msk [vmem:[#allocation3 + $0x150] sm:$0xff] %vm493_vm0, %v558_v4  ;;  %v633_v12 = vld [vmem:[#allocation2 + $0xc6] sm:$0xff]  ;;  %v630_v13 = vld [vmem:[#allocation2 + $0xae] sm:$0xff] }
  0x3e   : > { %599 = vst.msk [vmem:[#allocation3 + $0x1a0] sm:$0xff] %vm493_vm0, %v563_v5  ;;  %596 = vst.msk [vmem:[#allocation3 + $0x170] sm:$0xff] %vm493_vm0, %v560_v6  ;;  %v564_v14 = vld [vmem:[#allocation2 + $0xdd] sm:$0xff]  ;;  %v569_v15 = vld [vmem:[#allocation2 + $0x105] sm:$0xff] }
  0x3f   : > { %601 = vst.msk [vmem:[#allocation3 + $0x1c0] sm:$0xff] %vm493_vm0, %v565_v9  ;;  %598 = vst.msk [vmem:[#allocation3 + $0x190] sm:$0xff] %vm493_vm0, %v562_v10  ;;  %v635_v16 = vld [vmem:[#allocation2 + $0xd6] sm:$0xff]  ;;  %v632_v17 = vld [vmem:[#allocation2 + $0xbe] sm:$0xff] }
  0x40   : > { %721 = vrot.lane.b32.xlu0 %v629_v59, %s3069_s7  ;;  %603 = vst.msk [vmem:[#allocation3 + $0x1e0] sm:$0xff] %vm493_vm0, %v567_v11  ;;  %600 = vst.msk [vmem:[#allocation3 + $0x1b0] sm:$0xff] %vm493_vm0, %v564_v14  ;;  %v566_v18 = vld [vmem:[#allocation2 + $0xed] sm:$0xff]  ;;  %v571_v19 = vld [vmem:[#allocation2 + $0x115] sm:$0xff] }
  0x41   : > { %715 = vrot.lane.b32.xlu1 %v626_v60, %s3069_s7  ;;  %605 = vst.msk [vmem:[#allocation3 + $0x200] sm:$0xff] %vm493_vm0, %v569_v15  ;;  %602 = vst.msk [vmem:[#allocation3 + $0x1d0] sm:$0xff] %vm493_vm0, %v566_v18  ;;  %v637_v20 = vld [vmem:[#allocation2 + $0xe6] sm:$0xff]  ;;  %v634_v21 = vld [vmem:[#allocation2 + $0xce] sm:$0xff] }
  0x42   : > { %607 = vst.msk [vmem:[#allocation3 + $0x220] sm:$0xff] %vm493_vm0, %v571_v19  ;;  %v568_v22 = vld [vmem:[#allocation2 + $0xfd] sm:$0xff]  ;;  %v570_v25 = vld [vmem:[#allocation2 + $0x10d] sm:$0xff] }
  0x43   : > { %604 = vst.msk [vmem:[#allocation3 + $0x1f0] sm:$0xff] %vm493_vm0, %v568_v22  ;;  %v639_v23 = vld [vmem:[#allocation2 + $0xf6] sm:$0xff]  ;;  %v636_v24 = vld [vmem:[#allocation2 + $0xde] sm:$0xff]  ;;  %606 = vst.msk [vmem:[#allocation3 + $0x210] sm:$0xff] %vm493_vm0, %v570_v25 }
  0x44   : > { %725 = vrot.lane.b32.xlu0 %v631_v7, %s3069_s7  ;;  %v641_v26 = vld [vmem:[#allocation2 + $0x106] sm:$0xff]  ;;  %v638_v27 = vld [vmem:[#allocation2 + $0xee] sm:$0xff]  ;;  %v572_v28 = vld [vmem:[#allocation2 + $0x11d] sm:$0xff] }
  0x45   : > { %719 = vrot.lane.b32.xlu1 %v628_v8, %s3069_s7  ;;  %608 = vst.msk [vmem:[#allocation3 + $0x230] sm:$0xff] %vm493_vm0, %v572_v28  ;;  %v643_v29 = vld [vmem:[#allocation2 + $0x116] sm:$0xff]  ;;  %v640_v30 = vld [vmem:[#allocation2 + $0xfe] sm:$0xff]  ;;  %v826_v31 = vld [vmem:[#allocation2 + $0x7] sm:$0xff] }
  0x46   : > { %v642_v32 = vld [vmem:[#allocation2 + $0x10e] sm:$0xff]  ;;  %v3461_v33 = vld [vmem:[#allocation2 + $0x17] sm:$0xff]  ;;  %v3473_v38 = vld [vmem:[#allocation2 + $0x1f] sm:$0xff] }
  0x47   : > { %v644_v34 = vld [vmem:[#allocation2 + $0x11e] sm:$0xff]  ;;  %v3466_v35 = vld [vmem:[#allocation2 + $0x27] sm:$0xff]  ;;  %v827_v36 = vld [vmem:[#allocation2 + $0xf] sm:$0xff] }
  0x48   : > { %729 = vrot.lane.b32.xlu0 %v633_v12, %s3069_s7  ;;  %v3471_v37 = vld [vmem:[#allocation2 + $0x37] sm:$0xff]  ;;  %v3479_v39 = vld [vmem:[#allocation2 + $0x47] sm:$0xff]  ;;  %v3481_v40 = vld [vmem:[#allocation2 + $0x2f] sm:$0xff] }
  0x49   : > { %723 = vrot.lane.b32.xlu1 %v630_v13, %s3069_s7  ;;  %v3487_v41 = vld [vmem:[#allocation2 + $0x57] sm:$0xff]  ;;  %v3489_v42 = vld [vmem:[#allocation2 + $0x3f] sm:$0xff]  ;;  %v3495_v1 = vld [vmem:[#allocation2 + $0x67] sm:$0xff] }
  0x4a   : > { %v3497_v43 = vld [vmem:[#allocation2 + $0x4f] sm:$0xff]  ;;  %v2287_v44 = vld [vmem:[%s4497_s3 + $0x78] sm:$0xff]  ;;  %v842_v2 = vld [vmem:[#allocation2 + $0x87] sm:$0xff] }
  0x4b   : > { %v2286_v45 = vld [vmem:[%s4497_s3 + $0x70] sm:$0xff]  ;;  %v3511_v47 = vld [vmem:[#allocation2 + $0x5f] sm:$0xff]  ;;  %2399 = vmatpush1.msra.mxu0 %v2287_v44  ;;  %3023 = vmatpush1.msra.mxu1 %v2287_v44  ;;  %v2285_v48 = vld [vmem:[%s4497_s3 + $0x68] sm:$0xff] }
  0x4c   : > { %733 = vrot.lane.b32.xlu0 %v635_v16, %s3069_s7  ;;  %v3509_v46 = vld [vmem:[#allocation2 + $0x77] sm:$0xff]  ;;  %2400 = vmatprep.subr.mxu0 %v3068_v0  ;;  %v3522_v49 = vld [vmem:[#allocation2 + $0x6f] sm:$0xff]  ;;  %v2284_v50 = vld [vmem:[%s4497_s3 + $0x60] sm:$0xff] }
  0x4d   : > { %727 = vrot.lane.b32.xlu1 %v632_v17, %s3069_s7  ;;  %3006 = vmatprep.subr.mxu1 %v3068_v0  ;;  %v2283_v51 = vld [vmem:[%s4497_s3 + $0x58] sm:$0xff]  ;;  %v2282_v55 = vld [vmem:[%s4497_s3 + $0x50] sm:$0xff]  ;;  %v3545_v56 = vld [vmem:[#allocation2 + $0xa7] sm:$0xff] }
  0x4e   : > { %2401 = vmatpush1.msra.mxu0 %v2286_v45  ;;  %3024 = vmatpush1.msra.mxu1 %v2286_v45  ;;  %v844_v52 = vld [vmem:[#allocation2 + $0x97] sm:$0xff]  ;;  %v841_v53 = vld [vmem:[#allocation2 + $0x7f] sm:$0xff]  ;;  %v843_v57 = vld [vmem:[#allocation2 + $0x8f] sm:$0xff] }
  0x4f   : > { %2402 = vmatprep.subr.mxu0 %v3068_v0  ;;  %3007 = vmatprep.subr.mxu1 %v3068_v0  ;;  %v2281_v58 = vld [vmem:[%s4497_s3 + $0x48] sm:$0xff]  ;;  %v2280_v60 = vld [vmem:[%s4497_s3 + $0x40] sm:$0xff]  ;;  %v3561_v61 = vld [vmem:[#allocation2 + $0xb7] sm:$0xff] }
  0x50   : > { %737 = vrot.lane.b32.xlu0 %v637_v20, %s3069_s7  ;;  %2403 = vmatpush1.msra.mxu0 %v2285_v48  ;;  %v845_v62 = vld [vmem:[#allocation2 + $0x9f] sm:$0xff]  ;;  %v3571_v3 = vld [vmem:[#allocation2 + $0xaf] sm:$0xff] }
  0x51   : > { %731 = vrot.lane.b32.xlu1 %v634_v21, %s3069_s7  ;;  %3025 = vmatpush1.msra.mxu1 %v2285_v48  ;;  %v2279_v63 = vld [vmem:[%s4497_s3 + $0x38] sm:$0xff]  ;;  %v2278_v4 = vld [vmem:[%s4497_s3 + $0x30] sm:$0xff]  ;;  %v2277_v5 = vld [vmem:[%s4497_s3 + $0x28] sm:$0xff] }
  0x52   : > { %2404 = vmatprep.subr.mxu0 %v3068_v0  ;;  %3008 = vmatprep.subr.mxu1 %v3068_v0  ;;  %v1477_v6 = vld [vmem:[#allocation2 + $0x19] sm:$0xff]  ;;  %v2128_v8 = vld [vmem:[#allocation2 + $0x2b] sm:$0xff] }
  0x53   : > { %2405 = vmatpush1.msra.mxu0 %v2284_v50  ;;  %3026 = vmatpush1.msra.mxu1 %v2284_v50  ;;  %v3587_v7 = vld [vmem:[#allocation2 + $0xbf] sm:$0xff]  ;;  %2164 = vst.msk [vmem:[#allocation3 + $0x8] sm:$0xff] %vm493_vm0, %v2128_v8  ;;  %v2274_v16 = vld [vmem:[%s4497_s3 + $0x10] sm:$0xff]  ;;  %v1262_v45 = vld [vmem:[#allocation2 + $0x28] sm:$0xff] }
  0x54   : > { %741 = vrot.lane.b32.xlu0 %v639_v23, %s3069_s7  ;;  %2406 = vmatprep.subr.mxu0 %v3068_v0  ;;  %v2276_v11 = vld [vmem:[%s4497_s3 + $0x20] sm:$0xff]  ;;  %v1260_v12 = vld [vmem:[#allocation2 + $0x18] sm:$0xff]  ;;  %v1694_v19 = vld [vmem:[#allocation2 + $0x29] sm:$0xff] }
  0x55   : > { %735 = vrot.lane.b32.xlu1 %v636_v24, %s3069_s7  ;;  %3009 = vmatprep.subr.mxu1 %v3068_v0  ;;  %v2275_v15 = vld [vmem:[%s4497_s3 + $0x18] sm:$0xff]  ;;  %v1261_v18 = vld [vmem:[#allocation2 + $0x20] sm:$0xff]  ;;  %v2273_v23 = vld [vmem:[%s4497_s3 + $0x8] sm:$0xff] }
  0x56   : > { %2407 = vmatpush1.msra.mxu0 %v2283_v51  ;;  %3027 = vmatpush1.msra.mxu1 %v2283_v51  ;;  %v2129_v17 = vld [vmem:[#allocation2 + $0x33] sm:$0xff]  ;;  %v1911_v25 = vld [vmem:[#allocation2 + $0x2a] sm:$0xff]  ;;  %v2272_v28 = vld [vmem:[%s4497_s3] sm:$0xff] }
  0x57   : > { %2408 = vmatprep.subr.mxu0 %v3068_v0  ;;  %3010 = vmatprep.subr.mxu1 %v3068_v0  ;;  %2165 = vst.msk [vmem:[#allocation3 + $0x18] sm:$0xff] %vm493_vm0, %v2129_v17  ;;  %v3626_v24 = vld [vmem:[#allocation2 + $0x31] sm:$0xff]  ;;  %v2131_v50 = vld [vmem:[#allocation2 + $0x43] sm:$0xff] }
  0x58   : > { %745 = vrot.lane.b32.xlu0 %v641_v26, %s3069_s7  ;;  %2409 = vmatpush1.msra.mxu0 %v2282_v55  ;;  %2167 = vst.msk [vmem:[#allocation3 + $0x38] sm:$0xff] %vm493_vm0, %v2131_v50  ;;  %v1263_v51 = vld [vmem:[#allocation2 + $0x30] sm:$0xff] }
  0x59   : > { %739 = vrot.lane.b32.xlu1 %v638_v27, %s3069_s7  ;;  %3028 = vmatpush1.msra.mxu1 %v2282_v55  ;;  %v1913_v55 = vld [vmem:[#allocation2 + $0x3a] sm:$0xff]  ;;  %v1919_v50 = vld [vmem:[#allocation2 + $0x6a] sm:$0xff] }
  0x5a   : > { %2410 = vmatprep.subr.mxu0 %v3068_v0  ;;  %3011 = vmatprep.subr.mxu1 %v3068_v0  ;;  %v2201_v20 = vld [vmem:[#allocation3 + $0x8] sm:$0xff] }
  0x5b   : > { %2411 = vmatpush1.msra.mxu0 %v2281_v58  ;;  %3029 = vmatpush1.msra.mxu1 %v2281_v58  ;;  %v1914_v58 = vld [vmem:[#allocation2 + $0x42] sm:$0xff] }
  0x5c   : > { %749 = vrot.lane.b32.xlu0 %v643_v29, %s3069_s7  ;;  %2412 = vmatprep.subr.mxu0 %v3068_v0  ;;  %v2289_v29 = vld [vmem:[%s4497_s3 + $0x88] sm:$0xff] }
  0x5d   : > { %743 = vrot.lane.b32.xlu1 %v640_v30, %s3069_s7  ;;  %3012 = vmatprep.subr.mxu1 %v3068_v0  ;;  %v1912_v30 = vld [vmem:[#allocation2 + $0x32] sm:$0xff] }
  0x5e   : > { %2413 = vmatpush1.msra.mxu0 %v2280_v60  ;;  %3030 = vmatpush1.msra.mxu1 %v2280_v60 }
  0x5f   : > { %2414 = vmatprep.subr.mxu0 %v3068_v0  ;;  %3013 = vmatprep.subr.mxu1 %v3068_v0 }
  0x60   : > { %898 = vrot.lane.b32.xlu0 %v826_v31, %s3070_s19  ;;  %2415 = vmatpush1.msra.mxu0 %v2279_v63  ;;  %v1478_v31 = vld [vmem:[#allocation2 + $0x21] sm:$0xff] }
  0x61   : > { %747 = vrot.lane.b32.xlu1 %v642_v32, %s3069_s7  ;;  %3031 = vmatpush1.msra.mxu1 %v2279_v63 }
  0x62   : > { %2416 = vmatprep.subr.mxu0 %v3068_v0  ;;  %3014 = vmatprep.subr.mxu1 %v3068_v0 }
  0x63   : > { %2417 = vmatpush1.msra.mxu0 %v2278_v4  ;;  %3032 = vmatpush1.msra.mxu1 %v2278_v4 }
  0x64   : > { %902 = vrot.lane.b32.xlu0 %v3461_v33, %s3070_s19  ;;  %2418 = vmatprep.subr.mxu0 %v3068_v0 }
  0x65   : > { %751 = vrot.lane.b32.xlu1 %v644_v34, %s3069_s7  ;;  %3015 = vmatprep.subr.mxu1 %v3068_v0  ;;  %v2288_v34 = vld [vmem:[%s4497_s3 + $0x80] sm:$0xff]  ;;  %s4159_s7 = scalar_lea.vmem %s4499_s5, %s3041_s23 }
  0x66   : > { %2419 = vmatpush1.msra.mxu0 %v2277_v5  ;;  %3033 = vmatpush1.msra.mxu1 %v2277_v5  ;;  %v1264_v5 = vld [vmem:[#allocation2 + $0x38] sm:$0xff] }
  0x67   : > { %2420 = vmatprep.subr.mxu0 %v3068_v0  ;;  %3016 = vmatprep.subr.mxu1 %v3068_v0 }
  0x68   : > { %906 = vrot.lane.b32.xlu0 %v3466_v35, %s3070_s19  ;;  %2421 = vmatpush1.msra.mxu0 %v2276_v11 }
  0x69   : > { %900 = vrot.lane.b32.xlu1 %v827_v36, %s3070_s19  ;;  %3034 = vmatpush1.msra.mxu1 %v2276_v11  ;;  %v2130_v36 = vld [vmem:[#allocation2 + $0x3b] sm:$0xff]  ;;  %v1698_v11 = vld [vmem:[#allocation2 + $0x49] sm:$0xff] }
  0x6a   : > { %2422 = vmatprep.subr.mxu0 %v3068_v0  ;;  %3017 = vmatprep.subr.mxu1 %v3068_v0  ;;  %2166 = vst.msk [vmem:[#allocation3 + $0x28] sm:$0xff] %vm493_vm0, %v2130_v36  ;;  %v2136_v36 = vld [vmem:[#allocation2 + $0x6b] sm:$0xff] }
  0x6b   : > { %2423 = vmatpush1.msra.mxu0 %v2275_v15  ;;  %3035 = vmatpush1.msra.mxu1 %v2275_v15  ;;  %2172 = vst.msk [vmem:[#allocation3 + $0x88] sm:$0xff] %vm493_vm0, %v2136_v36 }
  0x6c   : > { %910 = vrot.lane.b32.xlu0 %v3471_v37, %s3070_s19  ;;  %2424 = vmatprep.subr.mxu0 %v3068_v0 }
  0x6d   : > { %904 = vrot.lane.b32.xlu1 %v3473_v38, %s3070_s19  ;;  %2967 = vmatprep.mubr.msk.f32.mxu0 %vm493_vm0, %v2201_v20 }
  0x6e   : > { %2425 = vmatpush1.msra.mxu0 %v2274_v16  ;;  %3018 = vmatprep.subr.mxu1 %v3068_v0 }
  0x6f   : > { %2426 = vmatprep.subr.mxu0 %v3068_v0  ;;  %3036 = vmatpush1.msra.mxu1 %v2274_v16  ;;  %v1916_v16 = vld [vmem:[#allocation2 + $0x52] sm:$0xff] }
  0x70   : > { %914 = vrot.lane.b32.xlu0 %v3479_v39, %s3070_s19  ;;  %2427 = vmatpush1.msra.mxu0 %v2273_v23 }
  0x71   : > { %908 = vrot.lane.b32.xlu1 %v3481_v40, %s3070_s19  ;;  %3019 = vmatprep.subr.mxu1 %v3068_v0  ;;  %v2205_v36 = vld [vmem:[#allocation3 + $0x28] sm:$0xff] }
  0x72   : > { %2428 = vmatprep.subr.mxu0 %v3068_v0  ;;  %3037 = vmatpush1.msra.mxu1 %v2273_v23 }
  0x73   : > { %2429 = vmatpush1.msra.mxu0 %v2272_v28  ;;  %3020 = vmatprep.subr.mxu1 %v3068_v0 }
  0x74   : > { %918 = vrot.lane.b32.xlu0 %v3487_v41, %s3070_s19  ;;  %2458 = vmatprep.subr.mxu0 %v3068_v0 }
  0x75   : > { %912 = vrot.lane.b32.xlu1 %v3489_v42, %s3070_s19  ;;  %3038 = vmatpush1.msra.mxu1 %v2272_v28 }
  0x76   : > { %2459 = vmatpush2.msra.mxu0 %v2289_v29  ;;  %3021 = vmatprep.subr.mxu1 %v3068_v0 }
  0x77   : > { %2460 = vmatprep.subr.mxu0 %v3068_v0  ;;  %3039 = vmatpush2.msra.mxu1 %v2289_v29  ;;  %v1701_v29 = vld [vmem:[#allocation2 + $0x61] sm:$0xff] }
  0x78   : > { %922 = vrot.lane.b32.xlu0 %v3495_v1, %s3070_s19  ;;  %2461 = vmatpush2.msra.mxu0 %v2288_v34 }
  0x79   : > { %916 = vrot.lane.b32.xlu1 %v3497_v43, %s3070_s19  ;;  %3022 = vmatprep.subr.mxu1 %v3068_v0  ;;  %v1277_v0 = vld [vmem:[#allocation2 + $0xa0] sm:$0xff] }
  0x7a   : > { %3040 = vmatpush2.msra.mxu1 %v2288_v34 }
  0x7c   : > { %926 = vrot.lane.b32.xlu0 %v3509_v46, %s3070_s19 }
  0x7d   : > { %920 = vrot.lane.b32.xlu1 %v3511_v47, %s3070_s19 }
  0x80   : > { %930 = vrot.lane.b32.xlu0 %v842_v2, %s3070_s19 }
  0x81   : > { %924 = vrot.lane.b32.xlu1 %v3522_v49, %s3070_s19 }
  0x84   : > { %934 = vrot.lane.b32.xlu0 %v844_v52, %s3070_s19  ;;  %v1696_v52 = vld [vmem:[#allocation2 + $0x39] sm:$0xff] }
  0x85   : > { %928 = vrot.lane.b32.xlu1 %v841_v53, %s3070_s19 }
  0x86   : > { %v682_v54 = vpop.permute.xlu0 %681 }
  0x87   : > { %790 = vst.msk [vmem:[#allocation3] sm:$0xff] %vm789_vm1, %v682_v54 }
  0x88   : > { %938 = vrot.lane.b32.xlu0 %v3545_v56, %s3070_s19 }
  0x89   : > { %932 = vrot.lane.b32.xlu1 %v843_v57, %s3070_s19 }
  0x8a   : > { %v684_v59 = vpop.permute.xlu0 %683 }
  0x8b   : > { %791 = vst.msk [vmem:[#allocation3 + $0x10] sm:$0xff] %vm789_vm1, %v684_v59 }
  0x8c   : > { %942 = vrot.lane.b32.xlu0 %v3561_v61, %s3070_s19 }
  0x8d   : > { %936 = vrot.lane.b32.xlu1 %v845_v62, %s3070_s19  ;;  %v2132_v62 = vld [vmem:[#allocation2 + $0x4b] sm:$0xff] }
  0x8e   : > { %2168 = vst.msk [vmem:[#allocation3 + $0x48] sm:$0xff] %vm493_vm0, %v2132_v62  ;;  %v2137_v62 = vld [vmem:[#allocation2 + $0x73] sm:$0xff] }
  0x8f   : > { %2173 = vst.msk [vmem:[#allocation3 + $0x98] sm:$0xff] %vm493_vm0, %v2137_v62  ;;  %v2140_v62 = vld [vmem:[#allocation2 + $0x8b] sm:$0xff] }
  0x90   : > { %1115 = vrot.lane.b32.xlu0 %v3461_v33, %s3071_s20  ;;  %2176 = vst.msk [vmem:[#allocation3 + $0xc8] sm:$0xff] %vm493_vm0, %v2140_v62 }
  0x91   : > { %940 = vrot.lane.b32.xlu1 %v3571_v3, %s3070_s19 }
  0x92   : > { %v690_v9 = vpop.permute.xlu0 %689 }
  0x93   : > { %v686_v10 = vpop.permute.xlu1 %685  ;;  %794 = vst.msk [vmem:[#allocation3 + $0x40] sm:$0xff] %vm789_vm1, %v690_v9  ;;  %v2133_v9 = vld [vmem:[#allocation2 + $0x53] sm:$0xff] }
  0x94   : > { %792 = vst.msk [vmem:[#allocation3 + $0x20] sm:$0xff] %vm789_vm1, %v686_v10  ;;  %1549 = vrot.lane.b32.xlu0 %v1477_v6, %s3072_s29  ;;  %v1265_v10 = vld [vmem:[#allocation2 + $0x40] sm:$0xff] }
  0x95   : > { %944 = vrot.lane.b32.xlu1 %v3587_v7, %s3070_s19  ;;  %2169 = vst.msk [vmem:[#allocation3 + $0x58] sm:$0xff] %vm493_vm0, %v2133_v9 }
  0x96   : > { %v694_v13 = vpop.permute.xlu0 %693 }
  0x97   : > { %v688_v14 = vpop.permute.xlu1 %687  ;;  %796 = vst.msk [vmem:[#allocation3 + $0x60] sm:$0xff] %vm789_vm1, %v694_v13 }
  0x98   : > { %793 = vst.msk [vmem:[#allocation3 + $0x30] sm:$0xff] %vm789_vm1, %v688_v14  ;;  %1117 = vrot.lane.b32.xlu0 %v3473_v38, %s3071_s20  ;;  %v1915_v14 = vld [vmem:[#allocation2 + $0x4a] sm:$0xff] }
  0x99   : > { %1332 = vrot.lane.b32.xlu1 %v1260_v12, %s3073_s9 }
  0x9a   : > { %v698_v21 = vpop.permute.xlu0 %697 }
  0x9b   : > { %v692_v22 = vpop.permute.xlu1 %691  ;;  %798 = vst.msk [vmem:[#allocation3 + $0x80] sm:$0xff] %vm789_vm1, %v698_v21 }
  0x9c   : > { %795 = vst.msk [vmem:[#allocation3 + $0x50] sm:$0xff] %vm789_vm1, %v692_v22  ;;  %1334 = vrot.lane.b32.xlu0 %v1261_v18, %s3073_s9  ;;  %v1266_v22 = vld [vmem:[#allocation2 + $0x48] sm:$0xff] }
  0x9d   : > { %1766 = vrot.lane.b32.xlu1 %v1694_v19, %s3074_s14 }
  0x9e   : > { %v702_v26 = vpop.permute.xlu0 %701 }
  0x9f   : > { %v696_v27 = vpop.permute.xlu1 %695  ;;  %800 = vst.msk [vmem:[#allocation3 + $0xa0] sm:$0xff] %vm789_vm1, %v702_v26  ;;  %v1267_v26 = vld [vmem:[#allocation2 + $0x50] sm:$0xff] }
  0xa0   : > { %797 = vst.msk [vmem:[#allocation3 + $0x70] sm:$0xff] %vm789_vm1, %v696_v27  ;;  %1768 = vrot.lane.b32.xlu0 %v3626_v24, %s3074_s14  ;;  %v1700_v27 = vld [vmem:[#allocation2 + $0x59] sm:$0xff] }
  0xa1   : > { %1983 = vrot.lane.b32.xlu1 %v1911_v25, %s3075_s17  ;;  %v2135_v25 = vld [vmem:[#allocation2 + $0x63] sm:$0xff] }
  0xa2   : > { %v706_v32 = vpop.permute.xlu0 %705  ;;  %2171 = vst.msk [vmem:[#allocation3 + $0x78] sm:$0xff] %vm493_vm0, %v2135_v25 }
  0xa3   : > { %v700_v33 = vpop.permute.xlu1 %699  ;;  %802 = vst.msk [vmem:[#allocation3 + $0xc0] sm:$0xff] %vm789_vm1, %v706_v32  ;;  %v1918_v32 = vld [vmem:[#allocation2 + $0x62] sm:$0xff] }
  0xa4   : > { %799 = vst.msk [vmem:[#allocation3 + $0x90] sm:$0xff] %vm789_vm1, %v700_v33  ;;  %1985 = vrot.lane.b32.xlu0 %v1912_v30, %s3075_s17  ;;  %v1917_v30 = vld [vmem:[#allocation2 + $0x5a] sm:$0xff] }
  0xa5   : > { %1551 = vrot.lane.b32.xlu1 %v1478_v31, %s3072_s29 }
  0xa6   : > { %v710_v38 = vpop.permute.xlu0 %709 }
  0xa7   : > { %v704_v44 = vpop.permute.xlu1 %703  ;;  %804 = vst.msk [vmem:[#allocation3 + $0xe0] sm:$0xff] %vm789_vm1, %v710_v38 }
  0xa8   : > { %801 = vst.msk [vmem:[#allocation3 + $0xb0] sm:$0xff] %vm789_vm1, %v704_v44  ;;  %1553 = vrot.lane.b32.xlu0 %v1694_v19, %s3072_s29  ;;  %v2134_v19 = vld [vmem:[#allocation2 + $0x5b] sm:$0xff] }
  0xa9   : > { %1119 = vrot.lane.b32.xlu1 %v3466_v35, %s3071_s20  ;;  %v1697_v35 = vld [vmem:[#allocation2 + $0x41] sm:$0xff]  ;;  %2170 = vst.msk [vmem:[#allocation3 + $0x68] sm:$0xff] %vm493_vm0, %v2134_v19 }
  0xaa   : > { %v714_v48 = vpop.permute.xlu0 %713  ;;  %v2147_v19 = vld [vmem:[#allocation2 + $0xc3] sm:$0xff] }
  0xab   : > { %v708_v2 = vpop.permute.xlu1 %707  ;;  %806 = vst.msk [vmem:[#allocation3 + $0x100] sm:$0xff] %vm789_vm1, %v714_v48 }
  0xac   : > { %803 = vst.msk [vmem:[#allocation3 + $0xd0] sm:$0xff] %vm789_vm1, %v708_v2  ;;  %1121 = vrot.lane.b32.xlu0 %v3481_v40, %s3071_s20 }
  0xad   : > { %1336 = vrot.lane.b32.xlu1 %v1262_v45, %s3073_s9  ;;  %v1268_v45 = vld [vmem:[#allocation2 + $0x58] sm:$0xff]  ;;  %2183 = vst.msk [vmem:[#allocation3 + $0x138] sm:$0xff] %vm493_vm0, %v2147_v19  ;;  %v2211_v19 = vld [vmem:[#allocation3 + $0x58] sm:$0xff] }
  0xae   : > { %v718_v53 = vpop.permute.xlu0 %717 }
  0xaf   : > { %v712_v54 = vpop.permute.xlu1 %711  ;;  %808 = vst.msk [vmem:[#allocation3 + $0x120] sm:$0xff] %vm789_vm1, %v718_v53 }
  0xb0   : > { %805 = vst.msk [vmem:[#allocation3 + $0xf0] sm:$0xff] %vm789_vm1, %v712_v54  ;;  %1338 = vrot.lane.b32.xlu0 %v1263_v51, %s3073_s9  ;;  %v3738_v51 = vld [vmem:[#allocation2 + $0x69] sm:$0xff] }
  0xb1   : > { %1770 = vrot.lane.b32.xlu1 %v1696_v52, %s3074_s14 }
  0xb2   : > { %v722_v57 = vpop.permute.xlu0 %721 }
  0xb3   : > { %v716_v40 = vpop.permute.xlu1 %715  ;;  %810 = vst.msk [vmem:[#allocation3 + $0x140] sm:$0xff] %vm789_vm1, %v722_v57 }
  0xb4   : > { %807 = vst.msk [vmem:[#allocation3 + $0x110] sm:$0xff] %vm789_vm1, %v716_v40  ;;  %1772 = vrot.lane.b32.xlu0 %v1697_v35, %s3074_s14 }
  0xb5   : > { %1987 = vrot.lane.b32.xlu1 %v1913_v55, %s3075_s17  ;;  %v1269_v55 = vld [vmem:[#allocation2 + $0x60] sm:$0xff] }
  0xb6   : > { %v726_v59 = vpop.permute.xlu0 %725 }
  0xb7   : > { %v720_v60 = vpop.permute.xlu1 %719  ;;  %812 = vst.msk [vmem:[#allocation3 + $0x160] sm:$0xff] %vm789_vm1, %v726_v59 }
  0xb8   : > { %809 = vst.msk [vmem:[#allocation3 + $0x130] sm:$0xff] %vm789_vm1, %v720_v60  ;;  %1989 = vrot.lane.b32.xlu0 %v1914_v58, %s3075_s17  ;;  %v3757_v58 = vld [vmem:[#allocation2 + $0xb9] sm:$0xff] }
  0xb9   : > { %1555 = vrot.lane.b32.xlu1 %v3626_v24, %s3072_s29 }
  0xba   : > { %v730_v63 = vpop.permute.xlu0 %729 }
  0xbb   : > { %v724_v4 = vpop.permute.xlu1 %723  ;;  %814 = vst.msk [vmem:[#allocation3 + $0x180] sm:$0xff] %vm789_vm1, %v730_v63  ;;  %v3766_v63 = vld [vmem:[#allocation2 + $0x71] sm:$0xff] }
  0xbc   : > { %811 = vst.msk [vmem:[#allocation3 + $0x150] sm:$0xff] %vm789_vm1, %v724_v4  ;;  %1557 = vrot.lane.b32.xlu0 %v1696_v52, %s3072_s29 }
  0xbd   : > { %1123 = vrot.lane.b32.xlu1 %v3471_v37, %s3071_s20  ;;  %v1699_v37 = vld [vmem:[#allocation2 + $0x51] sm:$0xff] }
  0xbe   : > { %v734_v6 = vpop.permute.xlu0 %733 }
  0xbf   : > { %v728_v8 = vpop.permute.xlu1 %727  ;;  %816 = vst.msk [vmem:[#allocation3 + $0x1a0] sm:$0xff] %vm789_vm1, %v734_v6  ;;  %v1929_v6 = vld [vmem:[#allocation2 + $0xba] sm:$0xff] }
  0xc0   : > { %813 = vst.msk [vmem:[#allocation3 + $0x170] sm:$0xff] %vm789_vm1, %v728_v8  ;;  %1125 = vrot.lane.b32.xlu0 %v3489_v42, %s3071_s20 }
  0xc1   : > { %1340 = vrot.lane.b32.xlu1 %v1264_v5, %s3073_s9 }
  0xc2   : > { %v738_v12 = vpop.permute.xlu0 %737 }
  0xc3   : > { %v732_v13 = vpop.permute.xlu1 %731  ;;  %818 = vst.msk [vmem:[#allocation3 + $0x1c0] sm:$0xff] %vm789_vm1, %v738_v12  ;;  %v1920_v12 = vld [vmem:[#allocation2 + $0x72] sm:$0xff] }
  0xc4   : > { %815 = vst.msk [vmem:[#allocation3 + $0x190] sm:$0xff] %vm789_vm1, %v732_v13  ;;  %1342 = vrot.lane.b32.xlu0 %v1265_v10, %s3073_s9 }
  0xc5   : > { %1774 = vrot.lane.b32.xlu1 %v1698_v11, %s3074_s14 }
  0xc6   : > { %v742_v15 = vpop.permute.xlu0 %741 }
  0xc7   : > { %v736_v42 = vpop.permute.xlu1 %735  ;;  %820 = vst.msk [vmem:[#allocation3 + $0x1e0] sm:$0xff] %vm789_vm1, %v742_v15 }
  0xc8   : > { %817 = vst.msk [vmem:[#allocation3 + $0x1b0] sm:$0xff] %vm789_vm1, %v736_v42  ;;  %1776 = vrot.lane.b32.xlu0 %v1699_v37, %s3074_s14  ;;  %v3790_v42 = vld [vmem:[#allocation2 + $0xc1] sm:$0xff] }
  0xc9   : > { %1991 = vrot.lane.b32.xlu1 %v1915_v14, %s3075_s17  ;;  %v1270_v14 = vld [vmem:[#allocation2 + $0x68] sm:$0xff] }
  0xca   : > { %v746_v17 = vpop.permute.xlu0 %745 }
  0xcb   : > { %v740_v18 = vpop.permute.xlu1 %739  ;;  %822 = vst.msk [vmem:[#allocation3 + $0x200] sm:$0xff] %vm789_vm1, %v746_v17 }
  0xcc   : > { %819 = vst.msk [vmem:[#allocation3 + $0x1d0] sm:$0xff] %vm789_vm1, %v740_v18  ;;  %1993 = vrot.lane.b32.xlu0 %v1916_v16, %s3075_s17  ;;  %v2138_v18 = vld [vmem:[#allocation2 + $0x7b] sm:$0xff] }
  0xcd   : > { %1559 = vrot.lane.b32.xlu1 %v1697_v35, %s3072_s29  ;;  %2174 = vst.msk [vmem:[#allocation3 + $0xa8] sm:$0xff] %vm493_vm0, %v2138_v18 }
  0xce   : > { %v750_v20 = vpop.permute.xlu0 %749 }
  0xcf   : > { %v744_v21 = vpop.permute.xlu1 %743  ;;  %824 = vst.msk [vmem:[#allocation3 + $0x220] sm:$0xff] %vm789_vm1, %v750_v20  ;;  %v3801_v20 = vld [vmem:[#allocation2 + $0x79] sm:$0xff] }
  0xd0   : > { %821 = vst.msk [vmem:[#allocation3 + $0x1f0] sm:$0xff] %vm789_vm1, %v744_v21  ;;  %1561 = vrot.lane.b32.xlu0 %v1698_v11, %s3072_s29  ;;  %v1279_v11 = vld [vmem:[#allocation2 + $0xb0] sm:$0xff] }
  0xd1   : > { %1127 = vrot.lane.b32.xlu1 %v3479_v39, %s3071_s20 }
  0xd2   : > { %v899_v23 = vpop.permute.xlu0 %898 }
  0xd3   : > { %v748_v24 = vpop.permute.xlu1 %747  ;;  %1007 = vst.msk [vmem:[#allocation3] sm:$0xff] %vm1006_vm2, %v899_v23  ;;  %v1930_v23 = vld [vmem:[#allocation2 + $0xc2] sm:$0xff] }
  0xd4   : > { %823 = vst.msk [vmem:[#allocation3 + $0x210] sm:$0xff] %vm789_vm1, %v748_v24  ;;  %1129 = vrot.lane.b32.xlu0 %v3497_v43, %s3071_s20 }
  0xd5   : > { %1344 = vrot.lane.b32.xlu1 %v1266_v22, %s3073_s9 }
  0xd6   : > { %v903_v28 = vpop.permute.xlu0 %902 }
  0xd7   : > { %v752_v39 = vpop.permute.xlu1 %751  ;;  %1009 = vst.msk [vmem:[#allocation3 + $0x20] sm:$0xff] %vm1006_vm2, %v903_v28 }
  0xd8   : > { %825 = vst.msk [vmem:[#allocation3 + $0x230] sm:$0xff] %vm789_vm1, %v752_v39  ;;  %1346 = vrot.lane.b32.xlu0 %v1267_v26, %s3073_s9  ;;  %v1280_v26 = vld [vmem:[#allocation2 + $0xb8] sm:$0xff] }
  0xd9   : > { %1778 = vrot.lane.b32.xlu1 %v1700_v27, %s3074_s14 }
  0xda   : > { %v907_v31 = vpop.permute.xlu0 %906 }
  0xdb   : > { %v901_v43 = vpop.permute.xlu1 %900  ;;  %1011 = vst.msk [vmem:[#allocation3 + $0x40] sm:$0xff] %vm1006_vm2, %v907_v31 }
  0xdc   : > { %1008 = vst.msk [vmem:[#allocation3 + $0x10] sm:$0xff] %vm1006_vm2, %v901_v43  ;;  %1780 = vrot.lane.b32.xlu0 %v1701_v29, %s3074_s14  ;;  %v2203_v43 = vld [vmem:[#allocation3 + $0x18] sm:$0xff] }
  0xdd   : > { %1995 = vrot.lane.b32.xlu1 %v1917_v30, %s3075_s17 }
  0xde   : > { %v911_v33 = vpop.permute.xlu0 %910 }
  0xdf   : > { %v905_v34 = vpop.permute.xlu1 %904  ;;  %1013 = vst.msk [vmem:[#allocation3 + $0x60] sm:$0xff] %vm1006_vm2, %v911_v33 }
  0xe0   : > { %1010 = vst.msk [vmem:[#allocation3 + $0x30] sm:$0xff] %vm1006_vm2, %v905_v34  ;;  %1997 = vrot.lane.b32.xlu0 %v1918_v32, %s3075_s17  ;;  %v2139_v34 = vld [vmem:[#allocation2 + $0x83] sm:$0xff] }
  0xe1   : > { %1563 = vrot.lane.b32.xlu1 %v1699_v37, %s3072_s29  ;;  %v3784_v37 = vld [vmem:[#allocation2 + $0xb1] sm:$0xff]  ;;  %2175 = vst.msk [vmem:[#allocation3 + $0xb8] sm:$0xff] %vm493_vm0, %v2139_v34 }
  0xe2   : > { %v915_v38 = vpop.permute.xlu0 %914 }
  0xe3   : > { %v909_v44 = vpop.permute.xlu1 %908  ;;  %1015 = vst.msk [vmem:[#allocation3 + $0x80] sm:$0xff] %vm1006_vm2, %v915_v38  ;;  %v2148_v38 = vld [vmem:[#allocation2 + $0xcb] sm:$0xff] }
  0xe4   : > { %1012 = vst.msk [vmem:[#allocation3 + $0x50] sm:$0xff] %vm1006_vm2, %v909_v44  ;;  %1565 = vrot.lane.b32.xlu0 %v1700_v27, %s3072_s29  ;;  %v1921_v27 = vld [vmem:[#allocation2 + $0x7a] sm:$0xff] }
  0xe5   : > { %1131 = vrot.lane.b32.xlu1 %v3487_v41, %s3071_s20  ;;  %v1278_v41 = vld [vmem:[#allocation2 + $0xa8] sm:$0xff]  ;;  %2184 = vst.msk [vmem:[#allocation3 + $0x148] sm:$0xff] %vm493_vm0, %v2148_v38 }
  0xe6   : > { %v919_v48 = vpop.permute.xlu0 %918  ;;  %v1274_v38 = vld [vmem:[#allocation2 + $0x88] sm:$0xff] }
  0xe7   : > { %v913_v2 = vpop.permute.xlu1 %912  ;;  %1017 = vst.msk [vmem:[#allocation3 + $0xa0] sm:$0xff] %vm1006_vm2, %v919_v48 }
  0xe8   : > { %1014 = vst.msk [vmem:[#allocation3 + $0x70] sm:$0xff] %vm1006_vm2, %v913_v2  ;;  %1133 = vrot.lane.b32.xlu0 %v3511_v47, %s3071_s20  ;;  %v3750_v47 = vld [vmem:[#allocation2 + $0xa9] sm:$0xff] }
  0xe9   : > { %1348 = vrot.lane.b32.xlu1 %v1268_v45, %s3073_s9  ;;  %v3834_v45 = vld [vmem:[#allocation2 + $0x81] sm:$0xff] }
  0xea   : > { %v923_v52 = vpop.permute.xlu0 %922 }
  0xeb   : > { %v917_v53 = vpop.permute.xlu1 %916  ;;  %1019 = vst.msk [vmem:[#allocation3 + $0xc0] sm:$0xff] %vm1006_vm2, %v923_v52 }
  0xec   : > { %1016 = vst.msk [vmem:[#allocation3 + $0x90] sm:$0xff] %vm1006_vm2, %v917_v53  ;;  %1999 = vrot.lane.b32.xlu0 %v1919_v50, %s3075_s17  ;;  %v1931_v50 = vld [vmem:[#allocation2 + $0xca] sm:$0xff]  ;;  %v1281_v53 = vld [vmem:[#allocation2 + $0xc0] sm:$0xff] }
  0xed   : > { %1782 = vrot.lane.b32.xlu1 %v3738_v51, %s3074_s14 }
  0xee   : > { %v927_v54 = vpop.permute.xlu0 %926 }
  0xef   : > { %v921_v35 = vpop.permute.xlu1 %920  ;;  %1021 = vst.msk [vmem:[#allocation3 + $0xe0] sm:$0xff] %vm1006_vm2, %v927_v54 }
  0xf0   : > { %1018 = vst.msk [vmem:[#allocation3 + $0xb0] sm:$0xff] %vm1006_vm2, %v921_v35  ;;  %1368 = vrot.lane.b32.xlu0 %v1278_v41, %s3073_s9  ;;  %v1922_v41 = vld [vmem:[#allocation2 + $0x82] sm:$0xff] }
  0xf1   : > { %1151 = vrot.lane.b32.xlu1 %v3545_v56, %s3071_s20  ;;  %v2146_v56 = vld [vmem:[#allocation2 + $0xbb] sm:$0xff] }
  0xf2   : > { %v931_v57 = vpop.permute.xlu0 %930  ;;  %2182 = vst.msk [vmem:[#allocation3 + $0x128] sm:$0xff] %vm493_vm0, %v2146_v56  ;;  %v2209_v56 = vld [vmem:[#allocation3 + $0x48] sm:$0xff] }
  0xf3   : > { %v925_v40 = vpop.permute.xlu1 %924  ;;  %1023 = vst.msk [vmem:[#allocation3 + $0x100] sm:$0xff] %vm1006_vm2, %v931_v57 }
  0xf4   : > { %1020 = vst.msk [vmem:[#allocation3 + $0xd0] sm:$0xff] %vm1006_vm2, %v925_v40  ;;  %1585 = vrot.lane.b32.xlu0 %v3750_v47, %s3072_s29 }
  0xf5   : > { %1350 = vrot.lane.b32.xlu1 %v1269_v55, %s3073_s9 }
  0xf6   : > { %v935_v59 = vpop.permute.xlu0 %934 }
  0xf7   : > { %v929_v60 = vpop.permute.xlu1 %928  ;;  %1025 = vst.msk [vmem:[#allocation3 + $0x120] sm:$0xff] %vm1006_vm2, %v935_v59 }
  0xf8   : > { %1022 = vst.msk [vmem:[#allocation3 + $0xf0] sm:$0xff] %vm1006_vm2, %v929_v60  ;;  %1802 = vrot.lane.b32.xlu0 %v3757_v58, %s3074_s14 }
  0xf9   : > { %1567 = vrot.lane.b32.xlu1 %v1701_v29, %s3072_s29  ;;  %v2237_v10 = vld [vmem:[#allocation3 + $0x128] sm:$0xff] }
  0xfa   : > { %v939_v4 = vpop.permute.xlu0 %938  ;;  %2985 = vmatprep.mubr.msk.f32.mxu1 %vm493_vm0, %v2237_v10  ;;  %v1932_v10 = vld [vmem:[#allocation2 + $0xd2] sm:$0xff] }
  0xfb   : > { %v933_v5 = vpop.permute.xlu1 %932  ;;  %1027 = vst.msk [vmem:[#allocation3 + $0x140] sm:$0xff] %vm1006_vm2, %v939_v4 }
  0xfc   : > { %1024 = vst.msk [vmem:[#allocation3 + $0x110] sm:$0xff] %vm1006_vm2, %v933_v5  ;;  %1153 = vrot.lane.b32.xlu0 %v3571_v3, %s3071_s20  ;;  %v3868_v5 = vld [vmem:[#allocation2 + $0xc7] sm:$0xff] }
  0xfd   : > { %1784 = vrot.lane.b32.xlu1 %v3766_v63, %s3074_s14 }
  0xfe   : > { %v943_v8 = vpop.permute.xlu0 %942 }
  0xff   : > { %v937_v9 = vpop.permute.xlu1 %936  ;;  %1029 = vst.msk [vmem:[#allocation3 + $0x160] sm:$0xff] %vm1006_vm2, %v943_v8 }
 0x100   : > { %1026 = vst.msk [vmem:[#allocation3 + $0x130] sm:$0xff] %vm1006_vm2, %v937_v9  ;;  %2019 = vrot.lane.b32.xlu0 %v1929_v6, %s3075_s17  ;;  %v3870_v6 = vld [vmem:[#allocation2 + $0x89] sm:$0xff] }
 0x101   : > { %1135 = vrot.lane.b32.xlu1 %v3495_v1, %s3071_s20 }
 0x102   : > { %v1116_v3 = vpop.permute.xlu0 %1115 }
 0x103   : > { %v941_v13 = vpop.permute.xlu1 %940  ;;  %1224 = vst.msk [vmem:[#allocation3] sm:$0xff] %vm1223_vm3, %v1116_v3 }
 0x104   : > { %1028 = vst.msk [vmem:[#allocation3 + $0x150] sm:$0xff] %vm1006_vm2, %v941_v13  ;;  %1370 = vrot.lane.b32.xlu0 %v1279_v11, %s3073_s9  ;;  %v1056_v11 = vld [vmem:[#allocation2 + $0x7f] sm:$0xff]  ;;  %v1282_v13 = vld [vmem:[#allocation2 + $0xc8] sm:$0xff] }
 0x105   : > { %2001 = vrot.lane.b32.xlu1 %v1920_v12, %s3075_s17 }
 0x106   : > { %v1550_v15 = vpop.permute.xlu0 %1549 }
 0x107   : > { %v945_v1 = vpop.permute.xlu1 %944 }
 0x108   : > { %1030 = vst.msk [vmem:[#allocation3 + $0x170] sm:$0xff] %vm1006_vm2, %v945_v1  ;;  %1587 = vrot.lane.b32.xlu0 %v3784_v37, %s3072_s29 }
 0x109   : > { %1352 = vrot.lane.b32.xlu1 %v1270_v14, %s3073_s9  ;;  %v1923_v14 = vld [vmem:[#allocation2 + $0x8a] sm:$0xff] }
 0x10a   : > { %v1118_v16 = vpop.permute.xlu0 %1117 }
 0x10b   : > { %v1333_v17 = vpop.permute.xlu1 %1332  ;;  %1225 = vst.msk [vmem:[#allocation3 + $0x10] sm:$0xff] %vm1223_vm3, %v1118_v16 }
 0x10c   : > { %1441 = vst.msk [vmem:[#allocation3] sm:$0xff] %vm1440_vm4, %v1333_v17  ;;  %1804 = vrot.lane.b32.xlu0 %v3790_v42, %s3074_s14 }
 0x10d   : > { %1569 = vrot.lane.b32.xlu1 %v3738_v51, %s3072_s29  ;;  %1658 = vst.msk [vmem:[#allocation3] sm:$0xff] %vm1657_vm5, %v1550_v15 }
 0x10e   : > { %v1335_v21 = vpop.permute.xlu0 %1334 }
 0x10f   : > { %v1767_v22 = vpop.permute.xlu1 %1766  ;;  %1442 = vst.msk [vmem:[#allocation3 + $0x10] sm:$0xff] %vm1440_vm4, %v1335_v21 }
 0x110   : > { %1875 = vst.msk [vmem:[#allocation3] sm:$0xff] %vm1874_vm6, %v1767_v22  ;;  %1155 = vrot.lane.b32.xlu0 %v3561_v61, %s3071_s20  ;;  %v1271_v61 = vld [vmem:[#allocation2 + $0x70] sm:$0xff] }
 0x111   : > { %1786 = vrot.lane.b32.xlu1 %v3801_v20, %s3074_s14 }
 0x112   : > { %v1769_v24 = vpop.permute.xlu0 %1768 }
 0x113   : > { %v1984_v25 = vpop.permute.xlu1 %1983 }
 0x114   : > { %2092 = vst.msk [vmem:[#allocation3] sm:$0xff] %vm2091_vm7, %v1984_v25  ;;  %2021 = vrot.lane.b32.xlu0 %v1930_v23, %s3075_s17  ;;  %v2141_v23 = vld [vmem:[#allocation2 + $0x93] sm:$0xff]  ;;  %v2150_v25 = vld [vmem:[#allocation2 + $0xdb] sm:$0xff] }
 0x115   : > { %1137 = vrot.lane.b32.xlu1 %v3522_v49, %s3071_s20  ;;  %v3822_v49 = vld [vmem:[#allocation2 + $0xc9] sm:$0xff]  ;;  %2177 = vst.msk [vmem:[#allocation3 + $0xd8] sm:$0xff] %vm493_vm0, %v2141_v23  ;;  %2186 = vst.msk [vmem:[#allocation3 + $0x168] sm:$0xff] %vm493_vm0, %v2150_v25 }
 0x116   : > { %v1986_v28 = vpop.permute.xlu0 %1985 }
 0x117   : > { %v1552_v39 = vpop.permute.xlu1 %1551 }
 0x118   : > { %1659 = vst.msk [vmem:[#allocation3 + $0x10] sm:$0xff] %vm1657_vm5, %v1552_v39  ;;  %1372 = vrot.lane.b32.xlu0 %v1280_v26, %s3073_s9 }
 0x119   : > { %1876 = vst.msk [vmem:[#allocation3 + $0x10] sm:$0xff] %vm1874_vm6, %v1769_v24  ;;  %2003 = vrot.lane.b32.xlu1 %v1921_v27, %s3075_s17  ;;  %v2213_v24 = vld [vmem:[#allocation3 + $0x68] sm:$0xff]  ;;  %v3903_v27 = vld [vmem:[#allocation2 + $0xcf] sm:$0xff] }
 0x11a   : > { %2093 = vst.msk [vmem:[#allocation3 + $0x10] sm:$0xff] %vm2091_vm7, %v1986_v28  ;;  %v1554_v29 = vpop.permute.xlu0 %1553  ;;  %v3905_v28 = vld [vmem:[#allocation2 + $0x91] sm:$0xff] }
 0x11b   : > { %v1120_v30 = vpop.permute.xlu1 %1119  ;;  %v2200_v31 = vld [vmem:[#allocation3] sm:$0xff] }
 0x11c   : > { %1226 = vst.msk [vmem:[#allocation3 + $0x20] sm:$0xff] %vm1223_vm3, %v1120_v30  ;;  %2463 = vmatmul.mubr.f32.vlgmr.msra.gmra.mxu0 %v2200_v31  ;;  %1589 = vrot.lane.b32.xlu0 %v3757_v58, %s3072_s29  ;;  %v2207_v58 = vld [vmem:[#allocation3 + $0x38] sm:$0xff] }
 0x11d   : > { %1354 = vrot.lane.b32.xlu1 %v1271_v61, %s3073_s9  ;;  %2968 = vmatprep.mubr.msk.f32.mxu0 %vm493_vm0, %v2203_v43  ;;  %v1057_v30 = vld [vmem:[#allocation2 + $0x87] sm:$0xff] }
 0x11e   : > { %v1122_v32 = vpop.permute.xlu0 %1121 }
 0x11f   : > { %v1337_v33 = vpop.permute.xlu1 %1336  ;;  %1227 = vst.msk [vmem:[#allocation3 + $0x30] sm:$0xff] %vm1223_vm3, %v1122_v32  ;;  %v1924_v32 = vld [vmem:[#allocation2 + $0x92] sm:$0xff] }
 0x120   : > { %1443 = vst.msk [vmem:[#allocation3 + $0x20] sm:$0xff] %vm1440_vm4, %v1337_v33  ;;  %1806 = vrot.lane.b32.xlu0 %v3822_v49, %s3074_s14 }
 0x121   : > { %1660 = vst.msk [vmem:[#allocation3 + $0x20] sm:$0xff] %vm1657_vm5, %v1554_v29  ;;  %1571 = vrot.lane.b32.xlu1 %v3766_v63, %s3072_s29  ;;  %v2202_v44 = vld [vmem:[#allocation3 + $0x10] sm:$0xff]  ;;  %v2149_v63 = vld [vmem:[#allocation2 + $0xd3] sm:$0xff] }
 0x122   : > { %2468 = vmatmul.mubr.f32.gmra.mxu0 %v2202_v44  ;;  %v1339_v48 = vpop.permute.xlu0 %1338  ;;  %2185 = vst.msk [vmem:[#allocation3 + $0x158] sm:$0xff] %vm493_vm0, %v2149_v63  ;;  %v1933_v29 = vld [vmem:[#allocation2 + $0xda] sm:$0xff] }
 0x123   : > { %v1771_v2 = vpop.permute.xlu1 %1770  ;;  %2969 = vmatprep.mubr.msk.f32.mxu0 %vm493_vm0, %v2205_v36  ;;  %1444 = vst.msk [vmem:[#allocation3 + $0x30] sm:$0xff] %vm1440_vm4, %v1339_v48  ;;  %v297_v36 = vld [vmem:[%s3144_s28 + $0x110] sm:$0xff]  ;;  %v3058_v44 = vld [vmem:[%s4495_s1] ss:$0 sm:$0xff]  ;;  %v298_v63 = vld [vmem:[%s3144_s28 + $0x118] sm:$0xff] }
 0x124   : > { %1877 = vst.msk [vmem:[#allocation3 + $0x20] sm:$0xff] %vm1874_vm6, %v1771_v2  ;;  %1157 = vrot.lane.b32.xlu0 %v3587_v7, %s3071_s20  ;;  %v1272_v7 = vld [vmem:[#allocation2 + $0x78] sm:$0xff] }
 0x125   : > { %1788 = vrot.lane.b32.xlu1 %v3834_v45, %s3074_s14 }
 0x126   : > { %v1773_v51 = vpop.permute.xlu0 %1772 }
 0x127   : > { %v1988_v52 = vpop.permute.xlu1 %1987 }
 0x128   : > { %2094 = vst.msk [vmem:[#allocation3 + $0x20] sm:$0xff] %vm2091_vm7, %v1988_v52  ;;  %2023 = vrot.lane.b32.xlu0 %v1931_v50, %s3075_s17  ;;  %v2142_v52 = vld [vmem:[#allocation2 + $0x9b] sm:$0xff] }
 0x129   : > { %1139 = vrot.lane.b32.xlu1 %v3509_v46, %s3071_s20  ;;  %v3856_v46 = vld [vmem:[#allocation2 + $0xd1] sm:$0xff]  ;;  %2178 = vst.msk [vmem:[#allocation3 + $0xe8] sm:$0xff] %vm493_vm0, %v2142_v52 }
 0x12a   : > { %v1990_v54 = vpop.permute.xlu0 %1989  ;;  %v2144_v52 = vld [vmem:[#allocation2 + $0xab] sm:$0xff] }
 0x12b   : > { %v1556_v35 = vpop.permute.xlu1 %1555  ;;  %2180 = vst.msk [vmem:[#allocation3 + $0x108] sm:$0xff] %vm493_vm0, %v2144_v52  ;;  %v1289_v52 = vld [vmem:[#allocation2 + $0x100] sm:$0xff] }
 0x12c   : > { %1661 = vst.msk [vmem:[#allocation3 + $0x30] sm:$0xff] %vm1657_vm5, %v1556_v35  ;;  %1374 = vrot.lane.b32.xlu0 %v1281_v53, %s3073_s9  ;;  %v3059_v53 = vld [vmem:[%s4496_s2] ss:$0 sm:$0xff] }
 0x12d   : > { %1878 = vst.msk [vmem:[#allocation3 + $0x30] sm:$0xff] %vm1874_vm6, %v1773_v51  ;;  %2005 = vrot.lane.b32.xlu1 %v1922_v41, %s3075_s17  ;;  %v2215_v51 = vld [vmem:[#allocation3 + $0x78] sm:$0xff] }
 0x12e   : > { %2095 = vst.msk [vmem:[#allocation3 + $0x30] sm:$0xff] %vm2091_vm7, %v1990_v54  ;;  %v1558_v55 = vpop.permute.xlu0 %1557  ;;  %v3934_v54 = vld [vmem:[#allocation2 + $0x99] sm:$0xff] }
 0x12f   : > { %v1124_v57 = vpop.permute.xlu1 %1123  ;;  %v2204_v40 = vld [vmem:[#allocation3 + $0x20] sm:$0xff] }
 0x130   : > { %1228 = vst.msk [vmem:[#allocation3 + $0x40] sm:$0xff] %vm1223_vm3, %v1124_v57  ;;  %2473 = vmatmul.mubr.f32.gmra.mxu0 %v2204_v40  ;;  %1591 = vrot.lane.b32.xlu0 %v3790_v42, %s3072_s29  ;;  %v1273_v42 = vld [vmem:[#allocation2 + $0x80] sm:$0xff]  ;;  %v455_v57 = vld [vmem:[%s4498_s4 + $0x110] sm:$0xff]  ;;  %v2217_v40 = vld [vmem:[#allocation3 + $0x88] sm:$0xff] }
 0x131   : > { %1356 = vrot.lane.b32.xlu1 %v1272_v7, %s3073_s9  ;;  %2970 = vmatprep.mubr.msk.f32.mxu0 %vm493_vm0, %v2207_v58 }
 0x132   : > { %v1126_v59 = vpop.permute.xlu0 %1125 }
 0x133   : > { %v1341_v60 = vpop.permute.xlu1 %1340  ;;  %1229 = vst.msk [vmem:[#allocation3 + $0x50] sm:$0xff] %vm1223_vm3, %v1126_v59  ;;  %v1058_v59 = vld [vmem:[#allocation2 + $0x8f] sm:$0xff] }
 0x134   : > { %1445 = vst.msk [vmem:[#allocation3 + $0x40] sm:$0xff] %vm1440_vm4, %v1341_v60  ;;  %1808 = vrot.lane.b32.xlu0 %v3856_v46, %s3074_s14 }
 0x135   : > { %1662 = vst.msk [vmem:[#allocation3 + $0x40] sm:$0xff] %vm1657_vm5, %v1558_v55  ;;  %1573 = vrot.lane.b32.xlu1 %v3801_v20, %s3072_s29  ;;  %v2206_v4 = vld [vmem:[#allocation3 + $0x30] sm:$0xff] }
 0x136   : > { %2478 = vmatmul.mubr.f32.gmra.mxu0 %v2206_v4  ;;  %v1343_v8 = vpop.permute.xlu0 %1342  ;;  %v3891_v20 = vld [vmem:[#allocation2 + $0xd9] sm:$0xff] }
 0x137   : > { %v1775_v9 = vpop.permute.xlu1 %1774  ;;  %2971 = vmatprep.mubr.msk.f32.mxu0 %vm493_vm0, %v2209_v56  ;;  %1446 = vst.msk [vmem:[#allocation3 + $0x50] sm:$0xff] %vm1440_vm4, %v1343_v8  ;;  %v2151_v56 = vld [vmem:[#allocation2 + $0xe3] sm:$0xff]  ;;  %v1925_v4 = vld [vmem:[#allocation2 + $0x9a] sm:$0xff]  ;;  %v341_v8 = vmul.f32 %v3058_v44, %v298_v63 }
 0x138   : > { %1879 = vst.msk [vmem:[#allocation3 + $0x40] sm:$0xff] %vm1874_vm6, %v1775_v9  ;;  %1159 = vrot.lane.b32.xlu0 %v3868_v5, %s3071_s20 }
 0x139   : > { %1790 = vrot.lane.b32.xlu1 %v3870_v6, %s3074_s14  ;;  %2187 = vst.msk [vmem:[#allocation3 + $0x178] sm:$0xff] %vm493_vm0, %v2151_v56 }
 0x13a   : > { %v1777_v12 = vpop.permute.xlu0 %1776 }
 0x13b   : > { %v1992_v3 = vpop.permute.xlu1 %1991 }
 0x13c   : > { %2096 = vst.msk [vmem:[#allocation3 + $0x40] sm:$0xff] %vm2091_vm7, %v1992_v3  ;;  %2025 = vrot.lane.b32.xlu0 %v1932_v10, %s3075_s17  ;;  %v3963_v3 = vld [vmem:[#allocation2 + $0xd7] sm:$0xff] }
 0x13d   : > { %1141 = vrot.lane.b32.xlu1 %v1056_v11, %s3071_s20  ;;  %v384_v11 = vadd.f32 %v3059_v53, %v341_v8 }
 0x13e   : > { %v1994_v15 = vpop.permute.xlu0 %1993 }
 0x13f   : > { %v1560_v1 = vpop.permute.xlu1 %1559 }
 0x140   : > { %1663 = vst.msk [vmem:[#allocation3 + $0x50] sm:$0xff] %vm1657_vm5, %v1560_v1  ;;  %1376 = vrot.lane.b32.xlu0 %v1282_v13, %s3073_s9 }
 0x141   : > { %1880 = vst.msk [vmem:[#allocation3 + $0x50] sm:$0xff] %vm1874_vm6, %v1777_v12  ;;  %2007 = vrot.lane.b32.xlu1 %v1923_v14, %s3075_s17  ;;  %v1275_v12 = vld [vmem:[#allocation2 + $0x90] sm:$0xff] }
 0x142   : > { %2097 = vst.msk [vmem:[#allocation3 + $0x50] sm:$0xff] %vm2091_vm7, %v1994_v15  ;;  %v1562_v16 = vpop.permute.xlu0 %1561  ;;  %v456_v15 = vld [vmem:[%s4498_s4 + $0x118] sm:$0xff] }
 0x143   : > { %v1128_v17 = vpop.permute.xlu1 %1127  ;;  %v2208_v18 = vld [vmem:[#allocation3 + $0x40] sm:$0xff] }
 0x144   : > { %1230 = vst.msk [vmem:[#allocation3 + $0x60] sm:$0xff] %vm1223_vm3, %v1128_v17  ;;  %2483 = vmatmul.mubr.f32.gmra.mxu0 %v2208_v18  ;;  %1593 = vrot.lane.b32.xlu0 %v3822_v49, %s3072_s29  ;;  %v1283_v49 = vld [vmem:[#allocation2 + $0xd0] sm:$0xff]  ;;  %v1934_v17 = vld [vmem:[#allocation2 + $0xe2] sm:$0xff] }
 0x145   : > { %1358 = vrot.lane.b32.xlu1 %v1273_v42, %s3073_s9  ;;  %2972 = vmatprep.mubr.msk.f32.mxu0 %vm493_vm0, %v2211_v19  ;;  %v2219_v42 = vld [vmem:[#allocation3 + $0x98] sm:$0xff] }
 0x146   : > { %v1130_v21 = vpop.permute.xlu0 %1129 }
 0x147   : > { %v1345_v22 = vpop.permute.xlu1 %1344  ;;  %1231 = vst.msk [vmem:[#allocation3 + $0x70] sm:$0xff] %vm1223_vm3, %v1130_v21  ;;  %v1284_v21 = vld [vmem:[#allocation2 + $0xd8] sm:$0xff] }
 0x148   : > { %1447 = vst.msk [vmem:[#allocation3 + $0x60] sm:$0xff] %vm1440_vm4, %v1345_v22  ;;  %1810 = vrot.lane.b32.xlu0 %v3891_v20, %s3074_s14 }
 0x149   : > { %1664 = vst.msk [vmem:[#allocation3 + $0x60] sm:$0xff] %vm1657_vm5, %v1562_v16  ;;  %1575 = vrot.lane.b32.xlu1 %v3834_v45, %s3072_s29  ;;  %v2210_v26 = vld [vmem:[#allocation3 + $0x50] sm:$0xff]  ;;  %v340_v45 = vmul.f32 %v3058_v44, %v297_v36 }
 0x14a   : > { %2488 = vmatmul.mubr.f32.gmra.mxu0 %v2210_v26  ;;  %v1347_v39 = vpop.permute.xlu0 %1346  ;;  %v1926_v36 = vld [vmem:[#allocation2 + $0xa2] sm:$0xff] }
 0x14b   : > { %v1779_v61 = vpop.permute.xlu1 %1778  ;;  %2973 = vmatprep.mubr.msk.f32.mxu0 %vm493_vm0, %v2213_v24  ;;  %1448 = vst.msk [vmem:[#allocation3 + $0x70] sm:$0xff] %vm1440_vm4, %v1347_v39  ;;  %v383_v41 = vadd.f32 %v3059_v53, %v340_v45  ;;  %v3985_v24 = vld [vmem:[#allocation2 + $0xe9] sm:$0xff] }
 0x14c   : > { %1881 = vst.msk [vmem:[#allocation3 + $0x60] sm:$0xff] %vm1874_vm6, %v1779_v61  ;;  %1161 = vrot.lane.b32.xlu0 %v3903_v27, %s3071_s20  ;;  %v2143_v39 = vld [vmem:[#allocation2 + $0xa3] sm:$0xff] }
 0x14d   : > { %1792 = vrot.lane.b32.xlu1 %v3905_v28, %s3074_s14  ;;  %v419_v35 = vmax.f32 %v383_v41, 0.0  ;;  %2179 = vst.msk [vmem:[#allocation3 + $0xf8] sm:$0xff] %vm493_vm0, %v2143_v39  ;;  %v3997_v61 = vld [vmem:[#allocation2 + $0xa1] sm:$0xff] }
 0x14e   : > { %v1781_v31 = vpop.permute.xlu0 %1780 }
 0x14f   : > { %v1996_v43 = vpop.permute.xlu1 %1995  ;;  %v491_v58 = vmul.f32 %v455_v57, %v419_v35  ;;  %v1060_v35 = vld [vmem:[#allocation2 + $0x9f] sm:$0xff]  ;;  %v2153_v57 = vld [vmem:[#allocation2 + $0xf3] sm:$0xff] }
 0x150   : > { %2098 = vst.msk [vmem:[#allocation3 + $0x60] sm:$0xff] %vm2091_vm7, %v1996_v43  ;;  %2027 = vrot.lane.b32.xlu0 %v1933_v29, %s3075_s17 }
 0x151   : > { %1143 = vrot.lane.b32.xlu1 %v1057_v30, %s3071_s20  ;;  %535 = vst.msk [vmem:[#allocation2 + $0x128] sm:$0xff] %vm493_vm0, %v491_v58  ;;  %2189 = vst.msk [vmem:[#allocation3 + $0x198] sm:$0xff] %vm493_vm0, %v2153_v57  ;;  %v2157_v57 = vld [vmem:[#allocation2 + $0x113] sm:$0xff] }
 0x152   : > { %v1998_v33 = vpop.permute.xlu0 %1997  ;;  %2193 = vst.msk [vmem:[#allocation3 + $0x1d8] sm:$0xff] %vm493_vm0, %v2157_v57 }
 0x153   : > { %v1564_v34 = vpop.permute.xlu1 %1563 }
 0x154   : > { %1665 = vst.msk [vmem:[#allocation3 + $0x70] sm:$0xff] %vm1657_vm5, %v1564_v34  ;;  %1378 = vrot.lane.b32.xlu0 %v1283_v49, %s3073_s9  ;;  %v1285_v34 = vld [vmem:[#allocation2 + $0xe0] sm:$0xff] }
 0x155   : > { %1882 = vst.msk [vmem:[#allocation3 + $0x70] sm:$0xff] %vm1874_vm6, %v1781_v31  ;;  %2009 = vrot.lane.b32.xlu1 %v1924_v32, %s3075_s17  ;;  %v1935_v31 = vld [vmem:[#allocation2 + $0xea] sm:$0xff] }
 0x156   : > { %2099 = vst.msk [vmem:[#allocation3 + $0x70] sm:$0xff] %vm2091_vm7, %v1998_v33  ;;  %v1566_v48 = vpop.permute.xlu0 %1565  ;;  %v2239_v33 = vld [vmem:[#allocation3 + $0x138] sm:$0xff] }
 0x157   : > { %v1132_v2 = vpop.permute.xlu1 %1131  ;;  %v2212_v50 = vld [vmem:[#allocation3 + $0x60] sm:$0xff] }
 0x158   : > { %1232 = vst.msk [vmem:[#allocation3 + $0x80] sm:$0xff] %vm1223_vm3, %v1132_v2  ;;  %2493 = vmatmul.mubr.f32.gmra.mxu0 %v2212_v50  ;;  %1595 = vrot.lane.b32.xlu0 %v3856_v46, %s3072_s29  ;;  %v1276_v2 = vld [vmem:[#allocation2 + $0x98] sm:$0xff] }
 0x159   : > { %1360 = vrot.lane.b32.xlu1 %v1274_v38, %s3073_s9  ;;  %2974 = vmatprep.mubr.msk.f32.mxu0 %vm493_vm0, %v2215_v51 }
 0x15a   : > { %v1134_v7 = vpop.permute.xlu0 %1133 }
 0x15b   : > { %v1349_v55 = vpop.permute.xlu1 %1348  ;;  %1233 = vst.msk [vmem:[#allocation3 + $0x90] sm:$0xff] %vm1223_vm3, %v1134_v7 }
 0x15c   : > { %1449 = vst.msk [vmem:[#allocation3 + $0x80] sm:$0xff] %vm1440_vm4, %v1349_v55  ;;  %1794 = vrot.lane.b32.xlu0 %v3934_v54, %s3074_s14 }
 0x15d   : > { %1666 = vst.msk [vmem:[#allocation3 + $0x80] sm:$0xff] %vm1657_vm5, %v1566_v48  ;;  %1577 = vrot.lane.b32.xlu1 %v3870_v6, %s3072_s29  ;;  %v2214_v46 = vld [vmem:[#allocation3 + $0x70] sm:$0xff]  ;;  %v2221_v48 = vld [vmem:[#allocation3 + $0xa8] sm:$0xff] }
 0x15e   : > { %2498 = vmatmul.mubr.f32.gmra.mxu0 %v2214_v46  ;;  %v2000_v60 = vpop.permute.xlu0 %1999  ;;  %v3956_v6 = vld [vmem:[#allocation2 + $0xe1] sm:$0xff] }
 0x15f   : > { %v1783_v62 = vpop.permute.xlu1 %1782  ;;  %2975 = vmatprep.mubr.msk.f32.mxu0 %vm493_vm0, %v2217_v40 }
 0x160   : > { %1883 = vst.msk [vmem:[#allocation3 + $0x80] sm:$0xff] %vm1874_vm6, %v1783_v62  ;;  %1145 = vrot.lane.b32.xlu0 %v1058_v59, %s3071_s20  ;;  %v2241_v59 = vld [vmem:[#allocation3 + $0x148] sm:$0xff] }
 0x161   : > { %2100 = vst.msk [vmem:[#allocation3 + $0x80] sm:$0xff] %vm2091_vm7, %v2000_v60  ;;  %946 = vrot.lane.b32.xlu1 %v3868_v5, %s3070_s19  ;;  %v420_v5 = vmax.f32 %v384_v11, 0.0  ;;  %v4041_v60 = vld [vmem:[#allocation2 + $0xe7] sm:$0xff] }
 0x162   : > { %v1369_v9 = vpop.permute.xlu0 %1368  ;;  %v1286_v11 = vld [vmem:[#allocation2 + $0xe8] sm:$0xff] }
 0x163   : > { %v1152_v10 = vpop.permute.xlu1 %1151  ;;  %v492_v16 = vmul.f32 %v456_v15, %v420_v5  ;;  %v4061_v5 = vld [vmem:[#allocation2 + $0xf9] sm:$0xff] }
 0x164   : > { %1242 = vst.msk [vmem:[#allocation3 + $0x120] sm:$0xff] %vm1223_vm3, %v1152_v10  ;;  %2011 = vrot.lane.b32.xlu0 %v1925_v4, %s3075_s17  ;;  %v2223_v4 = vld [vmem:[#allocation3 + $0xb8] sm:$0xff]  ;;  %v2145_v10 = vld [vmem:[#allocation2 + $0xb3] sm:$0xff]  ;;  %v2154_v15 = vld [vmem:[#allocation2 + $0xfb] sm:$0xff] }
 0x165   : > { %1459 = vst.msk [vmem:[#allocation3 + $0x120] sm:$0xff] %vm1440_vm4, %v1369_v9  ;;  %1812 = vrot.lane.b32.xlu1 %v3956_v6, %s3074_s14 }
 0x166   : > { %v1586_v13 = vpop.permute.xlu0 %1585  ;;  %536 = vst.msk [vmem:[#allocation2 + $0x130] sm:$0xff] %vm493_vm0, %v492_v16  ;;  %2181 = vst.msk [vmem:[#allocation3 + $0x118] sm:$0xff] %vm493_vm0, %v2145_v10  ;;  %v4134_v10 = vld [vmem:[#allocation2 + $0x10f] sm:$0xff] }
 0x167   : > { %v1351_v14 = vpop.permute.xlu1 %1350  ;;  %1676 = vst.msk [vmem:[#allocation3 + $0x120] sm:$0xff] %vm1657_vm5, %v1586_v13 }
 0x168   : > { %1450 = vst.msk [vmem:[#allocation3 + $0x90] sm:$0xff] %vm1440_vm4, %v1351_v14  ;;  %v2216_v1 = vld [vmem:[#allocation3 + $0x80] sm:$0xff]  ;;  %1362 = vrot.lane.b32.xlu0 %v1275_v12, %s3073_s9 }
 0x169   : > { %1163 = vrot.lane.b32.xlu1 %v3963_v3, %s3071_s20  ;;  %2503 = vmatmul.mubr.f32.gmra.mxu0 %v2216_v1  ;;  %2190 = vst.msk [vmem:[#allocation3 + $0x1a8] sm:$0xff] %vm493_vm0, %v2154_v15  ;;  %v1928_v1 = vld [vmem:[#allocation2 + $0xb2] sm:$0xff]  ;;  %v2643_v15 = vld [vmem:[%s4498_s4] sm:$0xff] }
 0x16a   : > { %v1803_v18 = vpop.permute.xlu0 %1802  ;;  %2976 = vmatprep.mubr.msk.f32.mxu0 %vm493_vm0, %v2219_v42 }
 0x16b   : > { %v1568_v19 = vpop.permute.xlu1 %1567  ;;  %1893 = vst.msk [vmem:[#allocation3 + $0x120] sm:$0xff] %vm1874_vm6, %v1803_v18  ;;  %v2243_v18 = vld [vmem:[#allocation3 + $0x158] sm:$0xff] }
 0x16c   : > { %1667 = vst.msk [vmem:[#allocation3 + $0x90] sm:$0xff] %vm1657_vm5, %v1568_v19  ;;  %1579 = vrot.lane.b32.xlu0 %v3905_v28, %s3072_s29  ;;  %v2152_v28 = vld [vmem:[#allocation2 + $0xeb] sm:$0xff] }
 0x16d   : > { %2029 = vrot.lane.b32.xlu1 %v1934_v17, %s3075_s17  ;;  %2188 = vst.msk [vmem:[#allocation3 + $0x188] sm:$0xff] %vm493_vm0, %v2152_v28  ;;  %v1070_v19 = vld [vmem:[#allocation2 + $0xef] sm:$0xff]  ;;  %v2155_v28 = vld [vmem:[#allocation2 + $0x103] sm:$0xff] }
 0x16e   : > { %v1154_v22 = vpop.permute.xlu0 %1153  ;;  %2191 = vst.msk [vmem:[#allocation3 + $0x1b8] sm:$0xff] %vm493_vm0, %v2155_v28  ;;  %v4176_v28 = vld [vmem:[#allocation2 + $0x121] sm:$0xff] }
 0x16f   : > { %v1785_v23 = vpop.permute.xlu1 %1784  ;;  %1243 = vst.msk [vmem:[#allocation3 + $0x130] sm:$0xff] %vm1223_vm3, %v1154_v22 }
 0x170   : > { %1884 = vst.msk [vmem:[#allocation3 + $0x90] sm:$0xff] %vm1874_vm6, %v1785_v23  ;;  %948 = vrot.lane.b32.xlu0 %v3903_v27, %s3070_s19  ;;  %v3995_v27 = vld [vmem:[#allocation2 + $0xdf] sm:$0xff] }
 0x171   : > { %1380 = vrot.lane.b32.xlu1 %v1284_v21, %s3073_s9  ;;  %v1287_v21 = vld [vmem:[#allocation2 + $0xf0] sm:$0xff] }
 0x172   : > { %v2020_v25 = vpop.permute.xlu0 %2019 }
 0x173   : > { %v1136_v26 = vpop.permute.xlu1 %1135  ;;  %2110 = vst.msk [vmem:[#allocation3 + $0x120] sm:$0xff] %vm2091_vm7, %v2020_v25  ;;  %v2225_v25 = vld [vmem:[#allocation3 + $0xc8] sm:$0xff] }
 0x174   : > { %1234 = vst.msk [vmem:[#allocation3 + $0xa0] sm:$0xff] %vm1223_vm3, %v1136_v26  ;;  %1814 = vrot.lane.b32.xlu0 %v3985_v24, %s3074_s14 }
 0x175   : > { %1597 = vrot.lane.b32.xlu1 %v3891_v20, %s3072_s29  ;;  %v1059_v20 = vld [vmem:[#allocation2 + $0x97] sm:$0xff] }
 0x176   : > { %v1371_v29 = vpop.permute.xlu0 %1370 }
 0x177   : > { %v2002_v30 = vpop.permute.xlu1 %2001  ;;  %1460 = vst.msk [vmem:[#allocation3 + $0x130] sm:$0xff] %vm1440_vm4, %v1371_v29 }
 0x178   : > { %2101 = vst.msk [vmem:[#allocation3 + $0x90] sm:$0xff] %vm2091_vm7, %v2002_v30  ;;  %1165 = vrot.lane.b32.xlu0 %v3995_v27, %s3071_s20  ;;  %v1721_v30 = vld [vmem:[#allocation2 + $0x101] sm:$0xff] }
 0x179   : > { %1796 = vrot.lane.b32.xlu1 %v3997_v61, %s3074_s14 }
 0x17a   : > { %v1588_v43 = vpop.permute.xlu0 %1587  ;;  %v2236_v32 = vld [vmem:[#allocation3 + $0x120] sm:$0xff] }
 0x17b   : > { %v1353_v49 = vpop.permute.xlu1 %1352  ;;  %1677 = vst.msk [vmem:[#allocation3 + $0x130] sm:$0xff] %vm1657_vm5, %v1588_v43  ;;  %2553 = vmatmul.mubr.f32.vlgmr.msra.gmra.mxu1 %v2236_v32 }
 0x17c   : > { %1451 = vst.msk [vmem:[#allocation3 + $0xa0] sm:$0xff] %vm1440_vm4, %v1353_v49  ;;  %2031 = vrot.lane.b32.xlu0 %v1935_v31, %s3075_s17  ;;  %2986 = vmatprep.mubr.msk.f32.mxu1 %vm493_vm0, %v2239_v33  ;;  %v1288_v31 = vld [vmem:[#allocation2 + $0xf8] sm:$0xff]  ;;  %v1938_v49 = vld [vmem:[#allocation2 + $0x102] sm:$0xff] }
 0x17d   : > { %1147 = vrot.lane.b32.xlu1 %v1059_v20, %s3071_s20 }
 0x17e   : > { %v1805_v38 = vpop.permute.xlu0 %1804 }
 0x17f   : > { %v1570_v44 = vpop.permute.xlu1 %1569  ;;  %v2218_v45 = vld [vmem:[#allocation3 + $0x90] sm:$0xff]  ;;  %1894 = vst.msk [vmem:[#allocation3 + $0x130] sm:$0xff] %vm1874_vm6, %v1805_v38  ;;  %v2156_v38 = vld [vmem:[#allocation2 + $0x10b] sm:$0xff] }
 0x180   : > { %1668 = vst.msk [vmem:[#allocation3 + $0xa0] sm:$0xff] %vm1657_vm5, %v1570_v44  ;;  %2508 = vmatmul.mubr.f32.gmra.mxu0 %v2218_v45  ;;  %1382 = vrot.lane.b32.xlu0 %v1285_v34, %s3073_s9  ;;  %v1072_v44 = vld [vmem:[#allocation2 + $0xff] sm:$0xff] }
 0x181   : > { %2013 = vrot.lane.b32.xlu1 %v1926_v36, %s3075_s17  ;;  %2977 = vmatprep.mubr.msk.f32.mxu0 %vm493_vm0, %v2221_v48  ;;  %v2245_v36 = vld [vmem:[#allocation3 + $0x168] sm:$0xff]  ;;  %2192 = vst.msk [vmem:[#allocation3 + $0x1c8] sm:$0xff] %vm493_vm0, %v2156_v38 }
 0x182   : > { %v1156_v50 = vpop.permute.xlu0 %1155 }
 0x183   : > { %v1787_v51 = vpop.permute.xlu1 %1786  ;;  %1244 = vst.msk [vmem:[#allocation3 + $0x140] sm:$0xff] %vm1223_vm3, %v1156_v50  ;;  %v2227_v50 = vld [vmem:[#allocation3 + $0xd8] sm:$0xff] }
 0x184   : > { %1885 = vst.msk [vmem:[#allocation3 + $0xa0] sm:$0xff] %vm1874_vm6, %v1787_v51  ;;  %1599 = vrot.lane.b32.xlu0 %v3956_v6, %s3072_s29  ;;  %v1936_v6 = vld [vmem:[#allocation2 + $0xf2] sm:$0xff]  ;;  %v1722_v51 = vld [vmem:[#allocation2 + $0x109] sm:$0xff] }
 0x185   : > { %1364 = vrot.lane.b32.xlu1 %v1276_v2, %s3073_s9 }
 0x186   : > { %v2022_v53 = vpop.permute.xlu0 %2021 }
 0x187   : > { %v1138_v41 = vpop.permute.xlu1 %1137  ;;  %2111 = vst.msk [vmem:[#allocation3 + $0x130] sm:$0xff] %vm2091_vm7, %v2022_v53 }
 0x188   : > { %1235 = vst.msk [vmem:[#allocation3 + $0xb0] sm:$0xff] %vm1223_vm3, %v1138_v41  ;;  %1798 = vrot.lane.b32.xlu0 %v3750_v47, %s3074_s14  ;;  %v1927_v47 = vld [vmem:[#allocation2 + $0xaa] sm:$0xff] }
 0x189   : > { %1581 = vrot.lane.b32.xlu1 %v3934_v54, %s3072_s29  ;;  %v4034_v54 = vld [vmem:[#allocation2 + $0xf1] sm:$0xff] }
 0x18a   : > { %v1373_v7 = vpop.permute.xlu0 %1372 }
 0x18b   : > { %v2004_v55 = vpop.permute.xlu1 %2003  ;;  %1461 = vst.msk [vmem:[#allocation3 + $0x140] sm:$0xff] %vm1440_vm4, %v1373_v7 }
 0x18c   : > { %2102 = vst.msk [vmem:[#allocation3 + $0xa0] sm:$0xff] %vm2091_vm7, %v2004_v55  ;;  %1149 = vrot.lane.b32.xlu0 %v1060_v35, %s3071_s20  ;;  %v1939_v35 = vld [vmem:[#allocation2 + $0x10a] sm:$0xff] }
 0x18d   : > { %950 = vrot.lane.b32.xlu1 %v3963_v3, %s3070_s19 }
 0x18e   : > { %v1590_v40 = vpop.permute.xlu0 %1589  ;;  %v2238_v46 = vld [vmem:[#allocation3 + $0x130] sm:$0xff] }
 0x18f   : > { %v1355_v58 = vpop.permute.xlu1 %1354  ;;  %1678 = vst.msk [vmem:[#allocation3 + $0x140] sm:$0xff] %vm1657_vm5, %v1590_v40  ;;  %2558 = vmatmul.mubr.f32.gmra.mxu1 %v2238_v46  ;;  %v1290_v46 = vld [vmem:[#allocation2 + $0x108] sm:$0xff] }
 0x190   : > { %1452 = vst.msk [vmem:[#allocation3 + $0xb0] sm:$0xff] %vm1440_vm4, %v1355_v58  ;;  %2015 = vrot.lane.b32.xlu0 %v1927_v47, %s3075_s17  ;;  %2987 = vmatprep.mubr.msk.f32.mxu1 %vm493_vm0, %v2241_v59  ;;  %v1073_v47 = vld [vmem:[#allocation2 + $0x107] sm:$0xff]  ;;  %v4121_v58 = vld [vmem:[#allocation2 + $0x111] sm:$0xff] }
 0x191   : > { %1816 = vrot.lane.b32.xlu1 %v4034_v54, %s3074_s14 }
 0x192   : > { %v1807_v62 = vpop.permute.xlu0 %1806 }
 0x193   : > { %v1572_v56 = vpop.permute.xlu1 %1571  ;;  %v2220_v63 = vld [vmem:[#allocation3 + $0xa0] sm:$0xff]  ;;  %1895 = vst.msk [vmem:[#allocation3 + $0x140] sm:$0xff] %vm1874_vm6, %v1807_v62  ;;  %v2247_v62 = vld [vmem:[#allocation3 + $0x178] sm:$0xff] }
 0x194   : > { %1669 = vst.msk [vmem:[#allocation3 + $0xb0] sm:$0xff] %vm1657_vm5, %v1572_v56  ;;  %2513 = vmatmul.mubr.f32.gmra.mxu0 %v2220_v63  ;;  %1366 = vrot.lane.b32.xlu0 %v1277_v0, %s3073_s9  ;;  %v1940_v56 = vld [vmem:[#allocation2 + $0x112] sm:$0xff] }
 0x195   : > { %1167 = vrot.lane.b32.xlu1 %v4041_v60, %s3071_s20  ;;  %2978 = vmatprep.mubr.msk.f32.mxu0 %vm493_vm0, %v2223_v4 }
 0x196   : > { %v1158_v8 = vpop.permute.xlu0 %1157 }
 0x197   : > { %v1789_v9 = vpop.permute.xlu1 %1788  ;;  %1245 = vst.msk [vmem:[#allocation3 + $0x150] sm:$0xff] %vm1223_vm3, %v1158_v8  ;;  %v2229_v8 = vld [vmem:[#allocation3 + $0xe8] sm:$0xff] }
 0x198   : > { %1886 = vst.msk [vmem:[#allocation3 + $0xb0] sm:$0xff] %vm1874_vm6, %v1789_v9  ;;  %1583 = vrot.lane.b32.xlu0 %v3997_v61, %s3072_s29  ;;  %v2158_v9 = vld [vmem:[#allocation2 + $0x11b] sm:$0xff] }
 0x199   : > { %2033 = vrot.lane.b32.xlu1 %v1936_v6, %s3075_s17  ;;  %2194 = vst.msk [vmem:[#allocation3 + $0x1e8] sm:$0xff] %vm493_vm0, %v2158_v9  ;;  %v2251_v9 = vld [vmem:[#allocation3 + $0x198] sm:$0xff] }
 0x19a   : > { %v2024_v12 = vpop.permute.xlu0 %2023 }
 0x19b   : > { %v1140_v3 = vpop.permute.xlu1 %1139  ;;  %2112 = vst.msk [vmem:[#allocation3 + $0x140] sm:$0xff] %vm2091_vm7, %v2024_v12 }
 0x19c   : > { %1236 = vst.msk [vmem:[#allocation3 + $0xc0] sm:$0xff] %vm1223_vm3, %v1140_v3  ;;  %952 = vrot.lane.b32.xlu0 %v3995_v27, %s3070_s19  ;;  %v1071_v27 = vld [vmem:[#allocation2 + $0xf7] sm:$0xff] }
 0x19d   : > { %1384 = vrot.lane.b32.xlu1 %v1286_v11, %s3073_s9  ;;  %v4142_v3 = vld [vmem:[#allocation2 + $0x119] sm:$0xff] }
 0x19e   : > { %v1375_v13 = vpop.permute.xlu0 %1374 }
 0x19f   : > { %v2006_v14 = vpop.permute.xlu1 %2005  ;;  %1462 = vst.msk [vmem:[#allocation3 + $0x150] sm:$0xff] %vm1440_vm4, %v1375_v13 }
 0x1a0   : > { %2103 = vst.msk [vmem:[#allocation3 + $0xb0] sm:$0xff] %vm2091_vm7, %v2006_v14  ;;  %1818 = vrot.lane.b32.xlu0 %v4061_v5, %s3074_s14 }
 0x1a1   : > { %1601 = vrot.lane.b32.xlu1 %v3985_v24, %s3072_s29 }
 0x1a2   : > { %v1592_v42 = vpop.permute.xlu0 %1591  ;;  %v2240_v17 = vld [vmem:[#allocation3 + $0x140] sm:$0xff] }
 0x1a3   : > { %v1357_v16 = vpop.permute.xlu1 %1356  ;;  %1679 = vst.msk [vmem:[#allocation3 + $0x150] sm:$0xff] %vm1657_vm5, %v1592_v42  ;;  %2563 = vmatmul.mubr.f32.gmra.mxu1 %v2240_v17  ;;  %v2159_v17 = vld [vmem:[#allocation2 + $0x123] sm:$0xff] }
 0x1a4   : > { %1453 = vst.msk [vmem:[#allocation3 + $0xc0] sm:$0xff] %vm1440_vm4, %v1357_v16  ;;  %2017 = vrot.lane.b32.xlu0 %v1928_v1, %s3075_s17  ;;  %2988 = vmatprep.mubr.msk.f32.mxu1 %vm493_vm0, %v2243_v18  ;;  %v1941_v1 = vld [vmem:[#allocation2 + $0x11a] sm:$0xff] }
 0x1a5   : > { %1800 = vrot.lane.b32.xlu1 %v3784_v37, %s3074_s14  ;;  %v1937_v37 = vld [vmem:[#allocation2 + $0xfa] sm:$0xff]  ;;  %2195 = vst.msk [vmem:[#allocation3 + $0x1f8] sm:$0xff] %vm493_vm0, %v2159_v17 }
 0x1a6   : > { %v1809_v22 = vpop.permute.xlu0 %1808 }
 0x1a7   : > { %v1574_v23 = vpop.permute.xlu1 %1573  ;;  %v2222_v24 = vld [vmem:[#allocation3 + $0xb0] sm:$0xff]  ;;  %1896 = vst.msk [vmem:[#allocation3 + $0x150] sm:$0xff] %vm1874_vm6, %v1809_v22  ;;  %v4164_v22 = vld [vmem:[#allocation2 + $0x117] sm:$0xff] }
 0x1a8   : > { %1670 = vst.msk [vmem:[#allocation3 + $0xc0] sm:$0xff] %vm1657_vm5, %v1574_v23  ;;  %2518 = vmatmul.mubr.f32.gmra.mxu0 %v2222_v24  ;;  %1386 = vrot.lane.b32.xlu0 %v1287_v21, %s3073_s9 }
 0x1a9   : > { %1169 = vrot.lane.b32.xlu1 %v1070_v19, %s3071_s20  ;;  %2979 = vmatprep.mubr.msk.f32.mxu0 %vm493_vm0, %v2225_v25 }
 0x1aa   : > { %v1160_v26 = vpop.permute.xlu0 %1159 }
 0x1ab   : > { %v1791_v39 = vpop.permute.xlu1 %1790  ;;  %1246 = vst.msk [vmem:[#allocation3 + $0x160] sm:$0xff] %vm1223_vm3, %v1160_v26  ;;  %v2644_v26 = vld [vmem:[%s4498_s4 + $0x8] sm:$0xff] }
 0x1ac   : > { %1887 = vst.msk [vmem:[#allocation3 + $0xc0] sm:$0xff] %vm1874_vm6, %v1791_v39  ;;  %954 = vrot.lane.b32.xlu0 %v4041_v60, %s3070_s19 }
 0x1ad   : > { %2035 = vrot.lane.b32.xlu1 %v1937_v37, %s3075_s17  ;;  %v2231_v37 = vld [vmem:[#allocation3 + $0xf8] sm:$0xff] }
 0x1ae   : > { %v2026_v61 = vpop.permute.xlu0 %2025 }
 0x1af   : > { %v1142_v29 = vpop.permute.xlu1 %1141  ;;  %2113 = vst.msk [vmem:[#allocation3 + $0x150] sm:$0xff] %vm2091_vm7, %v2026_v61 }
 0x1b0   : > { %1237 = vst.msk [vmem:[#allocation3 + $0xd0] sm:$0xff] %vm1223_vm3, %v1142_v29  ;;  %1171 = vrot.lane.b32.xlu0 %v1071_v27, %s3071_s20 }
 0x1b1   : > { %1603 = vrot.lane.b32.xlu1 %v4034_v54, %s3072_s29 }
 0x1b2   : > { %v1377_v20 = vpop.permute.xlu0 %1376 }
 0x1b3   : > { %v2008_v43 = vpop.permute.xlu1 %2007  ;;  %1463 = vst.msk [vmem:[#allocation3 + $0x160] sm:$0xff] %vm1440_vm4, %v1377_v20 }
 0x1b4   : > { %2104 = vst.msk [vmem:[#allocation3 + $0xc0] sm:$0xff] %vm2091_vm7, %v2008_v43  ;;  %1388 = vrot.lane.b32.xlu0 %v1288_v31, %s3073_s9 }
 0x1b5   : > { %1820 = vrot.lane.b32.xlu1 %v1721_v30, %s3074_s14 }
 0x1b6   : > { %v1594_v32 = vpop.permute.xlu0 %1593  ;;  %v2242_v34 = vld [vmem:[#allocation3 + $0x150] sm:$0xff] }
 0x1b7   : > { %v1359_v33 = vpop.permute.xlu1 %1358  ;;  %1680 = vst.msk [vmem:[#allocation3 + $0x160] sm:$0xff] %vm1657_vm5, %v1594_v32  ;;  %2568 = vmatmul.mubr.f32.gmra.mxu1 %v2242_v34  ;;  %v1942_v32 = vld [vmem:[#allocation2 + $0x122] sm:$0xff] }
 0x1b8   : > { %1454 = vst.msk [vmem:[#allocation3 + $0xd0] sm:$0xff] %vm1440_vm4, %v1359_v33  ;;  %956 = vrot.lane.b32.xlu0 %v1070_v19, %s3070_s19  ;;  %2989 = vmatprep.mubr.msk.f32.mxu1 %vm493_vm0, %v2245_v36 }
 0x1b9   : > { %2037 = vrot.lane.b32.xlu1 %v1938_v49, %s3075_s17 }
 0x1ba   : > { %v1811_v45 = vpop.permute.xlu0 %1810 }
 0x1bb   : > { %v1576_v48 = vpop.permute.xlu1 %1575  ;;  %v2224_v2 = vld [vmem:[#allocation3 + $0xc0] sm:$0xff]  ;;  %1897 = vst.msk [vmem:[#allocation3 + $0x160] sm:$0xff] %vm1874_vm6, %v1811_v45 }
 0x1bc   : > { %1671 = vst.msk [vmem:[#allocation3 + $0xd0] sm:$0xff] %vm1657_vm5, %v1576_v48  ;;  %2523 = vmatmul.mubr.f32.gmra.mxu0 %v2224_v2  ;;  %1173 = vrot.lane.b32.xlu0 %v1072_v44, %s3071_s20  ;;  %v2160_v45 = vld [vmem:[#allocation2 + $0x12b] sm:$0xff]  ;;  %v4191_v48 = vld [vmem:[#allocation2 + $0x11f] sm:$0xff] }
 0x1bd   : > { %1605 = vrot.lane.b32.xlu1 %v4061_v5, %s3072_s29  ;;  %2980 = vmatprep.mubr.msk.f32.mxu0 %vm493_vm0, %v2227_v50  ;;  %v1291_v5 = vld [vmem:[#allocation2 + $0x110] sm:$0xff]  ;;  %2196 = vst.msk [vmem:[#allocation3 + $0x208] sm:$0xff] %vm493_vm0, %v2160_v45  ;;  %v2235_v45 = vld [vmem:[#allocation3 + $0x118] sm:$0xff] }
 0x1be   : > { %v1162_v53 = vpop.permute.xlu0 %1161 }
 0x1bf   : > { %v1793_v41 = vpop.permute.xlu1 %1792  ;;  %1247 = vst.msk [vmem:[#allocation3 + $0x170] sm:$0xff] %vm1223_vm3, %v1162_v53  ;;  %v1293_v53 = vld [vmem:[#allocation2 + $0x120] sm:$0xff] }
 0x1c0   : > { %1888 = vst.msk [vmem:[#allocation3 + $0xd0] sm:$0xff] %vm1874_vm6, %v1793_v41  ;;  %1390 = vrot.lane.b32.xlu0 %v1289_v52, %s3073_s9  ;;  %v4203_v52 = vld [vmem:[#allocation2 + $0x129] sm:$0xff] }
 0x1c1   : > { %1822 = vrot.lane.b32.xlu1 %v1722_v51, %s3074_s14 }
 0x1c2   : > { %v2028_v7 = vpop.permute.xlu0 %2027 }
 0x1c3   : > { %v1144_v55 = vpop.permute.xlu1 %1143  ;;  %2114 = vst.msk [vmem:[#allocation3 + $0x160] sm:$0xff] %vm2091_vm7, %v2028_v7 }
 0x1c4   : > { %1238 = vst.msk [vmem:[#allocation3 + $0xe0] sm:$0xff] %vm1223_vm3, %v1144_v55  ;;  %958 = vrot.lane.b32.xlu0 %v1071_v27, %s3070_s19  ;;  %v1292_v27 = vld [vmem:[#allocation2 + $0x118] sm:$0xff] }
 0x1c5   : > { %2039 = vrot.lane.b32.xlu1 %v1939_v35, %s3075_s17 }
 0x1c6   : > { %v1379_v54 = vpop.permute.xlu0 %1378 }
 0x1c7   : > { %v2010_v40 = vpop.permute.xlu1 %2009  ;;  %1464 = vst.msk [vmem:[#allocation3 + $0x170] sm:$0xff] %vm1440_vm4, %v1379_v54 }
 0x1c8   : > { %2105 = vst.msk [vmem:[#allocation3 + $0xd0] sm:$0xff] %vm2091_vm7, %v2010_v40  ;;  %1175 = vrot.lane.b32.xlu0 %v1073_v47, %s3071_s20 }
 0x1c9   : > { %1607 = vrot.lane.b32.xlu1 %v1721_v30, %s3072_s29 }
 0x1ca   : > { %v1596_v59 = vpop.permute.xlu0 %1595  ;;  %v2244_v0 = vld [vmem:[#allocation3 + $0x160] sm:$0xff] }
 0x1cb   : > { %v1361_v60 = vpop.permute.xlu1 %1360  ;;  %1681 = vst.msk [vmem:[#allocation3 + $0x170] sm:$0xff] %vm1657_vm5, %v1596_v59  ;;  %2573 = vmatmul.mubr.f32.gmra.mxu1 %v2244_v0  ;;  %v2161_v59 = vld [vmem:[#allocation2 + $0x133] sm:$0xff] }
 0x1cc   : > { %1455 = vst.msk [vmem:[#allocation3 + $0xe0] sm:$0xff] %vm1440_vm4, %v1361_v60  ;;  %1392 = vrot.lane.b32.xlu0 %v1290_v46, %s3073_s9  ;;  %2990 = vmatprep.mubr.msk.f32.mxu1 %vm493_vm0, %v2247_v62  ;;  %v2646_v60 = vld [vmem:[%s4498_s4 + $0x18] sm:$0xff] }
 0x1cd   : > { %1824 = vrot.lane.b32.xlu1 %v4121_v58, %s3074_s14  ;;  %2197 = vst.msk [vmem:[#allocation3 + $0x218] sm:$0xff] %vm493_vm0, %v2161_v59 }
 0x1ce   : > { %v1795_v63 = vpop.permute.xlu0 %1794 }
 0x1cf   : > { %v1578_v4 = vpop.permute.xlu1 %1577  ;;  %v2226_v6 = vld [vmem:[#allocation3 + $0xd0] sm:$0xff] }
 0x1d0   : > { %1672 = vst.msk [vmem:[#allocation3 + $0xe0] sm:$0xff] %vm1657_vm5, %v1578_v4  ;;  %2528 = vmatmul.mubr.f32.gmra.mxu0 %v2226_v6  ;;  %960 = vrot.lane.b32.xlu0 %v1072_v44, %s3070_s19  ;;  %v2249_v44 = vld [vmem:[#allocation3 + $0x188] sm:$0xff] }
 0x1d1   : > { %1889 = vst.msk [vmem:[#allocation3 + $0xe0] sm:$0xff] %vm1874_vm6, %v1795_v63  ;;  %2041 = vrot.lane.b32.xlu1 %v1940_v56, %s3075_s17  ;;  %2981 = vmatprep.mubr.msk.f32.mxu0 %vm493_vm0, %v2229_v8  ;;  %v1077_v56 = vld [vmem:[#allocation2 + $0x127] sm:$0xff] }
 0x1d2   : > { %v1146_v11 = vpop.permute.xlu0 %1145 }
 0x1d3   : > { %v947_v12 = vpop.permute.xlu1 %946  ;;  %1239 = vst.msk [vmem:[#allocation3 + $0xf0] sm:$0xff] %vm1223_vm3, %v1146_v11 }
 0x1d4   : > { %1031 = vst.msk [vmem:[#allocation3 + $0x180] sm:$0xff] %vm1006_vm2, %v947_v12  ;;  %1177 = vrot.lane.b32.xlu0 %v4134_v10, %s3071_s20 }
 0x1d5   : > { %1609 = vrot.lane.b32.xlu1 %v1722_v51, %s3072_s29  ;;  %v2645_v51 = vld [vmem:[%s4498_s4 + $0x10] sm:$0xff] }
 0x1d6   : > { %v2012_v13 = vpop.permute.xlu0 %2011 }
 0x1d7   : > { %v1813_v14 = vpop.permute.xlu1 %1812  ;;  %2106 = vst.msk [vmem:[#allocation3 + $0xe0] sm:$0xff] %vm2091_vm7, %v2012_v13 }
 0x1d8   : > { %1898 = vst.msk [vmem:[#allocation3 + $0x170] sm:$0xff] %vm1874_vm6, %v1813_v14  ;;  %1394 = vrot.lane.b32.xlu0 %v1291_v5, %s3073_s9  ;;  %v1294_v5 = vld [vmem:[#allocation2 + $0x128] sm:$0xff] }
 0x1d9   : > { %1826 = vrot.lane.b32.xlu1 %v4142_v3, %s3074_s14 }
 0x1da   : > { %v1363_v42 = vpop.permute.xlu0 %1362 }
 0x1db   : > { %v1164_v16 = vpop.permute.xlu1 %1163  ;;  %1456 = vst.msk [vmem:[#allocation3 + $0xf0] sm:$0xff] %vm1440_vm4, %v1363_v42  ;;  %v2233_v42 = vld [vmem:[#allocation3 + $0x108] sm:$0xff] }
 0x1dc   : > { %1248 = vst.msk [vmem:[#allocation3 + $0x180] sm:$0xff] %vm1223_vm3, %v1164_v16  ;;  %v2464_v18 = vpop.f32.mrf.mxu0  ;;  %962 = vrot.lane.b32.xlu0 %v1073_v47, %s3070_s19  ;;  %v1943_v47 = vld [vmem:[#allocation2 + $0x12a] sm:$0xff]  ;;  %v1944_v16 = vld [vmem:[#allocation2 + $0x132] sm:$0xff] }
 0x1dd   : > { %v2679_v19 = vmul.f32 %v2643_v15, %v2464_v18  ;;  %2043 = vrot.lane.b32.xlu1 %v1941_v1, %s3075_s17 }
 0x1de   : > { %v2466_v21 = vpop.f32.mrf.mxu0  ;;  %v1580_v23 = vpop.permute.xlu0 %1579  ;;  %v2228_v25 = vld [vmem:[#allocation3 + $0xe0] sm:$0xff] }
 0x1df   : > { %2835 = vst [vmem:[%s4159_s7] sm:$0xff] %v2679_v19  ;;  %v2030_v24 = vpop.permute.xlu1 %2029  ;;  %1673 = vst.msk [vmem:[#allocation3 + $0xf0] sm:$0xff] %vm1657_vm5, %v1580_v23  ;;  %2533 = vmatmul.mubr.f32.gmra.mxu0 %v2228_v25  ;;  %v2757_v20 = vmul.f32 %v2679_v19, %v2679_v19  ;;  %v2647_v21 = vld [vmem:[%s4498_s4 + $0x20] sm:$0xff] }
 0x1e0   : > { %2115 = vst.msk [vmem:[#allocation3 + $0x170] sm:$0xff] %vm2091_vm7, %v2030_v24  ;;  %1179 = vrot.lane.b32.xlu0 %v4164_v22, %s3071_s20  ;;  %2982 = vmatprep.mubr.msk.f32.mxu0 %vm493_vm0, %v2231_v37 }
 0x1e1   : > { %1611 = vrot.lane.b32.xlu1 %v4121_v58, %s3072_s29 }
 0x1e2   : > { %v2469_v39 = vpop.f32.mrf.mxu0  ;;  %v949_v29 = vpop.permute.xlu0 %948 }
 0x1e3   : > { %v2680_v61 = vmul.f32 %v2644_v26, %v2469_v39  ;;  %v1381_v30 = vpop.permute.xlu1 %1380  ;;  %1032 = vst.msk [vmem:[#allocation3 + $0x190] sm:$0xff] %vm1006_vm2, %v949_v29  ;;  %v1728_v39 = vld [vmem:[#allocation2 + $0x139] sm:$0xff] }
 0x1e4   : > { %1465 = vst.msk [vmem:[#allocation3 + $0x180] sm:$0xff] %vm1440_vm4, %v1381_v30  ;;  %v2471_v31 = vpop.f32.mrf.mxu0  ;;  %1396 = vrot.lane.b32.xlu0 %v1292_v27, %s3073_s9 }
 0x1e5   : > { %v2715_v43 = vadd.f32 %v2680_v61, %v2679_v19  ;;  %v2758_v49 = vmul.f32 %v2680_v61, %v2680_v61  ;;  %2836 = vst [vmem:[%s4159_s7 + $0x8] sm:$0xff] %v2680_v61  ;;  %1828 = vrot.lane.b32.xlu1 %v4176_v28, %s3074_s14  ;;  %v2162_v19 = vld [vmem:[#allocation2 + $0x13b] sm:$0xff]  ;;  %v2163_v31 = vld [vmem:[#allocation2 + $0x143] sm:$0xff] }
 0x1e6   : > { %v1815_v34 = vpop.permute.xlu0 %1814  ;;  %2198 = vst.msk [vmem:[#allocation3 + $0x228] sm:$0xff] %vm493_vm0, %v2162_v19  ;;  %2199 = vst.msk [vmem:[#allocation3 + $0x238] sm:$0xff] %vm493_vm0, %v2163_v31 }
 0x1e7   : > { %v2793_v33 = vadd.f32 %v2758_v49, %v2757_v20  ;;  %v1598_v36 = vpop.permute.xlu1 %1597  ;;  %v2246_v38 = vld [vmem:[#allocation3 + $0x170] sm:$0xff]  ;;  %v2648_v20 = vld [vmem:[%s4498_s4 + $0x28] sm:$0xff] }
 0x1e8   : > { %1682 = vst.msk [vmem:[#allocation3 + $0x180] sm:$0xff] %vm1657_vm5, %v1598_v36  ;;  %2578 = vmatmul.mubr.f32.gmra.mxu1 %v2246_v38  ;;  %964 = vrot.lane.b32.xlu0 %v4134_v10, %s3070_s19 }
 0x1e9   : > { %1899 = vst.msk [vmem:[#allocation3 + $0x180] sm:$0xff] %vm1874_vm6, %v1815_v34  ;;  %2045 = vrot.lane.b32.xlu1 %v1942_v32, %s3075_s17  ;;  %2991 = vmatprep.mubr.msk.f32.mxu1 %vm493_vm0, %v2249_v44  ;;  %v1945_v32 = vld [vmem:[#allocation2 + $0x13a] sm:$0xff] }
 0x1ea   : > { %v1166_v2 = vpop.permute.xlu0 %1165 }
 0x1eb   : > { %v1797_v50 = vpop.permute.xlu1 %1796  ;;  %1249 = vst.msk [vmem:[#allocation3 + $0x190] sm:$0xff] %vm1223_vm3, %v1166_v2 }
 0x1ec   : > { %1890 = vst.msk [vmem:[#allocation3 + $0xf0] sm:$0xff] %vm1874_vm6, %v1797_v50  ;;  %1181 = vrot.lane.b32.xlu0 %v4191_v48, %s3071_s20 }
 0x1ed   : > { %1613 = vrot.lane.b32.xlu1 %v4142_v3, %s3072_s29  ;;  %v4226_v3 = vld [vmem:[#allocation2 + $0x131] sm:$0xff] }
 0x1ee   : > { %v2032_v41 = vpop.permute.xlu0 %2031 }
 0x1ef   : > { %v1148_v35 = vpop.permute.xlu1 %1147  ;;  %2116 = vst.msk [vmem:[#allocation3 + $0x180] sm:$0xff] %vm2091_vm7, %v2032_v41  ;;  %v1946_v41 = vld [vmem:[#allocation2 + $0x142] sm:$0xff] }
 0x1f0   : > { %1240 = vst.msk [vmem:[#allocation3 + $0x100] sm:$0xff] %vm1223_vm3, %v1148_v35  ;;  %v2474_v7 = vpop.f32.mrf.mxu0  ;;  %1398 = vrot.lane.b32.xlu0 %v1293_v53, %s3073_s9  ;;  %v2253_v35 = vld [vmem:[#allocation3 + $0x1a8] sm:$0xff] }
 0x1f1   : > { %v2681_v55 = vmul.f32 %v2645_v51, %v2474_v7  ;;  %1830 = vrot.lane.b32.xlu1 %v4203_v52, %s3074_s14 }
 0x1f2   : > { %v2476_v57 = vpop.f32.mrf.mxu0  ;;  %v1383_v58 = vpop.permute.xlu0 %1382 }
 0x1f3   : > { %v2716_v54 = vadd.f32 %v2715_v43, %v2681_v55  ;;  %v2759_v40 = vmul.f32 %v2681_v55, %v2681_v55  ;;  %2837 = vst [vmem:[%s4159_s7 + $0x10] sm:$0xff] %v2681_v55  ;;  %v2014_v46 = vpop.permute.xlu1 %2013  ;;  %1466 = vst.msk [vmem:[#allocation3 + $0x190] sm:$0xff] %vm1440_vm4, %v1383_v58 }
 0x1f4   : > { %2107 = vst.msk [vmem:[#allocation3 + $0xf0] sm:$0xff] %vm2091_vm7, %v2014_v46  ;;  %966 = vrot.lane.b32.xlu0 %v4164_v22, %s3070_s19  ;;  %v1078_v22 = vld [vmem:[#allocation2 + $0x12f] sm:$0xff] }
 0x1f5   : > { %v2794_v0 = vadd.f32 %v2793_v33, %v2759_v40  ;;  %2047 = vrot.lane.b32.xlu1 %v1943_v47, %s3075_s17  ;;  %v1729_v33 = vld [vmem:[#allocation2 + $0x141] sm:$0xff]  ;;  %v2649_v47 = vld [vmem:[%s4498_s4 + $0x30] sm:$0xff] }
 0x1f6   : > { %v2479_v62 = vpop.f32.mrf.mxu0  ;;  %v1600_v4 = vpop.permute.xlu0 %1599  ;;  %v2248_v8 = vld [vmem:[#allocation3 + $0x180] sm:$0xff] }
 0x1f7   : > { %v2682_v63 = vmul.f32 %v2646_v60, %v2479_v62  ;;  %v1365_v6 = vpop.permute.xlu1 %1364  ;;  %1683 = vst.msk [vmem:[#allocation3 + $0x190] sm:$0xff] %vm1657_vm5, %v1600_v4  ;;  %2583 = vmatmul.mubr.f32.gmra.mxu1 %v2248_v8 }
 0x1f8   : > { %1457 = vst.msk [vmem:[#allocation3 + $0x100] sm:$0xff] %vm1440_vm4, %v1365_v6  ;;  %v2481_v10 = vpop.f32.mrf.mxu0  ;;  %1183 = vrot.lane.b32.xlu0 %v1077_v56, %s3071_s20  ;;  %2992 = vmatprep.mubr.msk.f32.mxu1 %vm493_vm0, %v2251_v9 }
 0x1f9   : > { %v2717_v11 = vadd.f32 %v2716_v54, %v2682_v63  ;;  %v2760_v12 = vmul.f32 %v2682_v63, %v2682_v63  ;;  %2838 = vst [vmem:[%s4159_s7 + $0x18] sm:$0xff] %v2682_v63  ;;  %1615 = vrot.lane.b32.xlu1 %v4176_v28, %s3072_s29  ;;  %v1295_v28 = vld [vmem:[#allocation2 + $0x130] sm:$0xff]  ;;  %v2650_v63 = vld [vmem:[%s4498_s4 + $0x38] sm:$0xff] }
 0x1fa   : > { %v1799_v14 = vpop.permute.xlu0 %1798 }
 0x1fb   : > { %v2795_v13 = vadd.f32 %v2794_v0, %v2760_v12  ;;  %v1582_v15 = vpop.permute.xlu1 %1581  ;;  %v2230_v1 = vld [vmem:[#allocation3 + $0xf0] sm:$0xff] }
 0x1fc   : > { %1674 = vst.msk [vmem:[#allocation3 + $0x100] sm:$0xff] %vm1657_vm5, %v1582_v15  ;;  %2538 = vmatmul.mubr.f32.gmra.mxu0 %v2230_v1  ;;  %1400 = vrot.lane.b32.xlu0 %v1294_v5, %s3073_s9  ;;  %v2255_v1 = vld [vmem:[#allocation3 + $0x1b8] sm:$0xff] }
 0x1fd   : > { %1891 = vst.msk [vmem:[#allocation3 + $0x100] sm:$0xff] %vm1874_vm6, %v1799_v14  ;;  %1832 = vrot.lane.b32.xlu1 %v4226_v3, %s3074_s14  ;;  %2983 = vmatprep.mubr.msk.f32.mxu0 %vm493_vm0, %v2233_v42 }
 0x1fe   : > { %v1150_v17 = vpop.permute.xlu0 %1149 }
 0x1ff   : > { %v951_v18 = vpop.permute.xlu1 %950  ;;  %1241 = vst.msk [vmem:[#allocation3 + $0x110] sm:$0xff] %vm1223_vm3, %v1150_v17 }
 0x200   : > { %1033 = vst.msk [vmem:[#allocation3 + $0x1a0] sm:$0xff] %vm1006_vm2, %v951_v18  ;;  %968 = vrot.lane.b32.xlu0 %v4191_v48, %s3070_s19  ;;  %v2651_v18 = vld [vmem:[%s4498_s4 + $0x40] sm:$0xff] }
 0x201   : > { %2049 = vrot.lane.b32.xlu1 %v1944_v16, %s3075_s17 }
 0x202   : > { %v2016_v23 = vpop.permute.xlu0 %2015 }
 0x203   : > { %v1817_v24 = vpop.permute.xlu1 %1816  ;;  %2108 = vst.msk [vmem:[#allocation3 + $0x100] sm:$0xff] %vm2091_vm7, %v2016_v23 }
 0x204   : > { %1900 = vst.msk [vmem:[#allocation3 + $0x190] sm:$0xff] %vm1874_vm6, %v1817_v24  ;;  %v2484_v25 = vpop.f32.mrf.mxu0  ;;  %1185 = vrot.lane.b32.xlu0 %v1078_v22, %s3071_s20  ;;  %s262_s20 = scalar_lea.vmem %s4500_s6, %s2964_s10 }
 0x205   : > { %v2683_v37 = vmul.f32 %v2647_v21, %v2484_v25  ;;  %1617 = vrot.lane.b32.xlu1 %v4203_v52, %s3072_s29 }
 0x206   : > { %v2486_v26 = vpop.f32.mrf.mxu0  ;;  %v1367_v30 = vpop.permute.xlu0 %1366 }
 0x207   : > { %v2718_v27 = vadd.f32 %v2717_v11, %v2683_v37  ;;  %v2761_v61 = vmul.f32 %v2683_v37, %v2683_v37  ;;  %2839 = vst [vmem:[%s4159_s7 + $0x20] sm:$0xff] %v2683_v37  ;;  %v1168_v29 = vpop.permute.xlu1 %1167  ;;  %1458 = vst.msk [vmem:[#allocation3 + $0x110] sm:$0xff] %vm1440_vm4, %v1367_v30 }
 0x208   : > { %1250 = vst.msk [vmem:[#allocation3 + $0x1a0] sm:$0xff] %vm1223_vm3, %v1168_v29  ;;  %1402 = vrot.lane.b32.xlu0 %v1295_v28, %s3073_s9 }
 0x209   : > { %v2796_v43 = vadd.f32 %v2795_v13, %v2761_v61  ;;  %1834 = vrot.lane.b32.xlu1 %v1728_v39, %s3074_s14 }
 0x20a   : > { %v2489_v49 = vpop.f32.mrf.mxu0  ;;  %v1584_v38 = vpop.permute.xlu0 %1583  ;;  %v2232_v44 = vld [vmem:[#allocation3 + $0x100] sm:$0xff] }
 0x20b   : > { %v2684_v34 = vmul.f32 %v2648_v20, %v2489_v49  ;;  %v2034_v36 = vpop.permute.xlu1 %2033  ;;  %1675 = vst.msk [vmem:[#allocation3 + $0x110] sm:$0xff] %vm1657_vm5, %v1584_v38  ;;  %2543 = vmatmul.mubr.f32.gmra.mxu0 %v2232_v44  ;;  %v2259_v44 = vld [vmem:[#allocation3 + $0x1d8] sm:$0xff] }
 0x20c   : > { %2117 = vst.msk [vmem:[#allocation3 + $0x190] sm:$0xff] %vm2091_vm7, %v2034_v36  ;;  %v2491_v48 = vpop.f32.mrf.mxu0  ;;  %1836 = vrot.lane.b32.xlu0 %v1729_v33, %s3074_s14  ;;  %2984 = vmatprep.mubr.msk.f32.mxu0 %vm493_vm0, %v2235_v45  ;;  %v2652_v36 = vld [vmem:[%s4498_s4 + $0x48] sm:$0xff] }
 0x20d   : > { %v2719_v2 = vadd.f32 %v2718_v27, %v2684_v34  ;;  %v2762_v50 = vmul.f32 %v2684_v34, %v2684_v34  ;;  %2840 = vst [vmem:[%s4159_s7 + $0x28] sm:$0xff] %v2684_v34  ;;  %2051 = vrot.lane.b32.xlu1 %v1945_v32, %s3075_s17  ;;  %v2257_v27 = vld [vmem:[#allocation3 + $0x1c8] sm:$0xff] }
 0x20e   : > { %v953_v53 = vpop.permute.xlu0 %952 }
 0x20f   : > { %v2797_v51 = vadd.f32 %v2796_v43, %v2762_v50  ;;  %v1385_v52 = vpop.permute.xlu1 %1384  ;;  %1034 = vst.msk [vmem:[#allocation3 + $0x1b0] sm:$0xff] %vm1006_vm2, %v953_v53  ;;  %v2661_v43 = vld [vmem:[%s4498_s4 + $0x90] sm:$0xff] }
 0x210   : > { %1467 = vst.msk [vmem:[#allocation3 + $0x1a0] sm:$0xff] %vm1440_vm4, %v1385_v52 }
 0x211   : > { %1619 = vrot.lane.b32.xlu1 %v4226_v3, %s3072_s29 }
 0x212   : > { %v1819_v55 = vpop.permute.xlu0 %1818 }
 0x213   : > { %v1602_v7 = vpop.permute.xlu1 %1601  ;;  %v2250_v57 = vld [vmem:[#allocation3 + $0x190] sm:$0xff] }
 0x214   : > { %1684 = vst.msk [vmem:[#allocation3 + $0x1a0] sm:$0xff] %vm1657_vm5, %v1602_v7  ;;  %2588 = vmatmul.mubr.f32.gmra.mxu1 %v2250_v57 }
 0x215   : > { %1901 = vst.msk [vmem:[#allocation3 + $0x1a0] sm:$0xff] %vm1874_vm6, %v1819_v55  ;;  %2053 = vrot.lane.b32.xlu1 %v1946_v41, %s3075_s17  ;;  %2993 = vmatprep.mubr.msk.f32.mxu1 %vm493_vm0, %v2253_v35 }
 0x216   : > { %v2018_v40 = vpop.permute.xlu0 %2017 }
 0x217   : > { %v1801_v54 = vpop.permute.xlu1 %1800 }
 0x218   : > { %1892 = vst.msk [vmem:[#allocation3 + $0x110] sm:$0xff] %vm1874_vm6, %v1801_v54  ;;  %v2494_v58 = vpop.f32.mrf.mxu0  ;;  %v2261_v54 = vld [vmem:[#allocation3 + $0x1e8] sm:$0xff] }
 0x219   : > { %2109 = vst.msk [vmem:[#allocation3 + $0x110] sm:$0xff] %vm2091_vm7, %v2018_v40  ;;  %v2685_v46 = vmul.f32 %v2649_v47, %v2494_v58 }
 0x21a   : > { %v2496_v59 = vpop.f32.mrf.mxu0  ;;  %v1387_v56 = vpop.permute.xlu0 %1386 }
 0x21b   : > { %v2720_v60 = vadd.f32 %v2719_v2, %v2685_v46  ;;  %v2763_v0 = vmul.f32 %v2685_v46, %v2685_v46  ;;  %2841 = vst [vmem:[%s4159_s7 + $0x30] sm:$0xff] %v2685_v46  ;;  %v1170_v62 = vpop.permute.xlu1 %1169  ;;  %v2662_v59 = vld [vmem:[%s4498_s4 + $0x98] sm:$0xff] }
 0x21c   : > { %1251 = vst.msk [vmem:[#allocation3 + $0x1b0] sm:$0xff] %vm1223_vm3, %v1170_v62 }
 0x21d   : > { %v2798_v4 = vadd.f32 %v2797_v51, %v2763_v0  ;;  %1468 = vst.msk [vmem:[#allocation3 + $0x1b0] sm:$0xff] %vm1440_vm4, %v1387_v56 }
 0x21e   : > { %v2499_v6 = vpop.f32.mrf.mxu0  ;;  %v955_v10 = vpop.permute.xlu0 %954 }
 0x21f   : > { %v2686_v8 = vmul.f32 %v2650_v63, %v2499_v6  ;;  %v2036_v9 = vpop.permute.xlu1 %2035  ;;  %1035 = vst.msk [vmem:[#allocation3 + $0x1c0] sm:$0xff] %vm1006_vm2, %v955_v10  ;;  %v2653_v63 = vld [vmem:[%s4498_s4 + $0x50] sm:$0xff] }
 0x220   : > { %2118 = vst.msk [vmem:[#allocation3 + $0x1a0] sm:$0xff] %vm2091_vm7, %v2036_v9  ;;  %v2234_v11 = vld [vmem:[#allocation3 + $0x110] sm:$0xff]  ;;  %v2501_v12 = vpop.f32.mrf.mxu0 }
 0x221   : > { %v2721_v3 = vadd.f32 %v2720_v60, %v2686_v8  ;;  %v2764_v5 = vmul.f32 %v2686_v8, %v2686_v8  ;;  %2842 = vst [vmem:[%s4159_s7 + $0x38] sm:$0xff] %v2686_v8  ;;  %2548 = vmatmul.mubr.f32.gmra.mxu0 %v2234_v11  ;;  %v2263_v12 = vld [vmem:[#allocation3 + $0x1f8] sm:$0xff] }
 0x222   : > { %v1172_v15 = vpop.permute.xlu0 %1171 }
 0x223   : > { %v2799_v13 = vadd.f32 %v2798_v4, %v2764_v5  ;;  %v1604_v14 = vpop.permute.xlu1 %1603  ;;  %1252 = vst.msk [vmem:[#allocation3 + $0x1c0] sm:$0xff] %vm1223_vm3, %v1172_v15 }
 0x224   : > { %1685 = vst.msk [vmem:[#allocation3 + $0x1b0] sm:$0xff] %vm1657_vm5, %v1604_v14 }
 0x226   : > { %v1389_v17 = vpop.permute.xlu0 %1388 }
 0x227   : > { %v1821_v42 = vpop.permute.xlu1 %1820  ;;  %v2252_v16 = vld [vmem:[#allocation3 + $0x1a0] sm:$0xff]  ;;  %1469 = vst.msk [vmem:[#allocation3 + $0x1c0] sm:$0xff] %vm1440_vm4, %v1389_v17 }
 0x228   : > { %1902 = vst.msk [vmem:[#allocation3 + $0x1b0] sm:$0xff] %vm1874_vm6, %v1821_v42  ;;  %2593 = vmatmul.mubr.f32.gmra.mxu1 %v2252_v16 }
 0x229   : > { %2994 = vmatprep.mubr.msk.f32.mxu1 %vm493_vm0, %v2255_v1  ;;  %v2504_v19 = vpop.f32.mrf.mxu0 }
 0x22a   : > { %v2687_v21 = vmul.f32 %v2651_v18, %v2504_v19  ;;  %v957_v23 = vpop.permute.xlu0 %956  ;;  %v2663_v19 = vld [vmem:[%s4498_s4 + $0xa0] sm:$0xff] }
 0x22b   : > { %v2038_v22 = vpop.permute.xlu1 %2037  ;;  %v2506_v24 = vpop.f32.mrf.mxu0  ;;  %1036 = vst.msk [vmem:[#allocation3 + $0x1d0] sm:$0xff] %vm1006_vm2, %v957_v23 }
 0x22c   : > { %2119 = vst.msk [vmem:[#allocation3 + $0x1b0] sm:$0xff] %vm2091_vm7, %v2038_v22  ;;  %v2722_v25 = vadd.f32 %v2721_v3, %v2687_v21  ;;  %v2765_v37 = vmul.f32 %v2687_v21, %v2687_v21  ;;  %2843 = vst [vmem:[%s4159_s7 + $0x40] sm:$0xff] %v2687_v21  ;;  %v2265_v21 = vld [vmem:[#allocation3 + $0x208] sm:$0xff] }
 0x22e   : > { %v2800_v26 = vadd.f32 %v2799_v13, %v2765_v37  ;;  %v1174_v28 = vpop.permute.xlu0 %1173 }
 0x22f   : > { %v1606_v39 = vpop.permute.xlu1 %1605  ;;  %1253 = vst.msk [vmem:[#allocation3 + $0x1d0] sm:$0xff] %vm1223_vm3, %v1174_v28 }
 0x230   : > { %1686 = vst.msk [vmem:[#allocation3 + $0x1c0] sm:$0xff] %vm1657_vm5, %v1606_v39 }
 0x232   : > { %v1391_v30 = vpop.permute.xlu0 %1390 }
 0x233   : > { %v1823_v61 = vpop.permute.xlu1 %1822  ;;  %v2254_v29 = vld [vmem:[#allocation3 + $0x1b0] sm:$0xff]  ;;  %1470 = vst.msk [vmem:[#allocation3 + $0x1d0] sm:$0xff] %vm1440_vm4, %v1391_v30 }
 0x234   : > { %1903 = vst.msk [vmem:[#allocation3 + $0x1c0] sm:$0xff] %vm1874_vm6, %v1823_v61  ;;  %2598 = vmatmul.mubr.f32.gmra.mxu1 %v2254_v29 }
 0x235   : > { %2995 = vmatprep.mubr.msk.f32.mxu1 %vm493_vm0, %v2257_v27 }
 0x236   : > { %v959_v20 = vpop.permute.xlu0 %958 }
 0x237   : > { %v2040_v31 = vpop.permute.xlu1 %2039  ;;  %1037 = vst.msk [vmem:[#allocation3 + $0x1e0] sm:$0xff] %vm1006_vm2, %v959_v20 }
 0x238   : > { %2120 = vst.msk [vmem:[#allocation3 + $0x1c0] sm:$0xff] %vm2091_vm7, %v2040_v31 }
 0x23a   : > { %v1176_v32 = vpop.permute.xlu0 %1175 }
 0x23b   : > { %v1608_v49 = vpop.permute.xlu1 %1607  ;;  %v2554_v33 = vpop.f32.mrf.mxu1  ;;  %1254 = vst.msk [vmem:[#allocation3 + $0x1e0] sm:$0xff] %vm1223_vm3, %v1176_v32 }
 0x23c   : > { %1687 = vst.msk [vmem:[#allocation3 + $0x1d0] sm:$0xff] %vm1657_vm5, %v1608_v49  ;;  %v4309_v34 = vmul.f32 %v2661_v43, %v2554_v33  ;;  %v2267_v33 = vld [vmem:[#allocation3 + $0x218] sm:$0xff] }
 0x23d   : > { %v2556_v38 = vpop.f32.mrf.mxu1 }
 0x23e   : > { %2853 = vst [vmem:[%s4159_s7 + $0x90] sm:$0xff] %v4309_v34  ;;  %v1393_v2 = vpop.permute.xlu0 %1392 }
 0x23f   : > { %v1825_v45 = vpop.permute.xlu1 %1824  ;;  %v2256_v48 = vld [vmem:[#allocation3 + $0x1c0] sm:$0xff]  ;;  %1471 = vst.msk [vmem:[#allocation3 + $0x1e0] sm:$0xff] %vm1440_vm4, %v1393_v2  ;;  %v2664_v2 = vld [vmem:[%s4498_s4 + $0xa8] sm:$0xff] }
 0x240   : > { %1904 = vst.msk [vmem:[#allocation3 + $0x1d0] sm:$0xff] %vm1874_vm6, %v1825_v45  ;;  %v2509_v50 = vpop.f32.mrf.mxu0  ;;  %2603 = vmatmul.mubr.f32.gmra.mxu1 %v2256_v48 }
 0x241   : > { %v2688_v51 = vmul.f32 %v2652_v36, %v2509_v50  ;;  %2996 = vmatprep.mubr.msk.f32.mxu1 %vm493_vm0, %v2259_v44 }
 0x242   : > { %v2511_v52 = vpop.f32.mrf.mxu0  ;;  %v961_v7 = vpop.permute.xlu0 %960 }
 0x243   : > { %v2723_v53 = vadd.f32 %v2722_v25, %v2688_v51  ;;  %v2766_v41 = vmul.f32 %v2688_v51, %v2688_v51  ;;  %2844 = vst [vmem:[%s4159_s7 + $0x48] sm:$0xff] %v2688_v51  ;;  %v2042_v35 = vpop.permute.xlu1 %2041  ;;  %1038 = vst.msk [vmem:[#allocation3 + $0x1f0] sm:$0xff] %vm1006_vm2, %v961_v7  ;;  %v2269_v7 = vld [vmem:[#allocation3 + $0x228] sm:$0xff] }
 0x244   : > { %2121 = vst.msk [vmem:[#allocation3 + $0x1d0] sm:$0xff] %vm2091_vm7, %v2042_v35 }
 0x245   : > { %v2801_v55 = vadd.f32 %v2800_v26, %v2766_v41  ;;  %v2654_v26 = vld [vmem:[%s4498_s4 + $0x58] sm:$0xff]  ;;  %v2655_v41 = vld [vmem:[%s4498_s4 + $0x60] sm:$0xff] }
 0x246   : > { %v1178_v47 = vpop.permute.xlu0 %1177 }
 0x247   : > { %v1610_v57 = vpop.permute.xlu1 %1609  ;;  %1255 = vst.msk [vmem:[#allocation3 + $0x1f0] sm:$0xff] %vm1223_vm3, %v1178_v47 }
 0x248   : > { %1688 = vst.msk [vmem:[#allocation3 + $0x1e0] sm:$0xff] %vm1657_vm5, %v1610_v57 }
 0x24a   : > { %v1395_v46 = vpop.permute.xlu0 %1394 }
 0x24b   : > { %v1827_v40 = vpop.permute.xlu1 %1826  ;;  %v2258_v58 = vld [vmem:[#allocation3 + $0x1d0] sm:$0xff]  ;;  %1472 = vst.msk [vmem:[#allocation3 + $0x1f0] sm:$0xff] %vm1440_vm4, %v1395_v46 }
 0x24c   : > { %1905 = vst.msk [vmem:[#allocation3 + $0x1e0] sm:$0xff] %vm1874_vm6, %v1827_v40  ;;  %2608 = vmatmul.mubr.f32.gmra.mxu1 %v2258_v58 }
 0x24d   : > { %2997 = vmatprep.mubr.msk.f32.mxu1 %vm493_vm0, %v2261_v54 }
 0x24e   : > { %v963_v0 = vpop.permute.xlu0 %962 }
 0x24f   : > { %v2044_v60 = vpop.permute.xlu1 %2043  ;;  %v2559_v62 = vpop.f32.mrf.mxu1  ;;  %1039 = vst.msk [vmem:[#allocation3 + $0x200] sm:$0xff] %vm1006_vm2, %v963_v0 }
 0x250   : > { %2122 = vst.msk [vmem:[#allocation3 + $0x1e0] sm:$0xff] %vm2091_vm7, %v2044_v60  ;;  %v4332_v56 = vmul.f32 %v2662_v59, %v2559_v62 }
 0x251   : > { %v2561_v4 = vpop.f32.mrf.mxu1 }
 0x252   : > { %2854 = vst [vmem:[%s4159_s7 + $0x98] sm:$0xff] %v4332_v56  ;;  %v1180_v8 = vpop.permute.xlu0 %1179  ;;  %v2271_v4 = vld [vmem:[#allocation3 + $0x238] sm:$0xff] }
 0x253   : > { %v1612_v6 = vpop.permute.xlu1 %1611  ;;  %1256 = vst.msk [vmem:[#allocation3 + $0x200] sm:$0xff] %vm1223_vm3, %v1180_v8 }
 0x254   : > { %1689 = vst.msk [vmem:[#allocation3 + $0x1f0] sm:$0xff] %vm1657_vm5, %v1612_v6  ;;  %v2514_v9 = vpop.f32.mrf.mxu0 }
 0x255   : > { %v2689_v10 = vmul.f32 %v2653_v63, %v2514_v9  ;;  %v2665_v9 = vld [vmem:[%s4498_s4 + $0xb0] sm:$0xff] }
 0x256   : > { %v2516_v11 = vpop.f32.mrf.mxu0  ;;  %v1397_v15 = vpop.permute.xlu0 %1396 }
 0x257   : > { %v2724_v3 = vadd.f32 %v2723_v53, %v2689_v10  ;;  %v2767_v5 = vmul.f32 %v2689_v10, %v2689_v10  ;;  %2845 = vst [vmem:[%s4159_s7 + $0x50] sm:$0xff] %v2689_v10  ;;  %v1829_v13 = vpop.permute.xlu1 %1828  ;;  %v2260_v14 = vld [vmem:[#allocation3 + $0x1e0] sm:$0xff]  ;;  %1473 = vst.msk [vmem:[#allocation3 + $0x200] sm:$0xff] %vm1440_vm4, %v1397_v15 }
 0x258   : > { %1906 = vst.msk [vmem:[#allocation3 + $0x1f0] sm:$0xff] %vm1874_vm6, %v1829_v13  ;;  %2613 = vmatmul.mubr.f32.gmra.mxu1 %v2260_v14 }
 0x259   : > { %v2802_v1 = vadd.f32 %v2801_v55, %v2767_v5  ;;  %2998 = vmatprep.mubr.msk.f32.mxu1 %vm493_vm0, %v2263_v12  ;;  %v2656_v12 = vld [vmem:[%s4498_s4 + $0x68] sm:$0xff] }
 0x25a   : > { %v965_v16 = vpop.permute.xlu0 %964 }
 0x25b   : > { %v2046_v42 = vpop.permute.xlu1 %2045  ;;  %1040 = vst.msk [vmem:[#allocation3 + $0x210] sm:$0xff] %vm1006_vm2, %v965_v16 }
 0x25c   : > { %2123 = vst.msk [vmem:[#allocation3 + $0x1f0] sm:$0xff] %vm2091_vm7, %v2046_v42 }
 0x25e   : > { %v1182_v18 = vpop.permute.xlu0 %1181 }
 0x25f   : > { %v1614_v17 = vpop.permute.xlu1 %1613  ;;  %1257 = vst.msk [vmem:[#allocation3 + $0x210] sm:$0xff] %vm1223_vm3, %v1182_v18 }
 0x260   : > { %1690 = vst.msk [vmem:[#allocation3 + $0x200] sm:$0xff] %vm1657_vm5, %v1614_v17  ;;  %v2657_v17 = vld [vmem:[%s4498_s4 + $0x70] sm:$0xff] }
 0x262   : > { %v1399_v24 = vpop.permute.xlu0 %1398 }
 0x263   : > { %v1831_v22 = vpop.permute.xlu1 %1830  ;;  %v2262_v23 = vld [vmem:[#allocation3 + $0x1f0] sm:$0xff]  ;;  %v2564_v25 = vpop.f32.mrf.mxu1  ;;  %1474 = vst.msk [vmem:[#allocation3 + $0x210] sm:$0xff] %vm1440_vm4, %v1399_v24 }
 0x264   : > { %1907 = vst.msk [vmem:[#allocation3 + $0x200] sm:$0xff] %vm1874_vm6, %v1831_v22  ;;  %2618 = vmatmul.mubr.f32.gmra.mxu1 %v2262_v23  ;;  %v4354_v37 = vmul.f32 %v2663_v19, %v2564_v25  ;;  %v2666_v25 = vld [vmem:[%s4498_s4 + $0xb8] sm:$0xff] }
 0x265   : > { %2999 = vmatprep.mubr.msk.f32.mxu1 %vm493_vm0, %v2265_v21  ;;  %v2566_v39 = vpop.f32.mrf.mxu1 }
 0x266   : > { %2855 = vst [vmem:[%s4159_s7 + $0xa0] sm:$0xff] %v4354_v37  ;;  %v967_v27 = vpop.permute.xlu0 %966 }
 0x267   : > { %v2048_v28 = vpop.permute.xlu1 %2047  ;;  %1041 = vst.msk [vmem:[#allocation3 + $0x220] sm:$0xff] %vm1006_vm2, %v967_v27  ;;  %v2667_v27 = vld [vmem:[%s4498_s4 + $0xc0] sm:$0xff] }
 0x268   : > { %2124 = vst.msk [vmem:[#allocation3 + $0x200] sm:$0xff] %vm2091_vm7, %v2048_v28  ;;  %v2519_v61 = vpop.f32.mrf.mxu0 }
 0x269   : > { %v2690_v29 = vmul.f32 %v2654_v26, %v2519_v61 }
 0x26a   : > { %v2521_v30 = vpop.f32.mrf.mxu0  ;;  %v1184_v49 = vpop.permute.xlu0 %1183 }
 0x26b   : > { %v2725_v31 = vadd.f32 %v2724_v3, %v2690_v29  ;;  %v2768_v20 = vmul.f32 %v2690_v29, %v2690_v29  ;;  %2846 = vst [vmem:[%s4159_s7 + $0x58] sm:$0xff] %v2690_v29  ;;  %v1616_v43 = vpop.permute.xlu1 %1615  ;;  %1258 = vst.msk [vmem:[#allocation3 + $0x220] sm:$0xff] %vm1223_vm3, %v1184_v49  ;;  %v2658_v30 = vld [vmem:[%s4498_s4 + $0x78] sm:$0xff] }
 0x26c   : > { %1691 = vst.msk [vmem:[#allocation3 + $0x210] sm:$0xff] %vm1657_vm5, %v1616_v43 }
 0x26d   : > { %v2803_v32 = vadd.f32 %v2802_v1, %v2768_v20 }
 0x26e   : > { %v1401_v44 = vpop.permute.xlu0 %1400 }
 0x26f   : > { %v1833_v36 = vpop.permute.xlu1 %1832  ;;  %v2264_v38 = vld [vmem:[#allocation3 + $0x200] sm:$0xff]  ;;  %1475 = vst.msk [vmem:[#allocation3 + $0x220] sm:$0xff] %vm1440_vm4, %v1401_v44 }
 0x270   : > { %1908 = vst.msk [vmem:[#allocation3 + $0x210] sm:$0xff] %vm1874_vm6, %v1833_v36  ;;  %2623 = vmatmul.mubr.f32.gmra.mxu1 %v2264_v38  ;;  %v2659_v38 = vld [vmem:[%s4498_s4 + $0x80] sm:$0xff] }
 0x271   : > { %3000 = vmatprep.mubr.msk.f32.mxu1 %vm493_vm0, %v2267_v33 }
 0x272   : > { %v969_v48 = vpop.permute.xlu0 %968 }
 0x273   : > { %v2050_v45 = vpop.permute.xlu1 %2049  ;;  %1042 = vst.msk [vmem:[#allocation3 + $0x230] sm:$0xff] %vm1006_vm2, %v969_v48 }
 0x274   : > { %2125 = vst.msk [vmem:[#allocation3 + $0x210] sm:$0xff] %vm2091_vm7, %v2050_v45 }
 0x276   : > { %v1186_v51 = vpop.permute.xlu0 %1185 }
 0x277   : > { %v1618_v50 = vpop.permute.xlu1 %1617  ;;  %v2569_v52 = vpop.f32.mrf.mxu1  ;;  %1259 = vst.msk [vmem:[#allocation3 + $0x230] sm:$0xff] %vm1223_vm3, %v1186_v51 }
 0x278   : > { %1692 = vst.msk [vmem:[#allocation3 + $0x220] sm:$0xff] %vm1657_vm5, %v1618_v50  ;;  %v4377_v53 = vmul.f32 %v2664_v2, %v2569_v52  ;;  %v2668_v52 = vld [vmem:[%s4498_s4 + $0xc8] sm:$0xff] }
 0x279   : > { %v2571_v35 = vpop.f32.mrf.mxu1 }
 0x27a   : > { %2856 = vst [vmem:[%s4159_s7 + $0xa8] sm:$0xff] %v4377_v53  ;;  %v1403_v47 = vpop.permute.xlu0 %1402 }
 0x27b   : > { %v1835_v55 = vpop.permute.xlu1 %1834  ;;  %v2266_v57 = vld [vmem:[#allocation3 + $0x210] sm:$0xff]  ;;  %1476 = vst.msk [vmem:[#allocation3 + $0x230] sm:$0xff] %vm1440_vm4, %v1403_v47 }
 0x27c   : > { %1909 = vst.msk [vmem:[#allocation3 + $0x220] sm:$0xff] %vm1874_vm6, %v1835_v55  ;;  %v2524_v54 = vpop.f32.mrf.mxu0  ;;  %2628 = vmatmul.mubr.f32.gmra.mxu1 %v2266_v57  ;;  %v2660_v55 = vld [vmem:[%s4498_s4 + $0x88] sm:$0xff] }
 0x27d   : > { %v2691_v40 = vmul.f32 %v2655_v41, %v2524_v54  ;;  %3001 = vmatprep.mubr.msk.f32.mxu1 %vm493_vm0, %v2269_v7 }
 0x27e   : > { %v2526_v58 = vpop.f32.mrf.mxu0  ;;  %v1837_v62 = vpop.permute.xlu0 %1836 }
 0x27f   : > { %v2726_v46 = vadd.f32 %v2725_v31, %v2691_v40  ;;  %v2769_v59 = vmul.f32 %v2691_v40, %v2691_v40  ;;  %2847 = vst [vmem:[%s4159_s7 + $0x60] sm:$0xff] %v2691_v40  ;;  %v2052_v60 = vpop.permute.xlu1 %2051 }
 0x280   : > { %2126 = vst.msk [vmem:[#allocation3 + $0x220] sm:$0xff] %vm2091_vm7, %v2052_v60 }
 0x281   : > { %v2804_v0 = vadd.f32 %v2803_v32, %v2769_v59 }
 0x283   : > { %v1620_v63 = vpop.permute.xlu1 %1619 }
 0x284   : > { %1693 = vst.msk [vmem:[#allocation3 + $0x230] sm:$0xff] %vm1657_vm5, %v1620_v63 }
 0x285   : > { %1910 = vst.msk [vmem:[#allocation3 + $0x230] sm:$0xff] %vm1874_vm6, %v1837_v62  ;;  %v2776_v62 = vmul.f32 %v4332_v56, %v4332_v56 }
 0x287   : > { %v2054_v6 = vpop.permute.xlu1 %2053  ;;  %v2268_v8 = vld [vmem:[#allocation3 + $0x220] sm:$0xff] }
 0x288   : > { %2127 = vst.msk [vmem:[#allocation3 + $0x230] sm:$0xff] %vm2091_vm7, %v2054_v6  ;;  %2633 = vmatmul.mubr.f32.gmra.mxu1 %v2268_v8 }
 0x289   : > { %3002 = vmatprep.mubr.msk.f32.mxu1 %vm493_vm0, %v2271_v4 }
 0x28b   : > { %v2574_v10 = vpop.f32.mrf.mxu1 }
 0x28c   : > { %v4396_v11 = vmul.f32 %v2665_v9, %v2574_v10  ;;  %v2777_v9 = vmul.f32 %v4354_v37, %v4354_v37 }
 0x28d   : > { %v2576_v3 = vpop.f32.mrf.mxu1 }
 0x28e   : > { %2857 = vst [vmem:[%s4159_s7 + $0xb0] sm:$0xff] %v4396_v11  ;;  %v2778_v3 = vmul.f32 %v4377_v53, %v4377_v53 }
 0x28f   : > { %v2270_v5 = vld [vmem:[#allocation3 + $0x230] sm:$0xff] }
 0x290   : > { %v2529_v13 = vpop.f32.mrf.mxu0  ;;  %2638 = vmatmul.mubr.f32.gmra.mxu1 %v2270_v5 }
 0x291   : > { %v2692_v14 = vmul.f32 %v2656_v12, %v2529_v13 }
 0x292   : > { %v2531_v15 = vpop.f32.mrf.mxu0 }
 0x293   : > { %v2727_v1 = vadd.f32 %v2726_v46, %v2692_v14  ;;  %v2770_v42 = vmul.f32 %v2692_v14, %v2692_v14  ;;  %2848 = vst [vmem:[%s4159_s7 + $0x68] sm:$0xff] %v2692_v14  ;;  %v2775_v46 = vmul.f32 %v4309_v34, %v4309_v34 }
 0x295   : > { %v2805_v16 = vadd.f32 %v2804_v0, %v2770_v42  ;;  %v2669_v0 = vld [vmem:[%s4498_s4 + $0xd0] sm:$0xff] }
 0x29f   : > { %v2534_v18 = vpop.f32.mrf.mxu0 }
 0x2a0   : > { %v2693_v19 = vmul.f32 %v2657_v17, %v2534_v18 }
 0x2a1   : > { %v2536_v21 = vpop.f32.mrf.mxu0 }
 0x2a2   : > { %v2728_v22 = vadd.f32 %v2727_v1, %v2693_v19  ;;  %v2771_v23 = vmul.f32 %v2693_v19, %v2693_v19  ;;  %2849 = vst [vmem:[%s4159_s7 + $0x70] sm:$0xff] %v2693_v19  ;;  %v2670_v19 = vld [vmem:[%s4498_s4 + $0xd8] sm:$0xff] }
 0x2a4   : > { %v2806_v24 = vadd.f32 %v2805_v16, %v2771_v23 }
 0x2a8   : > { %v2579_v26 = vpop.f32.mrf.mxu1 }
 0x2a9   : > { %v2702_v39 = vmul.f32 %v2666_v25, %v2579_v26 }
 0x2aa   : > { %v2581_v28 = vpop.f32.mrf.mxu1 }
 0x2ab   : > { %2858 = vst [vmem:[%s4159_s7 + $0xb8] sm:$0xff] %v2702_v39  ;;  %v2780_v1 = vmul.f32 %v2702_v39, %v2702_v39 }
 0x2b7   : > { %v2584_v61 = vpop.f32.mrf.mxu1 }
 0x2b8   : > { %v2703_v29 = vmul.f32 %v2667_v27, %v2584_v61 }
 0x2b9   : > { %v2586_v31 = vpop.f32.mrf.mxu1 }
 0x2ba   : > { %2859 = vst [vmem:[%s4159_s7 + $0xc0] sm:$0xff] %v2703_v29 }
 0x2bc   : > { %v2539_v20 = vpop.f32.mrf.mxu0 }
 0x2bd   : > { %v2694_v43 = vmul.f32 %v2658_v30, %v2539_v20  ;;  %v2671_v30 = vld [vmem:[%s4498_s4 + $0xe0] sm:$0xff] }
 0x2be   : > { %v2541_v49 = vpop.f32.mrf.mxu0 }
 0x2bf   : > { %v2729_v32 = vadd.f32 %v2728_v22, %v2694_v43  ;;  %v2772_v33 = vmul.f32 %v2694_v43, %v2694_v43  ;;  %2850 = vst [vmem:[%s4159_s7 + $0x78] sm:$0xff] %v2694_v43 }
 0x2c1   : > { %v2807_v36 = vadd.f32 %v2806_v24, %v2772_v33 }
 0x2cb   : > { %v2544_v44 = vpop.f32.mrf.mxu0 }
 0x2cc   : > { %v2695_v45 = vmul.f32 %v2659_v38, %v2544_v44 }
 0x2cd   : > { %v2546_v48 = vpop.f32.mrf.mxu0 }
 0x2ce   : > { %v2730_v2 = vadd.f32 %v2729_v32, %v2695_v45  ;;  %v2773_v50 = vmul.f32 %v2695_v45, %v2695_v45  ;;  %2851 = vst [vmem:[%s4159_s7 + $0x80] sm:$0xff] %v2695_v45  ;;  %v2673_v48 = vld [vmem:[%s4498_s4 + $0xf0] sm:$0xff] }
 0x2d0   : > { %v2808_v51 = vadd.f32 %v2807_v36, %v2773_v50  ;;  %v2672_v36 = vld [vmem:[%s4498_s4 + $0xe8] sm:$0xff] }
 0x2d4   : > { %v2589_v41 = vpop.f32.mrf.mxu1 }
 0x2d5   : > { %v2704_v35 = vmul.f32 %v2668_v52, %v2589_v41  ;;  %v2674_v52 = vld [vmem:[%s4498_s4 + $0xf8] sm:$0xff] }
 0x2d6   : > { %v2591_v7 = vpop.f32.mrf.mxu1 }
 0x2d7   : > { %2860 = vst [vmem:[%s4159_s7 + $0xc8] sm:$0xff] %v2704_v35  ;;  %v2782_v21 = vmul.f32 %v2704_v35, %v2704_v35 }
 0x2e1   : > { %v2549_v57 = vpop.f32.mrf.mxu0 }
 0x2e2   : > { %v2696_v47 = vmul.f32 %v2660_v55, %v2549_v57  ;;  %v2675_v55 = vld [vmem:[%s4498_s4 + $0x100] sm:$0xff] }
 0x2e3   : > { %v2551_v54 = vpop.f32.mrf.mxu0 }
 0x2e4   : > { %v2731_v40 = vadd.f32 %v2730_v2, %v2696_v47  ;;  %v2774_v58 = vmul.f32 %v2696_v47, %v2696_v47  ;;  %2852 = vst [vmem:[%s4159_s7 + $0x88] sm:$0xff] %v2696_v47 }
 0x2e6   : > { %v2732_v59 = vadd.f32 %v2731_v40, %v4309_v34  ;;  %v2809_v60 = vadd.f32 %v2808_v51, %v2774_v58  ;;  %v2676_v40 = vld [vmem:[%s4498_s4 + $0x108] sm:$0xff] }
 0x2e8   : > { %v2733_v63 = vadd.f32 %v2732_v59, %v4332_v56  ;;  %v2810_v4 = vadd.f32 %v2809_v60, %v2775_v46  ;;  %v2594_v6 = vpop.f32.mrf.mxu1  ;;  %v2779_v56 = vmul.f32 %v4396_v11, %v4396_v11 }
 0x2e9   : > { %v2705_v8 = vmul.f32 %v2669_v0, %v2594_v6  ;;  %v2677_v0 = vld [vmem:[%s4498_s4 + $0x110] sm:$0xff] }
 0x2ea   : > { %v2734_v10 = vadd.f32 %v2733_v63, %v4354_v37  ;;  %v2811_v12 = vadd.f32 %v2810_v4, %v2776_v62  ;;  %v2596_v34 = vpop.f32.mrf.mxu1  ;;  %v2781_v37 = vmul.f32 %v2703_v29, %v2703_v29 }
 0x2eb   : > { %2861 = vst [vmem:[%s4159_s7 + $0xd0] sm:$0xff] %v2705_v8  ;;  %v2783_v26 = vmul.f32 %v2705_v8, %v2705_v8 }
 0x2ec   : > { %v2735_v5 = vadd.f32 %v2734_v10, %v4377_v53  ;;  %v2812_v13 = vadd.f32 %v2811_v12, %v2777_v9 }
 0x2ee   : > { %v2813_v14 = vadd.f32 %v2812_v13, %v2778_v3  ;;  %v2736_v15 = vadd.f32 %v2735_v5, %v4396_v11 }
 0x2f0   : > { %v2737_v42 = vadd.f32 %v2736_v15, %v2702_v39  ;;  %v2814_v16 = vadd.f32 %v2813_v14, %v2779_v56  ;;  %v2678_v15 = vld [vmem:[%s4498_s4 + $0x118] sm:$0xff] }
 0x2f2   : > { %v2738_v17 = vadd.f32 %v2737_v42, %v2703_v29  ;;  %v2815_v18 = vadd.f32 %v2814_v16, %v2780_v1 }
 0x2f4   : > { %v2739_v53 = vadd.f32 %v2738_v17, %v2704_v35  ;;  %v2816_v22 = vadd.f32 %v2815_v18, %v2781_v37  ;;  %v2599_v23 = vpop.f32.mrf.mxu1 }
 0x2f5   : > { %v2706_v24 = vmul.f32 %v2670_v19, %v2599_v23 }
 0x2f6   : > { %v2740_v25 = vadd.f32 %v2739_v53, %v2705_v8  ;;  %v2817_v11 = vadd.f32 %v2816_v22, %v2782_v21  ;;  %v2601_v28 = vpop.f32.mrf.mxu1 }
 0x2f7   : > { %v2784_v39 = vmul.f32 %v2706_v24, %v2706_v24  ;;  %2862 = vst [vmem:[%s4159_s7 + $0xd8] sm:$0xff] %v2706_v24 }
 0x2f8   : > { %v2818_v27 = vadd.f32 %v2817_v11, %v2783_v26  ;;  %v2741_v61 = vadd.f32 %v2740_v25, %v2706_v24 }
 0x2fa   : > { %v2819_v29 = vadd.f32 %v2818_v27, %v2784_v39 }
 0x300   : > { %v2604_v31 = vpop.f32.mrf.mxu1 }
 0x301   : > { %v2707_v20 = vmul.f32 %v2671_v30, %v2604_v31 }
 0x302   : > { %v2606_v43 = vpop.f32.mrf.mxu1 }
 0x303   : > { %v2742_v49 = vadd.f32 %v2741_v61, %v2707_v20  ;;  %v2785_v32 = vmul.f32 %v2707_v20, %v2707_v20  ;;  %2863 = vst [vmem:[%s4159_s7 + $0xe0] sm:$0xff] %v2707_v20 }
 0x305   : > { %v2820_v33 = vadd.f32 %v2819_v29, %v2785_v32 }
 0x30c   : > { %v2609_v38 = vpop.f32.mrf.mxu1 }
 0x30d   : > { %v2708_v44 = vmul.f32 %v2672_v36, %v2609_v38 }
 0x30e   : > { %v2611_v45 = vpop.f32.mrf.mxu1 }
 0x30f   : > { %2864 = vst [vmem:[%s4159_s7 + $0xe8] sm:$0xff] %v2708_v44  ;;  %v2786_v60 = vmul.f32 %v2708_v44, %v2708_v44  ;;  %v2743_v62 = vadd.f32 %v2742_v49, %v2708_v44 }
 0x311   : > { %v2821_v6 = vadd.f32 %v2820_v33, %v2786_v60 }
 0x318   : > { %v2614_v2 = vpop.f32.mrf.mxu1 }
 0x319   : > { %v2709_v50 = vmul.f32 %v2673_v48, %v2614_v2 }
 0x31a   : > { %v2616_v51 = vpop.f32.mrf.mxu1 }
 0x31b   : > { %2865 = vst [vmem:[%s4159_s7 + $0xf0] sm:$0xff] %v2709_v50  ;;  %v2787_v63 = vmul.f32 %v2709_v50, %v2709_v50  ;;  %v2744_v8 = vadd.f32 %v2743_v62, %v2709_v50 }
 0x31d   : > { %v2822_v34 = vadd.f32 %v2821_v6, %v2787_v63 }
 0x324   : > { %v2619_v41 = vpop.f32.mrf.mxu1 }
 0x325   : > { %v2710_v35 = vmul.f32 %v2674_v52, %v2619_v41 }
 0x326   : > { %v2621_v7 = vpop.f32.mrf.mxu1 }
 0x327   : > { %2866 = vst [vmem:[%s4159_s7 + $0xf8] sm:$0xff] %v2710_v35  ;;  %v2788_v9 = vmul.f32 %v2710_v35, %v2710_v35  ;;  %v2745_v3 = vadd.f32 %v2744_v8, %v2710_v35 }
 0x329   : > { %v2823_v13 = vadd.f32 %v2822_v34, %v2788_v9 }
 0x330   : > { %v2624_v57 = vpop.f32.mrf.mxu1 }
 0x331   : > { %v2711_v47 = vmul.f32 %v2675_v55, %v2624_v57 }
 0x332   : > { %v2626_v54 = vpop.f32.mrf.mxu1 }
 0x333   : > { %2867 = vst [vmem:[%s4159_s7 + $0x100] sm:$0xff] %v2711_v47  ;;  %v2789_v5 = vmul.f32 %v2711_v47, %v2711_v47  ;;  %v2746_v56 = vadd.f32 %v2745_v3, %v2711_v47 }
 0x335   : > { %v2824_v1 = vadd.f32 %v2823_v13, %v2789_v5 }
 0x33c   : > { %v2629_v58 = vpop.f32.mrf.mxu1 }
 0x33d   : > { %v2712_v46 = vmul.f32 %v2676_v40, %v2629_v58 }
 0x33e   : > { %v2631_v59 = vpop.f32.mrf.mxu1 }
 0x33f   : > { %2868 = vst [vmem:[%s4159_s7 + $0x108] sm:$0xff] %v2712_v46  ;;  %v2790_v14 = vmul.f32 %v2712_v46, %v2712_v46  ;;  %v2747_v42 = vadd.f32 %v2746_v56, %v2712_v46 }
 0x341   : > { %v2825_v17 = vadd.f32 %v2824_v1, %v2790_v14 }
 0x348   : > { %v2634_v4 = vpop.f32.mrf.mxu1 }
 0x349   : > { %v2713_v10 = vmul.f32 %v2677_v0, %v2634_v4 }
 0x34a   : > { %v2636_v12 = vpop.f32.mrf.mxu1 }
 0x34b   : > { %2869 = vst [vmem:[%s4159_s7 + $0x110] sm:$0xff] %v2713_v10  ;;  %v2791_v16 = vmul.f32 %v2713_v10, %v2713_v10  ;;  %v2748_v18 = vadd.f32 %v2747_v42, %v2713_v10 }
 0x34d   : > { %v2826_v53 = vadd.f32 %v2825_v17, %v2791_v16 }
 0x350   : > { %v2639_v37 = vpop.f32.mrf.mxu1 }
 0x351   : > { %v2714_v19 = vmul.f32 %v2678_v15, %v2639_v37 }
 0x352   : > { %v2641_v21 = vpop.f32.mrf.mxu1 }
 0x353   : > { %v2749_v22 = vadd.f32 %v2748_v18, %v2714_v19  ;;  %v2792_v23 = vmul.f32 %v2714_v19, %v2714_v19  ;;  %2870 = vst [vmem:[%s4159_s7 + $0x118] sm:$0xff] %v2714_v19 }
 0x355   : > { %v2750_v24 = vrot.slane %v2749_v22, 4  ;;  %v2827_v25 = vadd.f32 %v2826_v53, %v2792_v23 }
 0x357   : > { %v2751_v26 = vadd.f32 %v2750_v24, %v2749_v22  ;;  %v2828_v11 = vrot.slane %v2827_v25, 4 }
 0x359   : > { %v2752_v28 = vrot.slane %v2751_v26, 2  ;;  %v2829_v39 = vadd.f32 %v2828_v11, %v2827_v25 }
 0x35b   : > { %v2753_v27 = vadd.f32 %v2752_v28, %v2751_v26  ;;  %v2830_v61 = vrot.slane %v2829_v39, 2 }
 0x35d   : > { %v2754_v29 = vrot.slane %v2753_v27, 1  ;;  %v2831_v30 = vadd.f32 %v2830_v61, %v2829_v39 }
 0x35f   : > { %v2755_v31 = vadd.f32 %v2754_v29, %v2753_v27  ;;  %v2832_v20 = vrot.slane %v2831_v30, 1 }
 0x361   : > { %2756 = vst [vmem:[%s262_s20] sm:$0x1] %v2755_v31  ;;  %v2833_v43 = vadd.f32 %v2832_v20, %v2831_v30 }
 0x363   : > { %2834 = vst [vmem:[%s262_s20 + $0x1] sm:$0x1] %v2833_v43 }
 0x364 PF: > { %s17_s21 = sadd.s32 1, %s3066_s21  }
 0x365   : > { %p14_p4 = scmp.ge.s32.totalorder %s17_s21, 4  }
 0x367   :  { %16 = sbr.rel (!%p14_p4) target bundleno = 1 (0x1), region = 82 }

</bundles_post_ra>
